<compile_context>
chip_gen: v7x
topology: tpu7x:2x2x1
jax: 0.10.0
libtpu: 0.0.40
codegen_flags: <defaults>
</compile_context>

<pallas_src>
import functools

import jax
import jax.numpy as jnp
from jax import lax
from jax.experimental import pallas as pl
from jax.experimental.pallas import tpu as pltpu


# ------------------------------ small helpers -------------------------------

_VMEM_LIMIT = 64 * 1024 * 1024          # fits v7x physical VMEM; plenty on v5e/v6e


def _cparams(*sem):
    return pltpu.CompilerParams(dimension_semantics=sem,
                                vmem_limit_bytes=_VMEM_LIMIT)


def _pick_tile(dim, candidates):
    """Largest candidate that evenly divides `dim`; tiny dims fall back to full."""
    for t in candidates:
        if dim >= t and dim % t == 0:
            return t
    return dim


def _pad_rows(x2d, mult):
    """Pad rows to a multiple of `mult` so the grid always tiles the row axis.
    No copy is emitted when the row count is already divisible."""
    m = x2d.shape[0]
    pad = (-m) % mult
    if pad:
        x2d = jnp.pad(x2d, ((0, pad), (0, 0)))
    return x2d


# --------- Aggregator: fused depthwise(4 groups) + pointwise + BN stats ------

def _aggregator_kernel(x_ref, dw_ref, pw_ref, o_ref, stats_ref, pad_ref, *, H, W):
    PAD = 3
    b = pl.program_id(0)

    # Zero-padded input tile built in VMEM (no host-side jnp.pad HBM round trip).
    pad_ref[...] = jnp.zeros_like(pad_ref)
    pad_ref[PAD:PAD + H, PAD:PAD + W, :] = x_ref[0].astype(jnp.float32)

    dw = dw_ref[...].astype(jnp.float32)            # (7,7,C): true-K taps centered
    C = dw.shape[-1]
    acc = jnp.zeros((H, W, C), jnp.float32)
    # TODO(synk): for production H,W tile over output rows (with a 6-row halo) and
    # use pltpu.roll for the W shift (v5e store-slot pressure / v7x VMEM budget).
    for i in range(7):
        for j in range(7):
            acc = acc + pad_ref[i:i + H, j:j + W, :] * dw[i, j, :]

    # Block-diagonal pointwise conv across all 4 groups as one lane-dense
    # (H*W, C) x (C, C) bf16 matmul with f32 accumulation.
    y = jnp.dot(acc.reshape(H * W, C).astype(jnp.bfloat16), pw_ref[...],
                preferred_element_type=jnp.float32)
    o_ref[0] = y.astype(o_ref.dtype)

    # Fused BatchNorm statistics: per-channel sum / sum-of-squares over all rows,
    # accumulated across the batch grid axis (no separate stats pass over HBM).
    blk = jnp.concatenate([jnp.sum(y, axis=0, keepdims=True),
                           jnp.sum(y * y, axis=0, keepdims=True)], axis=0)

    @pl.when(b == 0)
    def _():
        stats_ref[...] = blk

    @pl.when(b != 0)
    def _():
        stats_ref[...] = stats_ref[...] + blk


def aggregator(x_nhwc, dw_w7, pw_bd_bf16):
    """x_nhwc (B,H,W,C) -> (conv_out (B,H*W,C) f32, stats (2,C) f32 [sum; sumsq])."""
    B, H, W, C = x_nhwc.shape
    kern = functools.partial(_aggregator_kernel, H=H, W=W)
    return pl.pallas_call(
        kern,
        out_shape=(jax.ShapeDtypeStruct((B, H * W, C), jnp.float32),
                   jax.ShapeDtypeStruct((2, C), jnp.float32)),
        grid_spec=pltpu.PrefetchScalarGridSpec(
            num_scalar_prefetch=0, grid=(B,),
            in_specs=[pl.BlockSpec((1, H, W, C), lambda b: (b, 0, 0, 0)),
                      pl.BlockSpec((7, 7, C), lambda b: (0, 0, 0)),
                      pl.BlockSpec((C, C), lambda b: (0, 0))],
            out_specs=(pl.BlockSpec((1, H * W, C), lambda b: (b, 0, 0)),
                       pl.BlockSpec((2, C), lambda b: (0, 0))),
            scratch_shapes=[pltpu.VMEM((H + 6, W + 6, C), jnp.float32)]),
        compiler_params=_cparams("arbitrary"),      # stats accumulate across b
    )(x_nhwc, dw_w7, pw_bd_bf16)


# ---------- fused BN-affine + Hardswish + q/k/v projections (3 outputs) ------

def _bn_act_qkv_kernel(x_ref, s_ref, t_ref, wq_ref, wk_ref, wv_ref,
                       q_ref, k_ref, v_ref, qacc, kacc, vacc):
    kk = pl.program_id(2)

    @pl.when(kk == 0)
    def _():
        qacc[...] = jnp.zeros_like(qacc)
        kacc[...] = jnp.zeros_like(kacc)
        vacc[...] = jnp.zeros_like(vacc)

    # BN affine + Hardswish computed once per tile, reused for all 3 projections.
    y = x_ref[...].astype(jnp.float32) * s_ref[...] + t_ref[...]
    y = y * jnp.clip(y + 3.0, 0.0, 6.0) * (1.0 / 6.0)            # Hardswish
    yb = y.astype(jnp.bfloat16)
    qacc[...] += jnp.dot(yb, wq_ref[...], preferred_element_type=jnp.float32)
    kacc[...] += jnp.dot(yb, wk_ref[...], preferred_element_type=jnp.float32)
    vacc[...] += jnp.dot(yb, wv_ref[...], preferred_element_type=jnp.float32)

    @pl.when(kk == pl.num_programs(2) - 1)
    def _():
        q_ref[...] = qacc[...].astype(q_ref.dtype)
        k_ref[...] = kacc[...].astype(k_ref.dtype)
        v_ref[...] = vacc[...].astype(v_ref.dtype)


def bn_act_qkv(x2d, bn_scale, bn_shift, wq, wk, wv):
    """q, k, v = hardswish(x*scale + shift) @ {wq, wk, wv}  (bf16 MXU, f32 acc)."""
    m0 = x2d.shape[0]
    x2d = _pad_rows(x2d, 128)
    M, K = x2d.shape
    N = wq.shape[1]
    tm = _pick_tile(M, (512, 256, 128))
    tn = _pick_tile(N, (512, 256, 128))
    tk = _pick_tile(K, (512, 256, 128))
    outs = pl.pallas_call(
        _bn_act_qkv_kernel,
        out_shape=tuple(jax.ShapeDtypeStruct((M, N), jnp.float32) for _ in range(3)),
        grid_spec=pltpu.PrefetchScalarGridSpec(
            num_scalar_prefetch=0, grid=(M // tm, N // tn, K // tk),
            in_specs=[pl.BlockSpec((tm, tk), lambda i, j, k: (i, k)),
                      pl.BlockSpec((1, tk), lambda i, j, k: (0, k)),
                      pl.BlockSpec((1, tk), lambda i, j, k: (0, k)),
                      pl.BlockSpec((tk, tn), lambda i, j, k: (k, j)),
                      pl.BlockSpec((tk, tn), lambda i, j, k: (k, j)),
                      pl.BlockSpec((tk, tn), lambda i, j, k: (k, j))],
            out_specs=tuple(pl.BlockSpec((tm, tn), lambda i, j, k: (i, j))
                            for _ in range(3)),
            scratch_shapes=[pltpu.VMEM((tm, tn), jnp.float32)] * 3),
        compiler_params=_cparams("parallel", "parallel", "arbitrary"),
    )(x2d, bn_scale, bn_shift, wq, wk, wv)
    return tuple(o[:m0] if M != m0 else o for o in outs)


# ---------------- fused residual-add + matmul + bias (output proj) -----------

def _add_matmul_bias_kernel(x1_ref, x2_ref, w_ref, b_ref, o_ref, acc_ref):
    kk = pl.program_id(2)

    @pl.when(kk == 0)
    def _():
        acc_ref[...] = jnp.zeros_like(acc_ref)

    y = x1_ref[...].astype(jnp.float32) + x2_ref[...].astype(jnp.float32)
    acc_ref[...] += jnp.dot(y.astype(jnp.bfloat16), w_ref[...],
                            preferred_element_type=jnp.float32)

    @pl.when(kk == pl.num_programs(2) - 1)
    def _():
        o_ref[...] = (acc_ref[...] + b_ref[...]).astype(o_ref.dtype)


def add_matmul_bias(x1, x2, w_bf16, bias2d):
    m0 = x1.shape[0]
    x1 = _pad_rows(x1, 128)
    x2 = _pad_rows(x2, 128)
    M, K = x1.shape
    N = w_bf16.shape[1]
    tm = _pick_tile(M, (512, 256, 128))
    tn = _pick_tile(N, (512, 256, 128))
    tk = _pick_tile(K, (512, 256, 128))
    out = pl.pallas_call(
        _add_matmul_bias_kernel,
        out_shape=jax.ShapeDtypeStruct((M, N), jnp.float32),
        grid_spec=pltpu.PrefetchScalarGridSpec(
            num_scalar_prefetch=0, grid=(M // tm, N // tn, K // tk),
            in_specs=[pl.BlockSpec((tm, tk), lambda i, j, k: (i, k)),
                      pl.BlockSpec((tm, tk), lambda i, j, k: (i, k)),
                      pl.BlockSpec((tk, tn), lambda i, j, k: (k, j)),
                      pl.BlockSpec((1, tn), lambda i, j, k: (0, j))],
            out_specs=pl.BlockSpec((tm, tn), lambda i, j, k: (i, j)),
            scratch_shapes=[pltpu.VMEM((tm, tn), jnp.float32)]),
        compiler_params=_cparams("parallel", "parallel", "arbitrary"),
    )(x1, x2, w_bf16, bias2d)
    return out[:m0] if M != m0 else out


# ---------------------- plain 3x3 depthwise conv (dwc branch) ----------------

def _dwc_kernel(x_ref, w_ref, b_ref, o_ref, pad_ref, *, H, W):
    pad_ref[...] = jnp.zeros_like(pad_ref)
    pad_ref[1:1 + H, 1:1 + W, :] = x_ref[0].astype(jnp.float32)
    wv = w_ref[...].astype(jnp.float32)
    C = wv.shape[-1]
    acc = jnp.zeros((H, W, C), jnp.float32)
    for i in range(3):
        for j in range(3):
            acc = acc + pad_ref[i:i + H, j:j + W, :] * wv[i, j, :]
    acc = acc + b_ref[...]
    o_ref[0] = acc.reshape(H * W, C).astype(o_ref.dtype)


def depthwise3x3(x_nhwc, w_33c, bias_1c):
    B, H, W, C = x_nhwc.shape
    kern = functools.partial(_dwc_kernel, H=H, W=W)
    return pl.pallas_call(
        kern,
        out_shape=jax.ShapeDtypeStruct((B, H * W, C), jnp.float32),
        grid_spec=pltpu.PrefetchScalarGridSpec(
            num_scalar_prefetch=0, grid=(B,),
            in_specs=[pl.BlockSpec((1, H, W, C), lambda b: (b, 0, 0, 0)),
                      pl.BlockSpec((3, 3, C), lambda b: (0, 0, 0)),
                      pl.BlockSpec((1, C), lambda b: (0, 0))],
            out_specs=pl.BlockSpec((1, H * W, C), lambda b: (b, 0, 0)),
            scratch_shapes=[pltpu.VMEM((H + 2, W + 2, C), jnp.float32)]),
        compiler_params=_cparams("parallel"),
    )(x_nhwc, w_33c, bias_1c)


# --------------------------- agent attention core ----------------------------

def _agent_attn_kernel(q_ref, k_ref, v_ref, a_ref, pb_ref, ab_ref, o_ref,
                       *, num_heads, head_dim):
    NH, D = num_heads, head_dim
    n = q_ref.shape[1]

    def to_heads(x2d):                       # (rows, c) -> (heads, rows, d) bf16
        x3 = x2d.astype(jnp.float32).reshape(x2d.shape[0], NH, D)
        return pltpu.einshape("rhd->hrd", x3).astype(jnp.bfloat16)

    qh = to_heads(q_ref[0])                  # (NH, n, D)
    kh = to_heads(k_ref[0])                  # (NH, n, D)
    vh = to_heads(v_ref[0])                  # (NH, n, D)
    ah = to_heads(a_ref[0])                  # (NH, A, D), pre-scaled by `scale`

    # Stage 1: agent_attn = softmax((agent*scale) @ k^T + pos_bias); agent_v = attn @ v
    s1 = jnp.einsum("had,hnd->han", ah, kh,
                    preferred_element_type=jnp.float32) + pb_ref[...]
    e1 = jnp.exp(s1 - jnp.max(s1, axis=-1, keepdims=True))
    p1 = e1 * pl.reciprocal(jnp.sum(e1, axis=-1, keepdims=True), approx=True)
    agent_v = jnp.einsum("han,hnd->had", p1.astype(jnp.bfloat16), vh,
                         preferred_element_type=jnp.float32)

    # Stage 2: q_attn = softmax(q @ (agent*scale)^T + agent_bias); out = q_attn @ agent_v
    s2 = jnp.einsum("hnd,had->hna", qh, ah,
                    preferred_element_type=jnp.float32) + ab_ref[...]
    e2 = jnp.exp(s2 - jnp.max(s2, axis=-1, keepdims=True))
    p2 = e2 * pl.reciprocal(jnp.sum(e2, axis=-1, keepdims=True), approx=True)
    out = jnp.einsum("hna,had->hnd", p2.astype(jnp.bfloat16),
                     agent_v.astype(jnp.bfloat16),
                     preferred_element_type=jnp.float32)

    # Single lane-dense (n, c) store.
    o_ref[0] = pltpu.einshape("hnd->nhd", out).reshape(n, NH * D).astype(o_ref.dtype)


def agent_attention_core(q, k, v, agent_tokens, pbias, abias, num_heads, head_dim):
    # q,k,v: (b,n,c); agent_tokens: (b,A,c) pre-scaled; pbias (h,A,n); abias (h,n,A)
    b, n, c = q.shape
    A = agent_tokens.shape[1]
    kern = functools.partial(_agent_attn_kernel, num_heads=num_heads,
                             head_dim=head_dim)
    # TODO(synk): for production n (e.g. 56*56) tile the q/n axis (compute agent_v
    # once per batch, then grid over (b, n_tiles)) to fit v7x's 64 MiB VMEM and
    # give the pipeline / 2 TensorCores enough grid steps.
    return pl.pallas_call(
        kern,
        out_shape=jax.ShapeDtypeStruct((b, n, c), jnp.float32),
        grid_spec=pltpu.PrefetchScalarGridSpec(
            num_scalar_prefetch=0, grid=(b,),
            in_specs=[pl.BlockSpec((1, n, c), lambda bi: (bi, 0, 0)),
                      pl.BlockSpec((1, n, c), lambda bi: (bi, 0, 0)),
                      pl.BlockSpec((1, n, c), lambda bi: (bi, 0, 0)),
                      pl.BlockSpec((1, A, c), lambda bi: (bi, 0, 0)),
                      pl.BlockSpec((num_heads, A, n), lambda bi: (0, 0, 0)),
                      pl.BlockSpec((num_heads, n, A), lambda bi: (0, 0, 0))],
            out_specs=pl.BlockSpec((1, n, c), lambda bi: (bi, 0, 0))),
        compiler_params=_cparams("parallel"),
    )(q, k, v, agent_tokens, pbias, abias)


# --------------------------- parameters (synthetic) --------------------------

def init_params(key, dim, num_heads, agent_num, H, W):
    assert dim % 4 == 0 and dim % num_heads == 0
    seg = dim // 4
    keys = jax.random.split(key, 24)
    ki = 0

    # One (7,7,dim) depthwise weight: each group's true KxK taps centered in the
    # 7x7 window, other taps zero (free VPU filler under a DMA-bound kernel).
    dw7 = jnp.zeros((7, 7, dim), jnp.float32)
    for g, K in enumerate((1, 3, 5, 7)):
        wg = jax.random.normal(keys[ki], (K, K, seg), jnp.float32) * 0.1
        ki += 1
        off = (7 - K) // 2
        dw7 = dw7.at[off:off + K, off:off + K, g * seg:(g + 1) * seg].set(wg)

    # Block-diagonal pointwise weight stored (in, out), bf16 for the MXU.
    pw = jnp.zeros((dim, dim), jnp.float32)
    for g in range(4):
        wpw = jax.random.normal(keys[ki], (seg, seg), jnp.float32) * 0.1  # torch (out, in)
        ki += 1
        pw = pw.at[g * seg:(g + 1) * seg, g * seg:(g + 1) * seg].set(wpw.T)

    p = {
        "agg_dw_w7": dw7,
        "agg_pw_bd": pw.astype(jnp.bfloat16),
        "agg_bn_gamma": jnp.ones((dim,), jnp.float32),     # BatchNorm default init
        "agg_bn_beta": jnp.zeros((dim,), jnp.float32),
        "q_w_t": (jax.random.normal(keys[ki + 0], (dim, dim), jnp.float32) * 0.1).astype(jnp.bfloat16),
        "k_w_t": (jax.random.normal(keys[ki + 1], (dim, dim), jnp.float32) * 0.1).astype(jnp.bfloat16),
        "v_w_t": (jax.random.normal(keys[ki + 2], (dim, dim), jnp.float32) * 0.1).astype(jnp.bfloat16),
        "proj_w_t": (jax.random.normal(keys[ki + 3], (dim, dim), jnp.float32) * 0.1).astype(jnp.bfloat16),
        "proj_b": jax.random.normal(keys[ki + 4], (dim,), jnp.float32) * 0.1,
        "dwc_w": jax.random.normal(keys[ki + 5], (3, 3, dim), jnp.float32) * 0.1,
        "dwc_b": jax.random.normal(keys[ki + 6], (dim,), jnp.float32) * 0.1,
        # position-bias parameters (trunc_normal std=0.02 ~ normal*0.02 here)
        "an_bias": jax.random.normal(keys[ki + 7], (num_heads, agent_num, 7, 7), jnp.float32) * 0.02,
        "ah_bias": jax.random.normal(keys[ki + 8], (1, num_heads, agent_num, H, 1), jnp.float32) * 0.02,
        "aw_bias": jax.random.normal(keys[ki + 9], (1, num_heads, agent_num, 1, W), jnp.float32) * 0.02,
        "na_bias": jax.random.normal(keys[ki + 10], (num_heads, agent_num, 7, 7), jnp.float32) * 0.02,
        "ha_bias": jax.random.normal(keys[ki + 11], (1, num_heads, H, 1, agent_num), jnp.float32) * 0.02,
        "wa_bias": jax.random.normal(keys[ki + 12], (1, num_heads, 1, W, agent_num), jnp.float32) * 0.02,
    }
    return p


def precompute_biases(params, h, w, num_heads, agent_num):
    """Hoisted out of the forward path (depends only on params and static h, w).
    NOTE: jax.image.resize bilinear ~ torch interpolate(align_corners=False); not
    guaranteed bit-identical at the edges."""
    n = h * w
    pb1 = jax.image.resize(params["an_bias"], (num_heads, agent_num, h, w),
                           method="bilinear", antialias=False)
    pb1 = pb1.reshape(num_heads, agent_num, n)
    pb2 = (params["ah_bias"] + params["aw_bias"]).reshape(num_heads, agent_num, n)
    pbias = pb1 + pb2                                              # (heads, A, n)

    ab1 = jax.image.resize(params["na_bias"], (num_heads, agent_num, h, w),
                           method="bilinear", antialias=False)
    ab1 = ab1.reshape(num_heads, agent_num, n).transpose(0, 2, 1)
    ab2 = (params["ha_bias"] + params["wa_bias"]).reshape(num_heads, n, agent_num)
    abias = ab1 + ab2                                              # (heads, n, A)
    return pbias, abias


# -------------------------------- forward pass -------------------------------

def msgaa_forward(x_nchw, params, pbias, abias, *, num_heads, agent_num):
    b, c, h, w = x_nchw.shape
    n = h * w
    head_dim = c // num_heads
    scale = head_dim ** (-0.5)

    x = jnp.transpose(x_nchw, (0, 2, 3, 1))                        # NHWC

    # Aggregator: 4 groups of depthwise + block-diag pointwise + BN stats, one kernel.
    conv_out, stats = aggregator(x, params["agg_dw_w7"], params["agg_pw_bd"])

    # Training-mode BatchNorm (batch stats, biased variance) folded into a
    # per-channel affine applied inside the qkv projection kernel.
    # NOTE: E[x^2]-E[x]^2 in f32 can cancel for very large activations; the clamp
    # guards it (a Welford pass would be needed for strict PyTorch parity).
    rows = b * n
    mean = stats[0] / rows
    var = jnp.maximum(stats[1] / rows - mean * mean, 0.0)
    invstd = lax.rsqrt(var + 1e-5)
    bn_scale = (params["agg_bn_gamma"] * invstd).reshape(1, c)
    bn_shift = (params["agg_bn_beta"] - mean * params["agg_bn_gamma"] * invstd).reshape(1, c)

    # Fused BN-affine + Hardswish + q/k/v projections (three separate outputs).
    q2d, k2d, v2d = bn_act_qkv(conv_out.reshape(rows, c), bn_scale, bn_shift,
                               params["q_w_t"], params["k_w_t"], params["v_w_t"])

    # Agent tokens = AdaptiveAvgPool2d of q (exact block average; divisibility
    # asserted).  The attention scale is folded in here once: stage 1 uses
    # scale*agent directly, stage 2 uses q @ (scale*agent)^T == scale*(q@agent^T).
    pool = int(round(agent_num ** 0.5))
    assert pool * pool == agent_num and h % pool == 0 and w % pool == 0, \
        "AdaptiveAvgPool2d replacement assumes h, w divisible by sqrt(agent_num)"
    agent_tok = q2d.reshape(b, pool, h // pool, pool, w // pool, c).mean(axis=(2, 4))
    agent_tok = agent_tok.reshape(b, agent_num, c) * scale

    # --------------------------- agent attention -----------------------------
    x_attn = agent_attention_core(q2d.reshape(b, n, c), k2d.reshape(b, n, c),
                                  v2d.reshape(b, n, c), agent_tok, pbias, abias,
                                  num_heads, head_dim)             # (b, n, c)

    # depthwise 3x3 conv on v (the "dwc" residual branch)
    dwc_out = depthwise3x3(v2d.reshape(b, h, w, c), params["dwc_w"],
                           params["dwc_b"].reshape(1, c))          # (b, n, c)

    # output projection with the residual add fused into the matmul
    out = add_matmul_bias(x_attn.reshape(rows, c), dwc_out.reshape(rows, c),
                          params["proj_w_t"], params["proj_b"].reshape(1, c))

    # back to NCHW
    return out.reshape(b, n, c).transpose(0, 2, 1).reshape(b, c, h, w)


# ----------------------------------- main ------------------------------------

if __name__ == "__main__":
    b, dim, h, w = 2, 32, 8, 8          # dim % num_heads == 0, dim % 4 == 0
    num_heads = 4
    agent_num = 16                      # pool_size = 4 divides h, w

    key = jax.random.PRNGKey(0)
    kx, kp = jax.random.split(key)
    x = jax.random.normal(kx, (b, dim, h, w), jnp.float32)
    params = init_params(kp, dim, num_heads, agent_num, h, w)
    pbias, abias = precompute_biases(params, h, w, num_heads, agent_num)

    fwd = jax.jit(functools.partial(msgaa_forward,
                                    num_heads=num_heads, agent_num=agent_num))
    out = jax.block_until_ready(fwd(x, params, pbias, abias))
    assert out.shape == (b, dim, h, w)
    assert bool(jnp.all(jnp.isfinite(out)))
    print("KERNEL_OK")
</pallas_src>

<mosaic_0001>
module attributes {stable_mosaic.version = 11 : i64} {
  func.func @_bn_act_qkv_kernel(%arg0: i32, %arg1: i32, %arg2: i32, %arg3: memref<128x32xf32, #tpu.memory_space<vmem>>, %arg4: memref<1x32xf32, #tpu.memory_space<vmem>>, %arg5: memref<1x32xf32, #tpu.memory_space<vmem>>, %arg6: memref<32x32xbf16, #tpu.memory_space<vmem>>, %arg7: memref<32x32xbf16, #tpu.memory_space<vmem>>, %arg8: memref<32x32xbf16, #tpu.memory_space<vmem>>, %arg9: memref<128x32xf32, #tpu.memory_space<vmem>>, %arg10: memref<128x32xf32, #tpu.memory_space<vmem>>, %arg11: memref<128x32xf32, #tpu.memory_space<vmem>>, %arg12: memref<128x32xf32, #tpu.memory_space<vmem>>, %arg13: memref<128x32xf32, #tpu.memory_space<vmem>>, %arg14: memref<128x32xf32, #tpu.memory_space<vmem>>) attributes {dimension_semantics = [#tpu.dimension_semantics<parallel>, #tpu.dimension_semantics<parallel>, #tpu.dimension_semantics<arbitrary>], iteration_bounds = array<i64: 1, 1, 1>, scalar_prefetch = 0 : i64, scratch_operands = 3 : i64, tpu.core_type = #tpu.core_type<tc>, window_params = [{transform_indices = @transform_0, window_bounds = array<i64: 128, 32>}, {transform_indices = @transform_1, window_bounds = array<i64: 1, 32>}, {transform_indices = @transform_2, window_bounds = array<i64: 1, 32>}, {transform_indices = @transform_3, window_bounds = array<i64: 32, 32>}, {transform_indices = @transform_4, window_bounds = array<i64: 32, 32>}, {transform_indices = @transform_5, window_bounds = array<i64: 32, 32>}, {transform_indices = @transform_6, window_bounds = array<i64: 128, 32>}, {transform_indices = @transform_7, window_bounds = array<i64: 128, 32>}, {transform_indices = @transform_8, window_bounds = array<i64: 128, 32>}]} {
    %c0_i32 = arith.constant 0 : i32
    %0 = arith.cmpi eq, %arg2, %c0_i32 : i32
    %1 = arith.extui %0 : i1 to i32
    %c0_i32_0 = arith.constant 0 : i32
    %2 = arith.cmpi ne, %1, %c0_i32_0 : i32
    scf.if %2 {
      %cst_32 = arith.constant 0.000000e+00 : f32
      %38 = vector.broadcast %cst_32 : f32 to vector<128x32xf32>
      %c0_33 = arith.constant 0 : index
      %c0_34 = arith.constant 0 : index
      %39 = vector.load %arg12[%c0_33, %c0_34] : memref<128x32xf32, #tpu.memory_space<vmem>>, vector<128x32xf32>
      tpu.vector_store %arg12[%c0_33, %c0_34], %38 {strides = array<i32>} : memref<128x32xf32, #tpu.memory_space<vmem>>, vector<128x32xf32>,
      %cst_35 = arith.constant 0.000000e+00 : f32
      %40 = vector.broadcast %cst_35 : f32 to vector<128x32xf32>
      %c0_36 = arith.constant 0 : index
      %c0_37 = arith.constant 0 : index
      %41 = vector.load %arg13[%c0_36, %c0_37] : memref<128x32xf32, #tpu.memory_space<vmem>>, vector<128x32xf32>
      tpu.vector_store %arg13[%c0_36, %c0_37], %40 {strides = array<i32>} : memref<128x32xf32, #tpu.memory_space<vmem>>, vector<128x32xf32>,
      %cst_38 = arith.constant 0.000000e+00 : f32
      %42 = vector.broadcast %cst_38 : f32 to vector<128x32xf32>
      %c0_39 = arith.constant 0 : index
      %c0_40 = arith.constant 0 : index
      %43 = vector.load %arg14[%c0_39, %c0_40] : memref<128x32xf32, #tpu.memory_space<vmem>>, vector<128x32xf32>
      tpu.vector_store %arg14[%c0_39, %c0_40], %42 {strides = array<i32>} : memref<128x32xf32, #tpu.memory_space<vmem>>, vector<128x32xf32>,
    } else {
    }
    %c0 = arith.constant 0 : index
    %c0_1 = arith.constant 0 : index
    %3 = vector.load %arg3[%c0, %c0_1] : memref<128x32xf32, #tpu.memory_space<vmem>>, vector<128x32xf32>
    %c0_2 = arith.constant 0 : index
    %c0_3 = arith.constant 0 : index
    %4 = vector.load %arg4[%c0_2, %c0_3] : memref<1x32xf32, #tpu.memory_space<vmem>>, vector<1x32xf32>
    %5 = vector.broadcast %4 : vector<1x32xf32> to vector<128x32xf32>
    %6 = arith.mulf %3, %5 : vector<128x32xf32>
    %c0_4 = arith.constant 0 : index
    %c0_5 = arith.constant 0 : index
    %7 = vector.load %arg5[%c0_4, %c0_5] : memref<1x32xf32, #tpu.memory_space<vmem>>, vector<1x32xf32>
    %8 = vector.broadcast %7 : vector<1x32xf32> to vector<128x32xf32>
    %9 = arith.addf %6, %8 : vector<128x32xf32>
    %cst = arith.constant 3.000000e+00 : f32
    %10 = vector.broadcast %cst : f32 to vector<128x32xf32>
    %11 = arith.addf %9, %10 : vector<128x32xf32>
    %cst_6 = arith.constant 0.000000e+00 : f32
    %cst_7 = arith.constant 6.000000e+00 : f32
    %12 = vector.broadcast %cst_6 : f32 to vector<128x32xf32>
    %13 = arith.maximumf %12, %11 : vector<128x32xf32>
    %14 = vector.broadcast %cst_7 : f32 to vector<128x32xf32>
    %15 = arith.minimumf %14, %13 : vector<128x32xf32>
    %16 = arith.mulf %9, %15 : vector<128x32xf32>
    %cst_8 = arith.constant 0.166666672 : f32
    %17 = vector.broadcast %cst_8 : f32 to vector<128x32xf32>
    %18 = arith.mulf %16, %17 : vector<128x32xf32>
    %19 = arith.truncf %18 : vector<128x32xf32> to vector<128x32xbf16>
    %c0_9 = arith.constant 0 : index
    %c0_10 = arith.constant 0 : index
    %20 = vector.load %arg12[%c0_9, %c0_10] : memref<128x32xf32, #tpu.memory_space<vmem>>, vector<128x32xf32>
    %c0_11 = arith.constant 0 : index
    %c0_12 = arith.constant 0 : index
    %21 = vector.load %arg6[%c0_11, %c0_12] : memref<32x32xbf16, #tpu.memory_space<vmem>>, vector<32x32xbf16>
    %cst_13 = arith.constant dense<0.000000e+00> : vector<128x32xf32>
    %22 = tpu.matmul %19, %21, %cst_13 {dimension_numbers = #tpu.dot_dimension_numbers<[1], [0], [0], [1], [0, 0, 1, 1], [], []>} : vector<128x32xbf16>, vector<32x32xbf16>, vector<128x32xf32> -> vector<128x32xf32>
    %23 = arith.addf %20, %22 : vector<128x32xf32>
    %c0_14 = arith.constant 0 : index
    %c0_15 = arith.constant 0 : index
    %24 = vector.load %arg12[%c0_14, %c0_15] : memref<128x32xf32, #tpu.memory_space<vmem>>, vector<128x32xf32>
    tpu.vector_store %arg12[%c0_14, %c0_15], %23 {strides = array<i32>} : memref<128x32xf32, #tpu.memory_space<vmem>>, vector<128x32xf32>,
    %c0_16 = arith.constant 0 : index
    %c0_17 = arith.constant 0 : index
    %25 = vector.load %arg13[%c0_16, %c0_17] : memref<128x32xf32, #tpu.memory_space<vmem>>, vector<128x32xf32>
    %c0_18 = arith.constant 0 : index
    %c0_19 = arith.constant 0 : index
    %26 = vector.load %arg7[%c0_18, %c0_19] : memref<32x32xbf16, #tpu.memory_space<vmem>>, vector<32x32xbf16>
    %cst_20 = arith.constant dense<0.000000e+00> : vector<128x32xf32>
    %27 = tpu.matmul %19, %26, %cst_20 {dimension_numbers = #tpu.dot_dimension_numbers<[1], [0], [0], [1], [0, 0, 1, 1], [], []>} : vector<128x32xbf16>, vector<32x32xbf16>, vector<128x32xf32> -> vector<128x32xf32>
    %28 = arith.addf %25, %27 : vector<128x32xf32>
    %c0_21 = arith.constant 0 : index
    %c0_22 = arith.constant 0 : index
    %29 = vector.load %arg13[%c0_21, %c0_22] : memref<128x32xf32, #tpu.memory_space<vmem>>, vector<128x32xf32>
    tpu.vector_store %arg13[%c0_21, %c0_22], %28 {strides = array<i32>} : memref<128x32xf32, #tpu.memory_space<vmem>>, vector<128x32xf32>,
    %c0_23 = arith.constant 0 : index
    %c0_24 = arith.constant 0 : index
    %30 = vector.load %arg14[%c0_23, %c0_24] : memref<128x32xf32, #tpu.memory_space<vmem>>, vector<128x32xf32>
    %c0_25 = arith.constant 0 : index
    %c0_26 = arith.constant 0 : index
    %31 = vector.load %arg8[%c0_25, %c0_26] : memref<32x32xbf16, #tpu.memory_space<vmem>>, vector<32x32xbf16>
    %cst_27 = arith.constant dense<0.000000e+00> : vector<128x32xf32>
    %32 = tpu.matmul %19, %31, %cst_27 {dimension_numbers = #tpu.dot_dimension_numbers<[1], [0], [0], [1], [0, 0, 1, 1], [], []>} : vector<128x32xbf16>, vector<32x32xbf16>, vector<128x32xf32> -> vector<128x32xf32>
    %33 = arith.addf %30, %32 : vector<128x32xf32>
    %c0_28 = arith.constant 0 : index
    %c0_29 = arith.constant 0 : index
    %34 = vector.load %arg14[%c0_28, %c0_29] : memref<128x32xf32, #tpu.memory_space<vmem>>, vector<128x32xf32>
    tpu.vector_store %arg14[%c0_28, %c0_29], %33 {strides = array<i32>} : memref<128x32xf32, #tpu.memory_space<vmem>>, vector<128x32xf32>,
    %c0_i32_30 = arith.constant 0 : i32
    %35 = arith.cmpi eq, %arg2, %c0_i32_30 : i32
    %36 = arith.extui %35 : i1 to i32
    %c0_i32_31 = arith.constant 0 : i32
    %37 = arith.cmpi ne, %36, %c0_i32_31 : i32
    scf.if %37 {
      %c0_32 = arith.constant 0 : index
      %c0_33 = arith.constant 0 : index
      %38 = vector.load %arg12[%c0_32, %c0_33] : memref<128x32xf32, #tpu.memory_space<vmem>>, vector<128x32xf32>
      %c0_34 = arith.constant 0 : index
      %c0_35 = arith.constant 0 : index
      %39 = vector.load %arg9[%c0_34, %c0_35] : memref<128x32xf32, #tpu.memory_space<vmem>>, vector<128x32xf32>
      tpu.vector_store %arg9[%c0_34, %c0_35], %38 {strides = array<i32>} : memref<128x32xf32, #tpu.memory_space<vmem>>, vector<128x32xf32>,
      %c0_36 = arith.constant 0 : index
      %c0_37 = arith.constant 0 : index
      %40 = vector.load %arg13[%c0_36, %c0_37] : memref<128x32xf32, #tpu.memory_space<vmem>>, vector<128x32xf32>
      %c0_38 = arith.constant 0 : index
      %c0_39 = arith.constant 0 : index
      %41 = vector.load %arg10[%c0_38, %c0_39] : memref<128x32xf32, #tpu.memory_space<vmem>>, vector<128x32xf32>
      tpu.vector_store %arg10[%c0_38, %c0_39], %40 {strides = array<i32>} : memref<128x32xf32, #tpu.memory_space<vmem>>, vector<128x32xf32>,
      %c0_40 = arith.constant 0 : index
      %c0_41 = arith.constant 0 : index
      %42 = vector.load %arg14[%c0_40, %c0_41] : memref<128x32xf32, #tpu.memory_space<vmem>>, vector<128x32xf32>
      %c0_42 = arith.constant 0 : index
      %c0_43 = arith.constant 0 : index
      %43 = vector.load %arg11[%c0_42, %c0_43] : memref<128x32xf32, #tpu.memory_space<vmem>>, vector<128x32xf32>
      tpu.vector_store %arg11[%c0_42, %c0_43], %42 {strides = array<i32>} : memref<128x32xf32, #tpu.memory_space<vmem>>, vector<128x32xf32>,
    } else {
    }
    return
  }
  func.func @transform_0(%arg0: i32, %arg1: i32, %arg2: i32) -> (i32, i32) {
    %c0_i32 = arith.constant 0 : i32
    return %arg0, %arg2 : i32, i32
  }
  func.func @transform_1(%arg0: i32, %arg1: i32, %arg2: i32) -> (i32, i32) {
    %c0_i32 = arith.constant 0 : i32
    %c0_i32_0 = arith.constant 0 : i32
    return %c0_i32, %arg2 : i32, i32
  }
  func.func @transform_2(%arg0: i32, %arg1: i32, %arg2: i32) -> (i32, i32) {
    %c0_i32 = arith.constant 0 : i32
    %c0_i32_0 = arith.constant 0 : i32
    return %c0_i32, %arg2 : i32, i32
  }
  func.func @transform_3(%arg0: i32, %arg1: i32, %arg2: i32) -> (i32, i32) {
    %c0_i32 = arith.constant 0 : i32
    return %arg2, %arg1 : i32, i32
  }
  func.func @transform_4(%arg0: i32, %arg1: i32, %arg2: i32) -> (i32, i32) {
    %c0_i32 = arith.constant 0 : i32
    return %arg2, %arg1 : i32, i32
  }
  func.func @transform_5(%arg0: i32, %arg1: i32, %arg2: i32) -> (i32, i32) {
    %c0_i32 = arith.constant 0 : i32
    return %arg2, %arg1 : i32, i32
  }
  func.func @transform_6(%arg0: i32, %arg1: i32, %arg2: i32) -> (i32, i32) {
    %c0_i32 = arith.constant 0 : i32
    return %arg0, %arg1 : i32, i32
  }
  func.func @transform_7(%arg0: i32, %arg1: i32, %arg2: i32) -> (i32, i32) {
    %c0_i32 = arith.constant 0 : i32
    return %arg0, %arg1 : i32, i32
  }
  func.func @transform_8(%arg0: i32, %arg1: i32, %arg2: i32) -> (i32, i32) {
    %c0_i32 = arith.constant 0 : i32
    return %arg0, %arg1 : i32, i32
  }
}

module attributes {stable_mosaic.version = 11 : i64} {
  func.func @_aggregator_kernel(%arg0: i32, %arg1: memref<1x8x8x32xf32, #tpu.memory_space<vmem>>, %arg2: memref<7x7x32xf32, #tpu.memory_space<vmem>>, %arg3: memref<32x32xbf16, #tpu.memory_space<vmem>>, %arg4: memref<1x64x32xf32, #tpu.memory_space<vmem>>, %arg5: memref<2x32xf32, #tpu.memory_space<vmem>>, %arg6: memref<14x14x32xf32, #tpu.memory_space<vmem>>) attributes {dimension_semantics = [#tpu.dimension_semantics<arbitrary>], iteration_bounds = array<i64: 2>, scalar_prefetch = 0 : i64, scratch_operands = 1 : i64, tpu.core_type = #tpu.core_type<tc>, window_params = [{transform_indices = @transform_0, window_bounds = array<i64: 1, 8, 8, 32>}, {pipeline_mode = #tpu.pipeline_mode<synchronous>, transform_indices = @transform_1, window_bounds = array<i64: 7, 7, 32>}, {pipeline_mode = #tpu.pipeline_mode<synchronous>, transform_indices = @transform_2, window_bounds = array<i64: 32, 32>}, {transform_indices = @transform_3, window_bounds = array<i64: 1, 64, 32>}, {pipeline_mode = #tpu.pipeline_mode<synchronous>, transform_indices = @transform_4, window_bounds = array<i64: 2, 32>}]} {
    %cst = arith.constant 0.000000e+00 : f32
    %0 = vector.broadcast %cst : f32 to vector<14x14x32xf32>
    %c0 = arith.constant 0 : index
    %c0_0 = arith.constant 0 : index
    %c0_1 = arith.constant 0 : index
    %1 = vector.load %arg6[%c0, %c0_0, %c0_1] : memref<14x14x32xf32, #tpu.memory_space<vmem>>, vector<14x14x32xf32>
    tpu.vector_store %arg6[%c0, %c0_0, %c0_1], %0 {strides = array<i32>} : memref<14x14x32xf32, #tpu.memory_space<vmem>>, vector<14x14x32xf32>,
    %c0_2 = arith.constant 0 : index
    %c0_3 = arith.constant 0 : index
    %c0_4 = arith.constant 0 : index
    %c0_5 = arith.constant 0 : index
    %2 = vector.load %arg1[%c0_2, %c0_3, %c0_4, %c0_5] : memref<1x8x8x32xf32, #tpu.memory_space<vmem>>, vector<1x8x8x32xf32>
    %3 = vector.shape_cast %2 : vector<1x8x8x32xf32> to vector<8x8x32xf32>
    %c3 = arith.constant 3 : index
    %c3_6 = arith.constant 3 : index
    %c0_7 = arith.constant 0 : index
    %4 = vector.load %arg6[%c3, %c3_6, %c0_7] : memref<14x14x32xf32, #tpu.memory_space<vmem>>, vector<8x8x32xf32>
    tpu.vector_store %arg6[%c3, %c3_6, %c0_7], %3 {strides = array<i32>} : memref<14x14x32xf32, #tpu.memory_space<vmem>>, vector<8x8x32xf32>,
    %c0_8 = arith.constant 0 : index
    %c0_9 = arith.constant 0 : index
    %c0_10 = arith.constant 0 : index
    %5 = vector.load %arg2[%c0_8, %c0_9, %c0_10] : memref<7x7x32xf32, #tpu.memory_space<vmem>>, vector<7x7x32xf32>
    %cst_11 = arith.constant 0.000000e+00 : f32
    %6 = vector.broadcast %cst_11 : f32 to vector<8x8x32xf32>
    %c0_12 = arith.constant 0 : index
    %c0_13 = arith.constant 0 : index
    %c0_14 = arith.constant 0 : index
    %7 = vector.load %arg6[%c0_12, %c0_13, %c0_14] : memref<14x14x32xf32, #tpu.memory_space<vmem>>, vector<8x8x32xf32>
    %8 = vector.extract_strided_slice %5 {offsets = [0, 0, 0], sizes = [1, 1, 32], strides = [1, 1, 1]} : vector<7x7x32xf32> to vector<1x1x32xf32>
    %9 = vector.shape_cast %8 : vector<1x1x32xf32> to vector<32xf32>
    %10 = vector.shape_cast %9 : vector<32xf32> to vector<1x1x32xf32>
    %11 = vector.broadcast %10 : vector<1x1x32xf32> to vector<8x8x32xf32>
    %12 = arith.mulf %7, %11 : vector<8x8x32xf32>
    %13 = arith.addf %6, %12 : vector<8x8x32xf32>
    %c0_15 = arith.constant 0 : index
    %c1 = arith.constant 1 : index
    %c0_16 = arith.constant 0 : index
    %14 = vector.load %arg6[%c0_15, %c1, %c0_16] : memref<14x14x32xf32, #tpu.memory_space<vmem>>, vector<8x8x32xf32>
    %15 = vector.extract_strided_slice %5 {offsets = [0, 1, 0], sizes = [1, 1, 32], strides = [1, 1, 1]} : vector<7x7x32xf32> to vector<1x1x32xf32>
    %16 = vector.shape_cast %15 : vector<1x1x32xf32> to vector<32xf32>
    %17 = vector.shape_cast %16 : vector<32xf32> to vector<1x1x32xf32>
    %18 = vector.broadcast %17 : vector<1x1x32xf32> to vector<8x8x32xf32>
    %19 = arith.mulf %14, %18 : vector<8x8x32xf32>
    %20 = arith.addf %13, %19 : vector<8x8x32xf32>
    %c0_17 = arith.constant 0 : index
    %c2 = arith.constant 2 : index
    %c0_18 = arith.constant 0 : index
    %21 = vector.load %arg6[%c0_17, %c2, %c0_18] : memref<14x14x32xf32, #tpu.memory_space<vmem>>, vector<8x8x32xf32>
    %22 = vector.extract_strided_slice %5 {offsets = [0, 2, 0], sizes = [1, 1, 32], strides = [1, 1, 1]} : vector<7x7x32xf32> to vector<1x1x32xf32>
    %23 = vector.shape_cast %22 : vector<1x1x32xf32> to vector<32xf32>
    %24 = vector.shape_cast %23 : vector<32xf32> to vector<1x1x32xf32>
    %25 = vector.broadcast %24 : vector<1x1x32xf32> to vector<8x8x32xf32>
    %26 = arith.mulf %21, %25 : vector<8x8x32xf32>
    %27 = arith.addf %20, %26 : vector<8x8x32xf32>
    %c0_19 = arith.constant 0 : index
    %c3_20 = arith.constant 3 : index
    %c0_21 = arith.constant 0 : index
    %28 = vector.load %arg6[%c0_19, %c3_20, %c0_21] : memref<14x14x32xf32, #tpu.memory_space<vmem>>, vector<8x8x32xf32>
    %29 = vector.extract_strided_slice %5 {offsets = [0, 3, 0], sizes = [1, 1, 32], strides = [1, 1, 1]} : vector<7x7x32xf32> to vector<1x1x32xf32>
    %30 = vector.shape_cast %29 : vector<1x1x32xf32> to vector<32xf32>
    %31 = vector.shape_cast %30 : vector<32xf32> to vector<1x1x32xf32>
    %32 = vector.broadcast %31 : vector<1x1x32xf32> to vector<8x8x32xf32>
    %33 = arith.mulf %28, %32 : vector<8x8x32xf32>
    %34 = arith.addf %27, %33 : vector<8x8x32xf32>
    %c0_22 = arith.constant 0 : index
    %c4 = arith.constant 4 : index
    %c0_23 = arith.constant 0 : index
    %35 = vector.load %arg6[%c0_22, %c4, %c0_23] : memref<14x14x32xf32, #tpu.memory_space<vmem>>, vector<8x8x32xf32>
    %36 = vector.extract_strided_slice %5 {offsets = [0, 4, 0], sizes = [1, 1, 32], strides = [1, 1, 1]} : vector<7x7x32xf32> to vector<1x1x32xf32>
    %37 = vector.shape_cast %36 : vector<1x1x32xf32> to vector<32xf32>
    %38 = vector.shape_cast %37 : vector<32xf32> to vector<1x1x32xf32>
    %39 = vector.broadcast %38 : vector<1x1x32xf32> to vector<8x8x32xf32>
    %40 = arith.mulf %35, %39 : vector<8x8x32xf32>
    %41 = arith.addf %34, %40 : vector<8x8x32xf32>
    %c0_24 = arith.constant 0 : index
    %c5 = arith.constant 5 : index
    %c0_25 = arith.constant 0 : index
    %42 = vector.load %arg6[%c0_24, %c5, %c0_25] : memref<14x14x32xf32, #tpu.memory_space<vmem>>, vector<8x8x32xf32>
    %43 = vector.extract_strided_slice %5 {offsets = [0, 5, 0], sizes = [1, 1, 32], strides = [1, 1, 1]} : vector<7x7x32xf32> to vector<1x1x32xf32>
    %44 = vector.shape_cast %43 : vector<1x1x32xf32> to vector<32xf32>
    %45 = vector.shape_cast %44 : vector<32xf32> to vector<1x1x32xf32>
    %46 = vector.broadcast %45 : vector<1x1x32xf32> to vector<8x8x32xf32>
    %47 = arith.mulf %42, %46 : vector<8x8x32xf32>
    %48 = arith.addf %41, %47 : vector<8x8x32xf32>
    %c0_26 = arith.constant 0 : index
    %c6 = arith.constant 6 : index
    %c0_27 = arith.constant 0 : index
    %49 = vector.load %arg6[%c0_26, %c6, %c0_27] : memref<14x14x32xf32, #tpu.memory_space<vmem>>, vector<8x8x32xf32>
    %50 = vector.extract_strided_slice %5 {offsets = [0, 6, 0], sizes = [1, 1, 32], strides = [1, 1, 1]} : vector<7x7x32xf32> to vector<1x1x32xf32>
    %51 = vector.shape_cast %50 : vector<1x1x32xf32> to vector<32xf32>
    %52 = vector.shape_cast %51 : vector<32xf32> to vector<1x1x32xf32>
    %53 = vector.broadcast %52 : vector<1x1x32xf32> to vector<8x8x32xf32>
    %54 = arith.mulf %49, %53 : vector<8x8x32xf32>
    %55 = arith.addf %48, %54 : vector<8x8x32xf32>
    %c1_28 = arith.constant 1 : index
    %c0_29 = arith.constant 0 : index
    %c0_30 = arith.constant 0 : index
    %56 = vector.load %arg6[%c1_28, %c0_29, %c0_30] : memref<14x14x32xf32, #tpu.memory_space<vmem>>, vector<8x8x32xf32>
    %57 = vector.extract_strided_slice %5 {offsets = [1, 0, 0], sizes = [1, 1, 32], strides = [1, 1, 1]} : vector<7x7x32xf32> to vector<1x1x32xf32>
    %58 = vector.shape_cast %57 : vector<1x1x32xf32> to vector<32xf32>
    %59 = vector.shape_cast %58 : vector<32xf32> to vector<1x1x32xf32>
    %60 = vector.broadcast %59 : vector<1x1x32xf32> to vector<8x8x32xf32>
    %61 = arith.mulf %56, %60 : vector<8x8x32xf32>
    %62 = arith.addf %55, %61 : vector<8x8x32xf32>
    %c1_31 = arith.constant 1 : index
    %c1_32 = arith.constant 1 : index
    %c0_33 = arith.constant 0 : index
    %63 = vector.load %arg6[%c1_31, %c1_32, %c0_33] : memref<14x14x32xf32, #tpu.memory_space<vmem>>, vector<8x8x32xf32>
    %64 = vector.extract_strided_slice %5 {offsets = [1, 1, 0], sizes = [1, 1, 32], strides = [1, 1, 1]} : vector<7x7x32xf32> to vector<1x1x32xf32>
    %65 = vector.shape_cast %64 : vector<1x1x32xf32> to vector<32xf32>
    %66 = vector.shape_cast %65 : vector<32xf32> to vector<1x1x32xf32>
    %67 = vector.broadcast %66 : vector<1x1x32xf32> to vector<8x8x32xf32>
    %68 = arith.mulf %63, %67 : vector<8x8x32xf32>
    %69 = arith.addf %62, %68 : vector<8x8x32xf32>
    %c1_34 = arith.constant 1 : index
    %c2_35 = arith.constant 2 : index
    %c0_36 = arith.constant 0 : index
    %70 = vector.load %arg6[%c1_34, %c2_35, %c0_36] : memref<14x14x32xf32, #tpu.memory_space<vmem>>, vector<8x8x32xf32>
    %71 = vector.extract_strided_slice %5 {offsets = [1, 2, 0], sizes = [1, 1, 32], strides = [1, 1, 1]} : vector<7x7x32xf32> to vector<1x1x32xf32>
    %72 = vector.shape_cast %71 : vector<1x1x32xf32> to vector<32xf32>
    %73 = vector.shape_cast %72 : vector<32xf32> to vector<1x1x32xf32>
    %74 = vector.broadcast %73 : vector<1x1x32xf32> to vector<8x8x32xf32>
    %75 = arith.mulf %70, %74 : vector<8x8x32xf32>
    %76 = arith.addf %69, %75 : vector<8x8x32xf32>
    %c1_37 = arith.constant 1 : index
    %c3_38 = arith.constant 3 : index
    %c0_39 = arith.constant 0 : index
    %77 = vector.load %arg6[%c1_37, %c3_38, %c0_39] : memref<14x14x32xf32, #tpu.memory_space<vmem>>, vector<8x8x32xf32>
    %78 = vector.extract_strided_slice %5 {offsets = [1, 3, 0], sizes = [1, 1, 32], strides = [1, 1, 1]} : vector<7x7x32xf32> to vector<1x1x32xf32>
    %79 = vector.shape_cast %78 : vector<1x1x32xf32> to vector<32xf32>
    %80 = vector.shape_cast %79 : vector<32xf32> to vector<1x1x32xf32>
    %81 = vector.broadcast %80 : vector<1x1x32xf32> to vector<8x8x32xf32>
    %82 = arith.mulf %77, %81 : vector<8x8x32xf32>
    %83 = arith.addf %76, %82 : vector<8x8x32xf32>
    %c1_40 = arith.constant 1 : index
    %c4_41 = arith.constant 4 : index
    %c0_42 = arith.constant 0 : index
    %84 = vector.load %arg6[%c1_40, %c4_41, %c0_42] : memref<14x14x32xf32, #tpu.memory_space<vmem>>, vector<8x8x32xf32>
    %85 = vector.extract_strided_slice %5 {offsets = [1, 4, 0], sizes = [1, 1, 32], strides = [1, 1, 1]} : vector<7x7x32xf32> to vector<1x1x32xf32>
    %86 = vector.shape_cast %85 : vector<1x1x32xf32> to vector<32xf32>
    %87 = vector.shape_cast %86 : vector<32xf32> to vector<1x1x32xf32>
    %88 = vector.broadcast %87 : vector<1x1x32xf32> to vector<8x8x32xf32>
    %89 = arith.mulf %84, %88 : vector<8x8x32xf32>
    %90 = arith.addf %83, %89 : vector<8x8x32xf32>
    %c1_43 = arith.constant 1 : index
    %c5_44 = arith.constant 5 : index
    %c0_45 = arith.constant 0 : index
    %91 = vector.load %arg6[%c1_43, %c5_44, %c0_45] : memref<14x14x32xf32, #tpu.memory_space<vmem>>, vector<8x8x32xf32>
    %92 = vector.extract_strided_slice %5 {offsets = [1, 5, 0], sizes = [1, 1, 32], strides = [1, 1, 1]} : vector<7x7x32xf32> to vector<1x1x32xf32>
    %93 = vector.shape_cast %92 : vector<1x1x32xf32> to vector<32xf32>
    %94 = vector.shape_cast %93 : vector<32xf32> to vector<1x1x32xf32>
    %95 = vector.broadcast %94 : vector<1x1x32xf32> to vector<8x8x32xf32>
    %96 = arith.mulf %91, %95 : vector<8x8x32xf32>
    %97 = arith.addf %90, %96 : vector<8x8x32xf32>
    %c1_46 = arith.constant 1 : index
    %c6_47 = arith.constant 6 : index
    %c0_48 = arith.constant 0 : index
    %98 = vector.load %arg6[%c1_46, %c6_47, %c0_48] : memref<14x14x32xf32, #tpu.memory_space<vmem>>, vector<8x8x32xf32>
    %99 = vector.extract_strided_slice %5 {offsets = [1, 6, 0], sizes = [1, 1, 32], strides = [1, 1, 1]} : vector<7x7x32xf32> to vector<1x1x32xf32>
    %100 = vector.shape_cast %99 : vector<1x1x32xf32> to vector<32xf32>
    %101 = vector.shape_cast %100 : vector<32xf32> to vector<1x1x32xf32>
    %102 = vector.broadcast %101 : vector<1x1x32xf32> to vector<8x8x32xf32>
    %103 = arith.mulf %98, %102 : vector<8x8x32xf32>
    %104 = arith.addf %97, %103 : vector<8x8x32xf32>
    %c2_49 = arith.constant 2 : index
    %c0_50 = arith.constant 0 : index
    %c0_51 = arith.constant 0 : index
    %105 = vector.load %arg6[%c2_49, %c0_50, %c0_51] : memref<14x14x32xf32, #tpu.memory_space<vmem>>, vector<8x8x32xf32>
    %106 = vector.extract_strided_slice %5 {offsets = [2, 0, 0], sizes = [1, 1, 32], strides = [1, 1, 1]} : vector<7x7x32xf32> to vector<1x1x32xf32>
    %107 = vector.shape_cast %106 : vector<1x1x32xf32> to vector<32xf32>
    %108 = vector.shape_cast %107 : vector<32xf32> to vector<1x1x32xf32>
    %109 = vector.broadcast %108 : vector<1x1x32xf32> to vector<8x8x32xf32>
    %110 = arith.mulf %105, %109 : vector<8x8x32xf32>
    %111 = arith.addf %104, %110 : vector<8x8x32xf32>
    %c2_52 = arith.constant 2 : index
    %c1_53 = arith.constant 1 : index
    %c0_54 = arith.constant 0 : index
    %112 = vector.load %arg6[%c2_52, %c1_53, %c0_54] : memref<14x14x32xf32, #tpu.memory_space<vmem>>, vector<8x8x32xf32>
    %113 = vector.extract_strided_slice %5 {offsets = [2, 1, 0], sizes = [1, 1, 32], strides = [1, 1, 1]} : vector<7x7x32xf32> to vector<1x1x32xf32>
    %114 = vector.shape_cast %113 : vector<1x1x32xf32> to vector<32xf32>
    %115 = vector.shape_cast %114 : vector<32xf32> to vector<1x1x32xf32>
    %116 = vector.broadcast %115 : vector<1x1x32xf32> to vector<8x8x32xf32>
    %117 = arith.mulf %112, %116 : vector<8x8x32xf32>
    %118 = arith.addf %111, %117 : vector<8x8x32xf32>
    %c2_55 = arith.constant 2 : index
    %c2_56 = arith.constant 2 : index
    %c0_57 = arith.constant 0 : index
    %119 = vector.load %arg6[%c2_55, %c2_56, %c0_57] : memref<14x14x32xf32, #tpu.memory_space<vmem>>, vector<8x8x32xf32>
    %120 = vector.extract_strided_slice %5 {offsets = [2, 2, 0], sizes = [1, 1, 32], strides = [1, 1, 1]} : vector<7x7x32xf32> to vector<1x1x32xf32>
    %121 = vector.shape_cast %120 : vector<1x1x32xf32> to vector<32xf32>
    %122 = vector.shape_cast %121 : vector<32xf32> to vector<1x1x32xf32>
    %123 = vector.broadcast %122 : vector<1x1x32xf32> to vector<8x8x32xf32>
    %124 = arith.mulf %119, %123 : vector<8x8x32xf32>
    %125 = arith.addf %118, %124 : vector<8x8x32xf32>
    %c2_58 = arith.constant 2 : index
    %c3_59 = arith.constant 3 : index
    %c0_60 = arith.constant 0 : index
    %126 = vector.load %arg6[%c2_58, %c3_59, %c0_60] : memref<14x14x32xf32, #tpu.memory_space<vmem>>, vector<8x8x32xf32>
    %127 = vector.extract_strided_slice %5 {offsets = [2, 3, 0], sizes = [1, 1, 32], strides = [1, 1, 1]} : vector<7x7x32xf32> to vector<1x1x32xf32>
    %128 = vector.shape_cast %127 : vector<1x1x32xf32> to vector<32xf32>
    %129 = vector.shape_cast %128 : vector<32xf32> to vector<1x1x32xf32>
    %130 = vector.broadcast %129 : vector<1x1x32xf32> to vector<8x8x32xf32>
    %131 = arith.mulf %126, %130 : vector<8x8x32xf32>
    %132 = arith.addf %125, %131 : vector<8x8x32xf32>
    %c2_61 = arith.constant 2 : index
    %c4_62 = arith.constant 4 : index
    %c0_63 = arith.constant 0 : index
    %133 = vector.load %arg6[%c2_61, %c4_62, %c0_63] : memref<14x14x32xf32, #tpu.memory_space<vmem>>, vector<8x8x32xf32>
    %134 = vector.extract_strided_slice %5 {offsets = [2, 4, 0], sizes = [1, 1, 32], strides = [1, 1, 1]} : vector<7x7x32xf32> to vector<1x1x32xf32>
    %135 = vector.shape_cast %134 : vector<1x1x32xf32> to vector<32xf32>
    %136 = vector.shape_cast %135 : vector<32xf32> to vector<1x1x32xf32>
    %137 = vector.broadcast %136 : vector<1x1x32xf32> to vector<8x8x32xf32>
    %138 = arith.mulf %133, %137 : vector<8x8x32xf32>
    %139 = arith.addf %132, %138 : vector<8x8x32xf32>
    %c2_64 = arith.constant 2 : index
    %c5_65 = arith.constant 5 : index
    %c0_66 = arith.constant 0 : index
    %140 = vector.load %arg6[%c2_64, %c5_65, %c0_66] : memref<14x14x32xf32, #tpu.memory_space<vmem>>, vector<8x8x32xf32>
    %141 = vector.extract_strided_slice %5 {offsets = [2, 5, 0], sizes = [1, 1, 32], strides = [1, 1, 1]} : vector<7x7x32xf32> to vector<1x1x32xf32>
    %142 = vector.shape_cast %141 : vector<1x1x32xf32> to vector<32xf32>
    %143 = vector.shape_cast %142 : vector<32xf32> to vector<1x1x32xf32>
    %144 = vector.broadcast %143 : vector<1x1x32xf32> to vector<8x8x32xf32>
    %145 = arith.mulf %140, %144 : vector<8x8x32xf32>
    %146 = arith.addf %139, %145 : vector<8x8x32xf32>
    %c2_67 = arith.constant 2 : index
    %c6_68 = arith.constant 6 : index
    %c0_69 = arith.constant 0 : index
    %147 = vector.load %arg6[%c2_67, %c6_68, %c0_69] : memref<14x14x32xf32, #tpu.memory_space<vmem>>, vector<8x8x32xf32>
    %148 = vector.extract_strided_slice %5 {offsets = [2, 6, 0], sizes = [1, 1, 32], strides = [1, 1, 1]} : vector<7x7x32xf32> to vector<1x1x32xf32>
    %149 = vector.shape_cast %148 : vector<1x1x32xf32> to vector<32xf32>
    %150 = vector.shape_cast %149 : vector<32xf32> to vector<1x1x32xf32>
    %151 = vector.broadcast %150 : vector<1x1x32xf32> to vector<8x8x32xf32>
    %152 = arith.mulf %147, %151 : vector<8x8x32xf32>
    %153 = arith.addf %146, %152 : vector<8x8x32xf32>
    %c3_70 = arith.constant 3 : index
    %c0_71 = arith.constant 0 : index
    %c0_72 = arith.constant 0 : index
    %154 = vector.load %arg6[%c3_70, %c0_71, %c0_72] : memref<14x14x32xf32, #tpu.memory_space<vmem>>, vector<8x8x32xf32>
    %155 = vector.extract_strided_slice %5 {offsets = [3, 0, 0], sizes = [1, 1, 32], strides = [1, 1, 1]} : vector<7x7x32xf32> to vector<1x1x32xf32>
    %156 = vector.shape_cast %155 : vector<1x1x32xf32> to vector<32xf32>
    %157 = vector.shape_cast %156 : vector<32xf32> to vector<1x1x32xf32>
    %158 = vector.broadcast %157 : vector<1x1x32xf32> to vector<8x8x32xf32>
    %159 = arith.mulf %154, %158 : vector<8x8x32xf32>
    %160 = arith.addf %153, %159 : vector<8x8x32xf32>
    %c3_73 = arith.constant 3 : index
    %c1_74 = arith.constant 1 : index
    %c0_75 = arith.constant 0 : index
    %161 = vector.load %arg6[%c3_73, %c1_74, %c0_75] : memref<14x14x32xf32, #tpu.memory_space<vmem>>, vector<8x8x32xf32>
    %162 = vector.extract_strided_slice %5 {offsets = [3, 1, 0], sizes = [1, 1, 32], strides = [1, 1, 1]} : vector<7x7x32xf32> to vector<1x1x32xf32>
    %163 = vector.shape_cast %162 : vector<1x1x32xf32> to vector<32xf32>
    %164 = vector.shape_cast %163 : vector<32xf32> to vector<1x1x32xf32>
    %165 = vector.broadcast %164 : vector<1x1x32xf32> to vector<8x8x32xf32>
    %166 = arith.mulf %161, %165 : vector<8x8x32xf32>
    %167 = arith.addf %160, %166 : vector<8x8x32xf32>
    %c3_76 = arith.constant 3 : index
    %c2_77 = arith.constant 2 : index
    %c0_78 = arith.constant 0 : index
    %168 = vector.load %arg6[%c3_76, %c2_77, %c0_78] : memref<14x14x32xf32, #tpu.memory_space<vmem>>, vector<8x8x32xf32>
    %169 = vector.extract_strided_slice %5 {offsets = [3, 2, 0], sizes = [1, 1, 32], strides = [1, 1, 1]} : vector<7x7x32xf32> to vector<1x1x32xf32>
    %170 = vector.shape_cast %169 : vector<1x1x32xf32> to vector<32xf32>
    %171 = vector.shape_cast %170 : vector<32xf32> to vector<1x1x32xf32>
    %172 = vector.broadcast %171 : vector<1x1x32xf32> to vector<8x8x32xf32>
    %173 = arith.mulf %168, %172 : vector<8x8x32xf32>
    %174 = arith.addf %167, %173 : vector<8x8x32xf32>
    %c3_79 = arith.constant 3 : index
    %c3_80 = arith.constant 3 : index
    %c0_81 = arith.constant 0 : index
    %175 = vector.load %arg6[%c3_79, %c3_80, %c0_81] : memref<14x14x32xf32, #tpu.memory_space<vmem>>, vector<8x8x32xf32>
    %176 = vector.extract_strided_slice %5 {offsets = [3, 3, 0], sizes = [1, 1, 32], strides = [1, 1, 1]} : vector<7x7x32xf32> to vector<1x1x32xf32>
    %177 = vector.shape_cast %176 : vector<1x1x32xf32> to vector<32xf32>
    %178 = vector.shape_cast %177 : vector<32xf32> to vector<1x1x32xf32>
    %179 = vector.broadcast %178 : vector<1x1x32xf32> to vector<8x8x32xf32>
    %180 = arith.mulf %175, %179 : vector<8x8x32xf32>
    %181 = arith.addf %174, %180 : vector<8x8x32xf32>
    %c3_82 = arith.constant 3 : index
    %c4_83 = arith.constant 4 : index
    %c0_84 = arith.constant 0 : index
    %182 = vector.load %arg6[%c3_82, %c4_83, %c0_84] : memref<14x14x32xf32, #tpu.memory_space<vmem>>, vector<8x8x32xf32>
    %183 = vector.extract_strided_slice %5 {offsets = [3, 4, 0], sizes = [1, 1, 32], strides = [1, 1, 1]} : vector<7x7x32xf32> to vector<1x1x32xf32>
    %184 = vector.shape_cast %183 : vector<1x1x32xf32> to vector<32xf32>
    %185 = vector.shape_cast %184 : vector<32xf32> to vector<1x1x32xf32>
    %186 = vector.broadcast %185 : vector<1x1x32xf32> to vector<8x8x32xf32>
    %187 = arith.mulf %182, %186 : vector<8x8x32xf32>
    %188 = arith.addf %181, %187 : vector<8x8x32xf32>
    %c3_85 = arith.constant 3 : index
    %c5_86 = arith.constant 5 : index
    %c0_87 = arith.constant 0 : index
    %189 = vector.load %arg6[%c3_85, %c5_86, %c0_87] : memref<14x14x32xf32, #tpu.memory_space<vmem>>, vector<8x8x32xf32>
    %190 = vector.extract_strided_slice %5 {offsets = [3, 5, 0], sizes = [1, 1, 32], strides = [1, 1, 1]} : vector<7x7x32xf32> to vector<1x1x32xf32>
    %191 = vector.shape_cast %190 : vector<1x1x32xf32> to vector<32xf32>
    %192 = vector.shape_cast %191 : vector<32xf32> to vector<1x1x32xf32>
    %193 = vector.broadcast %192 : vector<1x1x32xf32> to vector<8x8x32xf32>
    %194 = arith.mulf %189, %193 : vector<8x8x32xf32>
    %195 = arith.addf %188, %194 : vector<8x8x32xf32>
    %c3_88 = arith.constant 3 : index
    %c6_89 = arith.constant 6 : index
    %c0_90 = arith.constant 0 : index
    %196 = vector.load %arg6[%c3_88, %c6_89, %c0_90] : memref<14x14x32xf32, #tpu.memory_space<vmem>>, vector<8x8x32xf32>
    %197 = vector.extract_strided_slice %5 {offsets = [3, 6, 0], sizes = [1, 1, 32], strides = [1, 1, 1]} : vector<7x7x32xf32> to vector<1x1x32xf32>
    %198 = vector.shape_cast %197 : vector<1x1x32xf32> to vector<32xf32>
    %199 = vector.shape_cast %198 : vector<32xf32> to vector<1x1x32xf32>
    %200 = vector.broadcast %199 : vector<1x1x32xf32> to vector<8x8x32xf32>
    %201 = arith.mulf %196, %200 : vector<8x8x32xf32>
    %202 = arith.addf %195, %201 : vector<8x8x32xf32>
    %c4_91 = arith.constant 4 : index
    %c0_92 = arith.constant 0 : index
    %c0_93 = arith.constant 0 : index
    %203 = vector.load %arg6[%c4_91, %c0_92, %c0_93] : memref<14x14x32xf32, #tpu.memory_space<vmem>>, vector<8x8x32xf32>
    %204 = vector.extract_strided_slice %5 {offsets = [4, 0, 0], sizes = [1, 1, 32], strides = [1, 1, 1]} : vector<7x7x32xf32> to vector<1x1x32xf32>
    %205 = vector.shape_cast %204 : vector<1x1x32xf32> to vector<32xf32>
    %206 = vector.shape_cast %205 : vector<32xf32> to vector<1x1x32xf32>
    %207 = vector.broadcast %206 : vector<1x1x32xf32> to vector<8x8x32xf32>
    %208 = arith.mulf %203, %207 : vector<8x8x32xf32>
    %209 = arith.addf %202, %208 : vector<8x8x32xf32>
    %c4_94 = arith.constant 4 : index
    %c1_95 = arith.constant 1 : index
    %c0_96 = arith.constant 0 : index
    %210 = vector.load %arg6[%c4_94, %c1_95, %c0_96] : memref<14x14x32xf32, #tpu.memory_space<vmem>>, vector<8x8x32xf32>
    %211 = vector.extract_strided_slice %5 {offsets = [4, 1, 0], sizes = [1, 1, 32], strides = [1, 1, 1]} : vector<7x7x32xf32> to vector<1x1x32xf32>
    %212 = vector.shape_cast %211 : vector<1x1x32xf32> to vector<32xf32>
    %213 = vector.shape_cast %212 : vector<32xf32> to vector<1x1x32xf32>
    %214 = vector.broadcast %213 : vector<1x1x32xf32> to vector<8x8x32xf32>
    %215 = arith.mulf %210, %214 : vector<8x8x32xf32>
    %216 = arith.addf %209, %215 : vector<8x8x32xf32>
    %c4_97 = arith.constant 4 : index
    %c2_98 = arith.constant 2 : index
    %c0_99 = arith.constant 0 : index
    %217 = vector.load %arg6[%c4_97, %c2_98, %c0_99] : memref<14x14x32xf32, #tpu.memory_space<vmem>>, vector<8x8x32xf32>
    %218 = vector.extract_strided_slice %5 {offsets = [4, 2, 0], sizes = [1, 1, 32], strides = [1, 1, 1]} : vector<7x7x32xf32> to vector<1x1x32xf32>
    %219 = vector.shape_cast %218 : vector<1x1x32xf32> to vector<32xf32>
    %220 = vector.shape_cast %219 : vector<32xf32> to vector<1x1x32xf32>
    %221 = vector.broadcast %220 : vector<1x1x32xf32> to vector<8x8x32xf32>
    %222 = arith.mulf %217, %221 : vector<8x8x32xf32>
    %223 = arith.addf %216, %222 : vector<8x8x32xf32>
    %c4_100 = arith.constant 4 : index
    %c3_101 = arith.constant 3 : index
    %c0_102 = arith.constant 0 : index
    %224 = vector.load %arg6[%c4_100, %c3_101, %c0_102] : memref<14x14x32xf32, #tpu.memory_space<vmem>>, vector<8x8x32xf32>
    %225 = vector.extract_strided_slice %5 {offsets = [4, 3, 0], sizes = [1, 1, 32], strides = [1, 1, 1]} : vector<7x7x32xf32> to vector<1x1x32xf32>
    %226 = vector.shape_cast %225 : vector<1x1x32xf32> to vector<32xf32>
    %227 = vector.shape_cast %226 : vector<32xf32> to vector<1x1x32xf32>
    %228 = vector.broadcast %227 : vector<1x1x32xf32> to vector<8x8x32xf32>
    %229 = arith.mulf %224, %228 : vector<8x8x32xf32>
    %230 = arith.addf %223, %229 : vector<8x8x32xf32>
    %c4_103 = arith.constant 4 : index
    %c4_104 = arith.constant 4 : index
    %c0_105 = arith.constant 0 : index
    %231 = vector.load %arg6[%c4_103, %c4_104, %c0_105] : memref<14x14x32xf32, #tpu.memory_space<vmem>>, vector<8x8x32xf32>
    %232 = vector.extract_strided_slice %5 {offsets = [4, 4, 0], sizes = [1, 1, 32], strides = [1, 1, 1]} : vector<7x7x32xf32> to vector<1x1x32xf32>
    %233 = vector.shape_cast %232 : vector<1x1x32xf32> to vector<32xf32>
    %234 = vector.shape_cast %233 : vector<32xf32> to vector<1x1x32xf32>
    %235 = vector.broadcast %234 : vector<1x1x32xf32> to vector<8x8x32xf32>
    %236 = arith.mulf %231, %235 : vector<8x8x32xf32>
    %237 = arith.addf %230, %236 : vector<8x8x32xf32>
    %c4_106 = arith.constant 4 : index
    %c5_107 = arith.constant 5 : index
    %c0_108 = arith.constant 0 : index
    %238 = vector.load %arg6[%c4_106, %c5_107, %c0_108] : memref<14x14x32xf32, #tpu.memory_space<vmem>>, vector<8x8x32xf32>
    %239 = vector.extract_strided_slice %5 {offsets = [4, 5, 0], sizes = [1, 1, 32], strides = [1, 1, 1]} : vector<7x7x32xf32> to vector<1x1x32xf32>
    %240 = vector.shape_cast %239 : vector<1x1x32xf32> to vector<32xf32>
    %241 = vector.shape_cast %240 : vector<32xf32> to vector<1x1x32xf32>
    %242 = vector.broadcast %241 : vector<1x1x32xf32> to vector<8x8x32xf32>
    %243 = arith.mulf %238, %242 : vector<8x8x32xf32>
    %244 = arith.addf %237, %243 : vector<8x8x32xf32>
    %c4_109 = arith.constant 4 : index
    %c6_110 = arith.constant 6 : index
    %c0_111 = arith.constant 0 : index
    %245 = vector.load %arg6[%c4_109, %c6_110, %c0_111] : memref<14x14x32xf32, #tpu.memory_space<vmem>>, vector<8x8x32xf32>
    %246 = vector.extract_strided_slice %5 {offsets = [4, 6, 0], sizes = [1, 1, 32], strides = [1, 1, 1]} : vector<7x7x32xf32> to vector<1x1x32xf32>
    %247 = vector.shape_cast %246 : vector<1x1x32xf32> to vector<32xf32>
    %248 = vector.shape_cast %247 : vector<32xf32> to vector<1x1x32xf32>
    %249 = vector.broadcast %248 : vector<1x1x32xf32> to vector<8x8x32xf32>
    %250 = arith.mulf %245, %249 : vector<8x8x32xf32>
    %251 = arith.addf %244, %250 : vector<8x8x32xf32>
    %c5_112 = arith.constant 5 : index
    %c0_113 = arith.constant 0 : index
    %c0_114 = arith.constant 0 : index
    %252 = vector.load %arg6[%c5_112, %c0_113, %c0_114] : memref<14x14x32xf32, #tpu.memory_space<vmem>>, vector<8x8x32xf32>
    %253 = vector.extract_strided_slice %5 {offsets = [5, 0, 0], sizes = [1, 1, 32], strides = [1, 1, 1]} : vector<7x7x32xf32> to vector<1x1x32xf32>
    %254 = vector.shape_cast %253 : vector<1x1x32xf32> to vector<32xf32>
    %255 = vector.shape_cast %254 : vector<32xf32> to vector<1x1x32xf32>
    %256 = vector.broadcast %255 : vector<1x1x32xf32> to vector<8x8x32xf32>
    %257 = arith.mulf %252, %256 : vector<8x8x32xf32>
    %258 = arith.addf %251, %257 : vector<8x8x32xf32>
    %c5_115 = arith.constant 5 : index
    %c1_116 = arith.constant 1 : index
    %c0_117 = arith.constant 0 : index
    %259 = vector.load %arg6[%c5_115, %c1_116, %c0_117] : memref<14x14x32xf32, #tpu.memory_space<vmem>>, vector<8x8x32xf32>
    %260 = vector.extract_strided_slice %5 {offsets = [5, 1, 0], sizes = [1, 1, 32], strides = [1, 1, 1]} : vector<7x7x32xf32> to vector<1x1x32xf32>
    %261 = vector.shape_cast %260 : vector<1x1x32xf32> to vector<32xf32>
    %262 = vector.shape_cast %261 : vector<32xf32> to vector<1x1x32xf32>
    %263 = vector.broadcast %262 : vector<1x1x32xf32> to vector<8x8x32xf32>
    %264 = arith.mulf %259, %263 : vector<8x8x32xf32>
    %265 = arith.addf %258, %264 : vector<8x8x32xf32>
    %c5_118 = arith.constant 5 : index
    %c2_119 = arith.constant 2 : index
    %c0_120 = arith.constant 0 : index
    %266 = vector.load %arg6[%c5_118, %c2_119, %c0_120] : memref<14x14x32xf32, #tpu.memory_space<vmem>>, vector<8x8x32xf32>
    %267 = vector.extract_strided_slice %5 {offsets = [5, 2, 0], sizes = [1, 1, 32], strides = [1, 1, 1]} : vector<7x7x32xf32> to vector<1x1x32xf32>
    %268 = vector.shape_cast %267 : vector<1x1x32xf32> to vector<32xf32>
    %269 = vector.shape_cast %268 : vector<32xf32> to vector<1x1x32xf32>
    %270 = vector.broadcast %269 : vector<1x1x32xf32> to vector<8x8x32xf32>
    %271 = arith.mulf %266, %270 : vector<8x8x32xf32>
    %272 = arith.addf %265, %271 : vector<8x8x32xf32>
    %c5_121 = arith.constant 5 : index
    %c3_122 = arith.constant 3 : index
    %c0_123 = arith.constant 0 : index
    %273 = vector.load %arg6[%c5_121, %c3_122, %c0_123] : memref<14x14x32xf32, #tpu.memory_space<vmem>>, vector<8x8x32xf32>
    %274 = vector.extract_strided_slice %5 {offsets = [5, 3, 0], sizes = [1, 1, 32], strides = [1, 1, 1]} : vector<7x7x32xf32> to vector<1x1x32xf32>
    %275 = vector.shape_cast %274 : vector<1x1x32xf32> to vector<32xf32>
    %276 = vector.shape_cast %275 : vector<32xf32> to vector<1x1x32xf32>
    %277 = vector.broadcast %276 : vector<1x1x32xf32> to vector<8x8x32xf32>
    %278 = arith.mulf %273, %277 : vector<8x8x32xf32>
    %279 = arith.addf %272, %278 : vector<8x8x32xf32>
    %c5_124 = arith.constant 5 : index
    %c4_125 = arith.constant 4 : index
    %c0_126 = arith.constant 0 : index
    %280 = vector.load %arg6[%c5_124, %c4_125, %c0_126] : memref<14x14x32xf32, #tpu.memory_space<vmem>>, vector<8x8x32xf32>
    %281 = vector.extract_strided_slice %5 {offsets = [5, 4, 0], sizes = [1, 1, 32], strides = [1, 1, 1]} : vector<7x7x32xf32> to vector<1x1x32xf32>
    %282 = vector.shape_cast %281 : vector<1x1x32xf32> to vector<32xf32>
    %283 = vector.shape_cast %282 : vector<32xf32> to vector<1x1x32xf32>
    %284 = vector.broadcast %283 : vector<1x1x32xf32> to vector<8x8x32xf32>
    %285 = arith.mulf %280, %284 : vector<8x8x32xf32>
    %286 = arith.addf %279, %285 : vector<8x8x32xf32>
    %c5_127 = arith.constant 5 : index
    %c5_128 = arith.constant 5 : index
    %c0_129 = arith.constant 0 : index
    %287 = vector.load %arg6[%c5_127, %c5_128, %c0_129] : memref<14x14x32xf32, #tpu.memory_space<vmem>>, vector<8x8x32xf32>
    %288 = vector.extract_strided_slice %5 {offsets = [5, 5, 0], sizes = [1, 1, 32], strides = [1, 1, 1]} : vector<7x7x32xf32> to vector<1x1x32xf32>
    %289 = vector.shape_cast %288 : vector<1x1x32xf32> to vector<32xf32>
    %290 = vector.shape_cast %289 : vector<32xf32> to vector<1x1x32xf32>
    %291 = vector.broadcast %290 : vector<1x1x32xf32> to vector<8x8x32xf32>
    %292 = arith.mulf %287, %291 : vector<8x8x32xf32>
    %293 = arith.addf %286, %292 : vector<8x8x32xf32>
    %c5_130 = arith.constant 5 : index
    %c6_131 = arith.constant 6 : index
    %c0_132 = arith.constant 0 : index
    %294 = vector.load %arg6[%c5_130, %c6_131, %c0_132] : memref<14x14x32xf32, #tpu.memory_space<vmem>>, vector<8x8x32xf32>
    %295 = vector.extract_strided_slice %5 {offsets = [5, 6, 0], sizes = [1, 1, 32], strides = [1, 1, 1]} : vector<7x7x32xf32> to vector<1x1x32xf32>
    %296 = vector.shape_cast %295 : vector<1x1x32xf32> to vector<32xf32>
    %297 = vector.shape_cast %296 : vector<32xf32> to vector<1x1x32xf32>
    %298 = vector.broadcast %297 : vector<1x1x32xf32> to vector<8x8x32xf32>
    %299 = arith.mulf %294, %298 : vector<8x8x32xf32>
    %300 = arith.addf %293, %299 : vector<8x8x32xf32>
    %c6_133 = arith.constant 6 : index
    %c0_134 = arith.constant 0 : index
    %c0_135 = arith.constant 0 : index
    %301 = vector.load %arg6[%c6_133, %c0_134, %c0_135] : memref<14x14x32xf32, #tpu.memory_space<vmem>>, vector<8x8x32xf32>
    %302 = vector.extract_strided_slice %5 {offsets = [6, 0, 0], sizes = [1, 1, 32], strides = [1, 1, 1]} : vector<7x7x32xf32> to vector<1x1x32xf32>
    %303 = vector.shape_cast %302 : vector<1x1x32xf32> to vector<32xf32>
    %304 = vector.shape_cast %303 : vector<32xf32> to vector<1x1x32xf32>
    %305 = vector.broadcast %304 : vector<1x1x32xf32> to vector<8x8x32xf32>
    %306 = arith.mulf %301, %305 : vector<8x8x32xf32>
    %307 = arith.addf %300, %306 : vector<8x8x32xf32>
    %c6_136 = arith.constant 6 : index
    %c1_137 = arith.constant 1 : index
    %c0_138 = arith.constant 0 : index
    %308 = vector.load %arg6[%c6_136, %c1_137, %c0_138] : memref<14x14x32xf32, #tpu.memory_space<vmem>>, vector<8x8x32xf32>
    %309 = vector.extract_strided_slice %5 {offsets = [6, 1, 0], sizes = [1, 1, 32], strides = [1, 1, 1]} : vector<7x7x32xf32> to vector<1x1x32xf32>
    %310 = vector.shape_cast %309 : vector<1x1x32xf32> to vector<32xf32>
    %311 = vector.shape_cast %310 : vector<32xf32> to vector<1x1x32xf32>
    %312 = vector.broadcast %311 : vector<1x1x32xf32> to vector<8x8x32xf32>
    %313 = arith.mulf %308, %312 : vector<8x8x32xf32>
    %314 = arith.addf %307, %313 : vector<8x8x32xf32>
    %c6_139 = arith.constant 6 : index
    %c2_140 = arith.constant 2 : index
    %c0_141 = arith.constant 0 : index
    %315 = vector.load %arg6[%c6_139, %c2_140, %c0_141] : memref<14x14x32xf32, #tpu.memory_space<vmem>>, vector<8x8x32xf32>
    %316 = vector.extract_strided_slice %5 {offsets = [6, 2, 0], sizes = [1, 1, 32], strides = [1, 1, 1]} : vector<7x7x32xf32> to vector<1x1x32xf32>
    %317 = vector.shape_cast %316 : vector<1x1x32xf32> to vector<32xf32>
    %318 = vector.shape_cast %317 : vector<32xf32> to vector<1x1x32xf32>
    %319 = vector.broadcast %318 : vector<1x1x32xf32> to vector<8x8x32xf32>
    %320 = arith.mulf %315, %319 : vector<8x8x32xf32>
    %321 = arith.addf %314, %320 : vector<8x8x32xf32>
    %c6_142 = arith.constant 6 : index
    %c3_143 = arith.constant 3 : index
    %c0_144 = arith.constant 0 : index
    %322 = vector.load %arg6[%c6_142, %c3_143, %c0_144] : memref<14x14x32xf32, #tpu.memory_space<vmem>>, vector<8x8x32xf32>
    %323 = vector.extract_strided_slice %5 {offsets = [6, 3, 0], sizes = [1, 1, 32], strides = [1, 1, 1]} : vector<7x7x32xf32> to vector<1x1x32xf32>
    %324 = vector.shape_cast %323 : vector<1x1x32xf32> to vector<32xf32>
    %325 = vector.shape_cast %324 : vector<32xf32> to vector<1x1x32xf32>
    %326 = vector.broadcast %325 : vector<1x1x32xf32> to vector<8x8x32xf32>
    %327 = arith.mulf %322, %326 : vector<8x8x32xf32>
    %328 = arith.addf %321, %327 : vector<8x8x32xf32>
    %c6_145 = arith.constant 6 : index
    %c4_146 = arith.constant 4 : index
    %c0_147 = arith.constant 0 : index
    %329 = vector.load %arg6[%c6_145, %c4_146, %c0_147] : memref<14x14x32xf32, #tpu.memory_space<vmem>>, vector<8x8x32xf32>
    %330 = vector.extract_strided_slice %5 {offsets = [6, 4, 0], sizes = [1, 1, 32], strides = [1, 1, 1]} : vector<7x7x32xf32> to vector<1x1x32xf32>
    %331 = vector.shape_cast %330 : vector<1x1x32xf32> to vector<32xf32>
    %332 = vector.shape_cast %331 : vector<32xf32> to vector<1x1x32xf32>
    %333 = vector.broadcast %332 : vector<1x1x32xf32> to vector<8x8x32xf32>
    %334 = arith.mulf %329, %333 : vector<8x8x32xf32>
    %335 = arith.addf %328, %334 : vector<8x8x32xf32>
    %c6_148 = arith.constant 6 : index
    %c5_149 = arith.constant 5 : index
    %c0_150 = arith.constant 0 : index
    %336 = vector.load %arg6[%c6_148, %c5_149, %c0_150] : memref<14x14x32xf32, #tpu.memory_space<vmem>>, vector<8x8x32xf32>
    %337 = vector.extract_strided_slice %5 {offsets = [6, 5, 0], sizes = [1, 1, 32], strides = [1, 1, 1]} : vector<7x7x32xf32> to vector<1x1x32xf32>
    %338 = vector.shape_cast %337 : vector<1x1x32xf32> to vector<32xf32>
    %339 = vector.shape_cast %338 : vector<32xf32> to vector<1x1x32xf32>
    %340 = vector.broadcast %339 : vector<1x1x32xf32> to vector<8x8x32xf32>
    %341 = arith.mulf %336, %340 : vector<8x8x32xf32>
    %342 = arith.addf %335, %341 : vector<8x8x32xf32>
    %c6_151 = arith.constant 6 : index
    %c6_152 = arith.constant 6 : index
    %c0_153 = arith.constant 0 : index
    %343 = vector.load %arg6[%c6_151, %c6_152, %c0_153] : memref<14x14x32xf32, #tpu.memory_space<vmem>>, vector<8x8x32xf32>
    %344 = vector.extract_strided_slice %5 {offsets = [6, 6, 0], sizes = [1, 1, 32], strides = [1, 1, 1]} : vector<7x7x32xf32> to vector<1x1x32xf32>
    %345 = vector.shape_cast %344 : vector<1x1x32xf32> to vector<32xf32>
    %346 = vector.shape_cast %345 : vector<32xf32> to vector<1x1x32xf32>
    %347 = vector.broadcast %346 : vector<1x1x32xf32> to vector<8x8x32xf32>
    %348 = arith.mulf %343, %347 : vector<8x8x32xf32>
    %349 = arith.addf %342, %348 : vector<8x8x32xf32>
    %350 = vector.shape_cast %349 : vector<8x8x32xf32> to vector<64x32xf32>
    %351 = arith.truncf %350 : vector<64x32xf32> to vector<64x32xbf16>
    %c0_154 = arith.constant 0 : index
    %c0_155 = arith.constant 0 : index
    %352 = vector.load %arg3[%c0_154, %c0_155] : memref<32x32xbf16, #tpu.memory_space<vmem>>, vector<32x32xbf16>
    %cst_156 = arith.constant dense<0.000000e+00> : vector<64x32xf32>
    %353 = tpu.matmul %351, %352, %cst_156 {dimension_numbers = #tpu.dot_dimension_numbers<[1], [0], [0], [1], [0, 0, 1, 1], [], []>} : vector<64x32xbf16>, vector<32x32xbf16>, vector<64x32xf32> -> vector<64x32xf32>
    %c0_157 = arith.constant 0 : index
    %c0_158 = arith.constant 0 : index
    %c0_159 = arith.constant 0 : index
    %354 = vector.load %arg4[%c0_157, %c0_158, %c0_159] : memref<1x64x32xf32, #tpu.memory_space<vmem>>, vector<1x64x32xf32>
    %355 = vector.shape_cast %354 : vector<1x64x32xf32> to vector<64x32xf32>
    %356 = vector.shape_cast %353 : vector<64x32xf32> to vector<1x64x32xf32>
    tpu.vector_store %arg4[%c0_157, %c0_158, %c0_159], %356 {strides = array<i32>} : memref<1x64x32xf32, #tpu.memory_space<vmem>>, vector<1x64x32xf32>,
    %cst_160 = arith.constant dense<0.000000e+00> : vector<32xf32>
    %357 = vector.multi_reduction <add>, %353, %cst_160 [0] : vector<64x32xf32> to vector<32xf32>
    %358 = vector.shape_cast %357 : vector<32xf32> to vector<1x32xf32>
    %359 = arith.mulf %353, %353 : vector<64x32xf32>
    %cst_161 = arith.constant dense<0.000000e+00> : vector<32xf32>
    %360 = vector.multi_reduction <add>, %359, %cst_161 [0] : vector<64x32xf32> to vector<32xf32>
    %361 = vector.shape_cast %360 : vector<32xf32> to vector<1x32xf32>
    %362 = tpu.concatenate %358, %361 in 0 : vector<1x32xf32>, vector<1x32xf32> -> vector<2x32xf32>
    %c0_i32 = arith.constant 0 : i32
    %363 = arith.cmpi eq, %arg0, %c0_i32 : i32
    %364 = arith.extui %363 : i1 to i32
    %c0_i32_162 = arith.constant 0 : i32
    %365 = arith.cmpi ne, %364, %c0_i32_162 : i32
    scf.if %365 {
      %c0_165 = arith.constant 0 : index
      %c0_166 = arith.constant 0 : index
      %369 = vector.load %arg5[%c0_165, %c0_166] : memref<2x32xf32, #tpu.memory_space<vmem>>, vector<2x32xf32>
      tpu.vector_store %arg5[%c0_165, %c0_166], %362 {strides = array<i32>} : memref<2x32xf32, #tpu.memory_space<vmem>>, vector<2x32xf32>,
    } else {
    }
    %c0_i32_163 = arith.constant 0 : i32
    %366 = arith.cmpi ne, %arg0, %c0_i32_163 : i32
    %367 = arith.extui %366 : i1 to i32
    %c0_i32_164 = arith.constant 0 : i32
    %368 = arith.cmpi ne, %367, %c0_i32_164 : i32
    scf.if %368 {
      %c0_165 = arith.constant 0 : index
      %c0_166 = arith.constant 0 : index
      %369 = vector.load %arg5[%c0_165, %c0_166] : memref<2x32xf32, #tpu.memory_space<vmem>>, vector<2x32xf32>
      %370 = arith.addf %369, %362 : vector<2x32xf32>
      %c0_167 = arith.constant 0 : index
      %c0_168 = arith.constant 0 : index
      %371 = vector.load %arg5[%c0_167, %c0_168] : memref<2x32xf32, #tpu.memory_space<vmem>>, vector<2x32xf32>
      tpu.vector_store %arg5[%c0_167, %c0_168], %370 {strides = array<i32>} : memref<2x32xf32, #tpu.memory_space<vmem>>, vector<2x32xf32>,
    } else {
    }
    return
  }
  func.func @transform_0(%arg0: i32) -> (i32, i32, i32, i32) {
    %c0_i32 = arith.constant 0 : i32
    %c0_i32_0 = arith.constant 0 : i32
    %c0_i32_1 = arith.constant 0 : i32
    %c0_i32_2 = arith.constant 0 : i32
    return %arg0, %c0_i32, %c0_i32_0, %c0_i32_1 : i32, i32, i32, i32
  }
  func.func @transform_1(%arg0: i32) -> (i32, i32, i32) {
    %c0_i32 = arith.constant 0 : i32
    %c0_i32_0 = arith.constant 0 : i32
    %c0_i32_1 = arith.constant 0 : i32
    %c0_i32_2 = arith.constant 0 : i32
    return %c0_i32, %c0_i32_0, %c0_i32_1 : i32, i32, i32
  }
  func.func @transform_2(%arg0: i32) -> (i32, i32) {
    %c0_i32 = arith.constant 0 : i32
    %c0_i32_0 = arith.constant 0 : i32
    %c0_i32_1 = arith.constant 0 : i32
    return %c0_i32, %c0_i32_0 : i32, i32
  }
  func.func @transform_3(%arg0: i32) -> (i32, i32, i32) {
    %c0_i32 = arith.constant 0 : i32
    %c0_i32_0 = arith.constant 0 : i32
    %c0_i32_1 = arith.constant 0 : i32
    return %arg0, %c0_i32, %c0_i32_0 : i32, i32, i32
  }
  func.func @transform_4(%arg0: i32) -> (i32, i32) {
    %c0_i32 = arith.constant 0 : i32
    %c0_i32_0 = arith.constant 0 : i32
    %c0_i32_1 = arith.constant 0 : i32
    return %c0_i32, %c0_i32_0 : i32, i32
  }
}

module attributes {stable_mosaic.version = 11 : i64} {
  func.func @_agent_attn_kernel(%arg0: i32, %arg1: memref<1x64x32xf32, #tpu.memory_space<vmem>>, %arg2: memref<1x64x32xf32, #tpu.memory_space<vmem>>, %arg3: memref<1x64x32xf32, #tpu.memory_space<vmem>>, %arg4: memref<1x16x32xf32, #tpu.memory_space<vmem>>, %arg5: memref<4x16x64xf32, #tpu.memory_space<vmem>>, %arg6: memref<4x64x16xf32, #tpu.memory_space<vmem>>, %arg7: memref<1x64x32xf32, #tpu.memory_space<vmem>>) attributes {dimension_semantics = [#tpu.dimension_semantics<parallel>], iteration_bounds = array<i64: 2>, scalar_prefetch = 0 : i64, scratch_operands = 0 : i64, tpu.core_type = #tpu.core_type<tc>, window_params = [{transform_indices = @transform_0, window_bounds = array<i64: 1, 64, 32>}, {transform_indices = @transform_1, window_bounds = array<i64: 1, 64, 32>}, {transform_indices = @transform_2, window_bounds = array<i64: 1, 64, 32>}, {transform_indices = @transform_3, window_bounds = array<i64: 1, 16, 32>}, {pipeline_mode = #tpu.pipeline_mode<synchronous>, transform_indices = @transform_4, window_bounds = array<i64: 4, 16, 64>}, {pipeline_mode = #tpu.pipeline_mode<synchronous>, transform_indices = @transform_5, window_bounds = array<i64: 4, 64, 16>}, {transform_indices = @transform_6, window_bounds = array<i64: 1, 64, 32>}]} {
    %c0 = arith.constant 0 : index
    %c0_0 = arith.constant 0 : index
    %c0_1 = arith.constant 0 : index
    %0 = vector.load %arg1[%c0, %c0_0, %c0_1] : memref<1x64x32xf32, #tpu.memory_space<vmem>>, vector<1x64x32xf32>
    %1 = vector.shape_cast %0 : vector<1x64x32xf32> to vector<64x32xf32>
    %2 = vector.shape_cast %1 : vector<64x32xf32> to vector<64x4x8xf32>
    %3 = tpu.transpose %2, [1, 0, 2] : vector<64x4x8xf32> -> vector<4x64x8xf32>
    %4 = arith.truncf %3 : vector<4x64x8xf32> to vector<4x64x8xbf16>
    %c0_2 = arith.constant 0 : index
    %c0_3 = arith.constant 0 : index
    %c0_4 = arith.constant 0 : index
    %5 = vector.load %arg2[%c0_2, %c0_3, %c0_4] : memref<1x64x32xf32, #tpu.memory_space<vmem>>, vector<1x64x32xf32>
    %6 = vector.shape_cast %5 : vector<1x64x32xf32> to vector<64x32xf32>
    %7 = vector.shape_cast %6 : vector<64x32xf32> to vector<64x4x8xf32>
    %8 = tpu.transpose %7, [1, 0, 2] : vector<64x4x8xf32> -> vector<4x64x8xf32>
    %9 = arith.truncf %8 : vector<4x64x8xf32> to vector<4x64x8xbf16>
    %c0_5 = arith.constant 0 : index
    %c0_6 = arith.constant 0 : index
    %c0_7 = arith.constant 0 : index
    %10 = vector.load %arg3[%c0_5, %c0_6, %c0_7] : memref<1x64x32xf32, #tpu.memory_space<vmem>>, vector<1x64x32xf32>
    %11 = vector.shape_cast %10 : vector<1x64x32xf32> to vector<64x32xf32>
    %12 = vector.shape_cast %11 : vector<64x32xf32> to vector<64x4x8xf32>
    %13 = tpu.transpose %12, [1, 0, 2] : vector<64x4x8xf32> -> vector<4x64x8xf32>
    %14 = arith.truncf %13 : vector<4x64x8xf32> to vector<4x64x8xbf16>
    %c0_8 = arith.constant 0 : index
    %c0_9 = arith.constant 0 : index
    %c0_10 = arith.constant 0 : index
    %15 = vector.load %arg4[%c0_8, %c0_9, %c0_10] : memref<1x16x32xf32, #tpu.memory_space<vmem>>, vector<1x16x32xf32>
    %16 = vector.shape_cast %15 : vector<1x16x32xf32> to vector<16x32xf32>
    %17 = vector.shape_cast %16 : vector<16x32xf32> to vector<16x4x8xf32>
    %18 = tpu.transpose %17, [1, 0, 2] : vector<16x4x8xf32> -> vector<4x16x8xf32>
    %19 = arith.truncf %18 : vector<4x16x8xf32> to vector<4x16x8xbf16>
    "tpu.trace_start"() <{level = 10 : i32, message = "had,hnd->han"}> : () -> ()
    %cst = arith.constant dense<0.000000e+00> : vector<4x16x64xf32>
    %20 = tpu.matmul %19, %9, %cst {dimension_numbers = #tpu.dot_dimension_numbers<[2], [2], [1], [1], [0, 0, 0, 1, 1, 1], [0], [0]>} : vector<4x16x8xbf16>, vector<4x64x8xbf16>, vector<4x16x64xf32> -> vector<4x16x64xf32>
    "tpu.trace_stop"() : () -> ()
    %c0_11 = arith.constant 0 : index
    %c0_12 = arith.constant 0 : index
    %c0_13 = arith.constant 0 : index
    %21 = vector.load %arg5[%c0_11, %c0_12, %c0_13] : memref<4x16x64xf32, #tpu.memory_space<vmem>>, vector<4x16x64xf32>
    %22 = arith.addf %20, %21 : vector<4x16x64xf32>
    %cst_14 = arith.constant dense<0xFF800000> : vector<4x16xf32>
    %23 = vector.multi_reduction <maximumf>, %22, %cst_14 [2] : vector<4x16x64xf32> to vector<4x16xf32>
    %24 = vector.shape_cast %23 : vector<4x16xf32> to vector<4x16x1xf32>
    %25 = vector.broadcast %24 : vector<4x16x1xf32> to vector<4x16x64xf32>
    %26 = arith.subf %22, %25 : vector<4x16x64xf32>
    %27 = math.exp %26 : vector<4x16x64xf32>
    %cst_15 = arith.constant dense<0.000000e+00> : vector<4x16xf32>
    %28 = vector.multi_reduction <add>, %27, %cst_15 [2] : vector<4x16x64xf32> to vector<4x16xf32>
    %29 = vector.shape_cast %28 : vector<4x16xf32> to vector<4x16x1xf32>
    %30 = tpu.reciprocal %29 {approx = true} : vector<4x16x1xf32> -> vector<4x16x1xf32>
    %31 = vector.broadcast %30 : vector<4x16x1xf32> to vector<4x16x64xf32>
    %32 = arith.mulf %27, %31 : vector<4x16x64xf32>
    %33 = arith.truncf %32 : vector<4x16x64xf32> to vector<4x16x64xbf16>
    "tpu.trace_start"() <{level = 10 : i32, message = "han,hnd->had"}> : () -> ()
    %cst_16 = arith.constant dense<0.000000e+00> : vector<4x16x8xf32>
    %34 = tpu.matmul %33, %14, %cst_16 {dimension_numbers = #tpu.dot_dimension_numbers<[2], [1], [1], [2], [0, 0, 0, 1, 1, 2], [0], [0]>} : vector<4x16x64xbf16>, vector<4x64x8xbf16>, vector<4x16x8xf32> -> vector<4x16x8xf32>
    "tpu.trace_stop"() : () -> ()
    "tpu.trace_start"() <{level = 10 : i32, message = "hnd,had->hna"}> : () -> ()
    %cst_17 = arith.constant dense<0.000000e+00> : vector<4x64x16xf32>
    %35 = tpu.matmul %4, %19, %cst_17 {dimension_numbers = #tpu.dot_dimension_numbers<[2], [2], [1], [1], [0, 0, 0, 1, 1, 1], [0], [0]>} : vector<4x64x8xbf16>, vector<4x16x8xbf16>, vector<4x64x16xf32> -> vector<4x64x16xf32>
    "tpu.trace_stop"() : () -> ()
    %c0_18 = arith.constant 0 : index
    %c0_19 = arith.constant 0 : index
    %c0_20 = arith.constant 0 : index
    %36 = vector.load %arg6[%c0_18, %c0_19, %c0_20] : memref<4x64x16xf32, #tpu.memory_space<vmem>>, vector<4x64x16xf32>
    %37 = arith.addf %35, %36 : vector<4x64x16xf32>
    %cst_21 = arith.constant dense<0xFF800000> : vector<4x64xf32>
    %38 = vector.multi_reduction <maximumf>, %37, %cst_21 [2] : vector<4x64x16xf32> to vector<4x64xf32>
    %39 = vector.shape_cast %38 : vector<4x64xf32> to vector<4x64x1xf32>
    %40 = vector.broadcast %39 : vector<4x64x1xf32> to vector<4x64x16xf32>
    %41 = arith.subf %37, %40 : vector<4x64x16xf32>
    %42 = math.exp %41 : vector<4x64x16xf32>
    %cst_22 = arith.constant dense<0.000000e+00> : vector<4x64xf32>
    %43 = vector.multi_reduction <add>, %42, %cst_22 [2] : vector<4x64x16xf32> to vector<4x64xf32>
    %44 = vector.shape_cast %43 : vector<4x64xf32> to vector<4x64x1xf32>
    %45 = tpu.reciprocal %44 {approx = true} : vector<4x64x1xf32> -> vector<4x64x1xf32>
    %46 = vector.broadcast %45 : vector<4x64x1xf32> to vector<4x64x16xf32>
    %47 = arith.mulf %42, %46 : vector<4x64x16xf32>
    %48 = arith.truncf %47 : vector<4x64x16xf32> to vector<4x64x16xbf16>
    %49 = arith.truncf %34 : vector<4x16x8xf32> to vector<4x16x8xbf16>
    "tpu.trace_start"() <{level = 10 : i32, message = "hna,had->hnd"}> : () -> ()
    %cst_23 = arith.constant dense<0.000000e+00> : vector<4x64x8xf32>
    %50 = tpu.matmul %48, %49, %cst_23 {dimension_numbers = #tpu.dot_dimension_numbers<[2], [1], [1], [2], [0, 0, 0, 1, 1, 2], [0], [0]>} : vector<4x64x16xbf16>, vector<4x16x8xbf16>, vector<4x64x8xf32> -> vector<4x64x8xf32>
    "tpu.trace_stop"() : () -> ()
    %51 = tpu.transpose %50, [1, 0, 2] : vector<4x64x8xf32> -> vector<64x4x8xf32>
    %52 = vector.shape_cast %51 : vector<64x4x8xf32> to vector<64x32xf32>
    %c0_24 = arith.constant 0 : index
    %c0_25 = arith.constant 0 : index
    %c0_26 = arith.constant 0 : index
    %53 = vector.load %arg7[%c0_24, %c0_25, %c0_26] : memref<1x64x32xf32, #tpu.memory_space<vmem>>, vector<1x64x32xf32>
    %54 = vector.shape_cast %53 : vector<1x64x32xf32> to vector<64x32xf32>
    %55 = vector.shape_cast %52 : vector<64x32xf32> to vector<1x64x32xf32>
    tpu.vector_store %arg7[%c0_24, %c0_25, %c0_26], %55 {strides = array<i32>} : memref<1x64x32xf32, #tpu.memory_space<vmem>>, vector<1x64x32xf32>,
    return
  }
  func.func @transform_0(%arg0: i32) -> (i32, i32, i32) {
    %c0_i32 = arith.constant 0 : i32
    %c0_i32_0 = arith.constant 0 : i32
    %c0_i32_1 = arith.constant 0 : i32
    return %arg0, %c0_i32, %c0_i32_0 : i32, i32, i32
  }
  func.func @transform_1(%arg0: i32) -> (i32, i32, i32) {
    %c0_i32 = arith.constant 0 : i32
    %c0_i32_0 = arith.constant 0 : i32
    %c0_i32_1 = arith.constant 0 : i32
    return %arg0, %c0_i32, %c0_i32_0 : i32, i32, i32
  }
  func.func @transform_2(%arg0: i32) -> (i32, i32, i32) {
    %c0_i32 = arith.constant 0 : i32
    %c0_i32_0 = arith.constant 0 : i32
    %c0_i32_1 = arith.constant 0 : i32
    return %arg0, %c0_i32, %c0_i32_0 : i32, i32, i32
  }
  func.func @transform_3(%arg0: i32) -> (i32, i32, i32) {
    %c0_i32 = arith.constant 0 : i32
    %c0_i32_0 = arith.constant 0 : i32
    %c0_i32_1 = arith.constant 0 : i32
    return %arg0, %c0_i32, %c0_i32_0 : i32, i32, i32
  }
  func.func @transform_4(%arg0: i32) -> (i32, i32, i32) {
    %c0_i32 = arith.constant 0 : i32
    %c0_i32_0 = arith.constant 0 : i32
    %c0_i32_1 = arith.constant 0 : i32
    %c0_i32_2 = arith.constant 0 : i32
    return %c0_i32, %c0_i32_0, %c0_i32_1 : i32, i32, i32
  }
  func.func @transform_5(%arg0: i32) -> (i32, i32, i32) {
    %c0_i32 = arith.constant 0 : i32
    %c0_i32_0 = arith.constant 0 : i32
    %c0_i32_1 = arith.constant 0 : i32
    %c0_i32_2 = arith.constant 0 : i32
    return %c0_i32, %c0_i32_0, %c0_i32_1 : i32, i32, i32
  }
  func.func @transform_6(%arg0: i32) -> (i32, i32, i32) {
    %c0_i32 = arith.constant 0 : i32
    %c0_i32_0 = arith.constant 0 : i32
    %c0_i32_1 = arith.constant 0 : i32
    return %arg0, %c0_i32, %c0_i32_0 : i32, i32, i32
  }
}

module attributes {stable_mosaic.version = 11 : i64} {
  func.func @_dwc_kernel(%arg0: i32, %arg1: memref<1x8x8x32xf32, #tpu.memory_space<vmem>>, %arg2: memref<3x3x32xf32, #tpu.memory_space<vmem>>, %arg3: memref<1x32xf32, #tpu.memory_space<vmem>>, %arg4: memref<1x64x32xf32, #tpu.memory_space<vmem>>, %arg5: memref<10x10x32xf32, #tpu.memory_space<vmem>>) attributes {dimension_semantics = [#tpu.dimension_semantics<parallel>], iteration_bounds = array<i64: 2>, scalar_prefetch = 0 : i64, scratch_operands = 1 : i64, tpu.core_type = #tpu.core_type<tc>, window_params = [{transform_indices = @transform_0, window_bounds = array<i64: 1, 8, 8, 32>}, {pipeline_mode = #tpu.pipeline_mode<synchronous>, transform_indices = @transform_1, window_bounds = array<i64: 3, 3, 32>}, {pipeline_mode = #tpu.pipeline_mode<synchronous>, transform_indices = @transform_2, window_bounds = array<i64: 1, 32>}, {transform_indices = @transform_3, window_bounds = array<i64: 1, 64, 32>}]} {
    %cst = arith.constant 0.000000e+00 : f32
    %0 = vector.broadcast %cst : f32 to vector<10x10x32xf32>
    %c0 = arith.constant 0 : index
    %c0_0 = arith.constant 0 : index
    %c0_1 = arith.constant 0 : index
    %1 = vector.load %arg5[%c0, %c0_0, %c0_1] : memref<10x10x32xf32, #tpu.memory_space<vmem>>, vector<10x10x32xf32>
    tpu.vector_store %arg5[%c0, %c0_0, %c0_1], %0 {strides = array<i32>} : memref<10x10x32xf32, #tpu.memory_space<vmem>>, vector<10x10x32xf32>,
    %c0_2 = arith.constant 0 : index
    %c0_3 = arith.constant 0 : index
    %c0_4 = arith.constant 0 : index
    %c0_5 = arith.constant 0 : index
    %2 = vector.load %arg1[%c0_2, %c0_3, %c0_4, %c0_5] : memref<1x8x8x32xf32, #tpu.memory_space<vmem>>, vector<1x8x8x32xf32>
    %3 = vector.shape_cast %2 : vector<1x8x8x32xf32> to vector<8x8x32xf32>
    %c1 = arith.constant 1 : index
    %c1_6 = arith.constant 1 : index
    %c0_7 = arith.constant 0 : index
    %4 = vector.load %arg5[%c1, %c1_6, %c0_7] : memref<10x10x32xf32, #tpu.memory_space<vmem>>, vector<8x8x32xf32>
    tpu.vector_store %arg5[%c1, %c1_6, %c0_7], %3 {strides = array<i32>} : memref<10x10x32xf32, #tpu.memory_space<vmem>>, vector<8x8x32xf32>,
    %c0_8 = arith.constant 0 : index
    %c0_9 = arith.constant 0 : index
    %c0_10 = arith.constant 0 : index
    %5 = vector.load %arg2[%c0_8, %c0_9, %c0_10] : memref<3x3x32xf32, #tpu.memory_space<vmem>>, vector<3x3x32xf32>
    %cst_11 = arith.constant 0.000000e+00 : f32
    %6 = vector.broadcast %cst_11 : f32 to vector<8x8x32xf32>
    %c0_12 = arith.constant 0 : index
    %c0_13 = arith.constant 0 : index
    %c0_14 = arith.constant 0 : index
    %7 = vector.load %arg5[%c0_12, %c0_13, %c0_14] : memref<10x10x32xf32, #tpu.memory_space<vmem>>, vector<8x8x32xf32>
    %8 = vector.extract_strided_slice %5 {offsets = [0, 0, 0], sizes = [1, 1, 32], strides = [1, 1, 1]} : vector<3x3x32xf32> to vector<1x1x32xf32>
    %9 = vector.shape_cast %8 : vector<1x1x32xf32> to vector<32xf32>
    %10 = vector.shape_cast %9 : vector<32xf32> to vector<1x1x32xf32>
    %11 = vector.broadcast %10 : vector<1x1x32xf32> to vector<8x8x32xf32>
    %12 = arith.mulf %7, %11 : vector<8x8x32xf32>
    %13 = arith.addf %6, %12 : vector<8x8x32xf32>
    %c0_15 = arith.constant 0 : index
    %c1_16 = arith.constant 1 : index
    %c0_17 = arith.constant 0 : index
    %14 = vector.load %arg5[%c0_15, %c1_16, %c0_17] : memref<10x10x32xf32, #tpu.memory_space<vmem>>, vector<8x8x32xf32>
    %15 = vector.extract_strided_slice %5 {offsets = [0, 1, 0], sizes = [1, 1, 32], strides = [1, 1, 1]} : vector<3x3x32xf32> to vector<1x1x32xf32>
    %16 = vector.shape_cast %15 : vector<1x1x32xf32> to vector<32xf32>
    %17 = vector.shape_cast %16 : vector<32xf32> to vector<1x1x32xf32>
    %18 = vector.broadcast %17 : vector<1x1x32xf32> to vector<8x8x32xf32>
    %19 = arith.mulf %14, %18 : vector<8x8x32xf32>
    %20 = arith.addf %13, %19 : vector<8x8x32xf32>
    %c0_18 = arith.constant 0 : index
    %c2 = arith.constant 2 : index
    %c0_19 = arith.constant 0 : index
    %21 = vector.load %arg5[%c0_18, %c2, %c0_19] : memref<10x10x32xf32, #tpu.memory_space<vmem>>, vector<8x8x32xf32>
    %22 = vector.extract_strided_slice %5 {offsets = [0, 2, 0], sizes = [1, 1, 32], strides = [1, 1, 1]} : vector<3x3x32xf32> to vector<1x1x32xf32>
    %23 = vector.shape_cast %22 : vector<1x1x32xf32> to vector<32xf32>
    %24 = vector.shape_cast %23 : vector<32xf32> to vector<1x1x32xf32>
    %25 = vector.broadcast %24 : vector<1x1x32xf32> to vector<8x8x32xf32>
    %26 = arith.mulf %21, %25 : vector<8x8x32xf32>
    %27 = arith.addf %20, %26 : vector<8x8x32xf32>
    %c1_20 = arith.constant 1 : index
    %c0_21 = arith.constant 0 : index
    %c0_22 = arith.constant 0 : index
    %28 = vector.load %arg5[%c1_20, %c0_21, %c0_22] : memref<10x10x32xf32, #tpu.memory_space<vmem>>, vector<8x8x32xf32>
    %29 = vector.extract_strided_slice %5 {offsets = [1, 0, 0], sizes = [1, 1, 32], strides = [1, 1, 1]} : vector<3x3x32xf32> to vector<1x1x32xf32>
    %30 = vector.shape_cast %29 : vector<1x1x32xf32> to vector<32xf32>
    %31 = vector.shape_cast %30 : vector<32xf32> to vector<1x1x32xf32>
    %32 = vector.broadcast %31 : vector<1x1x32xf32> to vector<8x8x32xf32>
    %33 = arith.mulf %28, %32 : vector<8x8x32xf32>
    %34 = arith.addf %27, %33 : vector<8x8x32xf32>
    %c1_23 = arith.constant 1 : index
    %c1_24 = arith.constant 1 : index
    %c0_25 = arith.constant 0 : index
    %35 = vector.load %arg5[%c1_23, %c1_24, %c0_25] : memref<10x10x32xf32, #tpu.memory_space<vmem>>, vector<8x8x32xf32>
    %36 = vector.extract_strided_slice %5 {offsets = [1, 1, 0], sizes = [1, 1, 32], strides = [1, 1, 1]} : vector<3x3x32xf32> to vector<1x1x32xf32>
    %37 = vector.shape_cast %36 : vector<1x1x32xf32> to vector<32xf32>
    %38 = vector.shape_cast %37 : vector<32xf32> to vector<1x1x32xf32>
    %39 = vector.broadcast %38 : vector<1x1x32xf32> to vector<8x8x32xf32>
    %40 = arith.mulf %35, %39 : vector<8x8x32xf32>
    %41 = arith.addf %34, %40 : vector<8x8x32xf32>
    %c1_26 = arith.constant 1 : index
    %c2_27 = arith.constant 2 : index
    %c0_28 = arith.constant 0 : index
    %42 = vector.load %arg5[%c1_26, %c2_27, %c0_28] : memref<10x10x32xf32, #tpu.memory_space<vmem>>, vector<8x8x32xf32>
    %43 = vector.extract_strided_slice %5 {offsets = [1, 2, 0], sizes = [1, 1, 32], strides = [1, 1, 1]} : vector<3x3x32xf32> to vector<1x1x32xf32>
    %44 = vector.shape_cast %43 : vector<1x1x32xf32> to vector<32xf32>
    %45 = vector.shape_cast %44 : vector<32xf32> to vector<1x1x32xf32>
    %46 = vector.broadcast %45 : vector<1x1x32xf32> to vector<8x8x32xf32>
    %47 = arith.mulf %42, %46 : vector<8x8x32xf32>
    %48 = arith.addf %41, %47 : vector<8x8x32xf32>
    %c2_29 = arith.constant 2 : index
    %c0_30 = arith.constant 0 : index
    %c0_31 = arith.constant 0 : index
    %49 = vector.load %arg5[%c2_29, %c0_30, %c0_31] : memref<10x10x32xf32, #tpu.memory_space<vmem>>, vector<8x8x32xf32>
    %50 = vector.extract_strided_slice %5 {offsets = [2, 0, 0], sizes = [1, 1, 32], strides = [1, 1, 1]} : vector<3x3x32xf32> to vector<1x1x32xf32>
    %51 = vector.shape_cast %50 : vector<1x1x32xf32> to vector<32xf32>
    %52 = vector.shape_cast %51 : vector<32xf32> to vector<1x1x32xf32>
    %53 = vector.broadcast %52 : vector<1x1x32xf32> to vector<8x8x32xf32>
    %54 = arith.mulf %49, %53 : vector<8x8x32xf32>
    %55 = arith.addf %48, %54 : vector<8x8x32xf32>
    %c2_32 = arith.constant 2 : index
    %c1_33 = arith.constant 1 : index
    %c0_34 = arith.constant 0 : index
    %56 = vector.load %arg5[%c2_32, %c1_33, %c0_34] : memref<10x10x32xf32, #tpu.memory_space<vmem>>, vector<8x8x32xf32>
    %57 = vector.extract_strided_slice %5 {offsets = [2, 1, 0], sizes = [1, 1, 32], strides = [1, 1, 1]} : vector<3x3x32xf32> to vector<1x1x32xf32>
    %58 = vector.shape_cast %57 : vector<1x1x32xf32> to vector<32xf32>
    %59 = vector.shape_cast %58 : vector<32xf32> to vector<1x1x32xf32>
    %60 = vector.broadcast %59 : vector<1x1x32xf32> to vector<8x8x32xf32>
    %61 = arith.mulf %56, %60 : vector<8x8x32xf32>
    %62 = arith.addf %55, %61 : vector<8x8x32xf32>
    %c2_35 = arith.constant 2 : index
    %c2_36 = arith.constant 2 : index
    %c0_37 = arith.constant 0 : index
    %63 = vector.load %arg5[%c2_35, %c2_36, %c0_37] : memref<10x10x32xf32, #tpu.memory_space<vmem>>, vector<8x8x32xf32>
    %64 = vector.extract_strided_slice %5 {offsets = [2, 2, 0], sizes = [1, 1, 32], strides = [1, 1, 1]} : vector<3x3x32xf32> to vector<1x1x32xf32>
    %65 = vector.shape_cast %64 : vector<1x1x32xf32> to vector<32xf32>
    %66 = vector.shape_cast %65 : vector<32xf32> to vector<1x1x32xf32>
    %67 = vector.broadcast %66 : vector<1x1x32xf32> to vector<8x8x32xf32>
    %68 = arith.mulf %63, %67 : vector<8x8x32xf32>
    %69 = arith.addf %62, %68 : vector<8x8x32xf32>
    %c0_38 = arith.constant 0 : index
    %c0_39 = arith.constant 0 : index
    %70 = vector.load %arg3[%c0_38, %c0_39] : memref<1x32xf32, #tpu.memory_space<vmem>>, vector<1x32xf32>
    %71 = vector.shape_cast %70 : vector<1x32xf32> to vector<1x1x32xf32>
    %72 = vector.broadcast %71 : vector<1x1x32xf32> to vector<8x8x32xf32>
    %73 = arith.addf %69, %72 : vector<8x8x32xf32>
    %74 = vector.shape_cast %73 : vector<8x8x32xf32> to vector<64x32xf32>
    %c0_40 = arith.constant 0 : index
    %c0_41 = arith.constant 0 : index
    %c0_42 = arith.constant 0 : index
    %75 = vector.load %arg4[%c0_40, %c0_41, %c0_42] : memref<1x64x32xf32, #tpu.memory_space<vmem>>, vector<1x64x32xf32>
    %76 = vector.shape_cast %75 : vector<1x64x32xf32> to vector<64x32xf32>
    %77 = vector.shape_cast %74 : vector<64x32xf32> to vector<1x64x32xf32>
    tpu.vector_store %arg4[%c0_40, %c0_41, %c0_42], %77 {strides = array<i32>} : memref<1x64x32xf32, #tpu.memory_space<vmem>>, vector<1x64x32xf32>,
    return
  }
  func.func @transform_0(%arg0: i32) -> (i32, i32, i32, i32) {
    %c0_i32 = arith.constant 0 : i32
    %c0_i32_0 = arith.constant 0 : i32
    %c0_i32_1 = arith.constant 0 : i32
    %c0_i32_2 = arith.constant 0 : i32
    return %arg0, %c0_i32, %c0_i32_0, %c0_i32_1 : i32, i32, i32, i32
  }
  func.func @transform_1(%arg0: i32) -> (i32, i32, i32) {
    %c0_i32 = arith.constant 0 : i32
    %c0_i32_0 = arith.constant 0 : i32
    %c0_i32_1 = arith.constant 0 : i32
    %c0_i32_2 = arith.constant 0 : i32
    return %c0_i32, %c0_i32_0, %c0_i32_1 : i32, i32, i32
  }
  func.func @transform_2(%arg0: i32) -> (i32, i32) {
    %c0_i32 = arith.constant 0 : i32
    %c0_i32_0 = arith.constant 0 : i32
    %c0_i32_1 = arith.constant 0 : i32
    return %c0_i32, %c0_i32_0 : i32, i32
  }
  func.func @transform_3(%arg0: i32) -> (i32, i32, i32) {
    %c0_i32 = arith.constant 0 : i32
    %c0_i32_0 = arith.constant 0 : i32
    %c0_i32_1 = arith.constant 0 : i32
    return %arg0, %c0_i32, %c0_i32_0 : i32, i32, i32
  }
}

module attributes {stable_mosaic.version = 11 : i64} {
  func.func @_add_matmul_bias_kernel(%arg0: i32, %arg1: i32, %arg2: i32, %arg3: memref<128x32xf32, #tpu.memory_space<vmem>>, %arg4: memref<128x32xf32, #tpu.memory_space<vmem>>, %arg5: memref<32x32xbf16, #tpu.memory_space<vmem>>, %arg6: memref<1x32xf32, #tpu.memory_space<vmem>>, %arg7: memref<128x32xf32, #tpu.memory_space<vmem>>, %arg8: memref<128x32xf32, #tpu.memory_space<vmem>>) attributes {dimension_semantics = [#tpu.dimension_semantics<parallel>, #tpu.dimension_semantics<parallel>, #tpu.dimension_semantics<arbitrary>], iteration_bounds = array<i64: 1, 1, 1>, scalar_prefetch = 0 : i64, scratch_operands = 1 : i64, tpu.core_type = #tpu.core_type<tc>, window_params = [{transform_indices = @transform_0, window_bounds = array<i64: 128, 32>}, {transform_indices = @transform_1, window_bounds = array<i64: 128, 32>}, {transform_indices = @transform_2, window_bounds = array<i64: 32, 32>}, {transform_indices = @transform_3, window_bounds = array<i64: 1, 32>}, {transform_indices = @transform_4, window_bounds = array<i64: 128, 32>}]} {
    %c0_i32 = arith.constant 0 : i32
    %0 = arith.cmpi eq, %arg2, %c0_i32 : i32
    %1 = arith.extui %0 : i1 to i32
    %c0_i32_0 = arith.constant 0 : i32
    %2 = arith.cmpi ne, %1, %c0_i32_0 : i32
    scf.if %2 {
      %cst_12 = arith.constant 0.000000e+00 : f32
      %15 = vector.broadcast %cst_12 : f32 to vector<128x32xf32>
      %c0_13 = arith.constant 0 : index
      %c0_14 = arith.constant 0 : index
      %16 = vector.load %arg8[%c0_13, %c0_14] : memref<128x32xf32, #tpu.memory_space<vmem>>, vector<128x32xf32>
      tpu.vector_store %arg8[%c0_13, %c0_14], %15 {strides = array<i32>} : memref<128x32xf32, #tpu.memory_space<vmem>>, vector<128x32xf32>,
    } else {
    }
    %c0 = arith.constant 0 : index
    %c0_1 = arith.constant 0 : index
    %3 = vector.load %arg3[%c0, %c0_1] : memref<128x32xf32, #tpu.memory_space<vmem>>, vector<128x32xf32>
    %c0_2 = arith.constant 0 : index
    %c0_3 = arith.constant 0 : index
    %4 = vector.load %arg4[%c0_2, %c0_3] : memref<128x32xf32, #tpu.memory_space<vmem>>, vector<128x32xf32>
    %5 = arith.addf %3, %4 : vector<128x32xf32>
    %c0_4 = arith.constant 0 : index
    %c0_5 = arith.constant 0 : index
    %6 = vector.load %arg8[%c0_4, %c0_5] : memref<128x32xf32, #tpu.memory_space<vmem>>, vector<128x32xf32>
    %7 = arith.truncf %5 : vector<128x32xf32> to vector<128x32xbf16>
    %c0_6 = arith.constant 0 : index
    %c0_7 = arith.constant 0 : index
    %8 = vector.load %arg5[%c0_6, %c0_7] : memref<32x32xbf16, #tpu.memory_space<vmem>>, vector<32x32xbf16>
    %cst = arith.constant dense<0.000000e+00> : vector<128x32xf32>
    %9 = tpu.matmul %7, %8, %cst {dimension_numbers = #tpu.dot_dimension_numbers<[1], [0], [0], [1], [0, 0, 1, 1], [], []>} : vector<128x32xbf16>, vector<32x32xbf16>, vector<128x32xf32> -> vector<128x32xf32>
    %10 = arith.addf %6, %9 : vector<128x32xf32>
    %c0_8 = arith.constant 0 : index
    %c0_9 = arith.constant 0 : index
    %11 = vector.load %arg8[%c0_8, %c0_9] : memref<128x32xf32, #tpu.memory_space<vmem>>, vector<128x32xf32>
    tpu.vector_store %arg8[%c0_8, %c0_9], %10 {strides = array<i32>} : memref<128x32xf32, #tpu.memory_space<vmem>>, vector<128x32xf32>,
    %c0_i32_10 = arith.constant 0 : i32
    %12 = arith.cmpi eq, %arg2, %c0_i32_10 : i32
    %13 = arith.extui %12 : i1 to i32
    %c0_i32_11 = arith.constant 0 : i32
    %14 = arith.cmpi ne, %13, %c0_i32_11 : i32
    scf.if %14 {
      %c0_12 = arith.constant 0 : index
      %c0_13 = arith.constant 0 : index
      %15 = vector.load %arg8[%c0_12, %c0_13] : memref<128x32xf32, #tpu.memory_space<vmem>>, vector<128x32xf32>
      %c0_14 = arith.constant 0 : index
      %c0_15 = arith.constant 0 : index
      %16 = vector.load %arg6[%c0_14, %c0_15] : memref<1x32xf32, #tpu.memory_space<vmem>>, vector<1x32xf32>
      %17 = vector.broadcast %16 : vector<1x32xf32> to vector<128x32xf32>
      %18 = arith.addf %15, %17 : vector<128x32xf32>
      %c0_16 = arith.constant 0 : index
      %c0_17 = arith.constant 0 : index
      %19 = vector.load %arg7[%c0_16, %c0_17] : memref<128x32xf32, #tpu.memory_space<vmem>>, vector<128x32xf32>
      tpu.vector_store %arg7[%c0_16, %c0_17], %18 {strides = array<i32>} : memref<128x32xf32, #tpu.memory_space<vmem>>, vector<128x32xf32>,
    } else {
    }
    return
  }
  func.func @transform_0(%arg0: i32, %arg1: i32, %arg2: i32) -> (i32, i32) {
    %c0_i32 = arith.constant 0 : i32
    return %arg0, %arg2 : i32, i32
  }
  func.func @transform_1(%arg0: i32, %arg1: i32, %arg2: i32) -> (i32, i32) {
    %c0_i32 = arith.constant 0 : i32
    return %arg0, %arg2 : i32, i32
  }
  func.func @transform_2(%arg0: i32, %arg1: i32, %arg2: i32) -> (i32, i32) {
    %c0_i32 = arith.constant 0 : i32
    return %arg2, %arg1 : i32, i32
  }
  func.func @transform_3(%arg0: i32, %arg1: i32, %arg2: i32) -> (i32, i32) {
    %c0_i32 = arith.constant 0 : i32
    %c0_i32_0 = arith.constant 0 : i32
    return %c0_i32, %arg1 : i32, i32
  }
  func.func @transform_4(%arg0: i32, %arg1: i32, %arg2: i32) -> (i32, i32) {
    %c0_i32 = arith.constant 0 : i32
    return %arg0, %arg1 : i32, i32
  }
}

</mosaic_0001>

<bundles_post_ra>
// kernel: msgaa_forward.6
= control target key start
LH: loop header
LB: loop body
LE: loop exit
PB: predicated region body
PF: predicated region fallthrough
CT: control target
= control target key end

     0   :  { %14 = vsyncpa [#allocation6], 0  ;;  %s1765_s0 = inlined_call_operand.hbm [shape: f32[128,32], index: 0, kind: input, shape index: {}]   ;;  %s1766_s1 = inlined_call_operand.hbm [shape: f32[1,32], index: 1, kind: input, shape index: {}]   ;;  %s1767_s2 = inlined_call_operand.hbm [shape: f32[1,32], index: 2, kind: input, shape index: {}]   ;;  %s1768_s3 = inlined_call_operand.hbm [shape: bf16[32,32], index: 3, kind: input, shape index: {}]   ;;  %s1769_s4 = inlined_call_operand.hbm [shape: bf16[32,32], index: 4, kind: input, shape index: {}]   ;;  %s1770_s5 = inlined_call_operand.hbm [shape: bf16[32,32], index: 5, kind: input, shape index: {}]   ;;  %s1771_s6 = inlined_call_operand.hbm [shape: f32[128,32], index: 6, kind: output, shape index: {0}]   ;;  %s1772_s7 = inlined_call_operand.hbm [shape: f32[128,32], index: 7, kind: output, shape index: {1}]   ;;  %s1773_s8 = inlined_call_operand.hbm [shape: f32[128,32], index: 8, kind: output, shape index: {2}]  }
   0x1   :  { %15 = vsyncpa [#allocation9], 0 }
   0x2   :  { %16 = vsyncpa [#allocation12], 0 }
   0x3   :  { %17 = vsyncpa [#allocation15], 0 }
   0x4   :  { %18 = vsyncpa [#allocation7], 0 }
   0x5   :  { %19 = vsyncpa [#allocation18], 0  ;;  %s1324_s27 = smov [#allocation8]   ;;  %s1325_s29 = smov [#allocation11]  }
   0x6   :  { %s38_s28 = sshll.u32 %s1324_s27, 4  ;;  %s57_s30 = sshll.u32 %s1325_s29, 4  ;;  %s39_s28 = int_to_ptr.vmem [resolvable:$true] %s38_s28  ;;  %s1383_s30 = int_to_ptr.vmem [resolvable:$true] %s57_s30 }
   0x7   :  { %s1114_s11 = scalar_lea.hbm %s1766_s1, 16 }
   0x8   :  { %p1115_p0 = scmp.ne.s32.totalorder %s1766_s1, %s1114_s11  ;;  %p1118_p1 = scmp.lt.u32.totalorder %s1114_s11, %s1766_s1 }
   0xa   :  { %p1120_p2 = pnand %p1118_p1, %p1115_p0 }
   0xc   :  { %1123 = shalt.err (!%p1120_p2)
}
   0xd   :  { %s1124_s16 = scalar_lea.vmem %s39_s28, 16  ;;  %s1128_s17 = scalar_lea.vmem %s39_s28, 32 }
   0xe   :  { %p1125_p3 = scmp.ne.s32.totalorder %s39_s28, %s1124_s16  ;;  %p1129_p4 = scmp.lt.s32.totalorder %s39_s28, %s39_s28 }
   0xf   :  { %p1130_p5 = scmp.lt.s32.totalorder %s1128_s17, %s1124_s16 }
  0x11   :  { %p1131_p6 = por %p1130_p5, %p1129_p4 }
  0x13   :  { %p1132_p7 = pnand %p1131_p6, %p1125_p3 }
  0x15   :  { %1135 = shalt.err (!%p1132_p7)
}
  0x16   :  { %41 = dma.hbm_to_vmem [thread:$0]  %s1766_s1, 16, %s39_s28, [#allocation9]  }
  0x17   :  { %s1136_s22 = scalar_lea.hbm %s1768_s3, 256 }
  0x18   :  { %p1137_p8 = scmp.ne.s32.totalorder %s1768_s3, %s1136_s22  ;;  %p1140_p9 = scmp.lt.u32.totalorder %s1136_s22, %s1768_s3 }
  0x1a   :  { %p1142_p10 = pnand %p1140_p9, %p1137_p8 }
  0x1c   :  { %1145 = shalt.err (!%p1142_p10)
}
  0x1d   :  { %s1146_s27 = scalar_lea.vmem %s1383_s30, 256  ;;  %p1151_p12 = scmp.lt.s32.totalorder %s1383_s30, %s1383_s30 }
  0x1e   :  { %p1147_p11 = scmp.ne.s32.totalorder %s1383_s30, %s1146_s27  ;;  %p1152_p13 = scmp.lt.s32.totalorder %s1146_s27, %s1146_s27 }
  0x20   :  { %p1153_p0 = por %p1152_p13, %p1151_p12 }
  0x22   :  { %p1154_p1 = pnand %p1153_p0, %p1147_p11 }
  0x24   :  { %1157 = shalt.err (!%p1154_p1)
}
  0x25   :  { %s1326_s1 = smov 64   ;;  %s1327_s28 = smov 4  }
  0x26   :  { %63 = dma.hbm_to_vmem [thread:$0]  %s1768_s3, 256, %s1383_s30, [#allocation12], %s1326_s1, %s1326_s1, %s1327_s28  }
  0x27   :  { %s1328_s10 = smov [#allocation5]   ;;  %s1158_s14 = scalar_lea.hbm %s1765_s0, 2048 }
  0x28   :  { %s25_s11 = sshll.u32 %s1328_s10, 4  ;;  %p1159_p2 = scmp.ne.s32.totalorder %s1765_s0, %s1158_s14  ;;  %s26_s11 = int_to_ptr.vmem [resolvable:$true] %s25_s11 }
  0x29   :  { %p1162_p3 = scmp.lt.u32.totalorder %s1158_s14, %s1765_s0 }
  0x2b   :  { %p1164_p4 = pnand %p1162_p3, %p1159_p2 }
  0x2d   :  { %1167 = shalt.err (!%p1164_p4)
}
  0x2e   :  { %s1168_s19 = scalar_lea.vmem %s26_s11, 2048  ;;  %p1173_p6 = scmp.lt.s32.totalorder %s26_s11, %s26_s11 }
  0x2f   :  { %p1169_p5 = scmp.ne.s32.totalorder %s26_s11, %s1168_s19  ;;  %p1174_p7 = scmp.lt.s32.totalorder %s1168_s19, %s1168_s19 }
  0x31   :  { %p1175_p8 = por %p1174_p7, %p1173_p6 }
  0x33   :  { %p1176_p9 = pnand %p1175_p8, %p1169_p5 }
  0x35   :  { %1179 = shalt.err (!%p1176_p9)
}
  0x36   :  { %s1329_s3 = smov 128   ;;  %s1330_s30 = smov 8  }
  0x37   :  { %31 = dma.hbm_to_vmem [thread:$0]  %s1765_s0, 2048, %s26_s11, [#allocation6], %s1329_s3, %s1329_s3, %s1330_s30  }
  0x38   :  { %s1331_s22 = smov [#allocation10]   ;;  %s1332_s24 = smov [#allocation13]  }
  0x39   :  { %s48_s23 = sshll.u32 %s1331_s22, 4  ;;  %s69_s25 = sshll.u32 %s1332_s24, 4  ;;  %s49_s23 = int_to_ptr.vmem [resolvable:$true] %s48_s23  ;;  %s70_s25 = int_to_ptr.vmem [resolvable:$true] %s69_s25 }
  0x3a   :  { %s1180_s29 = scalar_lea.hbm %s1767_s2, 16 }
  0x3b   :  { %p1181_p10 = scmp.ne.s32.totalorder %s1767_s2, %s1180_s29  ;;  %p1184_p11 = scmp.lt.u32.totalorder %s1180_s29, %s1767_s2 }
  0x3d   :  { %p1186_p12 = pnand %p1184_p11, %p1181_p10 }
  0x3f   :  { %1189 = shalt.err (!%p1186_p12)
}
  0x40   :  { %s1190_s0 = scalar_lea.vmem %s49_s23, 16  ;;  %s1194_s11 = scalar_lea.vmem %s49_s23, 32 }
  0x41   :  { %p1191_p13 = scmp.ne.s32.totalorder %s49_s23, %s1190_s0  ;;  %p1195_p0 = scmp.lt.s32.totalorder %s49_s23, %s49_s23 }
  0x42   :  { %p1196_p1 = scmp.lt.s32.totalorder %s1194_s11, %s1190_s0 }
  0x44   :  { %p1197_p2 = por %p1196_p1, %p1195_p0 }
  0x46   :  { %p1198_p3 = pnand %p1197_p2, %p1191_p13 }
  0x48   :  { %1201 = shalt.err (!%p1198_p3)
}
  0x49   :  { %51 = dma.hbm_to_vmem [thread:$0]  %s1767_s2, 16, %s49_s23, [#allocation9]  }
  0x4a   :  { %s1202_s18 = scalar_lea.hbm %s1769_s4, 256 }
  0x4b   :  { %p1203_p4 = scmp.ne.s32.totalorder %s1769_s4, %s1202_s18  ;;  %p1206_p5 = scmp.lt.u32.totalorder %s1202_s18, %s1769_s4 }
  0x4d   :  { %p1208_p6 = pnand %p1206_p5, %p1203_p4 }
  0x4f   :  { %1211 = shalt.err (!%p1208_p6)
}
  0x50   :  { %s1212_s24 = scalar_lea.vmem %s70_s25, 256  ;;  %p1217_p8 = scmp.lt.s32.totalorder %s70_s25, %s70_s25 }
  0x51   :  { %p1213_p7 = scmp.ne.s32.totalorder %s70_s25, %s1212_s24  ;;  %p1218_p9 = scmp.lt.s32.totalorder %s1212_s24, %s1212_s24 }
  0x53   :  { %p1219_p10 = por %p1218_p9, %p1217_p8 }
  0x55   :  { %p1220_p11 = pnand %p1219_p10, %p1213_p7 }
  0x57   :  { %1223 = shalt.err (!%p1220_p11)
}
  0x58   :  { %75 = dma.hbm_to_vmem [thread:$0]  %s1769_s4, 256, %s70_s25, [#allocation12], %s1326_s1, %s1326_s1, %s1327_s28  }
  0x59   :  { %s1333_s26 = smov [#allocation14]   ;;  %s1224_s10 = scalar_lea.hbm %s1770_s5, 256 }
  0x5a   :  { %s81_s27 = sshll.u32 %s1333_s26, 4  ;;  %p1225_p12 = scmp.ne.s32.totalorder %s1770_s5, %s1224_s10  ;;  %s82_s27 = int_to_ptr.vmem [resolvable:$true] %s81_s27 }
  0x5b   :  { %p1228_p13 = scmp.lt.u32.totalorder %s1224_s10, %s1770_s5 }
  0x5d   :  { %p1230_p0 = pnand %p1228_p13, %p1225_p12 }
  0x5f   :  { %1233 = shalt.err (!%p1230_p0)
}
  0x60   :  { %s1234_s14 = scalar_lea.vmem %s82_s27, 256  ;;  %p1239_p2 = scmp.lt.s32.totalorder %s82_s27, %s82_s27 }
  0x61   :  { %p1235_p1 = scmp.ne.s32.totalorder %s82_s27, %s1234_s14  ;;  %p1240_p3 = scmp.lt.s32.totalorder %s1234_s14, %s1234_s14 }
  0x63   :  { %p1241_p4 = por %p1240_p3, %p1239_p2 }
  0x65   :  { %p1242_p5 = pnand %p1241_p4, %p1235_p1 }
  0x67   :  { %1245 = shalt.err (!%p1242_p5)
}
  0x68   :  { %87 = dma.hbm_to_vmem [thread:$0]  %s1770_s5, 256, %s82_s27, [#allocation15], %s1326_s1, %s1326_s1, %s1327_s28  }
  0x69   :  { %1312 = dma.done.wait [#allocation6], 2048  }
  0x6a   :  { %1313 = vsyncadd [#allocation6], 4294965248 }
  0x6b   :  { %1314 = dma.done.wait [#allocation9], 32  }
  0x6c   :  { %1315 = vsyncadd [#allocation9], 4294967264 }
  0x6d   :  { %1316 = dma.done.wait [#allocation12], 512  }
  0x6e   :  { %1317 = vsyncadd [#allocation12], 4294966784 }
  0x6f   :  { %1318 = dma.done.wait [#allocation15], 256  }
  0x70   :  { %1319 = vsyncadd [#allocation15], 4294967040  ;;  %vm111_vm0 = vcmask 261120   ;;  %v1334_v0 = vmov 0.0   ;;  %v1108_v1 = vld [vmem:[#allocation11] sm:$0xff]   ;;  %v1109_v2 = vld [vmem:[#allocation11 + $0x8] sm:$0xff]  }
  0x71   :  { %114 = vst.msk [vmem:[#allocation2 + $0x10] sm:$0xff] %vm111_vm0, %v1334_v0  ;;  %112 = vst.msk [vmem:[#allocation2] sm:$0xff] %vm111_vm0, %v1334_v0  ;;  %1090 = vmatprep.subr.bf16.mxu1 %v1108_v1  ;;  %1030 = vmatprep.subr.bf16.mxu0 %v1108_v1  ;;  %v160_v3 = vld [vmem:[#allocation5] sm:$0xff]  ;;  %v161_v4 = vld [vmem:[#allocation5 + $0x8] sm:$0xff]  ;;  %s1335_s5 = smov [#allocation16]  }
  0x72   :  { %113 = vst.msk [vmem:[#allocation2 + $0x8] sm:$0xff] %vm111_vm0, %v1334_v0  ;;  %115 = vst.msk [vmem:[#allocation2 + $0x18] sm:$0xff] %vm111_vm0, %v1334_v0  ;;  %v1522_v5 = vld [vmem:[#allocation8] ss:$0 sm:$0xff]  ;;  %1092 = vmatpush3.bf16.msra.mxu1 %v1108_v1  ;;  %1031 = vmatpush3.bf16.msra.mxu0 %v1108_v1  ;;  %v1526_v8 = vld [vmem:[#allocation10] ss:$0 sm:$0xff] }
  0x73   :  { %116 = vst.msk [vmem:[#allocation2 + $0x20] sm:$0xff] %vm111_vm0, %v1334_v0  ;;  %117 = vst.msk [vmem:[#allocation2 + $0x28] sm:$0xff] %vm111_vm0, %v1334_v0  ;;  %v183_v6 = vmul.f32 %v1522_v5, %v160_v3  ;;  %v184_v7 = vmul.f32 %v1522_v5, %v161_v4  ;;  %v168_v9 = vld [vmem:[#allocation5 + $0x40] sm:$0xff]  ;;  %v169_v10 = vld [vmem:[#allocation5 + $0x48] sm:$0xff]  ;;  %1091 = vmatprep.subr.bf16.mxu1 %v1109_v2  ;;  %1032 = vmatprep.subr.bf16.mxu0 %v1109_v2  ;;  %s922_s1 = sshll.u32 %s1335_s5, 4  ;;  %s1646_s1 = int_to_ptr.vmem [resolvable:$true] %s922_s1 }
  0x74   :  { %118 = vst.msk [vmem:[#allocation2 + $0x30] sm:$0xff] %vm111_vm0, %v1334_v0  ;;  %119 = vst.msk [vmem:[#allocation2 + $0x38] sm:$0xff] %vm111_vm0, %v1334_v0  ;;  %v191_v11 = vmul.f32 %v1522_v5, %v168_v9  ;;  %v192_v12 = vmul.f32 %v1522_v5, %v169_v10  ;;  %v1530_v13 = vld [vmem:[#allocation13] sm:$0xff]   ;;  %v1540_v28 = vld [vmem:[#allocation14] sm:$0xff]   ;;  %s1246_s28 = scalar_lea.vmem %s1646_s1, 2048  ;;  %p1251_p7 = scmp.lt.s32.totalorder %s1646_s1, %s1646_s1 }
  0x75   :  { %120 = vst.msk [vmem:[#allocation2 + $0x40] sm:$0xff] %vm111_vm0, %v1334_v0  ;;  %121 = vst.msk [vmem:[#allocation2 + $0x48] sm:$0xff] %vm111_vm0, %v1334_v0  ;;  %v206_v14 = vadd.f32 %v1526_v8, %v183_v6  ;;  %v207_v15 = vadd.f32 %v1526_v8, %v184_v7  ;;  %v162_v16 = vld [vmem:[#allocation5 + $0x10] sm:$0xff]  ;;  %v163_v17 = vld [vmem:[#allocation5 + $0x18] sm:$0xff]  ;;  %p1247_p6 = scmp.ne.s32.totalorder %s1646_s1, %s1246_s28  ;;  %p1252_p8 = scmp.lt.s32.totalorder %s1246_s28, %s1246_s28 }
  0x76   :  { %122 = vst.msk [vmem:[#allocation2 + $0x50] sm:$0xff] %vm111_vm0, %v1334_v0  ;;  %123 = vst.msk [vmem:[#allocation2 + $0x58] sm:$0xff] %vm111_vm0, %v1334_v0  ;;  %v170_v18 = vld [vmem:[#allocation5 + $0x50] sm:$0xff]  ;;  %v214_v19 = vadd.f32 %v1526_v8, %v191_v11  ;;  %v215_v20 = vadd.f32 %v1526_v8, %v192_v12  ;;  %v185_v21 = vmul.f32 %v1522_v5, %v162_v16  ;;  %v171_v23 = vld [vmem:[#allocation5 + $0x58] sm:$0xff]  ;;  %1093 = vmatpush3.bf16.msra.mxu1 %v1109_v2 }
  0x77   :  { %124 = vst.msk [vmem:[#allocation2 + $0x60] sm:$0xff] %vm111_vm0, %v1334_v0  ;;  %125 = vst.msk [vmem:[#allocation2 + $0x68] sm:$0xff] %vm111_vm0, %v1334_v0  ;;  %v186_v22 = vmul.f32 %v1522_v5, %v163_v17  ;;  %1033 = vmatpush3.bf16.msra.mxu0 %v1109_v2  ;;  %v222_v24 = vadd.f32 3.0, %v206_v14  ;;  %v223_v25 = vadd.f32 3.0, %v207_v15  ;;  %v193_v26 = vmul.f32 %v1522_v5, %v170_v18  ;;  %v164_v57 = vld [vmem:[#allocation5 + $0x20] sm:$0xff]  ;;  %v165_v58 = vld [vmem:[#allocation5 + $0x28] sm:$0xff]  ;;  %p1253_p9 = por %p1252_p8, %p1251_p7 }
  0x78   :  { %126 = vst.msk [vmem:[#allocation2 + $0x70] sm:$0xff] %vm111_vm0, %v1334_v0  ;;  %127 = vst.msk [vmem:[#allocation2 + $0x78] sm:$0xff] %vm111_vm0, %v1334_v0  ;;  %v194_v27 = vmul.f32 %v1522_v5, %v171_v23  ;;  %v230_v29 = vadd.f32 3.0, %v214_v19  ;;  %v231_v30 = vadd.f32 3.0, %v215_v20  ;;  %1050 = vmatprep.subr.bf16.mxu1 %v1530_v13  ;;  %v208_v31 = vadd.f32 %v1526_v8, %v185_v21  ;;  %v172_v3 = vld [vmem:[#allocation5 + $0x60] sm:$0xff]  ;;  %v173_v10 = vld [vmem:[#allocation5 + $0x68] sm:$0xff] }
  0x79   :  { %128 = vst.msk [vmem:[#allocation3] sm:$0xff] %vm111_vm0, %v1334_v0  ;;  %129 = vst.msk [vmem:[#allocation3 + $0x8] sm:$0xff] %vm111_vm0, %v1334_v0  ;;  %v209_v32 = vadd.f32 %v1526_v8, %v186_v22  ;;  %v238_v33 = vmax.f32 %v222_v24, 0.0  ;;  %v239_v34 = vmax.f32 %v223_v25, 0.0  ;;  %v216_v35 = vadd.f32 %v1526_v8, %v193_v26  ;;  %1070 = vmatprep.subr.bf16.mxu0 %v1540_v28  ;;  %v166_v11 = vld [vmem:[#allocation5 + $0x30] sm:$0xff]  ;;  %v167_v17 = vld [vmem:[#allocation5 + $0x38] sm:$0xff]  ;;  %p1254_p10 = pnand %p1253_p9, %p1247_p6 }
  0x7a   :  { %130 = vst.msk [vmem:[#allocation3 + $0x10] sm:$0xff] %vm111_vm0, %v1334_v0  ;;  %131 = vst.msk [vmem:[#allocation3 + $0x18] sm:$0xff] %vm111_vm0, %v1334_v0  ;;  %v217_v36 = vadd.f32 %v1526_v8, %v194_v27  ;;  %v246_v37 = vmax.f32 %v230_v29, 0.0  ;;  %v247_v38 = vmax.f32 %v231_v30, 0.0  ;;  %v224_v39 = vadd.f32 3.0, %v208_v31  ;;  %v174_v22 = vld [vmem:[#allocation5 + $0x70] sm:$0xff] }
  0x7b   :  { %132 = vst.msk [vmem:[#allocation3 + $0x20] sm:$0xff] %vm111_vm0, %v1334_v0  ;;  %133 = vst.msk [vmem:[#allocation3 + $0x28] sm:$0xff] %vm111_vm0, %v1334_v0  ;;  %v225_v40 = vadd.f32 3.0, %v209_v32  ;;  %v254_v41 = vmin.f32 %v238_v33, 6.0  ;;  %v255_v42 = vmin.f32 %v239_v34, 6.0  ;;  %v232_v43 = vadd.f32 3.0, %v216_v35 }
  0x7c   :  { %134 = vst.msk [vmem:[#allocation3 + $0x30] sm:$0xff] %vm111_vm0, %v1334_v0  ;;  %135 = vst.msk [vmem:[#allocation3 + $0x38] sm:$0xff] %vm111_vm0, %v1334_v0  ;;  %v233_v44 = vadd.f32 3.0, %v217_v36  ;;  %v262_v45 = vmin.f32 %v246_v37, 6.0  ;;  %v263_v46 = vmin.f32 %v247_v38, 6.0  ;;  %v240_v47 = vmax.f32 %v224_v39, 0.0 }
  0x7d   :  { %136 = vst.msk [vmem:[#allocation3 + $0x40] sm:$0xff] %vm111_vm0, %v1334_v0  ;;  %137 = vst.msk [vmem:[#allocation3 + $0x48] sm:$0xff] %vm111_vm0, %v1334_v0  ;;  %v241_v48 = vmax.f32 %v225_v40, 0.0  ;;  %v270_v49 = vmul.f32 %v254_v41, %v206_v14  ;;  %v271_v50 = vmul.f32 %v255_v42, %v207_v15  ;;  %v248_v51 = vmax.f32 %v232_v43, 0.0  ;;  %v175_v27 = vld [vmem:[#allocation5 + $0x78] sm:$0xff]  ;;  %v1113_v29 = vld [vmem:[#allocation14 + $0x8] sm:$0xff]  }
  0x7e   :  { %138 = vst.msk [vmem:[#allocation3 + $0x50] sm:$0xff] %vm111_vm0, %v1334_v0  ;;  %139 = vst.msk [vmem:[#allocation3 + $0x58] sm:$0xff] %vm111_vm0, %v1334_v0  ;;  %v249_v52 = vmax.f32 %v233_v44, 0.0  ;;  %v278_v53 = vmul.f32 %v262_v45, %v214_v19  ;;  %v279_v54 = vmul.f32 %v263_v46, %v215_v20  ;;  %v256_v55 = vmin.f32 %v240_v47, 6.0  ;;  %v1112_v33 = vld [vmem:[#allocation13 + $0x8] sm:$0xff]  }
  0x7f   :  { %140 = vst.msk [vmem:[#allocation3 + $0x60] sm:$0xff] %vm111_vm0, %v1334_v0  ;;  %141 = vst.msk [vmem:[#allocation3 + $0x68] sm:$0xff] %vm111_vm0, %v1334_v0  ;;  %v257_v56 = vmin.f32 %v241_v48, 6.0  ;;  %v286_v59 = vmul.f32 0.16666667, %v270_v49  ;;  %v264_v61 = vmin.f32 %v248_v51, 6.0  ;;  %v187_v9 = vmul.f32 %v1522_v5, %v164_v57 }
  0x80   :  { %142 = vst.msk [vmem:[#allocation3 + $0x70] sm:$0xff] %vm111_vm0, %v1334_v0  ;;  %143 = vst.msk [vmem:[#allocation3 + $0x78] sm:$0xff] %vm111_vm0, %v1334_v0  ;;  %v287_v60 = vmul.f32 0.16666667, %v271_v50  ;;  %v265_v62 = vmin.f32 %v249_v52, 6.0  ;;  %v272_v1 = vmul.f32 %v256_v55, %v208_v31  ;;  %v188_v16 = vmul.f32 %v1522_v5, %v165_v58 }
  0x81   :  { %144 = vst.msk [vmem:[#allocation4] sm:$0xff] %vm111_vm0, %v1334_v0  ;;  %145 = vst.msk [vmem:[#allocation4 + $0x8] sm:$0xff] %vm111_vm0, %v1334_v0  ;;  %v294_v63 = vmul.f32 0.16666667, %v278_v53  ;;  %v273_v2 = vmul.f32 %v257_v56, %v209_v32  ;;  %v280_v6 = vmul.f32 %v264_v61, %v216_v35  ;;  %v210_v20 = vadd.f32 %v1526_v8, %v187_v9 }
  0x82   :  { %146 = vst.msk [vmem:[#allocation4 + $0x10] sm:$0xff] %vm111_vm0, %v1334_v0  ;;  %147 = vst.msk [vmem:[#allocation4 + $0x18] sm:$0xff] %vm111_vm0, %v1334_v0  ;;  %v1548_v4 = vpack.c.bf16 %v287_v60, %v286_v59  ;;  %v281_v7 = vmul.f32 %v265_v62, %v217_v36  ;;  %v288_v14 = vmul.f32 0.16666667, %v272_v1  ;;  %v195_v21 = vmul.f32 %v1522_v5, %v172_v3 }
  0x83   :  { %148 = vst.msk [vmem:[#allocation4 + $0x20] sm:$0xff] %vm111_vm0, %v1334_v0  ;;  %149 = vst.msk [vmem:[#allocation4 + $0x28] sm:$0xff] %vm111_vm0, %v1334_v0  ;;  %v289_v15 = vmul.f32 0.16666667, %v273_v2  ;;  %v296_v18 = vmul.f32 0.16666667, %v280_v6  ;;  %v211_v24 = vadd.f32 %v1526_v8, %v188_v16  ;;  %v196_v25 = vmul.f32 %v1522_v5, %v173_v10 }
  0x84   :  { %150 = vst.msk [vmem:[#allocation4 + $0x30] sm:$0xff] %vm111_vm0, %v1334_v0  ;;  %151 = vst.msk [vmem:[#allocation4 + $0x38] sm:$0xff] %vm111_vm0, %v1334_v0  ;;  %1034 = vmatprep.mubr.msk.bf16.mxu0 %vm111_vm0, %v1548_v4  ;;  %v297_v19 = vmul.f32 0.16666667, %v281_v7  ;;  %v189_v26 = vmul.f32 %v1522_v5, %v166_v11  ;;  %v226_v31 = vadd.f32 3.0, %v210_v20  ;;  %v218_v32 = vadd.f32 %v1526_v8, %v195_v21 }
  0x85   :  { %152 = vst.msk [vmem:[#allocation4 + $0x40] sm:$0xff] %vm111_vm0, %v1334_v0  ;;  %153 = vst.msk [vmem:[#allocation4 + $0x48] sm:$0xff] %vm111_vm0, %v1334_v0  ;;  %v1560_v23 = vpack.c.bf16 %v289_v15, %v288_v14  ;;  %v190_v34 = vmul.f32 %v1522_v5, %v167_v17  ;;  %v227_v35 = vadd.f32 3.0, %v211_v24  ;;  %v219_v36 = vadd.f32 %v1526_v8, %v196_v25  ;;  %v318_v25 = vld [vmem:[#allocation2 + $0x40] sm:$0xff] }
  0x86   :  { %154 = vst.msk [vmem:[#allocation4 + $0x50] sm:$0xff] %vm111_vm0, %v1334_v0  ;;  %155 = vst.msk [vmem:[#allocation4 + $0x58] sm:$0xff] %vm111_vm0, %v1334_v0  ;;  %v1565_v30 = vpack.c.bf16 %v297_v19, %v296_v18  ;;  %v212_v37 = vadd.f32 %v1526_v8, %v189_v26  ;;  %v197_v38 = vmul.f32 %v1522_v5, %v174_v22  ;;  %v242_v39 = vmax.f32 %v226_v31, 0.0  ;;  %v320_v22 = vld [vmem:[#allocation2 + $0x50] sm:$0xff]  ;;  %v321_v31 = vld [vmem:[#allocation2 + $0x58] sm:$0xff] }
  0x87   :  { %156 = vst.msk [vmem:[#allocation4 + $0x60] sm:$0xff] %vm111_vm0, %v1334_v0  ;;  %157 = vst.msk [vmem:[#allocation4 + $0x68] sm:$0xff] %vm111_vm0, %v1334_v0  ;;  %1035 = vmatmul.mubr.msk.bf16.vlgmr.msra.gmra.mrb[0].mxu0 %vm111_vm0, %v1560_v23  ;;  %v234_v40 = vadd.f32 3.0, %v218_v32  ;;  %v213_v41 = vadd.f32 %v1526_v8, %v190_v34  ;;  %v198_v42 = vmul.f32 %v1522_v5, %v175_v27  ;;  %v243_v43 = vmax.f32 %v227_v35, 0.0 }
  0x88   :  { %158 = vst.msk [vmem:[#allocation4 + $0x70] sm:$0xff] %vm111_vm0, %v1334_v0  ;;  %159 = vst.msk [vmem:[#allocation4 + $0x78] sm:$0xff] %vm111_vm0, %v1334_v0  ;;  %v295_v0 = vmul.f32 0.16666667, %v279_v54  ;;  %1071 = vmatpush3.bf16.msra.mxu0 %v1540_v28  ;;  %v235_v44 = vadd.f32 3.0, %v219_v36  ;;  %v228_v45 = vadd.f32 3.0, %v212_v37  ;;  %v220_v46 = vadd.f32 %v1526_v8, %v197_v38 }
  0x89   :  { %1072 = vmatprep.subr.bf16.mxu0 %v1113_v29  ;;  %v258_v47 = vmin.f32 %v242_v39, 6.0  ;;  %v250_v48 = vmax.f32 %v234_v40, 0.0  ;;  %v229_v49 = vadd.f32 3.0, %v213_v41  ;;  %v221_v28 = vadd.f32 %v1526_v8, %v198_v42 }
  0x8a   :  { %v1551_v12 = vpack.c.bf16 %v295_v0, %v294_v63  ;;  %v259_v50 = vmin.f32 %v243_v43, 6.0  ;;  %v251_v51 = vmax.f32 %v235_v44, 0.0  ;;  %v244_v52 = vmax.f32 %v228_v45, 0.0 }
  0x8b   :  { %v236_v53 = vadd.f32 3.0, %v220_v46  ;;  %v274_v54 = vmul.f32 %v258_v47, %v210_v20  ;;  %v266_v5 = vmin.f32 %v250_v48, 6.0  ;;  %v245_v55 = vmax.f32 %v229_v49, 0.0 }
  0x8c   :  { %1042 = vmatprep.mubr.msk.bf16.mxu1 %vm111_vm0, %v1551_v12  ;;  %1073 = vmatpush3.bf16.msra.mxu0 %v1113_v29  ;;  %v275_v56 = vmul.f32 %v259_v50, %v211_v24  ;;  %v267_v57 = vmin.f32 %v251_v51, 6.0  ;;  %v260_v58 = vmin.f32 %v244_v52, 6.0  ;;  %v316_v51 = vld [vmem:[#allocation2 + $0x30] sm:$0xff] }
  0x8d   :  { %1043 = vmatmul.mubr.msk.bf16.vlgmr.msra.gmra.mrb[0].mxu1 %vm111_vm0, %v1565_v30  ;;  %v252_v59 = vmax.f32 %v236_v53, 0.0  ;;  %v290_v60 = vmul.f32 0.16666667, %v274_v54  ;;  %v282_v61 = vmul.f32 %v266_v5, %v218_v32  ;;  %v261_v62 = vmin.f32 %v245_v55, 6.0  ;;  %v311_v32 = vld [vmem:[#allocation2 + $0x8] sm:$0xff]  ;;  %v314_v53 = vld [vmem:[#allocation2 + $0x20] sm:$0xff] }
  0x8e   :  { %1051 = vmatpush3.bf16.msra.mxu1 %v1530_v13  ;;  %v237_v13 = vadd.f32 3.0, %v221_v28  ;;  %v291_v0 = vmul.f32 0.16666667, %v275_v56  ;;  %v283_v8 = vmul.f32 %v267_v57, %v219_v36  ;;  %v276_v1 = vmul.f32 %v260_v58, %v212_v37  ;;  %v319_v36 = vld [vmem:[#allocation2 + $0x48] sm:$0xff]  ;;  %v324_v5 = vld [vmem:[#allocation2 + $0x70] sm:$0xff]  ;;  %v317_v55 = vld [vmem:[#allocation2 + $0x38] sm:$0xff] }
  0x8f   :  { %1052 = vmatprep.subr.bf16.mxu1 %v1112_v33  ;;  %v268_v2 = vmin.f32 %v252_v59, 6.0  ;;  %v298_v3 = vmul.f32 0.16666667, %v282_v61  ;;  %v277_v6 = vmul.f32 %v261_v62, %v213_v41  ;;  %v322_v57 = vld [vmem:[#allocation2 + $0x60] sm:$0xff]  ;;  %v315_v58 = vld [vmem:[#allocation2 + $0x28] sm:$0xff]  ;;  %v325_v62 = vld [vmem:[#allocation2 + $0x78] sm:$0xff] }
  0x90   :  { %v253_v63 = vmax.f32 %v237_v13, 0.0  ;;  %v304_v9 = vpack.c.bf16 %v291_v0, %v290_v60  ;;  %v299_v10 = vmul.f32 0.16666667, %v283_v8  ;;  %v292_v11 = vmul.f32 0.16666667, %v276_v1 }
  0x91   :  { %v284_v14 = vmul.f32 %v268_v2, %v220_v46  ;;  %v293_v15 = vmul.f32 0.16666667, %v277_v6  ;;  %v323_v2 = vld [vmem:[#allocation2 + $0x68] sm:$0xff] }
  0x92   :  { %1053 = vmatpush3.bf16.msra.mxu1 %v1112_v33  ;;  %v269_v7 = vmin.f32 %v253_v63, 6.0  ;;  %1038 = vmatprep.mubr.msk.bf16.mxu0 %vm111_vm0, %v304_v9  ;;  %v308_v17 = vpack.c.bf16 %v299_v10, %v298_v3 }
  0x93   :  { %v300_v18 = vmul.f32 0.16666667, %v284_v14  ;;  %v305_v19 = vpack.c.bf16 %v293_v15, %v292_v11  ;;  %v659_v14 = vld [vmem:[#allocation4 + $0x10] sm:$0xff]  ;;  %v657_v15 = vld [vmem:[#allocation4] sm:$0xff] }
  0x94   :  { %v285_v16 = vmul.f32 %v269_v7, %v221_v28  ;;  %1046 = vmatprep.mubr.msk.bf16.mxu1 %vm111_vm0, %v308_v17 }
  0x95   :  { %1039 = vmatmul.mubr.msk.bf16.gmra.mrb[4].mxu0 %vm111_vm0, %v305_v19 }
  0x96   :  { %v301_v20 = vmul.f32 0.16666667, %v285_v16  ;;  %1074 = vmatprep.mubr.msk.bf16.mxu0 %vm111_vm0, %v1548_v4  ;;  %v498_v16 = vld [vmem:[#allocation3 + $0x10] sm:$0xff] }
  0x98   :  { %v309_v21 = vpack.c.bf16 %v301_v20, %v300_v18  ;;  %v660_v18 = vld [vmem:[#allocation4 + $0x18] sm:$0xff]  ;;  %v496_v20 = vld [vmem:[#allocation3] sm:$0xff] }
  0x9a   :  { %1047 = vmatmul.mubr.msk.bf16.gmra.mrb[4].mxu1 %vm111_vm0, %v309_v21 }
  0x9b   :  { %1054 = vmatprep.mubr.msk.bf16.mxu1 %vm111_vm0, %v1548_v4  ;;  %v312_v4 = vld [vmem:[#allocation2 + $0x10] sm:$0xff] }
  0x9d   :  { %1075 = vmatmul.mubr.msk.bf16.vlgmr.msra.gmra.mrb[8].mxu0 %vm111_vm0, %v1560_v23 }
  0x9e   :  { %1078 = vmatprep.mubr.msk.bf16.mxu0 %vm111_vm0, %v304_v9 }
  0xa2   :  { %1055 = vmatmul.mubr.msk.bf16.vlgmr.msra.gmra.mrb[8].mxu1 %vm111_vm0, %v1560_v23  ;;  %v310_v23 = vld [vmem:[#allocation2] sm:$0xff] }
  0xa3   :  { %1058 = vmatprep.mubr.msk.bf16.mxu1 %vm111_vm0, %v304_v9 }
  0xa5   :  { %1079 = vmatmul.mubr.msk.bf16.gmra.mrb[12].mxu0 %vm111_vm0, %v305_v19 }
  0xa6   :  { %1082 = vmatprep.mubr.msk.bf16.mxu0 %vm111_vm0, %v1551_v12 }
  0xaa   :  { %1059 = vmatmul.mubr.msk.bf16.gmra.mrb[12].mxu1 %vm111_vm0, %v305_v19 }
  0xab   :  { %1062 = vmatprep.mubr.msk.bf16.mxu1 %vm111_vm0, %v1551_v12  ;;  %v313_v12 = vld [vmem:[#allocation2 + $0x18] sm:$0xff] }
  0xad   :  { %1083 = vmatmul.mubr.msk.bf16.gmra.mrb[16].mxu0 %vm111_vm0, %v1565_v30 }
  0xae   :  { %1086 = vmatprep.mubr.msk.bf16.mxu0 %vm111_vm0, %v308_v17 }
  0xb2   :  { %1063 = vmatmul.mubr.msk.bf16.gmra.mrb[16].mxu1 %vm111_vm0, %v1565_v30 }
  0xb3   :  { %1066 = vmatprep.mubr.msk.bf16.mxu1 %vm111_vm0, %v308_v17 }
  0xb5   :  { %1087 = vmatmul.mubr.msk.bf16.gmra.mrb[20].mxu0 %vm111_vm0, %v309_v21 }
  0xba   :  { %1067 = vmatmul.mubr.msk.bf16.gmra.mrb[20].mxu1 %vm111_vm0, %v309_v21 }
 0x15a   :  { %v1036_v24 = vpop.f32.mrb[0].mxu0 }
 0x15b   :  { %v466_v26 = vadd.f32 %v1036_v24, %v312_v4  ;;  %v401_v29 = vpop.f32.mrb[1].mxu0  ;;  %v658_v4 = vld [vmem:[#allocation4 + $0x8] sm:$0xff] }
 0x15c   :  { %v464_v34 = vadd.f32 %v401_v29, %v310_v23  ;;  %v1037_v35 = vpop.f32.mrb[2].mxu0 }
 0x15d   :  { %482 = vst.msk [vmem:[#allocation2 + $0x10] sm:$0xff] %vm111_vm0, %v466_v26  ;;  %v467_v38 = vadd.f32 %v1037_v35, %v313_v12  ;;  %v404_v40 = vpop.f32.mrb[3].mxu0 }
 0x15e   :  { %480 = vst.msk [vmem:[#allocation2] sm:$0xff] %vm111_vm0, %v464_v34  ;;  %v465_v42 = vadd.f32 %v404_v40, %v311_v32  ;;  %v497_v32 = vld [vmem:[#allocation3 + $0x8] sm:$0xff] }
 0x15f   :  { %483 = vst.msk [vmem:[#allocation2 + $0x18] sm:$0xff] %vm111_vm0, %v467_v38 }
 0x160   :  { %v1044_v27 = vpop.f32.mrb[0].mxu1  ;;  %481 = vst.msk [vmem:[#allocation2 + $0x8] sm:$0xff] %vm111_vm0, %v465_v42 }
 0x161   :  { %v474_v33 = vadd.f32 %v1044_v27, %v320_v22  ;;  %v433_v30 = vpop.f32.mrb[1].mxu1 }
 0x162   :  { %v472_v37 = vadd.f32 %v433_v30, %v318_v25  ;;  %v1045_v39 = vpop.f32.mrb[2].mxu1  ;;  %v499_v25 = vld [vmem:[#allocation3 + $0x18] sm:$0xff] }
 0x163   :  { %490 = vst.msk [vmem:[#allocation2 + $0x50] sm:$0xff] %vm111_vm0, %v474_v33  ;;  %v475_v41 = vadd.f32 %v1045_v39, %v321_v31  ;;  %v436_v43 = vpop.f32.mrb[3].mxu1 }
 0x164   :  { %488 = vst.msk [vmem:[#allocation2 + $0x40] sm:$0xff] %vm111_vm0, %v472_v37  ;;  %v473_v44 = vadd.f32 %v436_v43, %v319_v36  ;;  %v823_v45 = vld [vmem:[#allocation2 + $0x10] sm:$0xff] }
 0x165   :  { %491 = vst.msk [vmem:[#allocation2 + $0x58] sm:$0xff] %vm111_vm0, %v475_v41  ;;  %839 = vst.msk [vmem:[#allocation16 + $0x10] sm:$0xff] %vm111_vm0, %v823_v45  ;;  %v821_v47 = vld [vmem:[#allocation2] sm:$0xff] }
 0x166   :  { %489 = vst.msk [vmem:[#allocation2 + $0x48] sm:$0xff] %vm111_vm0, %v473_v44  ;;  %837 = vst.msk [vmem:[#allocation16] sm:$0xff] %vm111_vm0, %v821_v47  ;;  %v824_v49 = vld [vmem:[#allocation2 + $0x18] sm:$0xff]  ;;  %v663_v44 = vld [vmem:[#allocation4 + $0x30] sm:$0xff] }
 0x167   :  { %840 = vst.msk [vmem:[#allocation16 + $0x18] sm:$0xff] %vm111_vm0, %v824_v49  ;;  %v822_v50 = vld [vmem:[#allocation2 + $0x8] sm:$0xff]  ;;  %v502_v47 = vld [vmem:[#allocation3 + $0x30] sm:$0xff]  ;;  %v664_v49 = vld [vmem:[#allocation4 + $0x38] sm:$0xff] }
 0x168   :  { %838 = vst.msk [vmem:[#allocation16 + $0x8] sm:$0xff] %vm111_vm0, %v822_v50  ;;  %v1040_v54 = vpop.f32.mrb[4].mxu0  ;;  %v500_v50 = vld [vmem:[#allocation3 + $0x20] sm:$0xff] }
 0x169   :  { %v470_v13 = vadd.f32 %v1040_v54, %v316_v51  ;;  %v417_v56 = vpop.f32.mrb[5].mxu0 }
 0x16a   :  { %v831_v46 = vld [vmem:[#allocation2 + $0x50] sm:$0xff]  ;;  %v468_v60 = vadd.f32 %v417_v56, %v314_v53  ;;  %v1041_v61 = vpop.f32.mrb[6].mxu0 }
 0x16b   :  { %847 = vst.msk [vmem:[#allocation16 + $0x50] sm:$0xff] %vm111_vm0, %v831_v46  ;;  %v829_v48 = vld [vmem:[#allocation2 + $0x40] sm:$0xff]  ;;  %486 = vst.msk [vmem:[#allocation2 + $0x30] sm:$0xff] %vm111_vm0, %v470_v13  ;;  %v471_v8 = vadd.f32 %v1041_v61, %v317_v55  ;;  %v420_v1 = vpop.f32.mrb[7].mxu0 }
 0x16c   :  { %845 = vst.msk [vmem:[#allocation16 + $0x40] sm:$0xff] %vm111_vm0, %v829_v48  ;;  %v832_v28 = vld [vmem:[#allocation2 + $0x58] sm:$0xff]  ;;  %484 = vst.msk [vmem:[#allocation2 + $0x20] sm:$0xff] %vm111_vm0, %v468_v60  ;;  %v469_v7 = vadd.f32 %v420_v1, %v315_v58  ;;  %v661_v46 = vld [vmem:[#allocation4 + $0x20] sm:$0xff] }
 0x16d   :  { %848 = vst.msk [vmem:[#allocation16 + $0x58] sm:$0xff] %vm111_vm0, %v832_v28  ;;  %v830_v52 = vld [vmem:[#allocation2 + $0x48] sm:$0xff]  ;;  %v1048_v59 = vpop.f32.mrb[4].mxu1  ;;  %487 = vst.msk [vmem:[#allocation2 + $0x38] sm:$0xff] %vm111_vm0, %v471_v8 }
 0x16e   :  { %846 = vst.msk [vmem:[#allocation16 + $0x48] sm:$0xff] %vm111_vm0, %v830_v52  ;;  %v478_v63 = vadd.f32 %v1048_v59, %v324_v5  ;;  %v449_v0 = vpop.f32.mrb[5].mxu1  ;;  %485 = vst.msk [vmem:[#allocation2 + $0x28] sm:$0xff] %vm111_vm0, %v469_v7  ;;  %v662_v52 = vld [vmem:[#allocation4 + $0x28] sm:$0xff] }
 0x16f   :  { %v476_v3 = vadd.f32 %v449_v0, %v322_v57  ;;  %v1049_v6 = vpop.f32.mrb[6].mxu1 }
 0x170   :  { %494 = vst.msk [vmem:[#allocation2 + $0x70] sm:$0xff] %vm111_vm0, %v478_v63  ;;  %v479_v9 = vadd.f32 %v1049_v6, %v325_v62  ;;  %v452_v10 = vpop.f32.mrb[7].mxu1  ;;  %v1076_v17 = vpop.f32.mrb[8].mxu0 }
 0x171   :  { %492 = vst.msk [vmem:[#allocation2 + $0x60] sm:$0xff] %vm111_vm0, %v476_v3  ;;  %v477_v11 = vadd.f32 %v452_v10, %v323_v2  ;;  %v788_v19 = vadd.f32 %v1076_v17, %v659_v14  ;;  %v723_v21 = vpop.f32.mrb[9].mxu0 }
 0x172   :  { %495 = vst.msk [vmem:[#allocation2 + $0x78] sm:$0xff] %vm111_vm0, %v479_v9  ;;  %v827_v22 = vld [vmem:[#allocation2 + $0x30] sm:$0xff]  ;;  %v786_v24 = vadd.f32 %v723_v21, %v657_v15  ;;  %v1077_v12 = vpop.f32.mrb[10].mxu0 }
 0x173   :  { %493 = vst.msk [vmem:[#allocation2 + $0x68] sm:$0xff] %vm111_vm0, %v477_v11  ;;  %843 = vst.msk [vmem:[#allocation16 + $0x30] sm:$0xff] %vm111_vm0, %v827_v22  ;;  %v825_v26 = vld [vmem:[#allocation2 + $0x20] sm:$0xff]  ;;  %v789_v31 = vadd.f32 %v1077_v12, %v660_v18  ;;  %v726_v33 = vpop.f32.mrb[11].mxu0 }
 0x174   :  { %804 = vst.msk [vmem:[#allocation4 + $0x10] sm:$0xff] %vm111_vm0, %v788_v19  ;;  %841 = vst.msk [vmem:[#allocation16 + $0x20] sm:$0xff] %vm111_vm0, %v825_v26  ;;  %v828_v30 = vld [vmem:[#allocation2 + $0x38] sm:$0xff]  ;;  %v787_v37 = vadd.f32 %v726_v33, %v658_v4 }
 0x175   :  { %v1056_v23 = vpop.f32.mrb[8].mxu1  ;;  %802 = vst.msk [vmem:[#allocation4] sm:$0xff] %vm111_vm0, %v786_v24  ;;  %844 = vst.msk [vmem:[#allocation16 + $0x38] sm:$0xff] %vm111_vm0, %v828_v30  ;;  %v826_v39 = vld [vmem:[#allocation2 + $0x28] sm:$0xff] }
 0x176   :  { %v627_v27 = vadd.f32 %v1056_v23, %v498_v16  ;;  %v562_v29 = vpop.f32.mrb[9].mxu1  ;;  %805 = vst.msk [vmem:[#allocation4 + $0x18] sm:$0xff] %vm111_vm0, %v789_v31  ;;  %842 = vst.msk [vmem:[#allocation16 + $0x28] sm:$0xff] %vm111_vm0, %v826_v39 }
 0x177   :  { %v835_v34 = vld [vmem:[#allocation2 + $0x70] sm:$0xff]  ;;  %v625_v35 = vadd.f32 %v562_v29, %v496_v20  ;;  %v1057_v36 = vpop.f32.mrb[10].mxu1  ;;  %803 = vst.msk [vmem:[#allocation4 + $0x8] sm:$0xff] %vm111_vm0, %v787_v37 }
 0x178   :  { %851 = vst.msk [vmem:[#allocation16 + $0x70] sm:$0xff] %vm111_vm0, %v835_v34  ;;  %v833_v38 = vld [vmem:[#allocation2 + $0x60] sm:$0xff]  ;;  %643 = vst.msk [vmem:[#allocation3 + $0x10] sm:$0xff] %vm111_vm0, %v627_v27  ;;  %v628_v40 = vadd.f32 %v1057_v36, %v499_v25  ;;  %v565_v41 = vpop.f32.mrb[11].mxu1  ;;  %v1080_v48 = vpop.f32.mrb[12].mxu0 }
 0x179   :  { %849 = vst.msk [vmem:[#allocation16 + $0x60] sm:$0xff] %vm111_vm0, %v833_v38  ;;  %v836_v42 = vld [vmem:[#allocation2 + $0x78] sm:$0xff]  ;;  %641 = vst.msk [vmem:[#allocation3] sm:$0xff] %vm111_vm0, %v625_v35  ;;  %v626_v43 = vadd.f32 %v565_v41, %v497_v32  ;;  %v792_v28 = vadd.f32 %v1080_v48, %v663_v44  ;;  %v739_v51 = vpop.f32.mrb[13].mxu0 }
 0x17a   :  { %852 = vst.msk [vmem:[#allocation16 + $0x78] sm:$0xff] %vm111_vm0, %v836_v42  ;;  %v834_v45 = vld [vmem:[#allocation2 + $0x68] sm:$0xff]  ;;  %644 = vst.msk [vmem:[#allocation3 + $0x18] sm:$0xff] %vm111_vm0, %v628_v40 }
 0x17b   :  { %850 = vst.msk [vmem:[#allocation16 + $0x68] sm:$0xff] %vm111_vm0, %v834_v45  ;;  %642 = vst.msk [vmem:[#allocation3 + $0x8] sm:$0xff] %vm111_vm0, %v626_v43 }
 0x17c   :  { %1257 = shalt.err (!%p1254_p10)
}
 0x17d   :  { %s1258_s17 = scalar_lea.hbm %s1771_s6, 2048 }
 0x17e   :  { %p1259_p11 = scmp.ne.s32.totalorder %s1771_s6, %s1258_s17  ;;  %p1262_p12 = scmp.lt.u32.totalorder %s1258_s17, %s1771_s6 }
 0x180   :  { %p1264_p13 = pnand %p1262_p12, %p1259_p11 }
 0x182   :  { %1267 = shalt.err (!%p1264_p13)
}
 0x183   :  { %928 = dma.vmem_to_hbm [thread:$0]  %s1646_s1, 2048, %s1771_s6, [#allocation7], %s1329_s3, %s1329_s3, %s1330_s30   ;;  %v887_v53 = vld [vmem:[#allocation4 + $0x10] sm:$0xff]  ;;  %v1060_v54 = vpop.f32.mrb[12].mxu1  ;;  %v790_v5 = vadd.f32 %v739_v51, %v661_v46  ;;  %v503_v55 = vld [vmem:[#allocation3 + $0x38] sm:$0xff]  ;;  %v1081_v13 = vpop.f32.mrb[14].mxu0 }
 0x184   :  { %903 = vst.msk [vmem:[#allocation19 + $0x10] sm:$0xff] %vm111_vm0, %v887_v53  ;;  %v885_v56 = vld [vmem:[#allocation4] sm:$0xff]  ;;  %v631_v57 = vadd.f32 %v1060_v54, %v502_v47  ;;  %808 = vst.msk [vmem:[#allocation4 + $0x30] sm:$0xff] %vm111_vm0, %v792_v28  ;;  %v578_v58 = vpop.f32.mrb[13].mxu1  ;;  %v793_v59 = vadd.f32 %v1081_v13, %v664_v49  ;;  %v501_v60 = vld [vmem:[#allocation3 + $0x28] sm:$0xff]  ;;  %v742_v61 = vpop.f32.mrb[15].mxu0 }
 0x185   :  { %v855_v62 = vld [vmem:[#allocation3 + $0x10] sm:$0xff]  ;;  %901 = vst.msk [vmem:[#allocation19] sm:$0xff] %vm111_vm0, %v885_v56  ;;  %v888_v63 = vld [vmem:[#allocation4 + $0x18] sm:$0xff]  ;;  %v629_v0 = vadd.f32 %v578_v58, %v500_v50  ;;  %806 = vst.msk [vmem:[#allocation4 + $0x20] sm:$0xff] %vm111_vm0, %v790_v5  ;;  %v1061_v8 = vpop.f32.mrb[14].mxu1  ;;  %v791_v1 = vadd.f32 %v742_v61, %v662_v52  ;;  %v1084_v17 = vpop.f32.mrb[16].mxu0 }
 0x186   :  { %871 = vst.msk [vmem:[#allocation17 + $0x10] sm:$0xff] %vm111_vm0, %v855_v62  ;;  %v853_v2 = vld [vmem:[#allocation3] sm:$0xff]  ;;  %904 = vst.msk [vmem:[#allocation19 + $0x18] sm:$0xff] %vm111_vm0, %v888_v63  ;;  %v886_v3 = vld [vmem:[#allocation4 + $0x8] sm:$0xff]  ;;  %v632_v6 = vadd.f32 %v1061_v8, %v503_v55  ;;  %v581_v7 = vpop.f32.mrb[15].mxu1  ;;  %v755_v21 = vpop.f32.mrb[17].mxu0 }
 0x187   :  { %647 = vst.msk [vmem:[#allocation3 + $0x30] sm:$0xff] %vm111_vm0, %v631_v57  ;;  %809 = vst.msk [vmem:[#allocation4 + $0x38] sm:$0xff] %vm111_vm0, %v793_v59  ;;  %v856_v9 = vld [vmem:[#allocation3 + $0x18] sm:$0xff]  ;;  %v630_v10 = vadd.f32 %v581_v7, %v501_v60  ;;  %v667_v11 = vld [vmem:[#allocation4 + $0x50] sm:$0xff]  ;;  %v1064_v23 = vpop.f32.mrb[16].mxu1  ;;  %v1085_v12 = vpop.f32.mrb[18].mxu0 }
 0x188   :  { %869 = vst.msk [vmem:[#allocation17] sm:$0xff] %vm111_vm0, %v853_v2  ;;  %902 = vst.msk [vmem:[#allocation19 + $0x8] sm:$0xff] %vm111_vm0, %v886_v3  ;;  %v854_v14 = vld [vmem:[#allocation3 + $0x8] sm:$0xff]  ;;  %v665_v15 = vld [vmem:[#allocation4 + $0x40] sm:$0xff]  ;;  %v796_v19 = vadd.f32 %v1084_v17, %v667_v11  ;;  %v594_v29 = vpop.f32.mrb[17].mxu1  ;;  %v758_v33 = vpop.f32.mrb[19].mxu0 }
 0x189   :  { %645 = vst.msk [vmem:[#allocation3 + $0x20] sm:$0xff] %vm111_vm0, %v629_v0  ;;  %807 = vst.msk [vmem:[#allocation4 + $0x28] sm:$0xff] %vm111_vm0, %v791_v1  ;;  %v506_v16 = vld [vmem:[#allocation3 + $0x50] sm:$0xff]  ;;  %v668_v18 = vld [vmem:[#allocation4 + $0x58] sm:$0xff]  ;;  %v794_v24 = vadd.f32 %v755_v21, %v665_v15  ;;  %v1065_v36 = vpop.f32.mrb[18].mxu1  ;;  %v1088_v48 = vpop.f32.mrb[20].mxu0 }
 0x18a   :  { %872 = vst.msk [vmem:[#allocation17 + $0x18] sm:$0xff] %vm111_vm0, %v856_v9  ;;  %648 = vst.msk [vmem:[#allocation3 + $0x38] sm:$0xff] %vm111_vm0, %v632_v6  ;;  %v504_v20 = vld [vmem:[#allocation3 + $0x40] sm:$0xff]  ;;  %v666_v4 = vld [vmem:[#allocation4 + $0x48] sm:$0xff]  ;;  %v635_v27 = vadd.f32 %v1064_v23, %v506_v16  ;;  %v797_v31 = vadd.f32 %v1085_v12, %v668_v18  ;;  %v597_v41 = vpop.f32.mrb[19].mxu1  ;;  %v771_v51 = vpop.f32.mrb[21].mxu0 }
 0x18b   :  { %870 = vst.msk [vmem:[#allocation17 + $0x8] sm:$0xff] %vm111_vm0, %v854_v14  ;;  %646 = vst.msk [vmem:[#allocation3 + $0x28] sm:$0xff] %vm111_vm0, %v630_v10  ;;  %v891_v22 = vld [vmem:[#allocation4 + $0x30] sm:$0xff]  ;;  %v507_v25 = vld [vmem:[#allocation3 + $0x58] sm:$0xff]  ;;  %v633_v35 = vadd.f32 %v594_v29, %v504_v20  ;;  %v795_v37 = vadd.f32 %v758_v33, %v666_v4  ;;  %v1089_v13 = vpop.f32.mrb[22].mxu0  ;;  %s1336_s6 = smov [#allocation17]  }
 0x18c   :  { %907 = vst.msk [vmem:[#allocation19 + $0x30] sm:$0xff] %vm111_vm0, %v891_v22  ;;  %v889_v26 = vld [vmem:[#allocation4 + $0x20] sm:$0xff]  ;;  %812 = vst.msk [vmem:[#allocation4 + $0x50] sm:$0xff] %vm111_vm0, %v796_v19  ;;  %v505_v32 = vld [vmem:[#allocation3 + $0x48] sm:$0xff]  ;;  %v636_v40 = vadd.f32 %v1065_v36, %v507_v25  ;;  %v774_v61 = vpop.f32.mrb[23].mxu0  ;;  %s934_s2 = sshll.u32 %s1336_s6, 4  ;;  %s935_s2 = int_to_ptr.vmem [resolvable:$true] %s934_s2 }
 0x18d   :  { %905 = vst.msk [vmem:[#allocation19 + $0x20] sm:$0xff] %vm111_vm0, %v889_v26  ;;  %810 = vst.msk [vmem:[#allocation4 + $0x40] sm:$0xff] %vm111_vm0, %v794_v24  ;;  %v634_v43 = vadd.f32 %v597_v41, %v505_v32  ;;  %v671_v44 = vld [vmem:[#allocation4 + $0x70] sm:$0xff]  ;;  %v669_v46 = vld [vmem:[#allocation4 + $0x60] sm:$0xff]  ;;  %v1068_v54 = vpop.f32.mrb[20].mxu1  ;;  %s1337_s23 = smov [#allocation19]   ;;  %p1273_p1 = scmp.lt.s32.totalorder %s935_s2, %s935_s2 }
 0x18e   :  { %v859_v34 = vld [vmem:[#allocation3 + $0x30] sm:$0xff]  ;;  %v892_v30 = vld [vmem:[#allocation4 + $0x38] sm:$0xff]  ;;  %651 = vst.msk [vmem:[#allocation3 + $0x50] sm:$0xff] %vm111_vm0, %v635_v27  ;;  %813 = vst.msk [vmem:[#allocation4 + $0x58] sm:$0xff] %vm111_vm0, %v797_v31  ;;  %v800_v28 = vadd.f32 %v1088_v48, %v671_v44  ;;  %v798_v5 = vadd.f32 %v771_v51, %v669_v46  ;;  %v610_v58 = vpop.f32.mrb[21].mxu1  ;;  %s946_s26 = sshll.u32 %s1337_s23, 4  ;;  %s1727_s26 = int_to_ptr.vmem [resolvable:$true] %s946_s26 }
 0x18f   :  { %875 = vst.msk [vmem:[#allocation17 + $0x30] sm:$0xff] %vm111_vm0, %v859_v34  ;;  %908 = vst.msk [vmem:[#allocation19 + $0x38] sm:$0xff] %vm111_vm0, %v892_v30  ;;  %v510_v47 = vld [vmem:[#allocation3 + $0x70] sm:$0xff]  ;;  %v672_v49 = vld [vmem:[#allocation4 + $0x78] sm:$0xff]  ;;  %v1069_v8 = vpop.f32.mrb[22].mxu1  ;;  %s1268_s27 = scalar_lea.vmem %s935_s2, 2048 }
 0x190   :  { %v857_v38 = vld [vmem:[#allocation3 + $0x20] sm:$0xff]  ;;  %v890_v39 = vld [vmem:[#allocation4 + $0x28] sm:$0xff]  ;;  %649 = vst.msk [vmem:[#allocation3 + $0x40] sm:$0xff] %vm111_vm0, %v633_v35  ;;  %811 = vst.msk [vmem:[#allocation4 + $0x48] sm:$0xff] %vm111_vm0, %v795_v37  ;;  %v639_v57 = vadd.f32 %v1068_v54, %v510_v47  ;;  %v801_v59 = vadd.f32 %v1089_v13, %v672_v49  ;;  %v613_v7 = vpop.f32.mrb[23].mxu1  ;;  %p1269_p0 = scmp.ne.s32.totalorder %s935_s2, %s1268_s27  ;;  %p1274_p2 = scmp.lt.s32.totalorder %s1268_s27, %s1268_s27 }
 0x191   :  { %873 = vst.msk [vmem:[#allocation17 + $0x20] sm:$0xff] %vm111_vm0, %v857_v38  ;;  %v860_v42 = vld [vmem:[#allocation3 + $0x38] sm:$0xff]  ;;  %906 = vst.msk [vmem:[#allocation19 + $0x28] sm:$0xff] %vm111_vm0, %v890_v39  ;;  %v508_v50 = vld [vmem:[#allocation3 + $0x60] sm:$0xff] }
 0x192   :  { %876 = vst.msk [vmem:[#allocation17 + $0x38] sm:$0xff] %vm111_vm0, %v860_v42  ;;  %v858_v45 = vld [vmem:[#allocation3 + $0x28] sm:$0xff]  ;;  %652 = vst.msk [vmem:[#allocation3 + $0x58] sm:$0xff] %vm111_vm0, %v636_v40  ;;  %v511_v55 = vld [vmem:[#allocation3 + $0x78] sm:$0xff]  ;;  %v637_v0 = vadd.f32 %v610_v58, %v508_v50  ;;  %p1275_p3 = por %p1274_p2, %p1273_p1 }
 0x193   :  { %874 = vst.msk [vmem:[#allocation17 + $0x28] sm:$0xff] %vm111_vm0, %v858_v45  ;;  %650 = vst.msk [vmem:[#allocation3 + $0x48] sm:$0xff] %vm111_vm0, %v634_v43  ;;  %v670_v52 = vld [vmem:[#allocation4 + $0x68] sm:$0xff]  ;;  %v895_v53 = vld [vmem:[#allocation4 + $0x50] sm:$0xff]  ;;  %v640_v6 = vadd.f32 %v1069_v8, %v511_v55 }
 0x194   :  { %911 = vst.msk [vmem:[#allocation19 + $0x50] sm:$0xff] %vm111_vm0, %v895_v53  ;;  %v893_v56 = vld [vmem:[#allocation4 + $0x40] sm:$0xff]  ;;  %816 = vst.msk [vmem:[#allocation4 + $0x70] sm:$0xff] %vm111_vm0, %v800_v28  ;;  %v509_v60 = vld [vmem:[#allocation3 + $0x68] sm:$0xff]  ;;  %v799_v1 = vadd.f32 %v774_v61, %v670_v52  ;;  %p1276_p4 = pnand %p1275_p3, %p1269_p0 }
 0x195   :  { %v863_v62 = vld [vmem:[#allocation3 + $0x50] sm:$0xff]  ;;  %909 = vst.msk [vmem:[#allocation19 + $0x40] sm:$0xff] %vm111_vm0, %v893_v56  ;;  %v896_v63 = vld [vmem:[#allocation4 + $0x58] sm:$0xff]  ;;  %814 = vst.msk [vmem:[#allocation4 + $0x60] sm:$0xff] %vm111_vm0, %v798_v5  ;;  %v638_v10 = vadd.f32 %v613_v7, %v509_v60 }
 0x196   :  { %879 = vst.msk [vmem:[#allocation17 + $0x50] sm:$0xff] %vm111_vm0, %v863_v62  ;;  %912 = vst.msk [vmem:[#allocation19 + $0x58] sm:$0xff] %vm111_vm0, %v896_v63 }
 0x197   :  { %v861_v2 = vld [vmem:[#allocation3 + $0x40] sm:$0xff]  ;;  %v894_v3 = vld [vmem:[#allocation4 + $0x48] sm:$0xff]  ;;  %655 = vst.msk [vmem:[#allocation3 + $0x70] sm:$0xff] %vm111_vm0, %v639_v57  ;;  %817 = vst.msk [vmem:[#allocation4 + $0x78] sm:$0xff] %vm111_vm0, %v801_v59 }
 0x198   :  { %877 = vst.msk [vmem:[#allocation17 + $0x40] sm:$0xff] %vm111_vm0, %v861_v2  ;;  %910 = vst.msk [vmem:[#allocation19 + $0x48] sm:$0xff] %vm111_vm0, %v894_v3 }
 0x199   :  { %v864_v9 = vld [vmem:[#allocation3 + $0x58] sm:$0xff]  ;;  %653 = vst.msk [vmem:[#allocation3 + $0x60] sm:$0xff] %vm111_vm0, %v637_v0  ;;  %815 = vst.msk [vmem:[#allocation4 + $0x68] sm:$0xff] %vm111_vm0, %v799_v1 }
 0x19a   :  { %880 = vst.msk [vmem:[#allocation17 + $0x58] sm:$0xff] %vm111_vm0, %v864_v9  ;;  %v862_v11 = vld [vmem:[#allocation3 + $0x48] sm:$0xff]  ;;  %656 = vst.msk [vmem:[#allocation3 + $0x78] sm:$0xff] %vm111_vm0, %v640_v6 }
 0x19b   :  { %878 = vst.msk [vmem:[#allocation17 + $0x48] sm:$0xff] %vm111_vm0, %v862_v11  ;;  %654 = vst.msk [vmem:[#allocation3 + $0x68] sm:$0xff] %vm111_vm0, %v638_v10  ;;  %v899_v14 = vld [vmem:[#allocation4 + $0x70] sm:$0xff] }
 0x19c   :  { %915 = vst.msk [vmem:[#allocation19 + $0x70] sm:$0xff] %vm111_vm0, %v899_v14  ;;  %v897_v15 = vld [vmem:[#allocation4 + $0x60] sm:$0xff] }
 0x19d   :  { %913 = vst.msk [vmem:[#allocation19 + $0x60] sm:$0xff] %vm111_vm0, %v897_v15 }
 0x19e   :  { %v867_v16 = vld [vmem:[#allocation3 + $0x70] sm:$0xff]  ;;  %v900_v17 = vld [vmem:[#allocation4 + $0x78] sm:$0xff] }
 0x19f   :  { %883 = vst.msk [vmem:[#allocation17 + $0x70] sm:$0xff] %vm111_vm0, %v867_v16  ;;  %916 = vst.msk [vmem:[#allocation19 + $0x78] sm:$0xff] %vm111_vm0, %v900_v17 }
 0x1a0   :  { %v865_v18 = vld [vmem:[#allocation3 + $0x60] sm:$0xff]  ;;  %v898_v19 = vld [vmem:[#allocation4 + $0x68] sm:$0xff] }
 0x1a1   :  { %881 = vst.msk [vmem:[#allocation17 + $0x60] sm:$0xff] %vm111_vm0, %v865_v18  ;;  %v868_v20 = vld [vmem:[#allocation3 + $0x78] sm:$0xff]  ;;  %914 = vst.msk [vmem:[#allocation19 + $0x68] sm:$0xff] %vm111_vm0, %v898_v19 }
 0x1a2   :  { %884 = vst.msk [vmem:[#allocation17 + $0x78] sm:$0xff] %vm111_vm0, %v868_v20  ;;  %v866_v21 = vld [vmem:[#allocation3 + $0x68] sm:$0xff] }
 0x1a3   :  { %882 = vst.msk [vmem:[#allocation17 + $0x68] sm:$0xff] %vm111_vm0, %v866_v21 }
 0x1a4   :  { %1279 = shalt.err (!%p1276_p4)
}
 0x1a5   :  { %s1280_s10 = scalar_lea.hbm %s1772_s7, 2048 }
 0x1a6   :  { %p1281_p5 = scmp.ne.s32.totalorder %s1772_s7, %s1280_s10  ;;  %p1284_p6 = scmp.lt.u32.totalorder %s1280_s10, %s1772_s7 }
 0x1a8   :  { %p1286_p7 = pnand %p1284_p6, %p1281_p5 }
 0x1aa   :  { %1289 = shalt.err (!%p1286_p7)
}
 0x1ab   :  { %940 = dma.vmem_to_hbm [thread:$0]  %s935_s2, 2048, %s1772_s7, [#allocation18], %s1329_s3, %s1329_s3, %s1330_s30  }
 0x1ac   :  { %s1290_s25 = scalar_lea.vmem %s1727_s26, 2048  ;;  %p1295_p9 = scmp.lt.s32.totalorder %s1727_s26, %s1727_s26 }
 0x1ad   :  { %p1291_p8 = scmp.ne.s32.totalorder %s1727_s26, %s1290_s25  ;;  %p1296_p10 = scmp.lt.s32.totalorder %s1290_s25, %s1290_s25 }
 0x1af   :  { %p1297_p11 = por %p1296_p10, %p1295_p9 }
 0x1b1   :  { %p1298_p12 = pnand %p1297_p11, %p1291_p8 }
 0x1b3   :  { %1301 = shalt.err (!%p1298_p12)
}
 0x1b4   :  { %s1302_s28 = scalar_lea.hbm %s1773_s8, 2048 }
 0x1b5   :  { %p1303_p13 = scmp.ne.s32.totalorder %s1773_s8, %s1302_s28  ;;  %p1306_p0 = scmp.lt.u32.totalorder %s1302_s28, %s1773_s8 }
 0x1b7   :  { %p1308_p1 = pnand %p1306_p0, %p1303_p13 }
 0x1b9   :  { %1311 = shalt.err (!%p1308_p1)
}
 0x1ba   :  { %952 = dma.vmem_to_hbm [thread:$0]  %s1727_s26, 2048, %s1773_s8, [#allocation18], %s1329_s3, %s1329_s3, %s1330_s30  }
 0x1bb   :  { %1320 = dma.done.wait [#allocation7], 2048  }
 0x1bc   :  { %1321 = vsyncadd [#allocation7], 4294965248 }
 0x1bd   :  { %1322 = dma.done.wait [#allocation18], 4096  }
 0x1be   :  { %1323 = vsyncadd [#allocation18], 4294963200 }
 0x1bf   :  { %962 = vsyncpa [#allocation6], 1 }
 0x1c0   :  { %963 = vsyncpa [#allocation9], 1 }
 0x1c1   :  { %964 = vsyncpa [#allocation12], 1 }
 0x1c2   :  { %965 = vsyncpa [#allocation15], 1 }
 0x1c3   :  { %966 = vsyncpa [#allocation7], 1 }
 0x1c4   :  { %967 = vsyncpa [#allocation18], 1 }

// kernel: msgaa_forward.8
= control target key start
LH: loop header
LB: loop body
LE: loop exit
PB: predicated region body
PF: predicated region fallthrough
CT: control target
= control target key end

     0   :  { %8 = vsyncpa [#allocation4], 0  ;;  %s1320_s0 = inlined_call_operand.hbm [shape: f32[2,8,8,32], index: 0, kind: input, shape index: {}]   ;;  %s1321_s1 = inlined_call_operand.hbm [shape: f32[3,3,32], index: 1, kind: input, shape index: {}]   ;;  %s1322_s2 = inlined_call_operand.hbm [shape: f32[1,32], index: 2, kind: input, shape index: {}]   ;;  %s1323_s3 = inlined_call_operand.hbm [shape: f32[2,64,32], index: 3, kind: output, shape index: {}]  }
   0x1   :  { %10 = vsyncpa [#allocation4 + $0x1], 0 }
   0x2   :  { %11 = vsyncpa [#allocation7], 0 }
   0x3   :  { %12 = vsyncpa [#allocation5], 0 }
   0x4   :  { %14 = vsyncpa [#allocation5 + $0x1], 0  ;;  %s924_s12 = smov 0   ;;  %s926_s13 = smov 0  }
   0x5   :  { %s928_s14 = smov 0   ;;  %s930_s15 = smov 0  }
   0x6 LB: > { %s945_s16 = sadd.s32 4294967295, %s891_s15   ;;  %s640_s17 = sadd.s32 4294967294, %s891_s15   ;;  %s891_s15 = sphi %s930_s15, %s1343_s15   ;;  %s887_s14 = sphi %s928_s14, %s1342_s14   ;;  %s883_s13 = sphi %s926_s13, %s1341_s13   ;;  %s879_s12 = sphi %s924_s12, %s1340_s12  }
   0x7   : > { %p40_p0 = scmp.ne.s32.totalorder %s883_s13, %s879_s12  ;;  %p1324_p1 = scmp.eq.s32.totalorder %s945_s16, 0 }
   0x8   : > { %p112_p3 = scmp.eq.s32.totalorder %s640_s17, 1  ;;  %p641_p5 = scmp.ge.s32.totalorder %s891_s15, 1 }
   0x9   : > { %p954_p4 = por %p1324_p1, %p40_p0  ;;  %p119_p7 = scmp.lt.s32.totalorder %s891_s15, 3 }
   0xa   : > { %p959_p6 = por %p112_p3, %p40_p0  ;;  %s893_s21 = smov [#allocation6]  }
   0xb   : > { %s1327_s18 = scalar_select %p954_p4, 1, 0 }
   0xc   : > { %s1328_s19 = scalar_select %p959_p6, 1, 0 }
   0xd   : > { %p964_p8 = pnand %p641_p5, %p119_p7  ;;  %s131_s22 = sshll.u32 %s893_s21, 4  ;;  %s968_s22 = int_to_ptr.vmem [resolvable:$true] %s131_s22 }
   0xe   : > { %s894_s24 = smov [#allocation8]   ;;  %s735_s28 = scalar_lea.hbm %s1321_s1, 192 }
   0xf   : > { %p673_p9 = pneg %p964_p8  ;;  %s145_s25 = sshll.u32 %s894_s24, 4  ;;  %s979_s25 = int_to_ptr.vmem [resolvable:$true] %s145_s25 }
  0x10   : > { %p736_p12 = scmp.ne.s32.totalorder %s1321_s1, %s735_s28  ;;  %p742_p5 = scmp.lt.u32.totalorder %s735_s28, %s1321_s1 }
  0x11   : > { %p975_p11 = pnand %p673_p9, %p1324_p1 }
  0x13   : > { %p737_p13 = pneg %p975_p11 }
  0x15   : > { %p738_p0 = pnand %p737_p13, %p736_p12 }
  0x17   : > { %p739_p3 = pneg %p738_p0 }
  0x19   : > { %p744_p7 = pnand %p742_p5, %p739_p3 }
  0x1b   : > { %747 = shalt.err (!%p744_p7)
}
  0x1c   : > { %s748_s6 = scalar_lea.vmem %s968_s22, 192  ;;  %p756_p2 = scmp.lt.s32.totalorder %s968_s22, %s968_s22 }
  0x1d   : > { %p749_p9 = scmp.ne.s32.totalorder %s968_s22, %s748_s6  ;;  %p757_p12 = scmp.lt.s32.totalorder %s748_s6, %s748_s6 }
  0x1f   : > { %p751_p10 = pnand %p749_p9, %p737_p13  ;;  %p758_p0 = por %p757_p12, %p756_p2 }
  0x21   : > { %p752_p1 = pneg %p751_p10 }
  0x23   : > { %p759_p6 = pnand %p758_p0, %p752_p1 }
  0x25   : > { %762 = shalt.err (!%p759_p6)
}
  0x26   : > { %s895_s7 = smov 64   ;;  %s896_s8 = smov 4  }
  0x27   : > { %676 = dma.hbm_to_vmem [thread:$0]  (!%p975_p11), %s1321_s1, 192, %s968_s22, [#allocation7], %s895_s7, %s895_s7, %s896_s8  }
  0x28   : > { %s763_s21 = scalar_lea.hbm %s1322_s2, 16 }
  0x29   : > { %p764_p2 = scmp.ne.s32.totalorder %s1322_s2, %s763_s21  ;;  %p770_p10 = scmp.lt.u32.totalorder %s763_s21, %s1322_s2 }
  0x2b   : > { %p766_p1 = pnand %p764_p2, %p737_p13 }
  0x2d   : > { %p767_p6 = pneg %p766_p1 }
  0x2f   : > { %p772_p3 = pnand %p770_p10, %p767_p6 }
  0x31   : > { %775 = shalt.err (!%p772_p3)
}
  0x32   : > { %s776_s22 = scalar_lea.vmem %s979_s25, 16  ;;  %s783_s29 = scalar_lea.vmem %s979_s25, 32 }
  0x33   : > { %p777_p5 = scmp.ne.s32.totalorder %s979_s25, %s776_s22  ;;  %p784_p12 = scmp.lt.s32.totalorder %s979_s25, %s979_s25 }
  0x34   : > { %p785_p0 = scmp.lt.s32.totalorder %s783_s29, %s776_s22 }
  0x35   : > { %p779_p7 = pnand %p777_p5, %p737_p13 }
  0x36   : > { %p786_p2 = por %p785_p0, %p784_p12 }
  0x37   : > { %p780_p9 = pneg %p779_p7 }
  0x39   : > { %p787_p1 = pnand %p786_p2, %p780_p9 }
  0x3b   : > { %790 = shalt.err (!%p787_p1)
}
  0x3c   : > { %679 = dma.hbm_to_vmem [thread:$0]  (!%p975_p11), %s1322_s2, 16, %s979_s25, [#allocation7]  }
  0x3d   : > { %s1035_s5 = sadd.s32 1, %s891_s15   ;;  %s27_s23 = sadd.s32 1, %s887_s14 }
  0x3e   : > { %s24_s6 = ssub.s32 %s891_s15, %s1035_s5  ;;  %p34_p13 = scmp.ne.s32.totalorder %s887_s14, %s883_s13 }
  0x3f   : > { %p25_p6 = scmp.eq.s32.totalorder %s24_s6, 0  ;;  %p35_p10 = scmp.eq.s32.totalorder %s891_s15, 0 }
  0x40   : > { %p1331_p3 = scmp.eq.s32.totalorder %s945_s16, 1  ;;  %p690_p7 = scmp.lt.s32.totalorder %s891_s15, 2 }
  0x41   : > { %s1051_s8 = scalar_select %p25_p6, %s887_s14, %s27_s23  }
  0x42   : > { %p1045_p5 = por %p1331_p3, %p34_p13  ;;  %p36_p9 = por %p35_p10, %p34_p13 }
  0x43   : > { %s156_s9 = sand.u32 1, %s887_s14   ;;  %s659_s25 = sshll.u32 %s891_s15, 10 }
  0x44   : > { %s1332_s7 = scalar_select %p1045_p5, 1, 0 }
  0x45   : > { %s645_s10 = sshll.u32 %s156_s9, 6  ;;  %s1058_s21 = scalar_lea.hbm %s1320_s0, %s659_s25 }
  0x46   : > { %s160_s24 = scalar_lea.vmem [#allocation3], %s645_s10  ;;  %p1062_p11 = pnand %p690_p7, %p36_p9 }
  0x47   : > { %s167_s26 = sshll.u32 %s160_s24, 4  ;;  %s1066_s28 = scalar_lea.sflag [#allocation4], %s156_s9  ;;  %s1060_s26 = int_to_ptr.vmem [resolvable:$true] %s167_s26 }
  0x48   : > { %s791_s22 = scalar_lea.hbm %s1058_s21, 1024  ;;  %p793_p0 = pneg %p1062_p11 }
  0x49   : > { %p792_p12 = scmp.ne.s32.totalorder %s1058_s21, %s791_s22  ;;  %s796_s4 = scalar_lea.hbm %s1320_s0, 2048 }
  0x4a   : > { %p797_p13 = scmp.lt.u32.totalorder %s1058_s21, %s1320_s0  ;;  %p798_p6 = scmp.lt.u32.totalorder %s796_s4, %s791_s22 }
  0x4b   : > { %p794_p2 = pnand %p793_p0, %p792_p12  ;;  %p800_p3 = scmp.lt.u32.totalorder %s791_s22, %s1058_s21 }
  0x4c   : > { %p799_p10 = por %p798_p6, %p797_p13 }
  0x4d   : > { %p795_p1 = pneg %p794_p2 }
  0x4e   : > { %p801_p7 = por %p800_p3, %p799_p10 }
  0x50   : > { %p802_p9 = pnand %p801_p7, %p795_p1 }
  0x52   : > { %805 = shalt.err (!%p802_p9)
}
  0x53   : > { %s806_s9 = scalar_lea.vmem %s1060_s26, 1024  ;;  %s897_s10 = smov [#allocation3]  }
  0x54   : > { %p807_p12 = scmp.ne.s32.totalorder %s1060_s26, %s806_s9  ;;  %s811_s25 = sshll.u32 %s897_s10, 4  ;;  %s812_s25 = int_to_ptr.vmem [resolvable:$false] %s811_s25 }
  0x55   : > { %s813_s11 = scalar_lea.vmem %s812_s25, 2048  ;;  %p814_p4 = scmp.lt.s32.totalorder %s1060_s26, %s812_s25 }
  0x56   : > { %p809_p2 = pnand %p807_p12, %p793_p0  ;;  %p815_p13 = scmp.lt.s32.totalorder %s813_s11, %s806_s9 }
  0x58   : > { %p810_p5 = pneg %p809_p2  ;;  %p816_p6 = por %p815_p13, %p814_p4 }
  0x5a   : > { %p817_p10 = pnand %p816_p6, %p810_p5 }
  0x5c   : > { %820 = shalt.err (!%p817_p10)
}
  0x5d   : > { %s898_s17 = smov 128   ;;  %s899_s24 = smov 8  }
  0x5e   : > { %683 = dma.hbm_to_vmem [thread:$0]  (!%p1062_p11), %s1058_s21, 1024, %s1060_s26, %s1066_s28, %s898_s17, %s898_s17, %s899_s24  }
  0x5f   : > { %179 = sbr.rel (%p964_p8) target bundleno = 186 (0xba), region = 32  ;;  %s1097_s22 = sand.u32 (!%p964_p8), 1, %s883_s13  }
  0x60   : > { %s649_s29 = sshll.u32 (!%p964_p8), %s1097_s22, 6  ;;  %s182_s30 = scalar_lea.sflag (!%p964_p8), [#allocation4], %s1097_s22 }
  0x61   : > { %s1103_s4 = scalar_lea.vmem (!%p964_p8), [#allocation3], %s649_s29  ;;  %p1334_p4 = scmp.ne.s32.totalorder (!%p964_p8), %s1327_s18, 0 }
  0x66   : > { %866 = dma.done.wait (%p1334_p4), %s182_s30, 1024  }
  0x67   : > { %868 = vsyncadd (%p1334_p4), %s182_s30, 4294966272  ;;  %p1335_p5 = scmp.eq.s32.totalorder %s945_s16, 0 }
  0x69   : > { %870 = dma.done.wait (%p1335_p5), [#allocation7], 208   ;;  %p1336_p8 = pmov %p1335_p5 }
  0x6a   : > { %vm216_vm0 = vcmask 261120   ;;  %vm218_vm1 = vcmask 254976   ;;  %v266_v0 = vlaneseq  ;;  %v900_v1 = vmov 0.0   ;;  %v238_v6 = vld [vmem:[%s1103_s4] sm:$0xff]  ;;  %v239_v7 = vld [vmem:[%s1103_s4 + $0x8] sm:$0xff]  ;;  %v240_v8 = vld [vmem:[%s1103_s4 + $0x10] sm:$0xff] }
  0x6b   : > { %872 = vsyncadd (%p1336_p8), [#allocation7], 4294967088  ;;  %217 = vst.msk [vmem:[#allocation2] sm:$0xff] %vm216_vm0, %v900_v1  ;;  %v241_v9 = vld [vmem:[%s1103_s4 + $0x18] sm:$0xff]  ;;  %v242_v10 = vld [vmem:[%s1103_s4 + $0x20] sm:$0xff]  ;;  %s1209_s18 = scalar_lea.vmem [#allocation9], %s649_s29 }
  0x6c   : > { %220 = vst.msk [vmem:[#allocation2 + $0x10] sm:$0xff] %vm216_vm0, %v900_v1  ;;  %222 = vst.msk [vmem:[#allocation2 + $0x20] sm:$0xff] %vm216_vm0, %v900_v1  ;;  %v267_v2 = vshrl.u32 %v266_v0, 7  ;;  %v243_v11 = vld [vmem:[%s1103_s4 + $0x28] sm:$0xff]  ;;  %v244_v12 = vld [vmem:[%s1103_s4 + $0x30] sm:$0xff]  ;;  %s548_s20 = sshll.u32 %s1209_s18, 4  ;;  %s1268_s20 = int_to_ptr.vmem [resolvable:$true] %s548_s20 }
  0x6d   : > { %224 = vst.msk [vmem:[#allocation2 + $0x30] sm:$0xff] %vm216_vm0, %v900_v1  ;;  %226 = vst.msk [vmem:[#allocation2 + $0x40] sm:$0xff] %vm216_vm0, %v900_v1  ;;  %v245_v13 = vld [vmem:[%s1103_s4 + $0x38] sm:$0xff]  ;;  %v255_v14 = vld [vmem:[#allocation6] sm:$0x7]  ;;  %s660_s21 = sshll.u32 %s945_s16, 10 }
  0x6e   : > { %228 = vst.msk [vmem:[#allocation2 + $0x50] sm:$0xff] %vm216_vm0, %v900_v1  ;;  %230 = vst.msk [vmem:[#allocation2 + $0x60] sm:$0xff] %vm216_vm0, %v900_v1  ;;  %v268_v3 = vsub.s32 0, %v267_v2  ;;  %v296_v4 = vsub.s32 1, %v267_v2  ;;  %v324_v5 = vsub.s32 2, %v267_v2  ;;  %s1273_s28 = scalar_lea.hbm %s1323_s3, %s660_s21  ;;  %s535_s23 = scalar_lea.sflag [#allocation5], %s1097_s22 }
  0x6f   : > { %232 = vst.msk [vmem:[#allocation2 + $0x70] sm:$0xff] %vm216_vm0, %v900_v1  ;;  %234 = vst.msk [vmem:[#allocation2 + $0x80] sm:$0xff] %vm216_vm0, %v900_v1  ;;  %v256_v15 = vld [vmem:[#allocation6 + $0x4] sm:$0x7]  ;;  %v257_v22 = vld [vmem:[#allocation6 + $0x8] sm:$0x7] }
  0x70   : > { %236 = vst.msk [vmem:[#allocation2 + $0x90] sm:$0xff] %vm216_vm0, %v900_v1  ;;  %v1149_v17 = vrot.slane %v255_v14, %v268_v3  ;;  %v1151_v18 = vrot.slane %v255_v14, %v296_v4  ;;  %v1153_v19 = vrot.slane %v255_v14, %v324_v5  ;;  %v1158_v26 = vrot.slane %v256_v15, %v268_v3  ;;  %s821_s6 = scalar_lea.vmem %s1268_s20, 1024  ;;  %p1337_p0 = scmp.ne.s32.totalorder %s1332_s7, 0 }
  0x71   : > { %219 = vst.msk [vmem:[#allocation2 + $0x8] sm:$0x3] %vm218_vm1, %v900_v1  ;;  %221 = vst.msk [vmem:[#allocation2 + $0x18] sm:$0x3] %vm218_vm1, %v900_v1  ;;  %v1160_v28 = vrot.slane %v256_v15, %v296_v4  ;;  %v1162_v31 = vrot.slane %v256_v15, %v324_v5  ;;  %v1164_v32 = vrot.slane %v257_v22, %v268_v3  ;;  %p822_p11 = scmp.ne.s32.totalorder %s1268_s20, %s821_s6  ;;  %s901_s16 = smov [#allocation9]  }
  0x72   : > { %223 = vst.msk [vmem:[#allocation2 + $0x28] sm:$0x3] %vm218_vm1, %v900_v1  ;;  %225 = vst.msk [vmem:[#allocation2 + $0x38] sm:$0x3] %vm218_vm1, %v900_v1  ;;  %v258_v16 = vld [vmem:[#allocation2] sm:$0xff]  ;;  %v1166_v33 = vrot.slane %v257_v22, %v296_v4  ;;  %v1169_v39 = vrot.slane %v257_v22, %v324_v5  ;;  %s825_s9 = sshll.u32 %s901_s16, 4  ;;  %s826_s9 = int_to_ptr.vmem [resolvable:$false] %s825_s9 }
  0x73   : > { %227 = vst.msk [vmem:[#allocation2 + $0x48] sm:$0x3] %vm218_vm1, %v900_v1  ;;  %229 = vst.msk [vmem:[#allocation2 + $0x58] sm:$0x3] %vm218_vm1, %v900_v1  ;;  %v270_v23 = vmul.f32 %v1149_v17, %v258_v16  ;;  %p823_p1 = pnand %p822_p11, %p1337_p0  ;;  %s827_s10 = scalar_lea.vmem %s826_s9, 2048 }
  0x74   : > { %231 = vst.msk [vmem:[#allocation2 + $0x68] sm:$0x3] %vm218_vm1, %v900_v1  ;;  %233 = vst.msk [vmem:[#allocation2 + $0x78] sm:$0x3] %vm218_vm1, %v900_v1  ;;  %p828_p7 = scmp.lt.s32.totalorder %s1268_s20, %s826_s9  ;;  %p829_p9 = scmp.lt.s32.totalorder %s827_s10, %s821_s6 }
  0x75   : > { %235 = vst.msk [vmem:[#allocation2 + $0x88] sm:$0x3] %vm218_vm1, %v900_v1  ;;  %237 = vst.msk [vmem:[#allocation2 + $0x98] sm:$0x3] %vm218_vm1, %v900_v1  ;;  %p824_p3 = pneg %p823_p1 }
  0x76   : > { %247 = vst.msk [vmem:[#allocation2 + $0x11] sm:$0xff] %vm216_vm0, %v238_v6  ;;  %248 = vst.msk [vmem:[#allocation2 + $0x21] sm:$0xff] %vm216_vm0, %v239_v7  ;;  %p830_p12 = por %p829_p9, %p828_p7 }
  0x77   : > { %249 = vst.msk [vmem:[#allocation2 + $0x31] sm:$0xff] %vm216_vm0, %v240_v8  ;;  %250 = vst.msk [vmem:[#allocation2 + $0x41] sm:$0xff] %vm216_vm0, %v241_v9 }
  0x78   : > { %251 = vst.msk [vmem:[#allocation2 + $0x51] sm:$0xff] %vm216_vm0, %v242_v10  ;;  %252 = vst.msk [vmem:[#allocation2 + $0x61] sm:$0xff] %vm216_vm0, %v243_v11  ;;  %v286_v20 = vld [vmem:[#allocation2 + $0x1] sm:$0xff]  ;;  %p831_p2 = pnand %p830_p12, %p824_p3 }
  0x79   : > { %253 = vst.msk [vmem:[#allocation2 + $0x71] sm:$0xff] %vm216_vm0, %v244_v12  ;;  %254 = vst.msk [vmem:[#allocation2 + $0x81] sm:$0xff] %vm216_vm0, %v245_v13  ;;  %v314_v21 = vld [vmem:[#allocation2 + $0x2] sm:$0xff]  ;;  %v298_v24 = vmul.f32 %v1151_v18, %v286_v20 }
  0x7a   : > { %v326_v25 = vmul.f32 %v1153_v19, %v314_v21  ;;  %v1194_v21 = vld [vmem:[#allocation8] ss:$0 sm:$0xff] }
  0x7b   : > { %v306_v27 = vadd.f32 %v298_v24, %v270_v23 }
  0x7d   : > { %v342_v29 = vld [vmem:[#allocation2 + $0x10] sm:$0xff]  ;;  %v334_v34 = vadd.f32 %v326_v25, %v306_v27  ;;  %v427_v37 = vld [vmem:[#allocation2 + $0x20] sm:$0xff] }
  0x7e   : > { %v370_v30 = vld [vmem:[#allocation2 + $0x11] sm:$0xff]  ;;  %v354_v35 = vmul.f32 %v1158_v26, %v342_v29  ;;  %v455_v38 = vld [vmem:[#allocation2 + $0x21] sm:$0xff]  ;;  %v271_v40 = vmul.f32 %v342_v29, %v1149_v17  ;;  %v439_v46 = vmul.f32 %v1164_v32, %v427_v37  ;;  %v272_v53 = vmul.f32 %v427_v37, %v1149_v17 }
  0x7f   : > { %v398_v36 = vld [vmem:[#allocation2 + $0x12] sm:$0xff]  ;;  %v382_v42 = vmul.f32 %v1160_v28, %v370_v30  ;;  %v483_v43 = vld [vmem:[#allocation2 + $0x22] sm:$0xff]  ;;  %v299_v44 = vmul.f32 %v370_v30, %v1151_v18  ;;  %v467_v47 = vmul.f32 %v1166_v33, %v455_v38  ;;  %v355_v55 = vmul.f32 %v427_v37, %v1158_v26 }
  0x80   : > { %v362_v41 = vadd.f32 %v354_v35, %v334_v34  ;;  %v410_v45 = vmul.f32 %v1162_v31, %v398_v36  ;;  %v428_v48 = vld [vmem:[#allocation2 + $0x30] sm:$0xff]  ;;  %v327_v51 = vmul.f32 %v398_v36, %v1153_v19  ;;  %v495_v54 = vmul.f32 %v1169_v39, %v483_v43  ;;  %v429_v6 = vld [vmem:[#allocation2 + $0x40] sm:$0xff] }
  0x81   : > { %v307_v50 = vadd.f32 %v299_v44, %v271_v40  ;;  %v456_v52 = vld [vmem:[#allocation2 + $0x31] sm:$0xff]  ;;  %v383_v56 = vmul.f32 %v455_v38, %v1160_v28  ;;  %v300_v58 = vmul.f32 %v455_v38, %v1151_v18  ;;  %v411_v61 = vmul.f32 %v483_v43, %v1162_v31  ;;  %v457_v12 = vld [vmem:[#allocation2 + $0x41] sm:$0xff] }
  0x82   : > { %v390_v49 = vadd.f32 %v382_v42, %v362_v41  ;;  %v484_v57 = vld [vmem:[#allocation2 + $0x32] sm:$0xff]  ;;  %v440_v62 = vmul.f32 %v1164_v32, %v428_v48  ;;  %v468_v63 = vmul.f32 %v1166_v33, %v456_v52  ;;  %v328_v1 = vmul.f32 %v483_v43, %v1153_v19  ;;  %v485_v15 = vld [vmem:[#allocation2 + $0x42] sm:$0xff] }
  0x83   : > { %v335_v60 = vadd.f32 %v327_v51, %v307_v50  ;;  %v308_v0 = vadd.f32 %v300_v58, %v272_v53  ;;  %v273_v2 = vmul.f32 %v428_v48, %v1149_v17  ;;  %v496_v5 = vmul.f32 %v1169_v39, %v484_v57  ;;  %v430_v34 = vld [vmem:[#allocation2 + $0x50] sm:$0xff] }
  0x84   : > { %v418_v59 = vadd.f32 %v410_v45, %v390_v49  ;;  %v301_v7 = vmul.f32 %v456_v52, %v1151_v18  ;;  %v356_v9 = vmul.f32 %v428_v48, %v1158_v26  ;;  %v384_v10 = vmul.f32 %v456_v52, %v1160_v28  ;;  %v458_v44 = vld [vmem:[#allocation2 + $0x51] sm:$0xff] }
  0x85   : > { %v363_v4 = vadd.f32 %v355_v55, %v335_v60  ;;  %v336_v8 = vadd.f32 %v328_v1, %v308_v0  ;;  %v412_v11 = vmul.f32 %v484_v57, %v1162_v31  ;;  %v329_v20 = vmul.f32 %v484_v57, %v1153_v19  ;;  %v486_v52 = vld [vmem:[#allocation2 + $0x52] sm:$0xff]  ;;  %v431_v0 = vld [vmem:[#allocation2 + $0x60] sm:$0xff] }
  0x86   : > { %v447_v3 = vadd.f32 %v439_v46, %v418_v59  ;;  %v309_v16 = vadd.f32 %v301_v7, %v273_v2  ;;  %v441_v23 = vmul.f32 %v1164_v32, %v429_v6  ;;  %v357_v24 = vmul.f32 %v429_v6, %v1158_v26  ;;  %v459_v2 = vld [vmem:[#allocation2 + $0x61] sm:$0xff] }
  0x87   : > { %v391_v14 = vadd.f32 %v383_v56, %v363_v4  ;;  %v364_v22 = vadd.f32 %v356_v9, %v336_v8  ;;  %v274_v25 = vmul.f32 %v429_v6, %v1149_v17  ;;  %v302_v35 = vmul.f32 %v457_v12, %v1151_v18 }
  0x88   : > { %v475_v13 = vadd.f32 %v467_v47, %v447_v3  ;;  %v337_v30 = vadd.f32 %v329_v20, %v309_v16  ;;  %v469_v37 = vmul.f32 %v1166_v33, %v457_v12  ;;  %v385_v38 = vmul.f32 %v457_v12, %v1160_v28 }
  0x89   : > { %v419_v29 = vadd.f32 %v411_v61, %v391_v14  ;;  %v392_v36 = vadd.f32 %v384_v10, %v364_v22  ;;  %v330_v40 = vmul.f32 %v485_v15, %v1153_v19  ;;  %v310_v45 = vadd.f32 %v302_v35, %v274_v25 }
  0x8a   : > { %v503_v27 = vadd.f32 %v495_v54, %v475_v13  ;;  %v365_v43 = vadd.f32 %v357_v24, %v337_v30  ;;  %v497_v47 = vmul.f32 %v1169_v39, %v485_v15  ;;  %v413_v48 = vmul.f32 %v485_v15, %v1162_v31 }
  0x8b   : > { %v448_v42 = vadd.f32 %v440_v62, %v419_v29  ;;  %v420_v46 = vadd.f32 %v412_v11, %v392_v36  ;;  %v442_v49 = vmul.f32 %v1164_v32, %v430_v34  ;;  %v338_v53 = vadd.f32 %v330_v40, %v310_v45  ;;  %v487_v11 = vld [vmem:[#allocation2 + $0x62] sm:$0xff] }
  0x8c   : > { %v518_v41 = vadd.f32 %v1194_v21, %v503_v27  ;;  %v393_v51 = vadd.f32 %v385_v38, %v365_v43  ;;  %v358_v54 = vmul.f32 %v430_v34, %v1158_v26  ;;  %v470_v56 = vmul.f32 %v1166_v33, %v458_v44  ;;  %v432_v27 = vld [vmem:[#allocation2 + $0x70] sm:$0xff] }
  0x8d   : > { %v476_v50 = vadd.f32 %v468_v63, %v448_v42  ;;  %v449_v55 = vadd.f32 %v441_v23, %v420_v46  ;;  %v275_v57 = vmul.f32 %v430_v34, %v1149_v17  ;;  %v303_v58 = vmul.f32 %v458_v44, %v1151_v18  ;;  %v460_v34 = vld [vmem:[#allocation2 + $0x71] sm:$0xff]  ;;  %v433_v46 = vld [vmem:[#allocation2 + $0x80] sm:$0xff] }
  0x8e   : > { %526 = vst.msk [vmem:[%s1209_s18] sm:$0xff] %vm216_vm0, %v518_v41  ;;  %v421_v60 = vadd.f32 %v413_v48, %v393_v51  ;;  %v366_v61 = vadd.f32 %v358_v54, %v338_v53  ;;  %v386_v62 = vmul.f32 %v458_v44, %v1160_v28  ;;  %v498_v1 = vmul.f32 %v1169_v39, %v486_v52  ;;  %v488_v43 = vld [vmem:[#allocation2 + $0x72] sm:$0xff] }
  0x8f   : > { %v504_v59 = vadd.f32 %v496_v5, %v476_v50  ;;  %v477_v63 = vadd.f32 %v469_v37, %v449_v55  ;;  %v311_v3 = vadd.f32 %v303_v58, %v275_v57  ;;  %v331_v4 = vmul.f32 %v486_v52, %v1153_v19 }
  0x90   : > { %v450_v7 = vadd.f32 %v442_v49, %v421_v60  ;;  %v394_v8 = vadd.f32 %v386_v62, %v366_v61  ;;  %v414_v9 = vmul.f32 %v486_v52, %v1162_v31  ;;  %v443_v10 = vmul.f32 %v1164_v32, %v431_v0  ;;  %v461_v60 = vld [vmem:[#allocation2 + $0x81] sm:$0xff] }
  0x91   : > { %v519_v6 = vadd.f32 %v1194_v21, %v504_v59  ;;  %v505_v5 = vadd.f32 %v497_v47, %v477_v63  ;;  %v339_v12 = vadd.f32 %v331_v4, %v311_v3  ;;  %v359_v13 = vmul.f32 %v431_v0, %v1158_v26 }
  0x92   : > { %v478_v14 = vadd.f32 %v470_v56, %v450_v7  ;;  %v422_v15 = vadd.f32 %v414_v9, %v394_v8  ;;  %v276_v16 = vmul.f32 %v431_v0, %v1149_v17  ;;  %v304_v20 = vmul.f32 %v459_v2, %v1151_v18 }
  0x93   : > { %527 = vst.msk [vmem:[%s1209_s18 + $0x8] sm:$0xff] %vm216_vm0, %v519_v6  ;;  %v520_v22 = vadd.f32 %v1194_v21, %v505_v5  ;;  %v471_v23 = vmul.f32 %v1166_v33, %v459_v2  ;;  %v367_v24 = vadd.f32 %v359_v13, %v339_v12  ;;  %v387_v25 = vmul.f32 %v459_v2, %v1160_v28  ;;  %v489_v2 = vld [vmem:[#allocation2 + $0x82] sm:$0xff]  ;;  %v462_v13 = vld [vmem:[#allocation2 + $0x91] sm:$0xff] }
  0x94   : > { %v506_v29 = vadd.f32 %v498_v1, %v478_v14  ;;  %v451_v30 = vadd.f32 %v443_v10, %v422_v15  ;;  %v312_v35 = vadd.f32 %v304_v20, %v276_v16  ;;  %v332_v36 = vmul.f32 %v487_v11, %v1153_v19  ;;  %v490_v15 = vld [vmem:[#allocation2 + $0x92] sm:$0xff] }
  0x95   : > { %528 = vst.msk [vmem:[%s1209_s18 + $0x10] sm:$0xff] %vm216_vm0, %v520_v22  ;;  %v499_v37 = vmul.f32 %v1169_v39, %v487_v11  ;;  %v395_v38 = vadd.f32 %v387_v25, %v367_v24  ;;  %v415_v40 = vmul.f32 %v487_v11, %v1162_v31  ;;  %v360_v45 = vmul.f32 %v432_v27, %v1158_v26 }
  0x96   : > { %v521_v41 = vadd.f32 %v1194_v21, %v506_v29  ;;  %v479_v42 = vadd.f32 %v471_v23, %v451_v30  ;;  %v340_v44 = vadd.f32 %v332_v36, %v312_v35  ;;  %v444_v48 = vmul.f32 %v1164_v32, %v432_v27 }
  0x97   : > { %v423_v47 = vadd.f32 %v415_v40, %v395_v38  ;;  %v277_v49 = vmul.f32 %v432_v27, %v1149_v17  ;;  %v305_v50 = vmul.f32 %v460_v34, %v1151_v18  ;;  %v472_v52 = vmul.f32 %v1166_v33, %v460_v34 }
  0x98   : > { %529 = vst.msk [vmem:[%s1209_s18 + $0x18] sm:$0xff] %vm216_vm0, %v521_v41  ;;  %v507_v51 = vadd.f32 %v499_v37, %v479_v42  ;;  %v368_v53 = vadd.f32 %v360_v45, %v340_v44  ;;  %v388_v54 = vmul.f32 %v460_v34, %v1160_v28  ;;  %v333_v57 = vmul.f32 %v488_v43, %v1153_v19  ;;  %v434_v19 = vld [vmem:[#allocation2 + $0x90] sm:$0xff] }
  0x99   : > { %v452_v55 = vadd.f32 %v444_v48, %v423_v47  ;;  %v313_v56 = vadd.f32 %v305_v50, %v277_v49  ;;  %v361_v58 = vmul.f32 %v433_v46, %v1158_v26  ;;  %v416_v18 = vmul.f32 %v488_v43, %v1162_v31 }
  0x9a   : > { %v522_v59 = vadd.f32 %v1194_v21, %v507_v51  ;;  %v396_v17 = vadd.f32 %v388_v54, %v368_v53  ;;  %v500_v62 = vmul.f32 %v1169_v39, %v488_v43  ;;  %v445_v1 = vmul.f32 %v1164_v32, %v433_v46 }
  0x9b   : > { %v480_v61 = vadd.f32 %v472_v52, %v452_v55  ;;  %v341_v0 = vadd.f32 %v333_v57, %v313_v56  ;;  %v389_v4 = vmul.f32 %v461_v60, %v1160_v28  ;;  %v473_v7 = vmul.f32 %v1166_v33, %v461_v60 }
  0x9c   : > { %530 = vst.msk [vmem:[%s1209_s18 + $0x20] sm:$0xff] %vm216_vm0, %v522_v59  ;;  %v424_v63 = vadd.f32 %v416_v18, %v396_v17  ;;  %v417_v5 = vmul.f32 %v489_v2, %v1162_v31  ;;  %v446_v10 = vmul.f32 %v1164_v32, %v434_v19  ;;  %v501_v12 = vmul.f32 %v1169_v39, %v489_v2 }
  0x9d   : > { %v508_v3 = vadd.f32 %v500_v62, %v480_v61  ;;  %v369_v26 = vadd.f32 %v361_v58, %v341_v0  ;;  %v474_v20 = vmul.f32 %v1166_v33, %v462_v13  ;;  %v502_v32 = vmul.f32 %v1169_v39, %v490_v15 }
  0x9e   : > { %v453_v6 = vadd.f32 %v445_v1, %v424_v63 }
  0x9f   : > { %v523_v8 = vadd.f32 %v1194_v21, %v508_v3  ;;  %v397_v9 = vadd.f32 %v389_v4, %v369_v26 }
  0xa0   : > { %v481_v11 = vadd.f32 %v473_v7, %v453_v6 }
  0xa1   : > { %531 = vst.msk [vmem:[%s1209_s18 + $0x28] sm:$0xff] %vm216_vm0, %v523_v8  ;;  %v425_v28 = vadd.f32 %v417_v5, %v397_v9 }
  0xa2   : > { %v509_v14 = vadd.f32 %v501_v12, %v481_v11 }
  0xa3   : > { %v454_v16 = vadd.f32 %v446_v10, %v425_v28 }
  0xa4   : > { %v524_v31 = vadd.f32 %v1194_v21, %v509_v14 }
  0xa5   : > { %v482_v22 = vadd.f32 %v474_v20, %v454_v16 }
  0xa6   : > { %532 = vst.msk [vmem:[%s1209_s18 + $0x30] sm:$0xff] %vm216_vm0, %v524_v31 }
  0xa7   : > { %v510_v23 = vadd.f32 %v502_v32, %v482_v22 }
  0xa9   : > { %v525_v33 = vadd.f32 %v1194_v21, %v510_v23 }
  0xab   : > { %533 = vst.msk [vmem:[%s1209_s18 + $0x38] sm:$0xff] %vm216_vm0, %v525_v33 }
  0xac   : > { %834 = shalt.err (!%p831_p2)
}
  0xad   : > { %s835_s25 = scalar_lea.hbm %s1273_s28, 1024  ;;  %s839_s24 = scalar_lea.hbm %s1323_s3, 2048 }
  0xae   : > { %p836_p13 = scmp.ne.s32.totalorder %s1273_s28, %s835_s25  ;;  %p840_p4 = scmp.lt.u32.totalorder %s1273_s28, %s1323_s3 }
  0xaf   : > { %p841_p5 = scmp.lt.u32.totalorder %s839_s24, %s835_s25  ;;  %p843_p11 = scmp.lt.u32.totalorder %s835_s25, %s1273_s28 }
  0xb0   : > { %p837_p6 = pnand %p836_p13, %p1337_p0 }
  0xb1   : > { %p842_p8 = por %p841_p5, %p840_p4 }
  0xb2   : > { %p838_p10 = pneg %p837_p6 }
  0xb3   : > { %p844_p1 = por %p843_p11, %p842_p8 }
  0xb5   : > { %p845_p3 = pnand %p844_p1, %p838_p10 }
  0xb7   : > { %848 = shalt.err (!%p845_p3)
}
  0xb8   : > { %s902_s4 = smov 128   ;;  %s903_s18 = smov 8  }
  0xb9   : > { %671 = dma.vmem_to_hbm [thread:$0]  (%p1337_p0), %s1268_s20, 1024, %s1273_s28, %s535_s23, %s902_s4, %s902_s4, %s903_s18  }
  0xba PF: > { %s563_s21 = sand.u32 1, %s879_s12   ;;  %p1338_p7 = scmp.ne.s32.totalorder %s1328_s19, 0 }
  0xbb   : > { %p1339_p9 = scmp.ge.s32.totalorder %s891_s15, 2  ;;  %s564_s26 = scalar_lea.sflag [#allocation5], %s563_s21 }
  0xbd   : > { %p685_p12 = pnand %p1339_p9, %p1338_p7 }
  0xbf   : > { %874 = dma.done.wait (!%p685_p12), %s564_s26, 1024  }
  0xc0   : > { %876 = vsyncadd (!%p685_p12), %s564_s26, 4294966272  ;;  %p17_p2 = scmp.ge.s32.totalorder %s1035_s5, 4   ;;  %s1340_s12 = smov %s883_s13 }
  0xc1   : > { %s1341_s13 = smov %s887_s14  ;;  %s1342_s14 = smov %s1051_s8 }
  0xc2   : > { %s1343_s15 = smov %s1035_s5  ;;  %19 = sbr.rel (!%p17_p2) target bundleno = 6 (0x6), region = 87 }
  0xc9   :  { %569 = vsyncpa [#allocation4], 1 }
  0xca   :  { %571 = vsyncpa [#allocation4 + $0x1], 1 }
  0xcb   :  { %572 = vsyncpa [#allocation7], 1 }
  0xcc   :  { %573 = vsyncpa [#allocation5], 1 }
  0xcd   :  { %575 = vsyncpa [#allocation5 + $0x1], 1 }

// kernel: msgaa_forward.5
= control target key start
LH: loop header
LB: loop body
LE: loop exit
PB: predicated region body
PF: predicated region fallthrough
CT: control target
= control target key end

     0   :  { %10 = vsyncpa [#allocation4], 0  ;;  %s3713_s0 = inlined_call_operand.hbm [shape: f32[2,8,8,32], index: 0, kind: input, shape index: {}]   ;;  %s3714_s1 = inlined_call_operand.hbm [shape: f32[7,7,32], index: 1, kind: input, shape index: {}]   ;;  %s3715_s2 = inlined_call_operand.hbm [shape: bf16[32,32], index: 2, kind: input, shape index: {}]   ;;  %s3716_s3 = inlined_call_operand.hbm [shape: f32[2,64,32], index: 3, kind: output, shape index: {0}]   ;;  %s3717_s4 = inlined_call_operand.hbm [shape: f32[2,32], index: 4, kind: output, shape index: {1}]  }
   0x1   :  { %12 = vsyncpa [#allocation4 + $0x1], 0 }
   0x2   :  { %13 = vsyncpa [#allocation7], 0 }
   0x3   :  { %14 = vsyncpa [#allocation5], 0 }
   0x4   :  { %16 = vsyncpa [#allocation5 + $0x1], 0 }
   0x5   :  { %17 = vsyncpa [#allocation11], 0  ;;  %s2335_s15 = smov 0   ;;  %s2337_s16 = smov 0  }
   0x6   :  { %s2339_s17 = smov 0   ;;  %s2341_s18 = smov 0  }
   0x7 LB: > { %s2356_s19 = sadd.s32 4294967295, %s2296_s18   ;;  %s1975_s20 = sadd.s32 4294967294, %s2296_s18   ;;  %s2296_s18 = sphi %s2341_s18, %s4019_s18   ;;  %s2292_s17 = sphi %s2339_s17, %s4018_s17   ;;  %s2288_s16 = sphi %s2337_s16, %s4017_s16   ;;  %s2284_s15 = sphi %s2335_s15, %s4016_s15  }
   0x8   : > { %p43_p0 = scmp.ne.s32.totalorder %s2288_s16, %s2284_s15  ;;  %p3718_p1 = scmp.eq.s32.totalorder %s2356_s19, 0 }
   0x9   : > { %p115_p3 = scmp.eq.s32.totalorder %s1975_s20, 1  ;;  %p1976_p5 = scmp.ge.s32.totalorder %s2296_s18, 1 }
   0xa   : > { %p2365_p4 = por %p3718_p1, %p43_p0  ;;  %p143_p7 = scmp.lt.s32.totalorder %s2296_s18, 3 }
   0xb   : > { %p2370_p6 = por %p115_p3, %p43_p0  ;;  %s2298_s24 = smov [#allocation6]  }
   0xc   : > { %s3834_s21 = scalar_select %p2365_p4, 1, 0 }
   0xd   : > { %s3835_s22 = scalar_select %p2370_p6, 1, 0 }
   0xe   : > { %p2376_p9 = pnand %p1976_p5, %p143_p7  ;;  %s155_s25 = sshll.u32 %s2298_s24, 4  ;;  %s2380_s25 = int_to_ptr.vmem [resolvable:$true] %s155_s25 }
   0xf   : > { %s2299_s27 = smov [#allocation8]   ;;  %s2110_s5 = scalar_lea.hbm %s3714_s1, 896 }
  0x10   : > { %p2043_p10 = pneg %p2376_p9  ;;  %s168_s28 = sshll.u32 %s2299_s27, 4  ;;  %s2391_s28 = int_to_ptr.vmem [resolvable:$true] %s168_s28 }
  0x11   : > { %p2111_p13 = scmp.ne.s32.totalorder %s3714_s1, %s2110_s5  ;;  %p2117_p7 = scmp.lt.u32.totalorder %s2110_s5, %s3714_s1 }
  0x12   : > { %p2387_p12 = pnand %p2043_p10, %p3718_p1 }
  0x14   : > { %p2112_p0 = pneg %p2387_p12 }
  0x16   : > { %p2113_p3 = pnand %p2112_p0, %p2111_p13 }
  0x18   : > { %p2114_p5 = pneg %p2113_p3 }
  0x1a   : > { %p2119_p10 = pnand %p2117_p7, %p2114_p5 }
  0x1c   : > { %2122 = shalt.err (!%p2119_p10)
}
  0x1d   : > { %s2123_s10 = scalar_lea.vmem %s2380_s25, 896  ;;  %p2131_p2 = scmp.lt.s32.totalorder %s2380_s25, %s2380_s25 }
  0x1e   : > { %p2124_p11 = scmp.ne.s32.totalorder %s2380_s25, %s2123_s10  ;;  %p2132_p13 = scmp.lt.s32.totalorder %s2123_s10, %s2123_s10 }
  0x20   : > { %p2126_p8 = pnand %p2124_p11, %p2112_p0  ;;  %p2133_p3 = por %p2132_p13, %p2131_p2 }
  0x22   : > { %p2127_p1 = pneg %p2126_p8 }
  0x24   : > { %p2134_p6 = pnand %p2133_p3, %p2127_p1 }
  0x26   : > { %2137 = shalt.err (!%p2134_p6)
}
  0x27   : > { %s2300_s11 = smov 128   ;;  %s2301_s12 = smov 8  }
  0x28   : > { %2046 = dma.hbm_to_vmem [thread:$0]  (!%p2387_p12), %s3714_s1, 896, %s2380_s25, [#allocation7], %s2300_s11, %s2300_s11, %s2301_s12  }
  0x29   : > { %s2138_s27 = scalar_lea.hbm %s3715_s2, 256 }
  0x2a   : > { %p2139_p1 = scmp.ne.s32.totalorder %s3715_s2, %s2138_s27  ;;  %p2145_p8 = scmp.lt.u32.totalorder %s2138_s27, %s3715_s2 }
  0x2c   : > { %p2141_p2 = pnand %p2139_p1, %p2112_p0 }
  0x2e   : > { %p2142_p6 = pneg %p2141_p2 }
  0x30   : > { %p2147_p11 = pnand %p2145_p8, %p2142_p6 }
  0x32   : > { %2150 = shalt.err (!%p2147_p11)
}
  0x33   : > { %s2151_s25 = scalar_lea.vmem %s2391_s28, 256  ;;  %p2159_p13 = scmp.lt.s32.totalorder %s2391_s28, %s2391_s28 }
  0x34   : > { %p2152_p5 = scmp.ne.s32.totalorder %s2391_s28, %s2151_s25  ;;  %p2160_p3 = scmp.lt.s32.totalorder %s2151_s25, %s2151_s25 }
  0x36   : > { %p2154_p7 = pnand %p2152_p5, %p2112_p0  ;;  %p2161_p1 = por %p2160_p3, %p2159_p13 }
  0x38   : > { %p2155_p10 = pneg %p2154_p7 }
  0x3a   : > { %p2162_p2 = pnand %p2161_p1, %p2155_p10 }
  0x3c   : > { %2165 = shalt.err (!%p2162_p2)
}
  0x3d   : > { %s2302_s7 = smov 64   ;;  %s2303_s8 = smov 4  }
  0x3e   : > { %2049 = dma.hbm_to_vmem [thread:$0]  (!%p2387_p12), %s3715_s2, 256, %s2391_s28, [#allocation7], %s2302_s7, %s2302_s7, %s2303_s8  }
  0x3f   : > { %s2449_s13 = sadd.s32 1, %s2296_s18   ;;  %s30_s20 = sadd.s32 1, %s2292_s17 }
  0x40   : > { %s27_s14 = ssub.s32 %s2296_s18, %s2449_s13  ;;  %p37_p6 = scmp.ne.s32.totalorder %s2292_s17, %s2288_s16 }
  0x41   : > { %p28_p0 = scmp.eq.s32.totalorder %s27_s14, 0  ;;  %p38_p8 = scmp.eq.s32.totalorder %s2296_s18, 0 }
  0x42   : > { %p3838_p5 = scmp.eq.s32.totalorder %s2356_s19, 1  ;;  %p2060_p10 = scmp.lt.s32.totalorder %s2296_s18, 2 }
  0x43   : > { %s2458_s24 = scalar_select %p28_p0, %s2292_s17, %s30_s20  }
  0x44   : > { %p39_p11 = por %p38_p8, %p37_p6  ;;  %p2462_p7 = por %p3838_p5, %p37_p6 }
  0x45   : > { %s182_s26 = sand.u32 1, %s2292_s17   ;;  %s2003_s28 = sshll.u32 %s2296_s18, 10 }
  0x46   : > { %s3839_s27 = scalar_select %p2462_p7, 1, 0 }
  0x47   : > { %s1980_s29 = sshll.u32 %s182_s26, 6  ;;  %s2472_s6 = scalar_lea.hbm %s3713_s0, %s2003_s28 }
  0x48   : > { %s186_s25 = scalar_lea.vmem [#allocation3], %s1980_s29  ;;  %p2476_p12 = pnand %p2060_p10, %p39_p11 }
  0x49   : > { %s193_s7 = sshll.u32 %s186_s25, 4  ;;  %s2480_s9 = scalar_lea.sflag [#allocation4], %s182_s26  ;;  %s2474_s7 = int_to_ptr.vmem [resolvable:$true] %s193_s7 }
  0x4a   : > { %s2166_s10 = scalar_lea.hbm %s2472_s6, 1024  ;;  %p2168_p3 = pneg %p2476_p12 }
  0x4b   : > { %p2167_p13 = scmp.ne.s32.totalorder %s2472_s6, %s2166_s10  ;;  %s2171_s29 = scalar_lea.hbm %s3713_s0, 2048 }
  0x4c   : > { %p2172_p0 = scmp.lt.u32.totalorder %s2472_s6, %s3713_s0  ;;  %p2173_p6 = scmp.lt.u32.totalorder %s2171_s29, %s2166_s10 }
  0x4d   : > { %p2169_p1 = pnand %p2168_p3, %p2167_p13  ;;  %p2175_p11 = scmp.lt.u32.totalorder %s2166_s10, %s2472_s6 }
  0x4e   : > { %p2174_p8 = por %p2173_p6, %p2172_p0 }
  0x4f   : > { %p2170_p2 = pneg %p2169_p1 }
  0x50   : > { %p2176_p5 = por %p2175_p11, %p2174_p8 }
  0x52   : > { %p2177_p10 = pnand %p2176_p5, %p2170_p2 }
  0x54   : > { %2180 = shalt.err (!%p2177_p10)
}
  0x55   : > { %s2181_s26 = scalar_lea.vmem %s2474_s7, 1024  ;;  %s2304_s5 = smov [#allocation3]  }
  0x56   : > { %p2182_p13 = scmp.ne.s32.totalorder %s2474_s7, %s2181_s26  ;;  %s2186_s25 = sshll.u32 %s2304_s5, 4  ;;  %s2187_s25 = int_to_ptr.vmem [resolvable:$false] %s2186_s25 }
  0x57   : > { %s2188_s14 = scalar_lea.vmem %s2187_s25, 2048  ;;  %p2189_p4 = scmp.lt.s32.totalorder %s2474_s7, %s2187_s25 }
  0x58   : > { %p2184_p1 = pnand %p2182_p13, %p2168_p3  ;;  %p2190_p0 = scmp.lt.s32.totalorder %s2188_s14, %s2181_s26 }
  0x5a   : > { %p2185_p7 = pneg %p2184_p1  ;;  %p2191_p6 = por %p2190_p0, %p2189_p4 }
  0x5c   : > { %p2192_p8 = pnand %p2191_p6, %p2185_p7 }
  0x5e   : > { %2195 = shalt.err (!%p2192_p8)
}
  0x5f   : > { %2053 = dma.hbm_to_vmem [thread:$0]  (!%p2476_p12), %s2472_s6, 1024, %s2474_s7, %s2480_s9, %s2300_s11, %s2300_s11, %s2301_s12  }
  0x60   : > { %205 = sbr.rel (%p2376_p9) target bundleno = 654 (0x28e), region = 32 }
  0x67   : > { %s2514_s10 = sand.u32 1, %s2288_s16   ;;  %p3841_p4 = scmp.ne.s32.totalorder %s3834_s21, 0 }
  0x68   : > { %s1984_s20 = sshll.u32 %s2514_s10, 6  ;;  %s208_s29 = scalar_lea.sflag [#allocation4], %s2514_s10 }
  0x69   : > { %s2520_s8 = scalar_lea.vmem [#allocation3], %s1984_s20 }
  0x6a   : > { %2267 = dma.done.wait (%p3841_p4), %s208_s29, 1024  }
  0x6b   : > { %2269 = vsyncadd (%p3841_p4), %s208_s29, 4294966272  ;;  %p3842_p7 = scmp.eq.s32.totalorder %s2356_s19, 0 }
  0x6d   : > { %2271 = dma.done.wait (%p3842_p7), [#allocation7], 1152   ;;  %p3843_p9 = pmov %p3842_p7 }
  0x6e   : > { %vm245_vm0 = vcmask 261120   ;;  %vm247_vm1 = vcmask 259072   ;;  %v307_v0 = vlaneseq  ;;  %v2305_v1 = vmov 0.0   ;;  %v275_v7 = vld [vmem:[%s2520_s8] sm:$0xff]  ;;  %v276_v8 = vld [vmem:[%s2520_s8 + $0x8] sm:$0xff]  ;;  %v277_v9 = vld [vmem:[%s2520_s8 + $0x10] sm:$0xff] }
  0x6f   : > { %2273 = vsyncadd (%p3843_p9), [#allocation7], 4294966144  ;;  %246 = vst.msk [vmem:[#allocation2] sm:$0xff] %vm245_vm0, %v2305_v1  ;;  %v278_v13 = vld [vmem:[%s2520_s8 + $0x18] sm:$0xff]  ;;  %v279_v14 = vld [vmem:[%s2520_s8 + $0x20] sm:$0xff]  ;;  %s3602_s21 = scalar_lea.vmem [#allocation9], %s1984_s20 }
  0x70   : > { %248 = vst.msk [vmem:[#allocation2 + $0x8] sm:$0x3f] %vm247_vm1, %v2305_v1  ;;  %250 = vst.msk [vmem:[#allocation2 + $0x18] sm:$0x3f] %vm247_vm1, %v2305_v1  ;;  %v308_v2 = vshrl.u32 %v307_v0, 7  ;;  %v280_v15 = vld [vmem:[%s2520_s8 + $0x28] sm:$0xff] }
  0x71   : > { %249 = vst.msk [vmem:[#allocation2 + $0x10] sm:$0xff] %vm245_vm0, %v2305_v1  ;;  %251 = vst.msk [vmem:[#allocation2 + $0x20] sm:$0xff] %vm245_vm0, %v2305_v1  ;;  %v281_v16 = vld [vmem:[%s2520_s8 + $0x30] sm:$0xff]  ;;  %v282_v17 = vld [vmem:[%s2520_s8 + $0x38] sm:$0xff]  ;;  %vm1831_vm2 = vcmask 1040384   ;;  %p4007_p12 = scmp.ne.s32.totalorder %s2356_s19, 0 }
  0x72   : > { %252 = vst.msk [vmem:[#allocation2 + $0x28] sm:$0x3f] %vm247_vm1, %v2305_v1  ;;  %254 = vst.msk [vmem:[#allocation2 + $0x38] sm:$0x3f] %vm247_vm1, %v2305_v1  ;;  %v2558_v3 = vsub.s32 0, %v308_v2  ;;  %v2560_v4 = vsub.s32 1, %v308_v2 }
  0x73   : > { %253 = vst.msk [vmem:[#allocation2 + $0x30] sm:$0xff] %vm245_vm0, %v2305_v1  ;;  %255 = vst.msk [vmem:[#allocation2 + $0x40] sm:$0xff] %vm245_vm0, %v2305_v1  ;;  %v2562_v5 = vsub.s32 2, %v308_v2  ;;  %v2564_v6 = vsub.s32 3, %v308_v2  ;;  %v2569_v10 = vsub.s32 4, %v308_v2  ;;  %v2571_v11 = vsub.s32 5, %v308_v2 }
  0x74   : > { %256 = vst.msk [vmem:[#allocation2 + $0x48] sm:$0x3f] %vm247_vm1, %v2305_v1  ;;  %258 = vst.msk [vmem:[#allocation2 + $0x58] sm:$0x3f] %vm247_vm1, %v2305_v1  ;;  %v2573_v12 = vsub.s32 6, %v308_v2  ;;  %vm1837_vm3 = vcmask (!%p4007_p12), 254976  }
  0x75   : > { %257 = vst.msk [vmem:[#allocation2 + $0x50] sm:$0xff] %vm245_vm0, %v2305_v1  ;;  %259 = vst.msk [vmem:[#allocation2 + $0x60] sm:$0xff] %vm245_vm0, %v2305_v1  ;;  %v292_v18 = vld [vmem:[#allocation6] sm:$0x7f]  ;;  %v2588_v19 = vld [vmem:[#allocation6 + $0x8] sm:$0x7f] }
  0x76   : > { %260 = vst.msk [vmem:[#allocation2 + $0x68] sm:$0x3f] %vm247_vm1, %v2305_v1  ;;  %262 = vst.msk [vmem:[#allocation2 + $0x78] sm:$0x3f] %vm247_vm1, %v2305_v1  ;;  %v310_v20 = vrot.slane %v292_v18, %v2558_v3  ;;  %v338_v21 = vrot.slane %v292_v18, %v2560_v4  ;;  %v2593_v22 = vrot.slane %v292_v18, %v2562_v5  ;;  %v299_v28 = vld [vmem:[#allocation2] sm:$0xff] }
  0x77   : > { %261 = vst.msk [vmem:[#allocation2 + $0x70] sm:$0xff] %vm245_vm0, %v2305_v1  ;;  %263 = vst.msk [vmem:[#allocation2 + $0x80] sm:$0xff] %vm245_vm0, %v2305_v1  ;;  %v2596_v23 = vrot.slane %v292_v18, %v2564_v6  ;;  %v2599_v24 = vrot.slane %v292_v18, %v2569_v10  ;;  %v2602_v25 = vrot.slane %v292_v18, %v2571_v11  ;;  %v327_v38 = vld [vmem:[#allocation2 + $0x1] sm:$0xff] }
  0x78   : > { %264 = vst.msk [vmem:[#allocation2 + $0x88] sm:$0x3f] %vm247_vm1, %v2305_v1  ;;  %266 = vst.msk [vmem:[#allocation2 + $0x98] sm:$0x3f] %vm247_vm1, %v2305_v1  ;;  %v2605_v26 = vrot.slane %v292_v18, %v2573_v12  ;;  %v2609_v27 = vrot.slane %v2588_v19, %v2558_v3  ;;  %v300_v29 = vld [vmem:[#allocation2 + $0x10] sm:$0xff]  ;;  %v2611_v30 = vld [vmem:[#allocation2 + $0x20] sm:$0xff]  ;;  %v2615_v31 = vrot.slane %v2588_v19, %v2560_v4 }
  0x79   : > { %265 = vst.msk [vmem:[#allocation2 + $0x90] sm:$0xff] %vm245_vm0, %v2305_v1  ;;  %267 = vst.msk [vmem:[#allocation2 + $0xa0] sm:$0xff] %vm245_vm0, %v2305_v1  ;;  %v2619_v32 = vrot.slane %v2588_v19, %v2562_v5  ;;  %v2623_v33 = vrot.slane %v2588_v19, %v2564_v6  ;;  %v2627_v34 = vrot.slane %v2588_v19, %v2569_v10  ;;  %v328_v39 = vld [vmem:[#allocation2 + $0x11] sm:$0xff]  ;;  %v2630_v40 = vld [vmem:[#allocation2 + $0x21] sm:$0xff] }
  0x7a   : > { %268 = vst.msk [vmem:[#allocation2 + $0xa8] sm:$0x3f] %vm247_vm1, %v2305_v1  ;;  %270 = vst.msk [vmem:[#allocation2 + $0xb8] sm:$0x3f] %vm247_vm1, %v2305_v1  ;;  %v311_v35 = vmul.f32 %v310_v20, %v299_v28  ;;  %v312_v36 = vmul.f32 %v310_v20, %v300_v29  ;;  %v313_v37 = vmul.f32 %v310_v20, %v2611_v30  ;;  %v355_v45 = vld [vmem:[#allocation2 + $0x2] sm:$0xff]  ;;  %v2636_v46 = vld [vmem:[#allocation2 + $0x12] sm:$0xff] }
  0x7b   : > { %269 = vst.msk [vmem:[#allocation2 + $0xb0] sm:$0xff] %vm245_vm0, %v2305_v1  ;;  %271 = vst.msk [vmem:[#allocation2 + $0xc0] sm:$0xff] %vm245_vm0, %v2305_v1  ;;  %v2633_v41 = vmul.f32 %v2609_v27, %v300_v29  ;;  %v339_v42 = vmul.f32 %v338_v21, %v327_v38  ;;  %v340_v43 = vmul.f32 %v338_v21, %v328_v39  ;;  %v2638_v47 = vld [vmem:[#allocation2 + $0x22] sm:$0xff] }
  0x7c   : > { %272 = vst.msk [vmem:[#allocation2 + $0xc8] sm:$0x3f] %vm247_vm1, %v2305_v1  ;;  %274 = vst.msk [vmem:[#allocation2 + $0xd8] sm:$0x3f] %vm247_vm1, %v2305_v1  ;;  %v341_v44 = vmul.f32 %v338_v21, %v2630_v40  ;;  %v2642_v48 = vmul.f32 %v2609_v27, %v2611_v30  ;;  %v367_v52 = vmul.f32 %v2593_v22, %v355_v45 }
  0x7d   : > { %273 = vst.msk [vmem:[#allocation2 + $0xd0] sm:$0xff] %vm245_vm0, %v2305_v1  ;;  %3844 = vst [vmem:[#allocation16_spill] sm:$0xff] %v2558_v3  ;;  %v368_v53 = vmul.f32 %v2593_v22, %v2636_v46  ;;  %v369_v54 = vmul.f32 %v2593_v22, %v2638_v47  ;;  %v2656_v55 = vmul.f32 %v2615_v31, %v328_v39 }
  0x7e   : > { %3845 = vst [vmem:[#allocation17_spill] sm:$0xff] %v2560_v4  ;;  %3846 = vst [vmem:[#allocation18_spill] sm:$0xff] %v2562_v5  ;;  %v347_v62 = vadd.f32 %v339_v42, %v311_v35  ;;  %v2704_v5 = vld [vmem:[#allocation2 + $0x23] sm:$0xff] }
  0x7f   : > { %3847 = vst [vmem:[#allocation19_spill] sm:$0xff] %v2564_v6  ;;  %3848 = vst [vmem:[#allocation20_spill] sm:$0xff] %v2569_v10 }
  0x80   : > { %3849 = vst [vmem:[#allocation21_spill] sm:$0xff] %v2571_v11  ;;  %3850 = vst [vmem:[#allocation22_spill] sm:$0xff] %v2573_v12  ;;  %v375_v6 = vadd.f32 %v367_v52, %v347_v62 }
  0x81   : > { %284 = vst.msk [vmem:[#allocation2 + $0x33] sm:$0xff] %vm245_vm0, %v275_v7  ;;  %285 = vst.msk [vmem:[#allocation2 + $0x43] sm:$0xff] %vm245_vm0, %v276_v8 }
  0x82   : > { %286 = vst.msk [vmem:[#allocation2 + $0x53] sm:$0xff] %vm245_vm0, %v277_v9  ;;  %287 = vst.msk [vmem:[#allocation2 + $0x63] sm:$0xff] %vm245_vm0, %v278_v13  ;;  %v348_v9 = vadd.f32 %v340_v43, %v312_v36 }
  0x83   : > { %288 = vst.msk [vmem:[#allocation2 + $0x73] sm:$0xff] %vm245_vm0, %v279_v14  ;;  %289 = vst.msk [vmem:[#allocation2 + $0x83] sm:$0xff] %vm245_vm0, %v280_v15 }
  0x84   : > { %290 = vst.msk [vmem:[#allocation2 + $0x93] sm:$0xff] %vm245_vm0, %v281_v16  ;;  %291 = vst.msk [vmem:[#allocation2 + $0xa3] sm:$0xff] %vm245_vm0, %v282_v17  ;;  %v349_v17 = vadd.f32 %v341_v44, %v313_v37 }
  0x85   : > { %3851 = vst [vmem:[#allocation23_spill] sm:$0xff] %v2588_v19  ;;  %3852 = vst [vmem:[#allocation24_spill] sm:$0xff] %v2611_v30 }
  0x86   : > { %3853 = vst [vmem:[#allocation25_spill] sm:$0xff] %v2627_v34 }
  0x88   : > { %v2644_v49 = vld [vmem:[#allocation2 + $0x30] sm:$0xff]  ;;  %v2646_v50 = vld [vmem:[#allocation2 + $0x40] sm:$0xff] }
  0x89   : > { %v2648_v51 = vld [vmem:[#allocation2 + $0x50] sm:$0xff]  ;;  %v2658_v56 = vld [vmem:[#allocation2 + $0x60] sm:$0xff]  ;;  %v314_v58 = vmul.f32 %v310_v20, %v2644_v49  ;;  %v315_v59 = vmul.f32 %v310_v20, %v2646_v50 }
  0x8a   : > { %v2660_v57 = vld [vmem:[#allocation2 + $0x70] sm:$0xff]  ;;  %v316_v60 = vmul.f32 %v310_v20, %v2648_v51  ;;  %v317_v63 = vmul.f32 %v310_v20, %v2658_v56  ;;  %v2669_v1 = vld [vmem:[#allocation2 + $0x41] sm:$0xff] }
  0x8b   : > { %v2665_v61 = vld [vmem:[#allocation2 + $0x31] sm:$0xff]  ;;  %v318_v0 = vmul.f32 %v310_v20, %v2660_v57  ;;  %v2673_v7 = vld [vmem:[#allocation2 + $0x61] sm:$0xff]  ;;  %v343_v14 = vmul.f32 %v338_v21, %v2669_v1 }
  0x8c   : > { %v2671_v2 = vld [vmem:[#allocation2 + $0x51] sm:$0xff]  ;;  %v342_v8 = vmul.f32 %v338_v21, %v2665_v61  ;;  %v345_v16 = vmul.f32 %v338_v21, %v2673_v7  ;;  %v2683_v20 = vld [vmem:[#allocation2 + $0x42] sm:$0xff] }
  0x8d   : > { %v2676_v13 = vld [vmem:[#allocation2 + $0x71] sm:$0xff]  ;;  %v344_v15 = vmul.f32 %v338_v21, %v2671_v2  ;;  %v2688_v38 = vld [vmem:[#allocation2 + $0x62] sm:$0xff]  ;;  %v371_v42 = vmul.f32 %v2593_v22, %v2683_v20  ;;  %v351_v37 = vadd.f32 %v343_v14, %v315_v59 }
  0x8e   : > { %v2681_v18 = vld [vmem:[#allocation2 + $0x32] sm:$0xff]  ;;  %v346_v28 = vmul.f32 %v338_v21, %v2676_v13  ;;  %v350_v29 = vadd.f32 %v342_v8, %v314_v58  ;;  %v353_v44 = vadd.f32 %v345_v16, %v317_v63  ;;  %v383_v21 = vld [vmem:[#allocation2 + $0x3] sm:$0xff]  ;;  %v373_v30 = vmul.f32 %v2593_v22, %v2688_v38 }
  0x8f   : > { %v2686_v35 = vld [vmem:[#allocation2 + $0x52] sm:$0xff]  ;;  %v370_v39 = vmul.f32 %v2593_v22, %v2681_v18  ;;  %v352_v43 = vadd.f32 %v344_v15, %v316_v60  ;;  %v2708_v59 = vld [vmem:[#allocation2 + $0x43] sm:$0xff]  ;;  %v376_v60 = vadd.f32 %v368_v53, %v348_v9  ;;  %v377_v63 = vadd.f32 %v369_v54, %v349_v17 }
  0x90   : > { %v2690_v36 = vld [vmem:[#allocation2 + $0x72] sm:$0xff]  ;;  %v372_v45 = vmul.f32 %v2593_v22, %v2686_v35  ;;  %v354_v8 = vadd.f32 %v346_v28, %v318_v0  ;;  %3854 = vst [vmem:[#allocation26_spill] sm:$0xff] %v2708_v59  ;;  %v379_v15 = vadd.f32 %v371_v42, %v351_v37  ;;  %v2712_v0 = vld [vmem:[#allocation2 + $0x63] sm:$0xff]  ;;  %v381_v12 = vadd.f32 %v373_v30, %v353_v44 }
  0x91   : > { %v2698_v58 = vld [vmem:[#allocation2 + $0x13] sm:$0xff]  ;;  %v374_v10 = vmul.f32 %v2593_v22, %v2690_v36  ;;  %v378_v14 = vadd.f32 %v370_v39, %v350_v29  ;;  %3856 = vst [vmem:[#allocation28_spill] sm:$0xff] %v2712_v0  ;;  %v395_v52 = vmul.f32 %v2596_v23, %v383_v21  ;;  %v397_v53 = vmul.f32 %v2596_v23, %v2704_v5  ;;  %v411_v17 = vld [vmem:[#allocation2 + $0x4] sm:$0xff] }
  0x92   : > { %v2706_v4 = vld [vmem:[#allocation2 + $0x33] sm:$0xff]  ;;  %v380_v3 = vadd.f32 %v372_v45, %v352_v43  ;;  %v396_v62 = vmul.f32 %v2596_v23, %v2698_v58  ;;  %v399_v9 = vmul.f32 %v2596_v23, %v2708_v59  ;;  %v401_v30 = vmul.f32 %v2596_v23, %v2712_v0  ;;  %v2733_v37 = vld [vmem:[#allocation2 + $0x24] sm:$0xff] }
  0x93   : > { %v2710_v16 = vld [vmem:[#allocation2 + $0x53] sm:$0xff]  ;;  %v382_v22 = vadd.f32 %v374_v10, %v354_v8  ;;  %v398_v54 = vmul.f32 %v2596_v23, %v2706_v4  ;;  %v403_v42 = vadd.f32 %v395_v52, %v375_v6  ;;  %3859 = vst [vmem:[#allocation31_spill] sm:$0xff] %v2733_v37  ;;  %v2737_v44 = vld [vmem:[#allocation2 + $0x44] sm:$0xff]  ;;  %v405_v21 = vadd.f32 %v397_v53, %v377_v63 }
  0x94   : > { %3855 = vst [vmem:[#allocation27_spill] sm:$0xff] %v2710_v16  ;;  %v2714_v28 = vld [vmem:[#allocation2 + $0x73] sm:$0xff]  ;;  %v400_v10 = vmul.f32 %v2596_v23, %v2710_v16  ;;  %3861 = vst [vmem:[#allocation33_spill] sm:$0xff] %v2737_v44  ;;  %v404_v45 = vadd.f32 %v396_v62, %v376_v60  ;;  %v407_v19 = vadd.f32 %v399_v9, %v379_v15  ;;  %v2741_v34 = vld [vmem:[#allocation2 + $0x64] sm:$0xff] }
  0x95   : > { %3857 = vst [vmem:[#allocation29_spill] sm:$0xff] %v2714_v28  ;;  %v2725_v29 = vld [vmem:[#allocation2 + $0x14] sm:$0xff]  ;;  %v402_v39 = vmul.f32 %v2596_v23, %v2714_v28  ;;  %v406_v8 = vadd.f32 %v398_v54, %v378_v14  ;;  %3863 = vst [vmem:[#allocation35_spill] sm:$0xff] %v2741_v34  ;;  %v409_v59 = vadd.f32 %v401_v30, %v381_v12  ;;  %v439_v15 = vld [vmem:[#allocation2 + $0x5] sm:$0xff] }
  0x96   : > { %3858 = vst [vmem:[#allocation30_spill] sm:$0xff] %v2725_v29  ;;  %v2735_v43 = vld [vmem:[#allocation2 + $0x34] sm:$0xff]  ;;  %v408_v0 = vadd.f32 %v400_v10, %v380_v3  ;;  %v423_v6 = vmul.f32 %v2599_v24, %v411_v17  ;;  %v424_v52 = vmul.f32 %v2599_v24, %v2725_v29  ;;  %v425_v60 = vmul.f32 %v2599_v24, %v2733_v37  ;;  %v2762_v54 = vld [vmem:[#allocation2 + $0x25] sm:$0xff] }
  0x97   : > { %3860 = vst [vmem:[#allocation32_spill] sm:$0xff] %v2735_v43  ;;  %v2739_v11 = vld [vmem:[#allocation2 + $0x54] sm:$0xff]  ;;  %v410_v23 = vadd.f32 %v402_v39, %v382_v22  ;;  %v426_v63 = vmul.f32 %v2599_v24, %v2735_v43  ;;  %v427_v14 = vmul.f32 %v2599_v24, %v2737_v44  ;;  %v429_v12 = vmul.f32 %v2599_v24, %v2741_v34  ;;  %v2766_v17 = vld [vmem:[#allocation2 + $0x45] sm:$0xff] }
  0x98   : > { %3862 = vst [vmem:[#allocation34_spill] sm:$0xff] %v2739_v11  ;;  %v2743_v16 = vld [vmem:[#allocation2 + $0x74] sm:$0xff]  ;;  %v428_v3 = vmul.f32 %v2599_v24, %v2739_v11  ;;  %v431_v53 = vadd.f32 %v423_v6, %v403_v42  ;;  %3866 = vst [vmem:[#allocation38_spill] sm:$0xff] %v2762_v54  ;;  %v432_v10 = vadd.f32 %v424_v52, %v404_v45  ;;  %v2770_v11 = vld [vmem:[#allocation2 + $0x65] sm:$0xff] }
  0x99   : > { %3864 = vst [vmem:[#allocation36_spill] sm:$0xff] %v2743_v16  ;;  %v2754_v62 = vld [vmem:[#allocation2 + $0x15] sm:$0xff]  ;;  %v430_v22 = vmul.f32 %v2599_v24, %v2743_v16  ;;  %3868 = vst [vmem:[#allocation40_spill] sm:$0xff] %v2766_v17  ;;  %v433_v30 = vadd.f32 %v425_v60, %v405_v21  ;;  %v434_v39 = vadd.f32 %v426_v63, %v406_v8  ;;  %v467_v8 = vld [vmem:[#allocation2 + $0x6] sm:$0xff] }
  0x9a   : > { %3865 = vst [vmem:[#allocation37_spill] sm:$0xff] %v2754_v62  ;;  %v2764_v9 = vld [vmem:[#allocation2 + $0x35] sm:$0xff]  ;;  %v435_v44 = vadd.f32 %v427_v14, %v407_v19  ;;  %3870 = vst [vmem:[#allocation42_spill] sm:$0xff] %v2770_v11  ;;  %v436_v34 = vadd.f32 %v428_v3, %v408_v0  ;;  %v437_v29 = vadd.f32 %v429_v12, %v409_v59  ;;  %v2791_v63 = vld [vmem:[#allocation2 + $0x26] sm:$0xff] }
  0x9b   : > { %3867 = vst [vmem:[#allocation39_spill] sm:$0xff] %v2764_v9  ;;  %v2768_v43 = vld [vmem:[#allocation2 + $0x55] sm:$0xff]  ;;  %v438_v24 = vadd.f32 %v430_v22, %v410_v23  ;;  %v451_v42 = vmul.f32 %v2602_v25, %v439_v15  ;;  %v452_v6 = vmul.f32 %v2602_v25, %v2754_v62  ;;  %v453_v45 = vmul.f32 %v2602_v25, %v2762_v54  ;;  %v2795_v15 = vld [vmem:[#allocation2 + $0x46] sm:$0xff] }
  0x9c   : > { %3869 = vst [vmem:[#allocation41_spill] sm:$0xff] %v2768_v43  ;;  %v2772_v37 = vld [vmem:[#allocation2 + $0x75] sm:$0xff]  ;;  %v454_v19 = vmul.f32 %v2602_v25, %v2764_v9  ;;  %v455_v21 = vmul.f32 %v2602_v25, %v2766_v17  ;;  %v456_v59 = vmul.f32 %v2602_v25, %v2768_v43  ;;  %v457_v0 = vmul.f32 %v2602_v25, %v2770_v11  ;;  %v2799_v43 = vld [vmem:[#allocation2 + $0x66] sm:$0xff] }
  0x9d   : > { %3871 = vst [vmem:[#allocation43_spill] sm:$0xff] %v2772_v37  ;;  %v2783_v52 = vld [vmem:[#allocation2 + $0x16] sm:$0xff]  ;;  %v458_v23 = vmul.f32 %v2602_v25, %v2772_v37  ;;  %v459_v60 = vadd.f32 %v451_v42, %v431_v53  ;;  %3872 = vst [vmem:[#allocation44_spill] sm:$0xff] %v2795_v15  ;;  %v460_v3 = vadd.f32 %v452_v6, %v432_v10 }
  0x9e   : > { %v2793_v14 = vld [vmem:[#allocation2 + $0x36] sm:$0xff]  ;;  %v461_v12 = vadd.f32 %v453_v45, %v433_v30  ;;  %v462_v22 = vadd.f32 %v454_v19, %v434_v39  ;;  %v463_v17 = vadd.f32 %v455_v21, %v435_v44  ;;  %3874 = vst [vmem:[#allocation46_spill] sm:$0xff] %v2799_v43  ;;  %v464_v11 = vadd.f32 %v456_v59, %v436_v34 }
  0x9f   : > { %v2797_v9 = vld [vmem:[#allocation2 + $0x56] sm:$0xff]  ;;  %v465_v62 = vadd.f32 %v457_v0, %v437_v29  ;;  %v466_v25 = vadd.f32 %v458_v23, %v438_v24  ;;  %v479_v53 = vmul.f32 %v2605_v26, %v467_v8  ;;  %v480_v42 = vmul.f32 %v2605_v26, %v2783_v52  ;;  %v2818_v8 = vld [vmem:[#allocation2 + $0x80] sm:$0xff] }
  0xa0   : > { %3873 = vst [vmem:[#allocation45_spill] sm:$0xff] %v2797_v9  ;;  %v2801_v54 = vld [vmem:[#allocation2 + $0x76] sm:$0xff]  ;;  %v481_v10 = vmul.f32 %v2605_v26, %v2791_v63  ;;  %v482_v44 = vmul.f32 %v2605_v26, %v2793_v14  ;;  %v483_v30 = vmul.f32 %v2605_v26, %v2795_v15  ;;  %v484_v39 = vmul.f32 %v2605_v26, %v2797_v9 }
  0xa1   : > { %3875 = vst [vmem:[#allocation47_spill] sm:$0xff] %v2801_v54  ;;  %v485_v34 = vmul.f32 %v2605_v26, %v2799_v43  ;;  %v486_v29 = vmul.f32 %v2605_v26, %v2801_v54  ;;  %v487_v24 = vadd.f32 %v479_v53, %v459_v60  ;;  %v488_v6 = vadd.f32 %v480_v42, %v460_v3 }
  0xa2   : > { %v489_v45 = vadd.f32 %v481_v10, %v461_v12  ;;  %v490_v19 = vadd.f32 %v482_v44, %v462_v22  ;;  %v491_v21 = vadd.f32 %v483_v30, %v463_v17  ;;  %v492_v59 = vadd.f32 %v484_v39, %v464_v11  ;;  %v2834_v12 = vld [vmem:[#allocation2 + $0x81] sm:$0xff] }
  0xa3   : > { %v493_v0 = vadd.f32 %v485_v34, %v465_v62  ;;  %v494_v23 = vadd.f32 %v486_v29, %v466_v25  ;;  %v510_v15 = vmul.f32 %v2609_v27, %v2644_v49  ;;  %v511_v9 = vmul.f32 %v2609_v27, %v2646_v50 }
  0xa4   : > { %v512_v43 = vmul.f32 %v2609_v27, %v2648_v51  ;;  %v513_v26 = vmul.f32 %v2609_v27, %v2658_v56  ;;  %v514_v17 = vmul.f32 %v2609_v27, %v2660_v57  ;;  %v515_v11 = vmul.f32 %v2609_v27, %v2818_v8 }
  0xa5   : > { %v516_v62 = vadd.f32 %v2633_v41, %v487_v24  ;;  %v517_v60 = vadd.f32 %v2642_v48, %v488_v6  ;;  %v518_v3 = vadd.f32 %v510_v15, %v489_v45  ;;  %v519_v22 = vadd.f32 %v511_v9, %v490_v19  ;;  %v2851_v24 = vld [vmem:[#allocation2 + $0x82] sm:$0xff] }
  0xa6   : > { %v520_v25 = vadd.f32 %v512_v43, %v491_v21  ;;  %v521_v53 = vadd.f32 %v513_v26, %v492_v59  ;;  %v522_v42 = vadd.f32 %v514_v17, %v493_v0  ;;  %v523_v10 = vadd.f32 %v515_v11, %v494_v23 }
  0xa7   : > { %v537_v44 = vmul.f32 %v2615_v31, %v2630_v40  ;;  %v538_v30 = vmul.f32 %v2615_v31, %v2665_v61  ;;  %v539_v27 = vmul.f32 %v2615_v31, %v2669_v1  ;;  %v540_v41 = vmul.f32 %v2615_v31, %v2671_v2 }
  0xa8   : > { %v541_v48 = vmul.f32 %v2615_v31, %v2673_v7  ;;  %v542_v43 = vmul.f32 %v2615_v31, %v2676_v13  ;;  %v543_v9 = vmul.f32 %v2615_v31, %v2834_v12  ;;  %v544_v15 = vadd.f32 %v2656_v55, %v516_v62 }
  0xa9   : > { %v545_v39 = vadd.f32 %v537_v44, %v517_v60  ;;  %v546_v34 = vadd.f32 %v538_v30, %v518_v3  ;;  %v547_v29 = vadd.f32 %v539_v27, %v519_v22  ;;  %v548_v6 = vadd.f32 %v540_v41, %v520_v25  ;;  %v2869_v22 = vld [vmem:[#allocation2 + $0x83] sm:$0xff] }
  0xaa   : > { %v549_v45 = vadd.f32 %v541_v48, %v521_v53  ;;  %v550_v19 = vadd.f32 %v542_v43, %v522_v42  ;;  %v551_v21 = vadd.f32 %v543_v9, %v523_v10  ;;  %v564_v59 = vmul.f32 %v2619_v32, %v2636_v46  ;;  %3876 = vst [vmem:[#allocation48_spill] sm:$0xff] %v2869_v22  ;;  %v3878_v48 = vld [vmem:[#allocation27_spill] sm:$0xff]  ;;  %v3879_v9 = vld [vmem:[#allocation28_spill] sm:$0xff] }
  0xab   : > { %v565_v0 = vmul.f32 %v2619_v32, %v2638_v47  ;;  %v566_v31 = vmul.f32 %v2619_v32, %v2681_v18  ;;  %v567_v55 = vmul.f32 %v2619_v32, %v2683_v20  ;;  %v568_v23 = vmul.f32 %v2619_v32, %v2686_v35 }
  0xac   : > { %v569_v26 = vmul.f32 %v2619_v32, %v2688_v38  ;;  %v570_v17 = vmul.f32 %v2619_v32, %v2690_v36  ;;  %v571_v46 = vmul.f32 %v2619_v32, %v2851_v24  ;;  %v572_v11 = vadd.f32 %v564_v59, %v544_v15  ;;  %v3877_v32 = vld [vmem:[#allocation26_spill] sm:$0xff] }
  0xad   : > { %v573_v62 = vadd.f32 %v565_v0, %v545_v39  ;;  %v574_v60 = vadd.f32 %v566_v31, %v546_v34  ;;  %v575_v3 = vadd.f32 %v567_v55, %v547_v29  ;;  %v576_v25 = vadd.f32 %v568_v23, %v548_v6  ;;  %v3881_v55 = vld [vmem:[#allocation30_spill] sm:$0xff]  ;;  %v3882_v23 = vld [vmem:[#allocation25_spill] sm:$0xff] }
  0xae   : > { %v577_v53 = vadd.f32 %v569_v26, %v549_v45  ;;  %v578_v42 = vadd.f32 %v570_v17, %v550_v19  ;;  %v579_v10 = vadd.f32 %v571_v46, %v551_v21  ;;  %v592_v44 = vmul.f32 %v2623_v33, %v2698_v58  ;;  %v2887_v19 = vld [vmem:[#allocation2 + $0x84] sm:$0xff] }
  0xaf   : > { %v593_v30 = vmul.f32 %v2623_v33, %v2704_v5  ;;  %v594_v27 = vmul.f32 %v2623_v33, %v2706_v4  ;;  %v595_v41 = vmul.f32 %v2623_v33, %v3877_v32  ;;  %v596_v43 = vmul.f32 %v2623_v33, %v3878_v48  ;;  %3880 = vst [vmem:[#allocation49_spill] sm:$0xff] %v2887_v19  ;;  %v3883_v17 = vld [vmem:[#allocation31_spill] sm:$0xff]  ;;  %v3905_v48 = vld [vmem:[#allocation44_spill] sm:$0xff]  ;;  %v3906_v32 = vld [vmem:[#allocation45_spill] sm:$0xff] }
  0xb0   : > { %v597_v15 = vmul.f32 %v2623_v33, %v3879_v9  ;;  %v598_v39 = vmul.f32 %v2623_v33, %v2714_v28  ;;  %v599_v58 = vmul.f32 %v2623_v33, %v2869_v22  ;;  %v600_v34 = vadd.f32 %v592_v44, %v572_v11  ;;  %v3884_v28 = vld [vmem:[#allocation32_spill] sm:$0xff]  ;;  %v3885_v33 = vld [vmem:[#allocation33_spill] sm:$0xff] }
  0xb1   : > { %v601_v29 = vadd.f32 %v593_v30, %v573_v62  ;;  %v602_v6 = vadd.f32 %v594_v27, %v574_v60  ;;  %v603_v45 = vadd.f32 %v595_v41, %v575_v3  ;;  %v604_v21 = vadd.f32 %v596_v43, %v576_v25  ;;  %v2897_v62 = vld [vmem:[#allocation6 + $0x10] sm:$0x7f]  ;;  %v3887_v60 = vld [vmem:[#allocation34_spill] sm:$0xff]  ;;  %v3888_v25 = vld [vmem:[#allocation35_spill] sm:$0xff] }
  0xb2   : > { %v605_v59 = vadd.f32 %v597_v15, %v577_v53  ;;  %v606_v0 = vadd.f32 %v598_v39, %v578_v42  ;;  %v607_v31 = vadd.f32 %v599_v58, %v579_v10  ;;  %v620_v26 = vmul.f32 %v3882_v23, %v3881_v55  ;;  %3886 = vst [vmem:[#allocation30_spill] sm:$0xff] %v2897_v62  ;;  %v2907_v55 = vld [vmem:[#allocation2 + $0x85] sm:$0xff] }
  0xb3   : > { %v621_v46 = vmul.f32 %v3882_v23, %v3883_v17  ;;  %v622_v9 = vmul.f32 %v3882_v23, %v3884_v28  ;;  %v623_v11 = vmul.f32 %v3882_v23, %v3885_v33  ;;  %v624_v3 = vmul.f32 %v3882_v23, %v3887_v60  ;;  %v3889_v60 = vld [vmem:[#allocation21_spill] sm:$0xff]  ;;  %v3890_v33 = vld [vmem:[#allocation23_spill] sm:$0xff] }
  0xb4   : > { %v625_v53 = vmul.f32 %v3882_v23, %v3888_v25  ;;  %v626_v42 = vmul.f32 %v3882_v23, %v2743_v16  ;;  %v627_v10 = vmul.f32 %v3882_v23, %v2887_v19  ;;  %v628_v44 = vadd.f32 %v620_v26, %v600_v34  ;;  %v3891_v25 = vld [vmem:[#allocation22_spill] sm:$0xff]  ;;  %v3892_v16 = vld [vmem:[#allocation16_spill] sm:$0xff]  ;;  %v3893_v23 = vld [vmem:[#allocation17_spill] sm:$0xff] }
  0xb5   : > { %v629_v30 = vadd.f32 %v621_v46, %v601_v29  ;;  %v630_v27 = vadd.f32 %v622_v9, %v602_v6  ;;  %v631_v41 = vadd.f32 %v623_v11, %v603_v45  ;;  %v632_v43 = vadd.f32 %v624_v3, %v604_v21  ;;  %v3894_v9 = vld [vmem:[#allocation18_spill] sm:$0xff]  ;;  %v3895_v6 = vld [vmem:[#allocation19_spill] sm:$0xff]  ;;  %v3896_v21 = vld [vmem:[#allocation20_spill] sm:$0xff] }
  0xb6   : > { %v633_v15 = vadd.f32 %v625_v53, %v605_v59  ;;  %v634_v39 = vadd.f32 %v626_v42, %v606_v0  ;;  %v635_v58 = vadd.f32 %v627_v10, %v607_v31  ;;  %v647_v28 = vrot.slane %v3890_v33, %v3889_v60  ;;  %v3899_v31 = vld [vmem:[#allocation37_spill] sm:$0xff]  ;;  %v3900_v46 = vld [vmem:[#allocation38_spill] sm:$0xff]  ;;  %v3901_v11 = vld [vmem:[#allocation39_spill] sm:$0xff] }
  0xb7   : > { %v675_v17 = vrot.slane %v3890_v33, %v3891_v25  ;;  %v704_v22 = vrot.slane %v2897_v62, %v3892_v16  ;;  %v2917_v34 = vrot.slane %v2897_v62, %v3893_v23  ;;  %v2921_v29 = vrot.slane %v2897_v62, %v3894_v9  ;;  %v3902_v53 = vld [vmem:[#allocation40_spill] sm:$0xff]  ;;  %v3903_v10 = vld [vmem:[#allocation41_spill] sm:$0xff] }
  0xb8   : > { %v2925_v45 = vrot.slane %v2897_v62, %v3895_v6  ;;  %v2929_v59 = vrot.slane %v2897_v62, %v3896_v21  ;;  %v2933_v0 = vrot.slane %v2897_v62, %v3889_v60  ;;  %v648_v26 = vmul.f32 %v647_v28, %v3899_v31  ;;  %v3904_v6 = vld [vmem:[#allocation42_spill] sm:$0xff] }
  0xb9   : > { %v649_v33 = vmul.f32 %v647_v28, %v3900_v46  ;;  %v650_v3 = vmul.f32 %v647_v28, %v3901_v11  ;;  %v651_v42 = vmul.f32 %v647_v28, %v3902_v53  ;;  %v652_v9 = vmul.f32 %v647_v28, %v3903_v10 }
  0xba   : > { %3897 = vst [vmem:[#allocation25_spill] sm:$0xff] %v2929_v59  ;;  %3898 = vst [vmem:[#allocation23_spill] sm:$0xff] %v2933_v0  ;;  %v653_v23 = vmul.f32 %v647_v28, %v3904_v6  ;;  %v654_v16 = vmul.f32 %v647_v28, %v2772_v37  ;;  %v655_v21 = vmul.f32 %v647_v28, %v2907_v55  ;;  %v2943_v0 = vld [vmem:[#allocation2 + $0x86] sm:$0xff] }
  0xbb   : > { %v656_v25 = vadd.f32 %v648_v26, %v628_v44  ;;  %v657_v19 = vadd.f32 %v649_v33, %v629_v30  ;;  %v658_v60 = vadd.f32 %v650_v3, %v630_v27  ;;  %v659_v62 = vadd.f32 %v651_v42, %v631_v41  ;;  %v3907_v44 = vld [vmem:[#allocation46_spill] sm:$0xff]  ;;  %v3909_v26 = vld [vmem:[#allocation24_spill] sm:$0xff] }
  0xbc   : > { %v660_v31 = vadd.f32 %v652_v9, %v632_v43  ;;  %v661_v46 = vadd.f32 %v653_v23, %v633_v15  ;;  %v662_v59 = vadd.f32 %v654_v16, %v634_v39  ;;  %v663_v11 = vadd.f32 %v655_v21, %v635_v58  ;;  %v2953_v58 = vld [vmem:[#allocation2 + $0x90] sm:$0xff] }
  0xbd   : > { %v676_v53 = vmul.f32 %v675_v17, %v2783_v52  ;;  %v677_v10 = vmul.f32 %v675_v17, %v2791_v63  ;;  %v678_v6 = vmul.f32 %v675_v17, %v2793_v14  ;;  %v679_v37 = vmul.f32 %v675_v17, %v3905_v48  ;;  %3908 = vst [vmem:[#allocation37_spill] sm:$0xff] %v2953_v58 }
  0xbe   : > { %v680_v28 = vmul.f32 %v675_v17, %v3906_v32  ;;  %v681_v30 = vmul.f32 %v675_v17, %v3907_v44  ;;  %v682_v27 = vmul.f32 %v675_v17, %v2801_v54  ;;  %v683_v41 = vmul.f32 %v675_v17, %v2943_v0 }
  0xbf   : > { %v684_v43 = vadd.f32 %v676_v53, %v656_v25  ;;  %v685_v15 = vadd.f32 %v677_v10, %v657_v19  ;;  %v686_v16 = vadd.f32 %v678_v6, %v658_v60  ;;  %v687_v39 = vadd.f32 %v679_v37, %v659_v62 }
  0xc0   : > { %v688_v52 = vadd.f32 %v680_v28, %v660_v31  ;;  %v689_v23 = vadd.f32 %v681_v30, %v661_v46  ;;  %v690_v9 = vadd.f32 %v682_v27, %v662_v59  ;;  %v691_v21 = vadd.f32 %v683_v41, %v663_v11  ;;  %v2963_v46 = vld [vmem:[#allocation2 + $0x91] sm:$0xff] }
  0xc1   : > { %v705_v33 = vmul.f32 %v704_v22, %v3909_v26  ;;  %v706_v3 = vmul.f32 %v704_v22, %v2644_v49  ;;  %v707_v42 = vmul.f32 %v704_v22, %v2646_v50  ;;  %v708_v54 = vmul.f32 %v704_v22, %v2648_v51 }
  0xc2   : > { %v709_v17 = vmul.f32 %v704_v22, %v2658_v56  ;;  %v710_v19 = vmul.f32 %v704_v22, %v2660_v57  ;;  %v711_v37 = vmul.f32 %v704_v22, %v2818_v8  ;;  %v712_v62 = vmul.f32 %v704_v22, %v2953_v58 }
  0xc3   : > { %v713_v60 = vadd.f32 %v705_v33, %v684_v43  ;;  %v714_v25 = vadd.f32 %v706_v3, %v685_v15  ;;  %v715_v6 = vadd.f32 %v707_v42, %v686_v16  ;;  %v716_v59 = vadd.f32 %v708_v54, %v687_v39 }
  0xc4   : > { %v717_v11 = vadd.f32 %v709_v17, %v688_v52  ;;  %v718_v49 = vadd.f32 %v710_v19, %v689_v23  ;;  %v719_v53 = vadd.f32 %v711_v37, %v690_v9  ;;  %v720_v50 = vadd.f32 %v712_v62, %v691_v21  ;;  %v3912_v17 = vld [vmem:[#allocation26_spill] sm:$0xff]  ;;  %v3914_v62 = vld [vmem:[#allocation28_spill] sm:$0xff] }
  0xc5   : > { %v733_v51 = vmul.f32 %v2917_v34, %v2630_v40  ;;  %v734_v56 = vmul.f32 %v2917_v34, %v2665_v61  ;;  %v735_v57 = vmul.f32 %v2917_v34, %v2669_v1  ;;  %v736_v22 = vmul.f32 %v2917_v34, %v2671_v2  ;;  %v2981_v1 = vld [vmem:[#allocation2 + $0x92] sm:$0xff] }
  0xc6   : > { %v737_v54 = vmul.f32 %v2917_v34, %v2673_v7  ;;  %v738_v10 = vmul.f32 %v2917_v34, %v2676_v13  ;;  %v739_v31 = vmul.f32 %v2917_v34, %v2834_v12  ;;  %v740_v40 = vmul.f32 %v2917_v34, %v2963_v46  ;;  %3910 = vst [vmem:[#allocation44_spill] sm:$0xff] %v2981_v1 }
  0xc7   : > { %v741_v28 = vadd.f32 %v733_v51, %v713_v60  ;;  %v742_v61 = vadd.f32 %v734_v56, %v714_v25  ;;  %v743_v30 = vadd.f32 %v735_v57, %v715_v6  ;;  %v744_v27 = vadd.f32 %v736_v22, %v716_v59  ;;  %v3915_v25 = vld [vmem:[#allocation29_spill] sm:$0xff]  ;;  %v3916_v59 = vld [vmem:[#allocation48_spill] sm:$0xff] }
  0xc8   : > { %v745_v41 = vadd.f32 %v737_v54, %v717_v11  ;;  %v746_v2 = vadd.f32 %v738_v10, %v718_v49  ;;  %v747_v43 = vadd.f32 %v739_v31, %v719_v53  ;;  %v748_v15 = vadd.f32 %v740_v40, %v720_v50  ;;  %v2108_v49 = vld [vmem:[#allocation8] sm:$0xff]   ;;  %v3918_v31 = vld [vmem:[#allocation31_spill] sm:$0xff] }
  0xc9   : > { %v761_v7 = vmul.f32 %v2921_v29, %v2638_v47  ;;  %v762_v13 = vmul.f32 %v2921_v29, %v2681_v18  ;;  %v763_v16 = vmul.f32 %v2921_v29, %v2683_v20  ;;  %v764_v34 = vmul.f32 %v2921_v29, %v2686_v35  ;;  %v2999_v20 = vld [vmem:[#allocation2 + $0x93] sm:$0xff]  ;;  %2011 = vmatprep.subr.bf16.mxu0 %v2108_v49 }
  0xca   : > { %v765_v39 = vmul.f32 %v2921_v29, %v2688_v38  ;;  %v766_v52 = vmul.f32 %v2921_v29, %v2690_v36  ;;  %v767_v23 = vmul.f32 %v2921_v29, %v2851_v24  ;;  %v768_v47 = vmul.f32 %v2921_v29, %v2981_v1  ;;  %3911 = vst [vmem:[#allocation45_spill] sm:$0xff] %v2999_v20  ;;  %v3913_v29 = vld [vmem:[#allocation27_spill] sm:$0xff]  ;;  %v3017_v56 = vld [vmem:[#allocation2 + $0x94] sm:$0xff] }
  0xcb   : > { %v769_v9 = vadd.f32 %v761_v7, %v741_v28  ;;  %v770_v18 = vadd.f32 %v762_v13, %v742_v61  ;;  %v771_v21 = vadd.f32 %v763_v16, %v743_v30  ;;  %v772_v26 = vadd.f32 %v764_v34, %v744_v27  ;;  %3917 = vst [vmem:[#allocation46_spill] sm:$0xff] %v3017_v56  ;;  %v3919_v40 = vld [vmem:[#allocation25_spill] sm:$0xff]  ;;  %v3920_v61 = vld [vmem:[#allocation32_spill] sm:$0xff] }
  0xcc   : > { %v773_v33 = vadd.f32 %v765_v39, %v745_v41  ;;  %v774_v35 = vadd.f32 %v766_v52, %v746_v2  ;;  %v775_v3 = vadd.f32 %v767_v23, %v747_v43  ;;  %v776_v42 = vadd.f32 %v768_v47, %v748_v15  ;;  %v3921_v27 = vld [vmem:[#allocation33_spill] sm:$0xff]  ;;  %v3922_v41 = vld [vmem:[#allocation34_spill] sm:$0xff]  ;;  %2012 = vmatpush3.bf16.msra.mxu0 %v2108_v49  ;;  %v3923_v43 = vld [vmem:[#allocation35_spill] sm:$0xff] }
  0xcd   : > { %v789_v38 = vmul.f32 %v2925_v45, %v2704_v5  ;;  %v790_v36 = vmul.f32 %v2925_v45, %v2706_v4  ;;  %v791_v19 = vmul.f32 %v2925_v45, %v3912_v17  ;;  %v792_v37 = vmul.f32 %v2925_v45, %v3913_v29  ;;  %v3924_v7 = vld [vmem:[#allocation36_spill] sm:$0xff]  ;;  %v3925_v16 = vld [vmem:[#allocation49_spill] sm:$0xff]  ;;  %v2109_v52 = vld [vmem:[#allocation8 + $0x8] sm:$0xff]   ;;  %2023 = vmatprep.subr.bf16.mxu1 %v2108_v49 }
  0xce   : > { %v793_v60 = vmul.f32 %v2925_v45, %v3914_v62  ;;  %v794_v6 = vmul.f32 %v2925_v45, %v3915_v25  ;;  %v795_v11 = vmul.f32 %v2925_v45, %v3916_v59  ;;  %v796_v5 = vmul.f32 %v2925_v45, %v2999_v20  ;;  %2025 = vmatpush3.bf16.msra.mxu1 %v2108_v49  ;;  %v3929_v17 = vld [vmem:[#allocation39_spill] sm:$0xff]  ;;  %v3930_v29 = vld [vmem:[#allocation40_spill] sm:$0xff]  ;;  %v3931_v62 = vld [vmem:[#allocation41_spill] sm:$0xff] }
  0xcf   : > { %v797_v4 = vadd.f32 %v789_v38, %v769_v9  ;;  %v798_v53 = vadd.f32 %v790_v36, %v770_v18  ;;  %v799_v50 = vadd.f32 %v791_v19, %v771_v21  ;;  %v800_v51 = vadd.f32 %v792_v37, %v772_v26  ;;  %v3035_v21 = vld [vmem:[#allocation2 + $0x95] sm:$0xff]  ;;  %2013 = vmatprep.subr.bf16.mxu0 %v2109_v52  ;;  %v3928_v38 = vld [vmem:[#allocation23_spill] sm:$0xff] }
  0xd0   : > { %v801_v57 = vadd.f32 %v793_v60, %v773_v33  ;;  %v802_v22 = vadd.f32 %v794_v6, %v774_v35  ;;  %v803_v54 = vadd.f32 %v795_v11, %v775_v3  ;;  %v804_v10 = vadd.f32 %v796_v5, %v776_v42  ;;  %3926 = vst [vmem:[#allocation24_spill] sm:$0xff] %v3035_v21  ;;  %v3927_v42 = vld [vmem:[#allocation38_spill] sm:$0xff]  ;;  %v3933_v5 = vld [vmem:[#allocation43_spill] sm:$0xff] }
  0xd1   : > { %v817_v28 = vmul.f32 %v3919_v40, %v3918_v31  ;;  %v818_v30 = vmul.f32 %v3919_v40, %v3920_v61  ;;  %v819_v45 = vmul.f32 %v3919_v40, %v3921_v27  ;;  %v820_v2 = vmul.f32 %v3919_v40, %v3922_v41  ;;  %2014 = vmatpush3.bf16.msra.mxu0 %v2109_v52  ;;  %v295_v25 = vld [vmem:[#allocation6 + $0x18] sm:$0x7f] }
  0xd2   : > { %v821_v15 = vmul.f32 %v3919_v40, %v3923_v43  ;;  %v822_v13 = vmul.f32 %v3919_v40, %v3924_v7  ;;  %v823_v34 = vmul.f32 %v3919_v40, %v3925_v16  ;;  %v824_v39 = vmul.f32 %v3919_v40, %v3017_v56  ;;  %v3932_v6 = vld [vmem:[#allocation42_spill] sm:$0xff]  ;;  %2024 = vmatprep.subr.bf16.mxu1 %v2109_v52 }
  0xd3   : > { %v825_v23 = vadd.f32 %v817_v28, %v797_v4  ;;  %v826_v47 = vadd.f32 %v818_v30, %v798_v53  ;;  %v827_v9 = vadd.f32 %v819_v45, %v799_v50  ;;  %v828_v18 = vadd.f32 %v820_v2, %v800_v51  ;;  %2026 = vmatpush3.bf16.msra.mxu1 %v2109_v52  ;;  %v3053_v28 = vld [vmem:[#allocation2 + $0x96] sm:$0xff]  ;;  %v3937_v45 = vld [vmem:[#allocation16_spill] sm:$0xff] }
  0xd4   : > { %v829_v26 = vadd.f32 %v821_v15, %v801_v57  ;;  %v830_v33 = vadd.f32 %v822_v13, %v802_v22  ;;  %v831_v35 = vadd.f32 %v823_v34, %v803_v54  ;;  %v832_v3 = vadd.f32 %v824_v39, %v804_v10  ;;  %3934 = vst [vmem:[#allocation26_spill] sm:$0xff] %v3053_v28  ;;  %v3935_v61 = vld [vmem:[#allocation22_spill] sm:$0xff]  ;;  %v3938_v2 = vld [vmem:[#allocation17_spill] sm:$0xff]  ;;  %v3940_v13 = vld [vmem:[#allocation19_spill] sm:$0xff] }
  0xd5   : > { %v845_v36 = vmul.f32 %v3928_v38, %v3927_v42  ;;  %v846_v19 = vmul.f32 %v3928_v38, %v3929_v17  ;;  %v847_v37 = vmul.f32 %v3928_v38, %v3930_v29  ;;  %v848_v60 = vmul.f32 %v3928_v38, %v3931_v62  ;;  %v3936_v30 = vld [vmem:[#allocation30_spill] sm:$0xff]  ;;  %v3941_v39 = vld [vmem:[#allocation20_spill] sm:$0xff] }
  0xd6   : > { %v849_v11 = vmul.f32 %v3928_v38, %v3932_v6  ;;  %v850_v49 = vmul.f32 %v3928_v38, %v3933_v5  ;;  %v851_v4 = vmul.f32 %v3928_v38, %v2907_v55  ;;  %v852_v53 = vmul.f32 %v3928_v38, %v3035_v21  ;;  %v3939_v15 = vld [vmem:[#allocation18_spill] sm:$0xff]  ;;  %v3943_v38 = vld [vmem:[#allocation47_spill] sm:$0xff] }
  0xd7   : > { %v853_v50 = vadd.f32 %v845_v36, %v825_v23  ;;  %v854_v51 = vadd.f32 %v846_v19, %v826_v47  ;;  %v855_v57 = vadd.f32 %v847_v37, %v827_v9  ;;  %v856_v22 = vadd.f32 %v848_v60, %v828_v18  ;;  %v3942_v23 = vld [vmem:[#allocation21_spill] sm:$0xff]  ;;  %v3082_v29 = vld [vmem:[#allocation2 + $0x40] sm:$0xff] }
  0xd8   : > { %v857_v54 = vadd.f32 %v849_v11, %v829_v26  ;;  %v858_v10 = vadd.f32 %v850_v49, %v830_v33  ;;  %v859_v31 = vadd.f32 %v851_v4, %v831_v35  ;;  %v860_v40 = vadd.f32 %v852_v53, %v832_v3  ;;  %v889_v3 = vld [vmem:[#allocation2 + $0x30] sm:$0xff] }
  0xd9   : > { %v872_v27 = vrot.slane %v3936_v30, %v3935_v61  ;;  %v900_v41 = vrot.slane %v295_v25, %v3937_v45  ;;  %v928_v43 = vrot.slane %v295_v25, %v3938_v2  ;;  %v3060_v7 = vrot.slane %v295_v25, %v3939_v15  ;;  %v3084_v37 = vld [vmem:[#allocation2 + $0x50] sm:$0xff] }
  0xda   : > { %v3063_v34 = vrot.slane %v295_v25, %v3940_v13  ;;  %v3066_v52 = vrot.slane %v295_v25, %v3941_v39  ;;  %v3069_v47 = vrot.slane %v295_v25, %v3942_v23  ;;  %v3072_v9 = vrot.slane %v295_v25, %v3935_v61  ;;  %v3090_v25 = vld [vmem:[#allocation2 + $0xa0] sm:$0xff] }
  0xdb   : > { %v873_v18 = vmul.f32 %v872_v27, %v2791_v63  ;;  %v874_v26 = vmul.f32 %v872_v27, %v2793_v14  ;;  %v875_v33 = vmul.f32 %v872_v27, %v3905_v48  ;;  %v876_v35 = vmul.f32 %v872_v27, %v3906_v32  ;;  %v3086_v63 = vld [vmem:[#allocation2 + $0x60] sm:$0xff]  ;;  %v3088_v32 = vld [vmem:[#allocation2 + $0x70] sm:$0xff]  ;;  %3944 = vst [vmem:[#allocation27_spill] sm:$0xff] %v3090_v25 }
  0xdc   : > { %v877_v42 = vmul.f32 %v872_v27, %v3907_v44  ;;  %v878_v36 = vmul.f32 %v872_v27, %v3943_v38  ;;  %v879_v17 = vmul.f32 %v872_v27, %v2943_v0  ;;  %v880_v19 = vmul.f32 %v872_v27, %v3053_v28  ;;  %v917_v27 = vld [vmem:[#allocation2 + $0x31] sm:$0xff] }
  0xdd   : > { %v881_v14 = vadd.f32 %v873_v18, %v853_v50  ;;  %v882_v62 = vadd.f32 %v874_v26, %v854_v51  ;;  %v883_v48 = vadd.f32 %v875_v33, %v855_v57  ;;  %v884_v60 = vadd.f32 %v876_v35, %v856_v22  ;;  %v3105_v35 = vld [vmem:[#allocation2 + $0x71] sm:$0xff] }
  0xde   : > { %v885_v44 = vadd.f32 %v877_v42, %v857_v54  ;;  %v886_v6 = vadd.f32 %v878_v36, %v858_v10  ;;  %v887_v11 = vadd.f32 %v879_v17, %v859_v31  ;;  %v888_v5 = vadd.f32 %v880_v19, %v860_v40  ;;  %v3099_v54 = vld [vmem:[#allocation2 + $0x41] sm:$0xff]  ;;  %v3101_v10 = vld [vmem:[#allocation2 + $0x51] sm:$0xff] }
  0xdf   : > { %v901_v49 = vmul.f32 %v900_v41, %v889_v3  ;;  %v902_v4 = vmul.f32 %v900_v41, %v3082_v29  ;;  %v903_v53 = vmul.f32 %v900_v41, %v3084_v37  ;;  %v904_v30 = vmul.f32 %v900_v41, %v3086_v63  ;;  %v3103_v31 = vld [vmem:[#allocation2 + $0x61] sm:$0xff] }
  0xe0   : > { %v905_v50 = vmul.f32 %v900_v41, %v3088_v32  ;;  %v906_v51 = vmul.f32 %v900_v41, %v2818_v8  ;;  %v907_v57 = vmul.f32 %v900_v41, %v2953_v58  ;;  %v908_v22 = vmul.f32 %v900_v41, %v3090_v25  ;;  %v3107_v3 = vld [vmem:[#allocation2 + $0xa1] sm:$0xff]  ;;  %v945_v58 = vld [vmem:[#allocation2 + $0x32] sm:$0xff] }
  0xe1   : > { %v909_v40 = vadd.f32 %v901_v49, %v881_v14  ;;  %v910_v18 = vadd.f32 %v902_v4, %v882_v62  ;;  %v911_v26 = vadd.f32 %v903_v53, %v883_v48  ;;  %v912_v33 = vadd.f32 %v904_v30, %v884_v60  ;;  %3945 = vst [vmem:[#allocation28_spill] sm:$0xff] %v3107_v3  ;;  %v3122_v30 = vld [vmem:[#allocation2 + $0x72] sm:$0xff] }
  0xe2   : > { %v913_v42 = vadd.f32 %v905_v50, %v885_v44  ;;  %v914_v8 = vadd.f32 %v906_v51, %v886_v6  ;;  %v915_v38 = vadd.f32 %v907_v57, %v887_v11  ;;  %v916_v36 = vadd.f32 %v908_v22, %v888_v5  ;;  %v3116_v44 = vld [vmem:[#allocation2 + $0x42] sm:$0xff]  ;;  %v3118_v6 = vld [vmem:[#allocation2 + $0x52] sm:$0xff]  ;;  %3946 = vst [vmem:[#allocation29_spill] sm:$0xff] %v3122_v30 }
  0xe3   : > { %v929_v17 = vmul.f32 %v928_v43, %v917_v27  ;;  %v930_v41 = vmul.f32 %v928_v43, %v3099_v54  ;;  %v931_v19 = vmul.f32 %v928_v43, %v3101_v10  ;;  %v932_v25 = vmul.f32 %v928_v43, %v3103_v31  ;;  %v3120_v11 = vld [vmem:[#allocation2 + $0x62] sm:$0xff] }
  0xe4   : > { %v933_v14 = vmul.f32 %v928_v43, %v3105_v35  ;;  %v934_v62 = vmul.f32 %v928_v43, %v2834_v12  ;;  %v935_v48 = vmul.f32 %v928_v43, %v2963_v46  ;;  %v936_v60 = vmul.f32 %v928_v43, %v3107_v3  ;;  %v3124_v27 = vld [vmem:[#allocation2 + $0xa2] sm:$0xff] }
  0xe5   : > { %v937_v5 = vadd.f32 %v929_v17, %v909_v40  ;;  %v938_v49 = vadd.f32 %v930_v41, %v910_v18  ;;  %v939_v4 = vadd.f32 %v931_v19, %v911_v26  ;;  %v940_v53 = vadd.f32 %v932_v25, %v912_v33  ;;  %3947 = vst [vmem:[#allocation48_spill] sm:$0xff] %v3124_v27  ;;  %v973_v25 = vld [vmem:[#allocation2 + $0x33] sm:$0xff] }
  0xe6   : > { %v941_v50 = vadd.f32 %v933_v14, %v913_v42  ;;  %v942_v12 = vadd.f32 %v934_v62, %v914_v8  ;;  %v943_v51 = vadd.f32 %v935_v48, %v915_v38  ;;  %v944_v57 = vadd.f32 %v936_v60, %v916_v36  ;;  %v3141_v42 = vld [vmem:[#allocation2 + $0x43] sm:$0xff]  ;;  %v3143_v8 = vld [vmem:[#allocation2 + $0x53] sm:$0xff] }
  0xe7   : > { %v957_v43 = vmul.f32 %v3060_v7, %v945_v58  ;;  %v958_v22 = vmul.f32 %v3060_v7, %v3116_v44  ;;  %v959_v3 = vmul.f32 %v3060_v7, %v3118_v6  ;;  %v960_v40 = vmul.f32 %v3060_v7, %v3120_v11  ;;  %v3145_v38 = vld [vmem:[#allocation2 + $0x63] sm:$0xff]  ;;  %v3147_v14 = vld [vmem:[#allocation2 + $0x73] sm:$0xff] }
  0xe8   : > { %v961_v18 = vmul.f32 %v3060_v7, %v3122_v30  ;;  %v962_v26 = vmul.f32 %v3060_v7, %v2851_v24  ;;  %v963_v33 = vmul.f32 %v3060_v7, %v2981_v1  ;;  %v964_v58 = vmul.f32 %v3060_v7, %v3124_v27  ;;  %3948 = vst [vmem:[#allocation31_spill] sm:$0xff] %v3147_v14  ;;  %v3149_v62 = vld [vmem:[#allocation2 + $0xa3] sm:$0xff] }
  0xe9   : > { %v965_v36 = vadd.f32 %v957_v43, %v937_v5  ;;  %v966_v17 = vadd.f32 %v958_v22, %v938_v49  ;;  %v967_v41 = vadd.f32 %v959_v3, %v939_v4  ;;  %v968_v19 = vadd.f32 %v960_v40, %v940_v53  ;;  %3949 = vst [vmem:[#allocation25_spill] sm:$0xff] %v3149_v62  ;;  %v1001_v5 = vld [vmem:[#allocation2 + $0x34] sm:$0xff] }
  0xea   : > { %v969_v24 = vadd.f32 %v961_v18, %v941_v50  ;;  %v970_v48 = vadd.f32 %v962_v26, %v942_v12  ;;  %v971_v60 = vadd.f32 %v963_v33, %v943_v51  ;;  %v972_v1 = vadd.f32 %v964_v58, %v944_v57  ;;  %v3166_v12 = vld [vmem:[#allocation2 + $0x44] sm:$0xff]  ;;  %v3168_v51 = vld [vmem:[#allocation2 + $0x54] sm:$0xff] }
  0xeb   : > { %v985_v7 = vmul.f32 %v3063_v34, %v973_v25  ;;  %v986_v27 = vmul.f32 %v3063_v34, %v3141_v42  ;;  %v987_v30 = vmul.f32 %v3063_v34, %v3143_v8  ;;  %v988_v3 = vmul.f32 %v3063_v34, %v3145_v38  ;;  %v3170_v57 = vld [vmem:[#allocation2 + $0x64] sm:$0xff]  ;;  %v3172_v18 = vld [vmem:[#allocation2 + $0x74] sm:$0xff] }
  0xec   : > { %v989_v49 = vmul.f32 %v3063_v34, %v3147_v14  ;;  %v990_v4 = vmul.f32 %v3063_v34, %v3916_v59  ;;  %v991_v53 = vmul.f32 %v3063_v34, %v2999_v20  ;;  %v992_v50 = vmul.f32 %v3063_v34, %v3149_v62  ;;  %3950 = vst [vmem:[#allocation32_spill] sm:$0xff] %v3172_v18  ;;  %v3174_v26 = vld [vmem:[#allocation2 + $0xa4] sm:$0xff] }
  0xed   : > { %v993_v43 = vadd.f32 %v985_v7, %v965_v36  ;;  %v994_v22 = vadd.f32 %v986_v27, %v966_v17  ;;  %v995_v40 = vadd.f32 %v987_v30, %v967_v41  ;;  %v996_v25 = vadd.f32 %v988_v3, %v968_v19  ;;  %3951 = vst [vmem:[#allocation33_spill] sm:$0xff] %v3174_v26  ;;  %v1029_v27 = vld [vmem:[#allocation2 + $0x35] sm:$0xff]  ;;  %v3191_v19 = vld [vmem:[#allocation2 + $0x45] sm:$0xff] }
  0xee   : > { %v997_v59 = vadd.f32 %v989_v49, %v969_v24  ;;  %v998_v33 = vadd.f32 %v990_v4, %v970_v48  ;;  %v999_v58 = vadd.f32 %v991_v53, %v971_v60  ;;  %v1000_v20 = vadd.f32 %v992_v50, %v972_v1  ;;  %v3193_v24 = vld [vmem:[#allocation2 + $0x55] sm:$0xff]  ;;  %v3195_v48 = vld [vmem:[#allocation2 + $0x65] sm:$0xff] }
  0xef   : > { %v1013_v34 = vmul.f32 %v3066_v52, %v1001_v5  ;;  %v1014_v62 = vmul.f32 %v3066_v52, %v3166_v12  ;;  %v1015_v14 = vmul.f32 %v3066_v52, %v3168_v51  ;;  %v1016_v30 = vmul.f32 %v3066_v52, %v3170_v57  ;;  %v3197_v49 = vld [vmem:[#allocation2 + $0x75] sm:$0xff]  ;;  %v3199_v4 = vld [vmem:[#allocation2 + $0xa5] sm:$0xff] }
  0xf0   : > { %v1017_v36 = vmul.f32 %v3066_v52, %v3172_v18  ;;  %v1018_v17 = vmul.f32 %v3066_v52, %v3925_v16  ;;  %v1019_v1 = vmul.f32 %v3066_v52, %v3017_v56  ;;  %v1020_v41 = vmul.f32 %v3066_v52, %v3174_v26  ;;  %3952 = vst [vmem:[#allocation34_spill] sm:$0xff] %v3197_v49 }
  0xf1   : > { %v1021_v60 = vadd.f32 %v1013_v34, %v993_v43  ;;  %v1022_v7 = vadd.f32 %v1014_v62, %v994_v22  ;;  %v1023_v3 = vadd.f32 %v1015_v14, %v995_v40  ;;  %v1024_v5 = vadd.f32 %v1016_v30, %v996_v25  ;;  %3953 = vst [vmem:[#allocation35_spill] sm:$0xff] %v3199_v4  ;;  %v1057_v62 = vld [vmem:[#allocation2 + $0x36] sm:$0xff]  ;;  %v3216_v25 = vld [vmem:[#allocation2 + $0x46] sm:$0xff] }
  0xf2   : > { %v1025_v16 = vadd.f32 %v1017_v36, %v997_v59  ;;  %v1026_v53 = vadd.f32 %v1018_v17, %v998_v33  ;;  %v1027_v50 = vadd.f32 %v1019_v1, %v999_v58  ;;  %v1028_v56 = vadd.f32 %v1020_v41, %v1000_v20  ;;  %v3218_v59 = vld [vmem:[#allocation2 + $0x56] sm:$0xff]  ;;  %v3220_v33 = vld [vmem:[#allocation2 + $0x66] sm:$0xff] }
  0xf3   : > { %v1041_v52 = vmul.f32 %v3069_v47, %v1029_v27  ;;  %v1042_v26 = vmul.f32 %v3069_v47, %v3191_v19  ;;  %v1043_v18 = vmul.f32 %v3069_v47, %v3193_v24  ;;  %v1044_v14 = vmul.f32 %v3069_v47, %v3195_v48  ;;  %v3222_v36 = vld [vmem:[#allocation2 + $0x76] sm:$0xff]  ;;  %v3224_v17 = vld [vmem:[#allocation2 + $0xa6] sm:$0xff] }
  0xf4   : > { %v1045_v43 = vmul.f32 %v3069_v47, %v3197_v49  ;;  %v1046_v22 = vmul.f32 %v3069_v47, %v2907_v55  ;;  %v1047_v20 = vmul.f32 %v3069_v47, %v3035_v21  ;;  %v1048_v40 = vmul.f32 %v3069_v47, %v3199_v4  ;;  %3954 = vst [vmem:[#allocation36_spill] sm:$0xff] %v3224_v17 }
  0xf5   : > { %v1049_v58 = vadd.f32 %v1041_v52, %v1021_v60  ;;  %v1050_v34 = vadd.f32 %v1042_v26, %v1022_v7  ;;  %v1051_v30 = vadd.f32 %v1043_v18, %v1023_v3  ;;  %v1052_v27 = vadd.f32 %v1044_v14, %v1024_v5  ;;  %v296_v26 = vld [vmem:[#allocation6 + $0x20] sm:$0x7f]  ;;  %v3241_v5 = vld [vmem:[#allocation6 + $0x28] sm:$0x7f] }
  0xf6   : > { %v1053_v55 = vadd.f32 %v1045_v43, %v1025_v16  ;;  %v1054_v1 = vadd.f32 %v1046_v22, %v1026_v53  ;;  %v1055_v41 = vadd.f32 %v1047_v20, %v1027_v50  ;;  %v1056_v21 = vadd.f32 %v1048_v40, %v1028_v56  ;;  %3955 = vst [vmem:[#allocation49_spill] sm:$0xff] %v3241_v5  ;;  %v3243_v20 = vld [vmem:[#allocation2 + $0x80] sm:$0xff]  ;;  %v3245_v40 = vld [vmem:[#allocation2 + $0xb0] sm:$0xff] }
  0xf7   : > { %v1069_v47 = vmul.f32 %v3072_v9, %v1057_v62  ;;  %v1070_v4 = vmul.f32 %v3072_v9, %v3216_v25  ;;  %v1071_v49 = vmul.f32 %v3072_v9, %v3218_v59  ;;  %v1072_v18 = vmul.f32 %v3072_v9, %v3220_v33 }
  0xf8   : > { %v1073_v60 = vmul.f32 %v3072_v9, %v3222_v36  ;;  %v1074_v7 = vmul.f32 %v3072_v9, %v2943_v0  ;;  %v1075_v56 = vmul.f32 %v3072_v9, %v3053_v28  ;;  %v1076_v3 = vmul.f32 %v3072_v9, %v3224_v17 }
  0xf9   : > { %v1077_v16 = vadd.f32 %v1069_v47, %v1049_v58  ;;  %v1078_v53 = vadd.f32 %v1070_v4, %v1050_v34  ;;  %v1079_v50 = vadd.f32 %v1071_v49, %v1051_v30  ;;  %v1080_v52 = vadd.f32 %v1072_v18, %v1052_v27  ;;  %v3957_v18 = vld [vmem:[#allocation27_spill] sm:$0xff] }
  0xfa   : > { %v1081_v14 = vadd.f32 %v1073_v60, %v1053_v55  ;;  %v1082_v62 = vadd.f32 %v1074_v7, %v1054_v1  ;;  %v1083_v43 = vadd.f32 %v1075_v56, %v1055_v41  ;;  %v1084_v22 = vadd.f32 %v1076_v3, %v1056_v21  ;;  %v3956_v41 = vld [vmem:[#allocation37_spill] sm:$0xff] }
  0xfb   : > { %v1097_v0 = vrot.slane %v296_v26, %v3937_v45  ;;  %v1125_v28 = vrot.slane %v296_v26, %v3938_v2  ;;  %v1153_v9 = vrot.slane %v296_v26, %v3939_v15  ;;  %v3251_v17 = vrot.slane %v296_v26, %v3940_v13 }
  0xfc   : > { %v3254_v49 = vrot.slane %v296_v26, %v3941_v39  ;;  %v3257_v4 = vrot.slane %v296_v26, %v3942_v23  ;;  %v3260_v21 = vrot.slane %v296_v26, %v3935_v61  ;;  %v3264_v58 = vrot.slane %v3241_v5, %v3937_v45  ;;  %v3274_v61 = vld [vmem:[#allocation2 + $0x81] sm:$0xff] }
  0xfd   : > { %v1098_v34 = vmul.f32 %v1097_v0, %v3082_v29  ;;  %v1099_v30 = vmul.f32 %v1097_v0, %v3084_v37  ;;  %v1100_v27 = vmul.f32 %v1097_v0, %v3086_v63  ;;  %v1101_v55 = vmul.f32 %v1097_v0, %v3088_v32  ;;  %3958 = vst [vmem:[#allocation38_spill] sm:$0xff] %v3274_v61  ;;  %v3276_v29 = vld [vmem:[#allocation2 + $0xb1] sm:$0xff] }
  0xfe   : > { %v1102_v1 = vmul.f32 %v1097_v0, %v3243_v20  ;;  %v1103_v47 = vmul.f32 %v1097_v0, %v3956_v41  ;;  %v1104_v60 = vmul.f32 %v1097_v0, %v3957_v18  ;;  %v1105_v26 = vmul.f32 %v1097_v0, %v3245_v40  ;;  %3959 = vst [vmem:[#allocation23_spill] sm:$0xff] %v3276_v29 }
  0xff   : > { %v1106_v7 = vadd.f32 %v1098_v34, %v1077_v16  ;;  %v1107_v56 = vadd.f32 %v1099_v30, %v1078_v53  ;;  %v1108_v3 = vadd.f32 %v1100_v27, %v1079_v50  ;;  %v1109_v45 = vadd.f32 %v1101_v55, %v1080_v52  ;;  %v3960_v50 = vld [vmem:[#allocation28_spill] sm:$0xff]  ;;  %v3286_v30 = vld [vmem:[#allocation2 + $0x82] sm:$0xff] }
 0x100   : > { %v1110_v23 = vadd.f32 %v1102_v1, %v1081_v14  ;;  %v1111_v39 = vadd.f32 %v1103_v47, %v1082_v62  ;;  %v1112_v13 = vadd.f32 %v1104_v60, %v1083_v43  ;;  %v1113_v15 = vadd.f32 %v1105_v26, %v1084_v22 }
 0x101   : > { %v1126_v5 = vmul.f32 %v1125_v28, %v3099_v54  ;;  %v1127_v41 = vmul.f32 %v1125_v28, %v3101_v10  ;;  %v1128_v2 = vmul.f32 %v1125_v28, %v3103_v31  ;;  %v1129_v0 = vmul.f32 %v1125_v28, %v3105_v35  ;;  %v3288_v54 = vld [vmem:[#allocation2 + $0xb2] sm:$0xff] }
 0x102   : > { %v1130_v16 = vmul.f32 %v1125_v28, %v3274_v61  ;;  %v1131_v53 = vmul.f32 %v1125_v28, %v2963_v46  ;;  %v1132_v52 = vmul.f32 %v1125_v28, %v3960_v50  ;;  %v1133_v34 = vmul.f32 %v1125_v28, %v3276_v29  ;;  %v3961_v50 = vld [vmem:[#allocation29_spill] sm:$0xff] }
 0x103   : > { %v1134_v14 = vadd.f32 %v1126_v5, %v1106_v7  ;;  %v1135_v62 = vadd.f32 %v1127_v41, %v1107_v56  ;;  %v1136_v43 = vadd.f32 %v1128_v2, %v1108_v3  ;;  %v1137_v22 = vadd.f32 %v1129_v0, %v1109_v45  ;;  %v3962_v2 = vld [vmem:[#allocation44_spill] sm:$0xff] }
 0x104   : > { %v1138_v27 = vadd.f32 %v1130_v16, %v1110_v23  ;;  %v1139_v55 = vadd.f32 %v1131_v53, %v1111_v39  ;;  %v1140_v1 = vadd.f32 %v1132_v52, %v1112_v13  ;;  %v1141_v47 = vadd.f32 %v1133_v34, %v1113_v15  ;;  %v3963_v7 = vld [vmem:[#allocation48_spill] sm:$0xff] }
 0x105   : > { %v1154_v60 = vmul.f32 %v1153_v9, %v3116_v44  ;;  %v1155_v46 = vmul.f32 %v1153_v9, %v3118_v6  ;;  %v1156_v26 = vmul.f32 %v1153_v9, %v3120_v11  ;;  %v1157_v28 = vmul.f32 %v1153_v9, %v3961_v50  ;;  %v3298_v41 = vld [vmem:[#allocation2 + $0x83] sm:$0xff]  ;;  %v3300_v44 = vld [vmem:[#allocation2 + $0xb3] sm:$0xff] }
 0x106   : > { %v1158_v5 = vmul.f32 %v1153_v9, %v3286_v30  ;;  %v1159_v45 = vmul.f32 %v1153_v9, %v3962_v2  ;;  %v1160_v56 = vmul.f32 %v1153_v9, %v3963_v7  ;;  %v1161_v3 = vmul.f32 %v1153_v9, %v3288_v54  ;;  %3964 = vst [vmem:[#allocation39_spill] sm:$0xff] %v3298_v41 }
 0x107   : > { %v1162_v23 = vadd.f32 %v1154_v60, %v1134_v14  ;;  %v1163_v39 = vadd.f32 %v1155_v46, %v1135_v62  ;;  %v1164_v13 = vadd.f32 %v1156_v26, %v1136_v43  ;;  %v1165_v15 = vadd.f32 %v1157_v28, %v1137_v22  ;;  %v3965_v14 = vld [vmem:[#allocation31_spill] sm:$0xff]  ;;  %v3966_v22 = vld [vmem:[#allocation45_spill] sm:$0xff] }
 0x108   : > { %v1166_v0 = vadd.f32 %v1158_v5, %v1138_v27  ;;  %v1167_v16 = vadd.f32 %v1159_v45, %v1139_v55  ;;  %v1168_v53 = vadd.f32 %v1160_v56, %v1140_v1  ;;  %v1169_v52 = vadd.f32 %v1161_v3, %v1141_v47  ;;  %v3967_v55 = vld [vmem:[#allocation25_spill] sm:$0xff]  ;;  %v3318_v28 = vld [vmem:[#allocation2 + $0x84] sm:$0xff] }
 0x109   : > { %v1182_v34 = vmul.f32 %v3251_v17, %v3141_v42  ;;  %v1183_v2 = vmul.f32 %v3251_v17, %v3143_v8  ;;  %v1184_v9 = vmul.f32 %v3251_v17, %v3145_v38  ;;  %v1185_v62 = vmul.f32 %v3251_v17, %v3965_v14  ;;  %3968 = vst [vmem:[#allocation40_spill] sm:$0xff] %v3318_v28  ;;  %v3320_v5 = vld [vmem:[#allocation2 + $0xb4] sm:$0xff] }
 0x10a   : > { %v1186_v43 = vmul.f32 %v3251_v17, %v3298_v41  ;;  %v1187_v27 = vmul.f32 %v3251_v17, %v3966_v22  ;;  %v1188_v1 = vmul.f32 %v3251_v17, %v3967_v55  ;;  %v1189_v42 = vmul.f32 %v3251_v17, %v3300_v44 }
 0x10b   : > { %v1190_v47 = vadd.f32 %v1182_v34, %v1162_v23  ;;  %v1191_v60 = vadd.f32 %v1183_v2, %v1163_v39  ;;  %v1192_v46 = vadd.f32 %v1184_v9, %v1164_v13  ;;  %v1193_v26 = vadd.f32 %v1185_v62, %v1165_v15  ;;  %v3969_v23 = vld [vmem:[#allocation32_spill] sm:$0xff]  ;;  %v3970_v15 = vld [vmem:[#allocation46_spill] sm:$0xff] }
 0x10c   : > { %v1194_v45 = vadd.f32 %v1186_v43, %v1166_v0  ;;  %v1195_v56 = vadd.f32 %v1187_v27, %v1167_v16  ;;  %v1196_v3 = vadd.f32 %v1188_v1, %v1168_v53  ;;  %v1197_v41 = vadd.f32 %v1189_v42, %v1169_v52  ;;  %v3971_v16 = vld [vmem:[#allocation33_spill] sm:$0xff]  ;;  %v3338_v62 = vld [vmem:[#allocation2 + $0x85] sm:$0xff] }
 0x10d   : > { %v1210_v22 = vmul.f32 %v3254_v49, %v3166_v12  ;;  %v1211_v55 = vmul.f32 %v3254_v49, %v3168_v51  ;;  %v1212_v17 = vmul.f32 %v3254_v49, %v3170_v57  ;;  %v1213_v39 = vmul.f32 %v3254_v49, %v3969_v23  ;;  %3972 = vst [vmem:[#allocation41_spill] sm:$0xff] %v3338_v62  ;;  %v3340_v43 = vld [vmem:[#allocation2 + $0xb5] sm:$0xff] }
 0x10e   : > { %v1214_v13 = vmul.f32 %v3254_v49, %v3318_v28  ;;  %v1215_v0 = vmul.f32 %v3254_v49, %v3970_v15  ;;  %v1216_v53 = vmul.f32 %v3254_v49, %v3971_v16  ;;  %v1217_v12 = vmul.f32 %v3254_v49, %v3320_v5 }
 0x10f   : > { %v1218_v52 = vadd.f32 %v1210_v22, %v1190_v47  ;;  %v1219_v34 = vadd.f32 %v1211_v55, %v1191_v60  ;;  %v1220_v2 = vadd.f32 %v1212_v17, %v1192_v46  ;;  %v1221_v9 = vadd.f32 %v1213_v39, %v1193_v26  ;;  %v3973_v55 = vld [vmem:[#allocation34_spill] sm:$0xff]  ;;  %v3974_v46 = vld [vmem:[#allocation24_spill] sm:$0xff] }
 0x110   : > { %v1222_v27 = vadd.f32 %v1214_v13, %v1194_v45  ;;  %v1223_v1 = vadd.f32 %v1215_v0, %v1195_v56  ;;  %v1224_v42 = vadd.f32 %v1216_v53, %v1196_v3  ;;  %v1225_v28 = vadd.f32 %v1217_v12, %v1197_v41  ;;  %v3975_v45 = vld [vmem:[#allocation35_spill] sm:$0xff]  ;;  %v3360_v13 = vld [vmem:[#allocation2 + $0xb6] sm:$0xff] }
 0x111   : > { %v1238_v15 = vmul.f32 %v3257_v4, %v3191_v19  ;;  %v1239_v16 = vmul.f32 %v3257_v4, %v3193_v24  ;;  %v1240_v49 = vmul.f32 %v3257_v4, %v3195_v48  ;;  %v1241_v47 = vmul.f32 %v3257_v4, %v3973_v55  ;;  %v3358_v39 = vld [vmem:[#allocation2 + $0x86] sm:$0xff] }
 0x112   : > { %v1242_v60 = vmul.f32 %v3257_v4, %v3338_v62  ;;  %v1243_v26 = vmul.f32 %v3257_v4, %v3974_v46  ;;  %v1244_v41 = vmul.f32 %v3257_v4, %v3975_v45  ;;  %v1245_v19 = vmul.f32 %v3257_v4, %v3340_v43 }
 0x113   : > { %v1246_v56 = vadd.f32 %v1238_v15, %v1218_v52  ;;  %v1247_v3 = vadd.f32 %v1239_v16, %v1219_v34  ;;  %v1248_v22 = vadd.f32 %v1240_v49, %v1220_v2  ;;  %v1249_v17 = vadd.f32 %v1241_v47, %v1221_v9  ;;  %v3976_v34 = vld [vmem:[#allocation26_spill] sm:$0xff]  ;;  %v3977_v9 = vld [vmem:[#allocation36_spill] sm:$0xff] }
 0x114   : > { %v1250_v0 = vadd.f32 %v1242_v60, %v1222_v27  ;;  %v1251_v53 = vadd.f32 %v1243_v26, %v1223_v1  ;;  %v1252_v12 = vadd.f32 %v1244_v41, %v1224_v42  ;;  %v1253_v62 = vadd.f32 %v1245_v19, %v1225_v28  ;;  %v3378_v49 = vld [vmem:[#allocation2 + $0x90] sm:$0xff]  ;;  %v3380_v47 = vld [vmem:[#allocation2 + $0xc0] sm:$0xff] }
 0x115   : > { %v1266_v46 = vmul.f32 %v3260_v21, %v3216_v25  ;;  %v1267_v45 = vmul.f32 %v3260_v21, %v3218_v59  ;;  %v1268_v4 = vmul.f32 %v3260_v21, %v3220_v33  ;;  %v1269_v16 = vmul.f32 %v3260_v21, %v3222_v36  ;;  %3978 = vst [vmem:[#allocation42_spill] sm:$0xff] %v3380_v47 }
 0x116   : > { %v1270_v52 = vmul.f32 %v3260_v21, %v3358_v39  ;;  %v1271_v2 = vmul.f32 %v3260_v21, %v3976_v34  ;;  %v1272_v28 = vmul.f32 %v3260_v21, %v3977_v9  ;;  %v1273_v25 = vmul.f32 %v3260_v21, %v3360_v13 }
 0x117   : > { %v1274_v27 = vadd.f32 %v1266_v46, %v1246_v56  ;;  %v1275_v1 = vadd.f32 %v1267_v45, %v1247_v3  ;;  %v1276_v42 = vadd.f32 %v1268_v4, %v1248_v22  ;;  %v1277_v15 = vadd.f32 %v1269_v16, %v1249_v17  ;;  %v3398_v22 = vld [vmem:[#allocation6 + $0x30] sm:$0x7f] }
 0x118   : > { %v1278_v60 = vadd.f32 %v1270_v52, %v1250_v0  ;;  %v1279_v26 = vadd.f32 %v1271_v2, %v1251_v53  ;;  %v1280_v41 = vadd.f32 %v1272_v28, %v1252_v12  ;;  %v1281_v19 = vadd.f32 %v1273_v25, %v1253_v62  ;;  %3979 = vst [vmem:[#allocation43_spill] sm:$0xff] %v3398_v22  ;;  %v3400_v16 = vld [vmem:[#allocation2 + $0x91] sm:$0xff]  ;;  %v3402_v52 = vld [vmem:[#allocation2 + $0xc1] sm:$0xff] }
 0x119   : > { %v1295_v34 = vmul.f32 %v3264_v58, %v3084_v37  ;;  %v1296_v9 = vmul.f32 %v3264_v58, %v3086_v63  ;;  %v1297_v21 = vmul.f32 %v3264_v58, %v3088_v32  ;;  %v1298_v45 = vmul.f32 %v3264_v58, %v3243_v20  ;;  %3980 = vst [vmem:[#allocation30_spill] sm:$0xff] %v3400_v16  ;;  %v3982_v2 = vld [vmem:[#allocation49_spill] sm:$0xff]  ;;  %v3983_v25 = vld [vmem:[#allocation18_spill] sm:$0xff] }
 0x11a   : > { %v1299_v56 = vmul.f32 %v3264_v58, %v3378_v49  ;;  %v1300_v3 = vmul.f32 %v3264_v58, %v3957_v18  ;;  %v1301_v62 = vmul.f32 %v3264_v58, %v3245_v40  ;;  %v1302_v37 = vmul.f32 %v3264_v58, %v3380_v47  ;;  %v3981_v18 = vld [vmem:[#allocation17_spill] sm:$0xff]  ;;  %v3984_v47 = vld [vmem:[#allocation19_spill] sm:$0xff] }
 0x11b   : > { %v1303_v63 = vadd.f32 %v1295_v34, %v1274_v27  ;;  %v1304_v17 = vadd.f32 %v1296_v9, %v1275_v1  ;;  %v1305_v32 = vadd.f32 %v1297_v21, %v1276_v42  ;;  %v1306_v0 = vadd.f32 %v1298_v45, %v1277_v15  ;;  %v3985_v9 = vld [vmem:[#allocation20_spill] sm:$0xff]  ;;  %v3986_v42 = vld [vmem:[#allocation21_spill] sm:$0xff] }
 0x11c   : > { %v1307_v53 = vadd.f32 %v1299_v56, %v1278_v60  ;;  %v1308_v12 = vadd.f32 %v1300_v3, %v1279_v26  ;;  %v1309_v46 = vadd.f32 %v1301_v62, %v1280_v41  ;;  %v1310_v4 = vadd.f32 %v1302_v37, %v1281_v19  ;;  %v3987_v60 = vld [vmem:[#allocation22_spill] sm:$0xff]  ;;  %v3988_v41 = vld [vmem:[#allocation16_spill] sm:$0xff] }
 0x11d   : > { %v1322_v28 = vrot.slane %v3982_v2, %v3981_v18  ;;  %v1350_v58 = vrot.slane %v3982_v2, %v3983_v25  ;;  %v1378_v27 = vrot.slane %v3982_v2, %v3984_v47  ;;  %v3412_v1 = vrot.slane %v3982_v2, %v3985_v9  ;;  %v3989_v37 = vld [vmem:[#allocation28_spill] sm:$0xff] }
 0x11e   : > { %v3416_v15 = vrot.slane %v3982_v2, %v3986_v42  ;;  %v3420_v26 = vrot.slane %v3982_v2, %v3987_v60  ;;  %v3424_v19 = vrot.slane %v3398_v22, %v3988_v41  ;;  %v3428_v34 = vrot.slane %v3398_v22, %v3981_v18  ;;  %v3438_v22 = vld [vmem:[#allocation2 + $0x92] sm:$0xff] }
 0x11f   : > { %v1323_v21 = vmul.f32 %v1322_v28, %v3101_v10  ;;  %v1324_v45 = vmul.f32 %v1322_v28, %v3103_v31  ;;  %v1325_v56 = vmul.f32 %v1322_v28, %v3105_v35  ;;  %v1326_v3 = vmul.f32 %v1322_v28, %v3274_v61  ;;  %v3440_v10 = vld [vmem:[#allocation2 + $0xc2] sm:$0xff] }
 0x120   : > { %v1327_v62 = vmul.f32 %v1322_v28, %v3400_v16  ;;  %v1328_v2 = vmul.f32 %v1322_v28, %v3989_v37  ;;  %v1329_v60 = vmul.f32 %v1322_v28, %v3276_v29  ;;  %v1330_v41 = vmul.f32 %v1322_v28, %v3402_v52 }
 0x121   : > { %v1331_v42 = vadd.f32 %v1323_v21, %v1303_v63  ;;  %v1332_v9 = vadd.f32 %v1324_v45, %v1304_v17  ;;  %v1333_v18 = vadd.f32 %v1325_v56, %v1305_v32  ;;  %v1334_v47 = vadd.f32 %v1326_v3, %v1306_v0 }
 0x122   : > { %v1335_v31 = vadd.f32 %v1327_v62, %v1307_v53  ;;  %v1336_v35 = vadd.f32 %v1328_v2, %v1308_v12  ;;  %v1337_v25 = vadd.f32 %v1329_v60, %v1309_v46  ;;  %v1338_v61 = vadd.f32 %v1330_v41, %v1310_v4  ;;  %v3450_v60 = vld [vmem:[#allocation2 + $0x93] sm:$0xff]  ;;  %v3990_v62 = vld [vmem:[#allocation39_spill] sm:$0xff] }
 0x123   : > { %v1351_v16 = vmul.f32 %v1350_v58, %v3118_v6  ;;  %v1352_v37 = vmul.f32 %v1350_v58, %v3120_v11  ;;  %v1353_v29 = vmul.f32 %v1350_v58, %v3961_v50  ;;  %v1354_v28 = vmul.f32 %v1350_v58, %v3286_v30  ;;  %v3452_v6 = vld [vmem:[#allocation2 + $0xc3] sm:$0xff] }
 0x124   : > { %v1355_v63 = vmul.f32 %v1350_v58, %v3438_v22  ;;  %v1356_v17 = vmul.f32 %v1350_v58, %v3963_v7  ;;  %v1357_v32 = vmul.f32 %v1350_v58, %v3288_v54  ;;  %v1358_v0 = vmul.f32 %v1350_v58, %v3440_v10 }
 0x125   : > { %v1359_v53 = vadd.f32 %v1351_v16, %v1331_v42  ;;  %v1360_v12 = vadd.f32 %v1352_v37, %v1332_v9  ;;  %v1361_v46 = vadd.f32 %v1353_v29, %v1333_v18  ;;  %v1362_v4 = vadd.f32 %v1354_v28, %v1334_v47  ;;  %v3991_v29 = vld [vmem:[#allocation25_spill] sm:$0xff] }
 0x126   : > { %v1363_v11 = vadd.f32 %v1355_v63, %v1335_v31  ;;  %v1364_v50 = vadd.f32 %v1356_v17, %v1336_v35  ;;  %v1365_v21 = vadd.f32 %v1357_v32, %v1337_v25  ;;  %v1366_v45 = vadd.f32 %v1358_v0, %v1338_v61  ;;  %v3462_v18 = vld [vmem:[#allocation2 + $0x94] sm:$0xff]  ;;  %v3992_v63 = vld [vmem:[#allocation40_spill] sm:$0xff] }
 0x127   : > { %v1379_v56 = vmul.f32 %v1378_v27, %v3143_v8  ;;  %v1380_v7 = vmul.f32 %v1378_v27, %v3145_v38  ;;  %v1381_v3 = vmul.f32 %v1378_v27, %v3965_v14  ;;  %v1382_v58 = vmul.f32 %v1378_v27, %v3990_v62  ;;  %v3464_v8 = vld [vmem:[#allocation2 + $0xc4] sm:$0xff]  ;;  %v3993_v0 = vld [vmem:[#allocation33_spill] sm:$0xff] }
 0x128   : > { %v1383_v16 = vmul.f32 %v1378_v27, %v3450_v60  ;;  %v1384_v47 = vmul.f32 %v1378_v27, %v3991_v29  ;;  %v1385_v9 = vmul.f32 %v1378_v27, %v3300_v44  ;;  %v1386_v42 = vmul.f32 %v1378_v27, %v3452_v6 }
 0x129   : > { %v1387_v2 = vadd.f32 %v1379_v56, %v1359_v53  ;;  %v1388_v41 = vadd.f32 %v1380_v7, %v1360_v12  ;;  %v1389_v25 = vadd.f32 %v1381_v3, %v1361_v46  ;;  %v1390_v61 = vadd.f32 %v1382_v58, %v1362_v4 }
 0x12a   : > { %v1391_v38 = vadd.f32 %v1383_v16, %v1363_v11  ;;  %v1392_v14 = vadd.f32 %v1384_v47, %v1364_v50  ;;  %v1393_v31 = vadd.f32 %v1385_v9, %v1365_v21  ;;  %v1394_v35 = vadd.f32 %v1386_v42, %v1366_v45  ;;  %v3484_v50 = vld [vmem:[#allocation2 + $0xc5] sm:$0xff]  ;;  %v3994_v16 = vld [vmem:[#allocation41_spill] sm:$0xff] }
 0x12b   : > { %v1407_v37 = vmul.f32 %v3412_v1, %v3168_v51  ;;  %v1408_v28 = vmul.f32 %v3412_v1, %v3170_v57  ;;  %v1409_v27 = vmul.f32 %v3412_v1, %v3969_v23  ;;  %v1410_v17 = vmul.f32 %v3412_v1, %v3992_v63  ;;  %v3482_v23 = vld [vmem:[#allocation2 + $0x95] sm:$0xff]  ;;  %v3995_v9 = vld [vmem:[#allocation35_spill] sm:$0xff] }
 0x12c   : > { %v1411_v32 = vmul.f32 %v3412_v1, %v3462_v18  ;;  %v1412_v53 = vmul.f32 %v3412_v1, %v3993_v0  ;;  %v1413_v12 = vmul.f32 %v3412_v1, %v3320_v5  ;;  %v1414_v51 = vmul.f32 %v3412_v1, %v3464_v8  ;;  %v3996_v0 = vld [vmem:[#allocation36_spill] sm:$0xff] }
 0x12d   : > { %v1415_v46 = vadd.f32 %v1407_v37, %v1387_v2  ;;  %v1416_v57 = vadd.f32 %v1408_v28, %v1388_v41  ;;  %v1417_v4 = vadd.f32 %v1409_v27, %v1389_v25  ;;  %v1418_v11 = vadd.f32 %v1410_v17, %v1390_v61 }
 0x12e   : > { %v1419_v21 = vadd.f32 %v1411_v32, %v1391_v38  ;;  %v1420_v45 = vadd.f32 %v1412_v53, %v1392_v14  ;;  %v1421_v56 = vadd.f32 %v1413_v12, %v1393_v31  ;;  %v1422_v7 = vadd.f32 %v1414_v51, %v1394_v35  ;;  %v3504_v38 = vld [vmem:[#allocation2 + $0xc6] sm:$0xff] }
 0x12f   : > { %v1435_v3 = vmul.f32 %v3416_v15, %v3193_v24  ;;  %v1436_v58 = vmul.f32 %v3416_v15, %v3195_v48  ;;  %v1437_v1 = vmul.f32 %v3416_v15, %v3973_v55  ;;  %v1438_v29 = vmul.f32 %v3416_v15, %v3994_v16  ;;  %v3502_v55 = vld [vmem:[#allocation2 + $0x96] sm:$0xff]  ;;  %v1480_v51 = vld [vmem:[#allocation2 + $0x60] sm:$0xff] }
 0x130   : > { %v1439_v47 = vmul.f32 %v3416_v15, %v3482_v23  ;;  %v1440_v42 = vmul.f32 %v3416_v15, %v3995_v9  ;;  %v1441_v2 = vmul.f32 %v3416_v15, %v3340_v43  ;;  %v1442_v24 = vmul.f32 %v3416_v15, %v3484_v50 }
 0x131   : > { %v1443_v41 = vadd.f32 %v1435_v3, %v1415_v46  ;;  %v1444_v48 = vadd.f32 %v1436_v58, %v1416_v57  ;;  %v1445_v25 = vadd.f32 %v1437_v1, %v1417_v4  ;;  %v1446_v61 = vadd.f32 %v1438_v29, %v1418_v11  ;;  %v1484_v11 = vld [vmem:[#allocation2 + $0xa0] sm:$0xff] }
 0x132   : > { %v1447_v14 = vadd.f32 %v1439_v47, %v1419_v21  ;;  %v1448_v31 = vadd.f32 %v1440_v42, %v1420_v45  ;;  %v1449_v35 = vadd.f32 %v1441_v2, %v1421_v56  ;;  %v1450_v37 = vadd.f32 %v1442_v24, %v1422_v7  ;;  %v1487_v21 = vld [vmem:[#allocation2 + $0xd0] sm:$0xff]  ;;  %v3997_v42 = vld [vmem:[#allocation42_spill] sm:$0xff] }
 0x133   : > { %v1463_v28 = vmul.f32 %v3420_v26, %v3218_v59  ;;  %v1464_v27 = vmul.f32 %v3420_v26, %v3220_v33  ;;  %v1465_v15 = vmul.f32 %v3420_v26, %v3222_v36  ;;  %v1466_v17 = vmul.f32 %v3420_v26, %v3358_v39  ;;  %v1481_v33 = vld [vmem:[#allocation2 + $0x70] sm:$0xff] }
 0x134   : > { %v1467_v32 = vmul.f32 %v3420_v26, %v3502_v55  ;;  %v1468_v53 = vmul.f32 %v3420_v26, %v3996_v0  ;;  %v1469_v12 = vmul.f32 %v3420_v26, %v3360_v13  ;;  %v1470_v59 = vmul.f32 %v3420_v26, %v3504_v38 }
 0x135   : > { %v1471_v46 = vadd.f32 %v1463_v28, %v1443_v41  ;;  %v1472_v57 = vadd.f32 %v1464_v27, %v1444_v48  ;;  %v1473_v36 = vadd.f32 %v1465_v15, %v1445_v25  ;;  %v1474_v4 = vadd.f32 %v1466_v17, %v1446_v61  ;;  %v1508_v41 = vld [vmem:[#allocation2 + $0x61] sm:$0xff]  ;;  %v1509_v48 = vld [vmem:[#allocation2 + $0x71] sm:$0xff] }
 0x136   : > { %v1475_v45 = vadd.f32 %v1467_v32, %v1447_v14  ;;  %v1476_v56 = vadd.f32 %v1468_v53, %v1448_v31  ;;  %v1477_v7 = vadd.f32 %v1469_v12, %v1449_v35  ;;  %v1478_v3 = vadd.f32 %v1470_v59, %v1450_v37  ;;  %v1515_v35 = vld [vmem:[#allocation2 + $0xd1] sm:$0xff]  ;;  %v3998_v17 = vld [vmem:[#allocation38_spill] sm:$0xff]  ;;  %v4000_v12 = vld [vmem:[#allocation23_spill] sm:$0xff] }
 0x137   : > { %v1492_v58 = vmul.f32 %v3424_v19, %v1480_v51  ;;  %v1493_v1 = vmul.f32 %v3424_v19, %v1481_v33  ;;  %v1494_v29 = vmul.f32 %v3424_v19, %v3243_v20  ;;  %v1495_v26 = vmul.f32 %v3424_v19, %v3378_v49  ;;  %v1512_v20 = vld [vmem:[#allocation2 + $0xa1] sm:$0xff] }
 0x138   : > { %v1496_v47 = vmul.f32 %v3424_v19, %v1484_v11  ;;  %v1497_v9 = vmul.f32 %v3424_v19, %v3245_v40  ;;  %v1498_v2 = vmul.f32 %v3424_v19, %v3997_v42  ;;  %v1499_v24 = vmul.f32 %v3424_v19, %v1487_v21  ;;  %v3999_v19 = vld [vmem:[#allocation30_spill] sm:$0xff]  ;;  %v1536_v21 = vld [vmem:[#allocation2 + $0x62] sm:$0xff]  ;;  %v4004_v42 = vld [vmem:[#allocation20_spill] sm:$0xff] }
 0x139   : > { %v1500_v25 = vadd.f32 %v1492_v58, %v1471_v46  ;;  %v1501_v61 = vadd.f32 %v1493_v1, %v1472_v57  ;;  %v1502_v14 = vadd.f32 %v1494_v29, %v1473_v36  ;;  %v1503_v31 = vadd.f32 %v1495_v26, %v1474_v4  ;;  %v1540_v58 = vld [vmem:[#allocation2 + $0xa2] sm:$0xff]  ;;  %v1543_v1 = vld [vmem:[#allocation2 + $0xd2] sm:$0xff]  ;;  %v4001_v29 = vld [vmem:[#allocation18_spill] sm:$0xff] }
 0x13a   : > { %v1504_v37 = vadd.f32 %v1496_v47, %v1475_v45  ;;  %v1505_v49 = vadd.f32 %v1497_v9, %v1476_v56  ;;  %v1506_v28 = vadd.f32 %v1498_v2, %v1477_v7  ;;  %v1507_v27 = vadd.f32 %v1499_v24, %v1478_v3  ;;  %v1537_v45 = vld [vmem:[#allocation2 + $0x72] sm:$0xff]  ;;  %v4002_v26 = vld [vmem:[#allocation43_spill] sm:$0xff] }
 0x13b   : > { %v1520_v15 = vmul.f32 %v3428_v34, %v1508_v41  ;;  %v1521_v40 = vmul.f32 %v3428_v34, %v1509_v48  ;;  %v1522_v32 = vmul.f32 %v3428_v34, %v3998_v17  ;;  %v1523_v0 = vmul.f32 %v3428_v34, %v3999_v19  ;;  %v4003_v9 = vld [vmem:[#allocation19_spill] sm:$0xff]  ;;  %v4005_v2 = vld [vmem:[#allocation21_spill] sm:$0xff]  ;;  %v4006_v41 = vld [vmem:[#allocation22_spill] sm:$0xff] }
 0x13c   : > { %v1524_v53 = vmul.f32 %v3428_v34, %v1512_v20  ;;  %v1525_v59 = vmul.f32 %v3428_v34, %v4000_v12  ;;  %v1526_v51 = vmul.f32 %v3428_v34, %v3402_v52  ;;  %v1527_v33 = vmul.f32 %v3428_v34, %v1515_v35  ;;  %v1568_v19 = vld [vmem:[#allocation2 + $0xa3] sm:$0xff] }
 0x13d   : > { %v1528_v46 = vadd.f32 %v1520_v15, %v1500_v25  ;;  %v1529_v57 = vadd.f32 %v1521_v40, %v1501_v61  ;;  %v1530_v36 = vadd.f32 %v1522_v32, %v1502_v14  ;;  %v1531_v4 = vadd.f32 %v1523_v0, %v1503_v31  ;;  %v1571_v0 = vld [vmem:[#allocation2 + $0xd3] sm:$0xff] }
 0x13e   : > { %v1532_v11 = vadd.f32 %v1524_v53, %v1504_v37  ;;  %v1533_v56 = vadd.f32 %v1525_v59, %v1505_v49  ;;  %v1534_v7 = vadd.f32 %v1526_v51, %v1506_v28  ;;  %v1535_v3 = vadd.f32 %v1527_v33, %v1507_v27  ;;  %v1564_v28 = vld [vmem:[#allocation2 + $0x63] sm:$0xff]  ;;  %v1565_v27 = vld [vmem:[#allocation2 + $0x73] sm:$0xff] }
 0x13f   : > { %v1547_v47 = vrot.slane %v4002_v26, %v4001_v29  ;;  %v1575_v52 = vrot.slane %v4002_v26, %v4003_v9  ;;  %v1603_v34 = vrot.slane %v4002_v26, %v4004_v42  ;;  %v3554_v24 = vrot.slane %v4002_v26, %v4005_v2 }
 0x140   : > { %v3558_v48 = vrot.slane %v4002_v26, %v4006_v41  ;;  %v1620_v41 = vld [vmem:[#allocation2 + $0x65] sm:$0xff] }
 0x141   : > { %v1548_v25 = vmul.f32 %v1547_v47, %v1536_v21  ;;  %v1549_v61 = vmul.f32 %v1547_v47, %v1537_v45  ;;  %v1550_v14 = vmul.f32 %v1547_v47, %v3286_v30  ;;  %v1551_v31 = vmul.f32 %v1547_v47, %v3438_v22 }
 0x142   : > { %v1552_v20 = vmul.f32 %v1547_v47, %v1540_v58  ;;  %v1553_v35 = vmul.f32 %v1547_v47, %v3288_v54  ;;  %v1554_v37 = vmul.f32 %v1547_v47, %v3440_v10  ;;  %v1555_v49 = vmul.f32 %v1547_v47, %v1543_v1 }
 0x143   : > { %v1556_v15 = vadd.f32 %v1548_v25, %v1528_v46  ;;  %v1557_v40 = vadd.f32 %v1549_v61, %v1529_v57  ;;  %v1558_v17 = vadd.f32 %v1550_v14, %v1530_v36  ;;  %v1559_v32 = vadd.f32 %v1551_v31, %v1531_v4  ;;  %v1592_v36 = vld [vmem:[#allocation2 + $0x64] sm:$0xff]  ;;  %v1593_v4 = vld [vmem:[#allocation2 + $0x74] sm:$0xff] }
 0x144   : > { %v1560_v53 = vadd.f32 %v1552_v20, %v1532_v11  ;;  %v1561_v12 = vadd.f32 %v1553_v35, %v1533_v56  ;;  %v1562_v59 = vadd.f32 %v1554_v37, %v1534_v7  ;;  %v1563_v30 = vadd.f32 %v1555_v49, %v1535_v3  ;;  %v1596_v7 = vld [vmem:[#allocation2 + $0xa4] sm:$0xff]  ;;  %v1599_v3 = vld [vmem:[#allocation2 + $0xd4] sm:$0xff] }
 0x145   : > { %v1576_v51 = vmul.f32 %v1575_v52, %v1564_v28  ;;  %v1577_v22 = vmul.f32 %v1575_v52, %v1565_v27  ;;  %v1578_v33 = vmul.f32 %v1575_v52, %v3990_v62  ;;  %v1579_v54 = vmul.f32 %v1575_v52, %v3450_v60  ;;  %v1621_v25 = vld [vmem:[#allocation2 + $0x75] sm:$0xff]  ;;  %v1624_v35 = vld [vmem:[#allocation2 + $0xa5] sm:$0xff] }
 0x146   : > { %v1580_v10 = vmul.f32 %v1575_v52, %v1568_v19  ;;  %v1581_v21 = vmul.f32 %v1575_v52, %v3300_v44  ;;  %v1582_v46 = vmul.f32 %v1575_v52, %v3452_v6  ;;  %v1583_v57 = vmul.f32 %v1575_v52, %v1571_v0  ;;  %v1627_v37 = vld [vmem:[#allocation2 + $0xd5] sm:$0xff]  ;;  %v1648_v19 = vld [vmem:[#allocation2 + $0x66] sm:$0xff] }
 0x147   : > { %v1584_v45 = vadd.f32 %v1576_v51, %v1556_v15  ;;  %v1585_v58 = vadd.f32 %v1577_v22, %v1557_v40  ;;  %v1586_v11 = vadd.f32 %v1578_v33, %v1558_v17  ;;  %v1587_v56 = vadd.f32 %v1579_v54, %v1559_v32  ;;  %v1649_v0 = vld [vmem:[#allocation2 + $0x76] sm:$0xff] }
 0x148   : > { %v1588_v1 = vadd.f32 %v1580_v10, %v1560_v53  ;;  %v1589_v29 = vadd.f32 %v1581_v21, %v1561_v12  ;;  %v1590_v26 = vadd.f32 %v1582_v46, %v1562_v59  ;;  %v1591_v62 = vadd.f32 %v1583_v57, %v1563_v30  ;;  %v1655_v51 = vld [vmem:[#allocation2 + $0xd6] sm:$0xff] }
 0x149   : > { %v1604_v47 = vmul.f32 %v1603_v34, %v1592_v36  ;;  %v1605_v60 = vmul.f32 %v1603_v34, %v1593_v4  ;;  %v1606_v9 = vmul.f32 %v1603_v34, %v3992_v63  ;;  %v1607_v44 = vmul.f32 %v1603_v34, %v3462_v18 }
 0x14a   : > { %v1608_v6 = vmul.f32 %v1603_v34, %v1596_v7  ;;  %v1609_v52 = vmul.f32 %v1603_v34, %v3320_v5  ;;  %v1610_v42 = vmul.f32 %v1603_v34, %v3464_v8  ;;  %v1611_v2 = vmul.f32 %v1603_v34, %v1599_v3 }
 0x14b   : > { %v1612_v61 = vadd.f32 %v1604_v47, %v1584_v45  ;;  %v1613_v14 = vadd.f32 %v1605_v60, %v1585_v58  ;;  %v1614_v31 = vadd.f32 %v1606_v9, %v1586_v11  ;;  %v1615_v20 = vadd.f32 %v1607_v44, %v1587_v56 }
 0x14c   : > { %v1616_v49 = vadd.f32 %v1608_v6, %v1588_v1  ;;  %v1617_v28 = vadd.f32 %v1609_v52, %v1589_v29  ;;  %v1618_v27 = vadd.f32 %v1610_v42, %v1590_v26  ;;  %v1619_v63 = vadd.f32 %v1611_v2, %v1591_v62 }
 0x14d   : > { %v1632_v18 = vmul.f32 %v3554_v24, %v1620_v41  ;;  %v1633_v15 = vmul.f32 %v3554_v24, %v1621_v25  ;;  %v1634_v5 = vmul.f32 %v3554_v24, %v3994_v16  ;;  %v1635_v8 = vmul.f32 %v3554_v24, %v3482_v23  ;;  %v1652_v16 = vld [vmem:[#allocation2 + $0xa6] sm:$0xff] }
 0x14e   : > { %v1636_v34 = vmul.f32 %v3554_v24, %v1624_v35  ;;  %v1637_v40 = vmul.f32 %v3554_v24, %v3340_v43  ;;  %v1638_v17 = vmul.f32 %v3554_v24, %v3484_v50  ;;  %v1639_v32 = vmul.f32 %v3554_v24, %v1627_v37 }
 0x14f   : > { %v1640_v53 = vadd.f32 %v1632_v18, %v1612_v61  ;;  %v1641_v12 = vadd.f32 %v1633_v15, %v1613_v14  ;;  %v1642_v59 = vadd.f32 %v1634_v5, %v1614_v31  ;;  %v1643_v30 = vadd.f32 %v1635_v8, %v1615_v20 }
 0x150   : > { %v1644_v22 = vadd.f32 %v1636_v34, %v1616_v49  ;;  %v1645_v23 = vadd.f32 %v1637_v40, %v1617_v28  ;;  %v1646_v33 = vadd.f32 %v1638_v17, %v1618_v27  ;;  %v1647_v54 = vadd.f32 %v1639_v32, %v1619_v63 }
 0x151   : > { %v1660_v10 = vmul.f32 %v3558_v48, %v1648_v19  ;;  %v1661_v43 = vmul.f32 %v3558_v48, %v1649_v0  ;;  %v1662_v50 = vmul.f32 %v3558_v48, %v3358_v39  ;;  %v1663_v24 = vmul.f32 %v3558_v48, %v3502_v55 }
 0x152   : > { %v1664_v21 = vmul.f32 %v3558_v48, %v1652_v16  ;;  %v1665_v46 = vmul.f32 %v3558_v48, %v3360_v13  ;;  %v1666_v57 = vmul.f32 %v3558_v48, %v3504_v38  ;;  %v1667_v36 = vmul.f32 %v3558_v48, %v1655_v51 }
 0x153   : > { %v1668_v4 = vadd.f32 %v1660_v10, %v1640_v53  ;;  %v1669_v45 = vadd.f32 %v1661_v43, %v1641_v12  ;;  %v1670_v58 = vadd.f32 %v1662_v50, %v1642_v59  ;;  %v1671_v11 = vadd.f32 %v1663_v24, %v1643_v30 }
 0x154   : > { %v1672_v56 = vadd.f32 %v1664_v21, %v1644_v22  ;;  %v1673_v39 = vadd.f32 %v1665_v46, %v1645_v23  ;;  %v1674_v7 = vadd.f32 %v1666_v57, %v1646_v33  ;;  %v1675_v3 = vadd.f32 %v1667_v36, %v1647_v54 }
 0x155   : > { %v1676_v55 = vpack.c.bf16 %v1669_v45, %v1668_v4  ;;  %v1677_v1 = vpack.c.bf16 %v1671_v11, %v1670_v58 }
 0x156   : > { %v1678_v29 = vpack.c.bf16 %v1673_v39, %v1672_v56  ;;  %v1679_v26 = vpack.c.bf16 %v1675_v3, %v1674_v7 }
 0x157   : > { %2015 = vmatprep.mubr.msk.bf16.mxu0 %vm245_vm0, %v1676_v55 }
 0x158   : > { %2016 = vmatmul.mubr.msk.bf16.vlgmr.msra.gmra.mrb[0].mxu0 %vm245_vm0, %v1677_v1  ;;  %2019 = vmatprep.mubr.msk.bf16.mxu1 %vm245_vm0, %v1678_v29 }
 0x159   : > { %2020 = vmatmul.mubr.msk.bf16.vlgmr.msra.gmra.mrb[0].mxu1 %vm245_vm0, %v1679_v26 }
 0x22b   : > { %v2017_v13 = vpop.f32.mrb[0].mxu0 }
 0x22c   : > { %1775 = vst.msk [vmem:[%s3602_s21 + $0x10] sm:$0xff] %vm245_vm0, %v2017_v13  ;;  %v1742_v38 = vpop.f32.mrb[1].mxu0  ;;  %v2021_v48 = vpop.f32.mrb[0].mxu1  ;;  %v1804_v41 = vmul.f32 %v2017_v13, %v2017_v13  ;;  %v1784_v61 = vsel %vm245_vm0, %v2017_v13, 0.0 }
 0x22d   : > { %1773 = vst.msk [vmem:[%s3602_s21] sm:$0xff] %vm245_vm0, %v1742_v38  ;;  %v2018_v62 = vpop.f32.mrb[2].mxu0  ;;  %1779 = vst.msk [vmem:[%s3602_s21 + $0x30] sm:$0xff] %vm245_vm0, %v2021_v48  ;;  %v1758_v47 = vpop.f32.mrb[1].mxu1  ;;  %v1802_v60 = vmul.f32 %v1742_v38, %v1742_v38  ;;  %v1781_v52 = vsel %vm245_vm0, %v1742_v38, 0.0  ;;  %v1808_v19 = vmul.f32 %v2021_v48, %v2021_v48  ;;  %v1792_v12 = vsel %vm245_vm0, %v2021_v48, 0.0 }
 0x22e   : > { %1776 = vst.msk [vmem:[%s3602_s21 + $0x18] sm:$0xff] %vm245_vm0, %v2018_v62  ;;  %v1745_v9 = vpop.f32.mrb[3].mxu0  ;;  %1777 = vst.msk [vmem:[%s3602_s21 + $0x20] sm:$0xff] %vm245_vm0, %v1758_v47  ;;  %v2022_v44 = vpop.f32.mrb[2].mxu1  ;;  %v1805_v14 = vmul.f32 %v2018_v62, %v2018_v62  ;;  %v1806_v31 = vmul.f32 %v1758_v47, %v1758_v47  ;;  %v1786_v28 = vsel %vm245_vm0, %v2018_v62, 0.0  ;;  %v1788_v27 = vsel %vm245_vm0, %v1758_v47, 0.0 }
 0x22f   : > { %1774 = vst.msk [vmem:[%s3602_s21 + $0x8] sm:$0xff] %vm245_vm0, %v1745_v9  ;;  %1780 = vst.msk [vmem:[%s3602_s21 + $0x38] sm:$0xff] %vm245_vm0, %v2022_v44  ;;  %v1761_v6 = vpop.f32.mrb[3].mxu1  ;;  %v1782_v42 = vsel %vm245_vm0, %v1745_v9, 0.0  ;;  %v1803_v2 = vmul.f32 %v1745_v9, %v1745_v9  ;;  %v1810_v20 = vsel %vm245_vm0, %v1802_v60, 0.0  ;;  %v1813_v63 = vsel %vm245_vm0, %v1804_v41, 0.0 }
 0x230   : > { %1778 = vst.msk [vmem:[%s3602_s21 + $0x28] sm:$0xff] %vm245_vm0, %v1761_v6  ;;  %v1783_v25 = vadd.f32 %v1782_v42, %v1781_v52  ;;  %v1807_v5 = vmul.f32 %v1761_v6, %v1761_v6  ;;  %v1815_v8 = vsel %vm245_vm0, %v1805_v14, 0.0  ;;  %v1817_v34 = vsel %vm245_vm0, %v1806_v31, 0.0 }
 0x231   : > { %v1811_v35 = vsel %vm245_vm0, %v1803_v2, 0.0  ;;  %v1790_v32 = vsel %vm245_vm0, %v1761_v6, 0.0  ;;  %v1809_v59 = vmul.f32 %v2022_v44, %v2022_v44  ;;  %v1794_v22 = vsel %vm245_vm0, %v2022_v44, 0.0 }
 0x232   : > { %v1785_v37 = vadd.f32 %v1784_v61, %v1783_v25  ;;  %v1812_v49 = vadd.f32 %v1811_v35, %v1810_v20  ;;  %v1819_v30 = vsel %vm245_vm0, %v1807_v5, 0.0  ;;  %v1821_v23 = vsel %vm245_vm0, %v1808_v19, 0.0 }
 0x233   : > { %v1823_v10 = vsel %vm245_vm0, %v1809_v59, 0.0 }
 0x234   : > { %v1787_v18 = vadd.f32 %v1786_v28, %v1785_v37  ;;  %v1814_v15 = vadd.f32 %v1813_v63, %v1812_v49 }
 0x236   : > { %v1789_v40 = vadd.f32 %v1788_v27, %v1787_v18  ;;  %v1816_v17 = vadd.f32 %v1815_v8, %v1814_v15 }
 0x238   : > { %v1791_v0 = vadd.f32 %v1790_v32, %v1789_v40  ;;  %v1818_v53 = vadd.f32 %v1817_v34, %v1816_v17 }
 0x23a   : > { %v1793_v16 = vadd.f32 %v1792_v12, %v1791_v0  ;;  %v1820_v51 = vadd.f32 %v1819_v30, %v1818_v53 }
 0x23c   : > { %v1795_v33 = vadd.f32 %v1794_v22, %v1793_v16  ;;  %v1822_v54 = vadd.f32 %v1821_v23, %v1820_v51 }
 0x23e   : > { %v1796_v43 = vrot.slane %v1795_v33, 4  ;;  %v1824_v50 = vadd.f32 %v1823_v10, %v1822_v54 }
 0x240   : > { %v1797_v24 = vadd.f32 %v1796_v43, %v1795_v33  ;;  %v1825_v21 = vrot.slane %v1824_v50, 4 }
 0x242   : > { %v1798_v46 = vrot.slane %v1797_v24, 2  ;;  %v1826_v57 = vadd.f32 %v1825_v21, %v1824_v50 }
 0x244   : > { %v1799_v36 = vadd.f32 %v1798_v46, %v1797_v24  ;;  %v1827_v4 = vrot.slane %v1826_v57, 2 }
 0x246   : > { %v1800_v45 = vrot.slane %v1799_v36, 1  ;;  %v1828_v58 = vadd.f32 %v1827_v4, %v1826_v57  ;;  %1836 = sbr.rel (%p4007_p12) target bundleno = 590 (0x24e), region = 48 }
 0x248   : > { %v1829_v11 = vrot.slane %v1828_v58, 1  ;;  %v1801_v56 = vadd.f32 %v1800_v45, %v1799_v36 }
 0x24a   : > { %v1830_v39 = vadd.f32 %v1829_v11, %v1828_v58 }
 0x24c   : > { %v1832_v7 = vsel %vm1831_vm2, %v1801_v56, %v1830_v39 }
 0x24d   : > { %1838 = vst.msk [vmem:[#allocation10] sm:$0x3] %vm1837_vm3, %v1832_v7 }
 0x24e PF: > { %p4008_p3 = scmp.eq.s32.totalorder %s2356_s19, 0 }
 0x24f   : > { %vm1845_vm4 = vcmask (!%p4008_p3), 254976  }
 0x250   : > { %1842 = sbr.rel (%p4008_p3) target bundleno = 600 (0x258), region = 52 }
 0x254   : > { %v1843_v3 = vld [vmem:[#allocation10] sm:$0x3] (!%p4008_p3) }
 0x255   : > { %v1844_v55 = vadd.f32 (!%p4008_p3), %v1843_v3, %v1832_v7 }
 0x257   : > { %1846 = vst.msk [vmem:[#allocation10] sm:$0x3] %vm1845_vm4, %v1844_v55 }
 0x258 PF: > { %s2004_s23 = sshll.u32 %s2356_s19, 10  ;;  %s1861_s7 = sshll.u32 %s3602_s21, 4  ;;  %s3647_s7 = int_to_ptr.vmem [resolvable:$true] %s1861_s7 }
 0x259   : > { %s3644_s6 = scalar_lea.hbm %s3716_s3, %s2004_s23  ;;  %s1848_s9 = scalar_lea.sflag [#allocation5], %s2514_s10 }
 0x25a   : > { %s2196_s28 = scalar_lea.vmem %s3647_s7, 1024  ;;  %p4009_p11 = scmp.ne.s32.totalorder %s3839_s27, 0 }
 0x25b   : > { %p2197_p2 = scmp.ne.s32.totalorder %s3647_s7, %s2196_s28  ;;  %s2306_s30 = smov [#allocation9]  }
 0x25c   : > { %s2200_s26 = sshll.u32 %s2306_s30, 4  ;;  %s2201_s26 = int_to_ptr.vmem [resolvable:$false] %s2200_s26 }
 0x25d   : > { %p2198_p5 = pnand %p2197_p2, %p4009_p11  ;;  %s2202_s5 = scalar_lea.vmem %s2201_s26, 2048 }
 0x25e   : > { %p2203_p13 = scmp.lt.s32.totalorder %s3647_s7, %s2201_s26  ;;  %p2204_p1 = scmp.lt.s32.totalorder %s2202_s5, %s2196_s28 }
 0x25f   : > { %p2199_p10 = pneg %p2198_p5 }
 0x260   : > { %p2205_p0 = por %p2204_p1, %p2203_p13 }
 0x262   : > { %p2206_p6 = pnand %p2205_p0, %p2199_p10 }
 0x264   : > { %2209 = shalt.err (!%p2206_p6)
}
 0x265   : > { %s2210_s25 = scalar_lea.hbm %s3644_s6, 1024  ;;  %s2214_s29 = scalar_lea.hbm %s3716_s3, 2048 }
 0x266   : > { %p2211_p8 = scmp.ne.s32.totalorder %s3644_s6, %s2210_s25  ;;  %p2215_p9 = scmp.lt.u32.totalorder %s3644_s6, %s3716_s3 }
 0x267   : > { %p2216_p12 = scmp.lt.u32.totalorder %s2214_s29, %s2210_s25  ;;  %p2218_p2 = scmp.lt.u32.totalorder %s2210_s25, %s3644_s6 }
 0x268   : > { %p2212_p4 = pnand %p2211_p8, %p4009_p11 }
 0x269   : > { %p2217_p3 = por %p2216_p12, %p2215_p9 }
 0x26a   : > { %p2213_p7 = pneg %p2212_p4 }
 0x26b   : > { %p2219_p5 = por %p2218_p2, %p2217_p3 }
 0x26d   : > { %p2220_p10 = pnand %p2219_p5, %p2213_p7 }
 0x26f   : > { %2223 = shalt.err (!%p2220_p10)
}
 0x270   : > { %s2307_s23 = smov 128   ;;  %s2308_s11 = smov 8  }
 0x271   : > { %2037 = dma.vmem_to_hbm [thread:$0]  (%p4009_p11), %s3647_s7, 1024, %s3644_s6, %s1848_s9, %s2307_s23, %s2307_s23, %s2308_s11  }
 0x272   : > { %s2309_s12 = smov [#allocation10]   ;;  %p4010_p1 = scmp.eq.s32.totalorder %s2356_s19, 1 }
 0x273   : > { %s1875_s28 = sshll.u32 %s2309_s12, 4  ;;  %s1876_s28 = int_to_ptr.vmem [resolvable:$true] %s1875_s28 }
 0x274   : > { %s2224_s30 = scalar_lea.vmem %s1876_s28, 32  ;;  %p2231_p8 = scmp.lt.s32.totalorder %s1876_s28, %s1876_s28 }
 0x275   : > { %p2225_p13 = scmp.ne.s32.totalorder %s1876_s28, %s2224_s30  ;;  %p2232_p4 = scmp.lt.s32.totalorder %s2224_s30, %s2224_s30 }
 0x277   : > { %p2226_p0 = pnand %p2225_p13, %p4010_p1  ;;  %p2233_p7 = por %p2232_p4, %p2231_p8 }
 0x279   : > { %p2227_p6 = pneg %p2226_p0 }
 0x27b   : > { %p2234_p9 = pnand %p2233_p7, %p2227_p6 }
 0x27d   : > { %2237 = shalt.err (!%p2234_p9)
}
 0x27e   : > { %s2238_s27 = scalar_lea.hbm %s3717_s4, 32  ;;  %p4011_p12 = pmov %p4010_p1 }
 0x27f   : > { %p2239_p11 = scmp.ne.s32.totalorder %s3717_s4, %s2238_s27  ;;  %p2244_p5 = scmp.lt.u32.totalorder %s2238_s27, %s3717_s4 }
 0x281   : > { %p2240_p3 = pnand %p2239_p11, %p4011_p12 }
 0x283   : > { %p2241_p2 = pneg %p2240_p3 }
 0x285   : > { %p2246_p10 = pnand %p2244_p5, %p2241_p2 }
 0x287   : > { %2249 = shalt.err (!%p2246_p10)
}
 0x288   : > { %p4012_p13 = pmov %p4010_p1 }
 0x28a   : > { %2039 = dma.vmem_to_hbm [thread:$0]  (%p4012_p13), %s1876_s28, 32, %s3717_s4, [#allocation11]  }
 0x28b   : > { %2275 = dma.done.wait (%p4010_p1), [#allocation11], 32   ;;  %p4013_p0 = pmov %p4010_p1 }
 0x28d   : > { %2277 = vsyncadd (%p4013_p0), [#allocation11], 4294967264 }
 0x28e PF: > { %s1891_s20 = sand.u32 1, %s2284_s15   ;;  %p4014_p6 = scmp.ne.s32.totalorder %s3835_s22, 0 }
 0x28f   : > { %p4015_p8 = scmp.ge.s32.totalorder %s2296_s18, 2  ;;  %s1892_s29 = scalar_lea.sflag [#allocation5], %s1891_s20 }
 0x291   : > { %p2055_p4 = pnand %p4015_p8, %p4014_p6 }
 0x293   : > { %2279 = dma.done.wait (!%p2055_p4), %s1892_s29, 1024  }
 0x294   : > { %2281 = vsyncadd (!%p2055_p4), %s1892_s29, 4294966272  ;;  %p20_p7 = scmp.ge.s32.totalorder %s2449_s13, 4   ;;  %s4016_s15 = smov %s2288_s16 }
 0x295   : > { %s4017_s16 = smov %s2292_s17  ;;  %s4018_s17 = smov %s2458_s24 }
 0x296   : > { %s4019_s18 = smov %s2449_s13  ;;  %22 = sbr.rel (!%p20_p7) target bundleno = 7 (0x7), region = 107 }
 0x29d   :  { %1897 = vsyncpa [#allocation4], 1 }
 0x29e   :  { %1899 = vsyncpa [#allocation4 + $0x1], 1 }
 0x29f   :  { %1900 = vsyncpa [#allocation7], 1 }
 0x2a0   :  { %1901 = vsyncpa [#allocation5], 1 }
 0x2a1   :  { %1903 = vsyncpa [#allocation5 + $0x1], 1 }
 0x2a2   :  { %1904 = vsyncpa [#allocation11], 1 }

// kernel: msgaa_forward.9
= control target key start
LH: loop header
LB: loop body
LE: loop exit
PB: predicated region body
PF: predicated region fallthrough
CT: control target
= control target key end

     0   :  { %9 = vsyncpa [#allocation4], 0  ;;  %s772_s0 = inlined_call_operand.hbm [shape: f32[128,32], index: 0, kind: input, shape index: {}]   ;;  %s773_s1 = inlined_call_operand.hbm [shape: f32[128,32], index: 1, kind: input, shape index: {}]   ;;  %s774_s2 = inlined_call_operand.hbm [shape: bf16[32,32], index: 2, kind: input, shape index: {}]   ;;  %s775_s3 = inlined_call_operand.hbm [shape: f32[1,32], index: 3, kind: input, shape index: {}]   ;;  %s776_s4 = inlined_call_operand.hbm [shape: f32[128,32], index: 4, kind: output, shape index: {}]  }
   0x1   :  { %10 = vsyncpa [#allocation7], 0 }
   0x2   :  { %11 = vsyncpa [#allocation10], 0 }
   0x3   :  { %12 = vsyncpa [#allocation5], 0  ;;  %s587_s15 = smov [#allocation6]   ;;  %s588_s17 = smov [#allocation3]  }
   0x4   :  { %s30_s16 = sshll.u32 %s587_s15, 4  ;;  %s18_s18 = sshll.u32 %s588_s17, 4  ;;  %s31_s16 = int_to_ptr.vmem [resolvable:$true] %s30_s16  ;;  %s622_s18 = int_to_ptr.vmem [resolvable:$true] %s18_s18 }
   0x5   :  { %s469_s21 = scalar_lea.hbm %s773_s1, 2048 }
   0x6   :  { %p470_p0 = scmp.ne.s32.totalorder %s773_s1, %s469_s21  ;;  %p473_p1 = scmp.lt.u32.totalorder %s469_s21, %s773_s1 }
   0x8   :  { %p475_p2 = pnand %p473_p1, %p470_p0 }
   0xa   :  { %478 = shalt.err (!%p475_p2)
}
   0xb   :  { %s479_s26 = scalar_lea.vmem %s31_s16, 2048  ;;  %p484_p4 = scmp.lt.s32.totalorder %s31_s16, %s31_s16 }
   0xc   :  { %p480_p3 = scmp.ne.s32.totalorder %s31_s16, %s479_s26  ;;  %p485_p5 = scmp.lt.s32.totalorder %s479_s26, %s479_s26 }
   0xe   :  { %p486_p6 = por %p485_p5, %p484_p4 }
  0x10   :  { %p487_p7 = pnand %p486_p6, %p480_p3 }
  0x12   :  { %490 = shalt.err (!%p487_p7)
}
  0x13   :  { %s589_s27 = smov 128   ;;  %s590_s28 = smov 8  }
  0x14   :  { %36 = dma.hbm_to_vmem [thread:$0]  %s773_s1, 2048, %s31_s16, [#allocation7], %s589_s27, %s589_s27, %s590_s28  }
  0x15   :  { %s491_s7 = scalar_lea.hbm %s772_s0, 2048 }
  0x16   :  { %p492_p8 = scmp.ne.s32.totalorder %s772_s0, %s491_s7  ;;  %p495_p9 = scmp.lt.u32.totalorder %s491_s7, %s772_s0 }
  0x18   :  { %p497_p10 = pnand %p495_p9, %p492_p8 }
  0x1a   :  { %500 = shalt.err (!%p497_p10)
}
  0x1b   :  { %s501_s12 = scalar_lea.vmem %s622_s18, 2048  ;;  %p506_p12 = scmp.lt.s32.totalorder %s622_s18, %s622_s18 }
  0x1c   :  { %p502_p11 = scmp.ne.s32.totalorder %s622_s18, %s501_s12  ;;  %p507_p13 = scmp.lt.s32.totalorder %s501_s12, %s501_s12 }
  0x1e   :  { %p508_p0 = por %p507_p13, %p506_p12 }
  0x20   :  { %p509_p1 = pnand %p508_p0, %p502_p11 }
  0x22   :  { %512 = shalt.err (!%p509_p1)
}
  0x23   :  { %24 = dma.hbm_to_vmem [thread:$0]  %s772_s0, 2048, %s622_s18, [#allocation4], %s589_s27, %s589_s27, %s590_s28  }
  0x24   :  { %s591_s14 = smov [#allocation8]   ;;  %s513_s19 = scalar_lea.hbm %s774_s2, 256 }
  0x25   :  { %s42_s15 = sshll.u32 %s591_s14, 4  ;;  %p514_p2 = scmp.ne.s32.totalorder %s774_s2, %s513_s19  ;;  %s43_s15 = int_to_ptr.vmem [resolvable:$true] %s42_s15 }
  0x26   :  { %p517_p3 = scmp.lt.u32.totalorder %s513_s19, %s774_s2 }
  0x28   :  { %p519_p4 = pnand %p517_p3, %p514_p2 }
  0x2a   :  { %522 = shalt.err (!%p519_p4)
}
  0x2b   :  { %s523_s24 = scalar_lea.vmem %s43_s15, 256  ;;  %p528_p6 = scmp.lt.s32.totalorder %s43_s15, %s43_s15 }
  0x2c   :  { %p524_p5 = scmp.ne.s32.totalorder %s43_s15, %s523_s24  ;;  %p529_p7 = scmp.lt.s32.totalorder %s523_s24, %s523_s24 }
  0x2e   :  { %p530_p8 = por %p529_p7, %p528_p6 }
  0x30   :  { %p531_p9 = pnand %p530_p8, %p524_p5 }
  0x32   :  { %534 = shalt.err (!%p531_p9)
}
  0x33   :  { %s592_s0 = smov 64   ;;  %s593_s18 = smov 4  }
  0x34   :  { %48 = dma.hbm_to_vmem [thread:$0]  %s774_s2, 256, %s43_s15, [#allocation7], %s592_s0, %s592_s0, %s593_s18  }
  0x35   :  { %s594_s29 = smov [#allocation9]   ;;  %s535_s7 = scalar_lea.hbm %s775_s3, 16 }
  0x36   :  { %s55_s30 = sshll.u32 %s594_s29, 4  ;;  %p536_p10 = scmp.ne.s32.totalorder %s775_s3, %s535_s7  ;;  %s56_s30 = int_to_ptr.vmem [resolvable:$true] %s55_s30 }
  0x37   :  { %p539_p11 = scmp.lt.u32.totalorder %s535_s7, %s775_s3 }
  0x39   :  { %p541_p12 = pnand %p539_p11, %p536_p10 }
  0x3b   :  { %544 = shalt.err (!%p541_p12)
}
  0x3c   :  { %s545_s12 = scalar_lea.vmem %s56_s30, 16  ;;  %s549_s2 = scalar_lea.vmem %s56_s30, 32 }
  0x3d   :  { %p546_p13 = scmp.ne.s32.totalorder %s56_s30, %s545_s12  ;;  %p550_p0 = scmp.lt.s32.totalorder %s56_s30, %s56_s30 }
  0x3e   :  { %p551_p1 = scmp.lt.s32.totalorder %s549_s2, %s545_s12 }
  0x40   :  { %p552_p2 = por %p551_p1, %p550_p0 }
  0x42   :  { %p553_p3 = pnand %p552_p2, %p546_p13 }
  0x44   :  { %556 = shalt.err (!%p553_p3)
}
  0x45   :  { %58 = dma.hbm_to_vmem [thread:$0]  %s775_s3, 16, %s56_s30, [#allocation10]  }
  0x46   :  { %579 = dma.done.wait [#allocation4], 2048  }
  0x47   :  { %580 = vsyncadd [#allocation4], 4294965248 }
  0x48   :  { %581 = dma.done.wait [#allocation7], 2304  }
  0x49   :  { %582 = vsyncadd [#allocation7], 4294964992 }
  0x4a   :  { %583 = dma.done.wait [#allocation10], 16  }
  0x4b   :  { %584 = vsyncadd [#allocation10], 4294967280  ;;  %vm76_vm0 = vcmask 261120   ;;  %v595_v0 = vmov 0.0   ;;  %v467_v1 = vld [vmem:[#allocation8] sm:$0xff]   ;;  %v468_v2 = vld [vmem:[#allocation8 + $0x8] sm:$0xff]  }
  0x4c   :  { %79 = vst.msk [vmem:[#allocation2 + $0x10] sm:$0xff] %vm76_vm0, %v595_v0  ;;  %77 = vst.msk [vmem:[#allocation2] sm:$0xff] %vm76_vm0, %v595_v0  ;;  %433 = vmatprep.subr.bf16.mxu0 %v467_v1  ;;  %453 = vmatprep.subr.bf16.mxu1 %v467_v1  ;;  %v93_v3 = vld [vmem:[#allocation3] sm:$0xff]  ;;  %v94_v4 = vld [vmem:[#allocation3 + $0x8] sm:$0xff]  ;;  %s596_s3 = smov [#allocation11]  }
  0x4d   :  { %78 = vst.msk [vmem:[#allocation2 + $0x8] sm:$0xff] %vm76_vm0, %v595_v0  ;;  %80 = vst.msk [vmem:[#allocation2 + $0x18] sm:$0xff] %vm76_vm0, %v595_v0  ;;  %v109_v5 = vld [vmem:[#allocation6] sm:$0xff]  ;;  %434 = vmatpush3.bf16.msra.mxu0 %v467_v1  ;;  %455 = vmatpush3.bf16.msra.mxu1 %v467_v1  ;;  %v110_v6 = vld [vmem:[#allocation6 + $0x8] sm:$0xff]  ;;  %s398_s14 = sshll.u32 %s596_s3, 4  ;;  %s399_s14 = int_to_ptr.vmem [resolvable:$true] %s398_s14 }
  0x4e   :  { %81 = vst.msk [vmem:[#allocation2 + $0x20] sm:$0xff] %vm76_vm0, %v595_v0  ;;  %82 = vst.msk [vmem:[#allocation2 + $0x28] sm:$0xff] %vm76_vm0, %v595_v0  ;;  %v125_v7 = vadd.f32 %v109_v5, %v93_v3  ;;  %v101_v8 = vld [vmem:[#allocation3 + $0x40] sm:$0xff]  ;;  %v102_v9 = vld [vmem:[#allocation3 + $0x48] sm:$0xff]  ;;  %435 = vmatprep.subr.bf16.mxu0 %v468_v2  ;;  %454 = vmatprep.subr.bf16.mxu1 %v468_v2  ;;  %v126_v10 = vadd.f32 %v110_v6, %v94_v4  ;;  %s557_s15 = scalar_lea.vmem %s399_s14, 2048  ;;  %p562_p5 = scmp.lt.s32.totalorder %s399_s14, %s399_s14 }
  0x4f   :  { %83 = vst.msk [vmem:[#allocation2 + $0x30] sm:$0xff] %vm76_vm0, %v595_v0  ;;  %84 = vst.msk [vmem:[#allocation2 + $0x38] sm:$0xff] %vm76_vm0, %v595_v0  ;;  %v117_v11 = vld [vmem:[#allocation6 + $0x40] sm:$0xff]  ;;  %v118_v12 = vld [vmem:[#allocation6 + $0x48] sm:$0xff]  ;;  %p558_p4 = scmp.ne.s32.totalorder %s399_s14, %s557_s15  ;;  %p563_p6 = scmp.lt.s32.totalorder %s557_s15, %s557_s15 }
  0x50   :  { %85 = vst.msk [vmem:[#allocation2 + $0x40] sm:$0xff] %vm76_vm0, %v595_v0  ;;  %86 = vst.msk [vmem:[#allocation2 + $0x48] sm:$0xff] %vm76_vm0, %v595_v0  ;;  %v95_v13 = vld [vmem:[#allocation3 + $0x10] sm:$0xff]  ;;  %v133_v14 = vadd.f32 %v117_v11, %v101_v8  ;;  %v134_v15 = vadd.f32 %v118_v12, %v102_v9  ;;  %v96_v16 = vld [vmem:[#allocation3 + $0x18] sm:$0xff]  ;;  %v157_v19 = vpack.c.bf16 %v126_v10, %v125_v7 }
  0x51   :  { %87 = vst.msk [vmem:[#allocation2 + $0x50] sm:$0xff] %vm76_vm0, %v595_v0  ;;  %88 = vst.msk [vmem:[#allocation2 + $0x58] sm:$0xff] %vm76_vm0, %v595_v0  ;;  %v111_v17 = vld [vmem:[#allocation6 + $0x10] sm:$0xff]  ;;  %v112_v18 = vld [vmem:[#allocation6 + $0x18] sm:$0xff]  ;;  %436 = vmatpush3.bf16.msra.mxu0 %v468_v2  ;;  %456 = vmatpush3.bf16.msra.mxu1 %v468_v2  ;;  %p564_p7 = por %p563_p6, %p562_p5 }
  0x52   :  { %89 = vst.msk [vmem:[#allocation2 + $0x60] sm:$0xff] %vm76_vm0, %v595_v0  ;;  %90 = vst.msk [vmem:[#allocation2 + $0x68] sm:$0xff] %vm76_vm0, %v595_v0  ;;  %v127_v20 = vadd.f32 %v111_v17, %v95_v13  ;;  %v128_v21 = vadd.f32 %v112_v18, %v96_v16  ;;  %v103_v22 = vld [vmem:[#allocation3 + $0x50] sm:$0xff]  ;;  %v104_v23 = vld [vmem:[#allocation3 + $0x58] sm:$0xff]  ;;  %v161_v25 = vpack.c.bf16 %v134_v15, %v133_v14  ;;  %437 = vmatprep.mubr.msk.bf16.mxu0 %vm76_vm0, %v157_v19 }
  0x53   :  { %91 = vst.msk [vmem:[#allocation2 + $0x70] sm:$0xff] %vm76_vm0, %v595_v0  ;;  %92 = vst.msk [vmem:[#allocation2 + $0x78] sm:$0xff] %vm76_vm0, %v595_v0  ;;  %v119_v24 = vld [vmem:[#allocation6 + $0x50] sm:$0xff]  ;;  %v120_v26 = vld [vmem:[#allocation6 + $0x58] sm:$0xff]  ;;  %p565_p8 = pnand %p564_p7, %p558_p4 }
  0x54   :  { %v135_v27 = vadd.f32 %v119_v24, %v103_v22  ;;  %v97_v28 = vld [vmem:[#allocation3 + $0x20] sm:$0xff]  ;;  %v98_v29 = vld [vmem:[#allocation3 + $0x28] sm:$0xff]  ;;  %v158_v30 = vpack.c.bf16 %v128_v21, %v127_v20  ;;  %v136_v31 = vadd.f32 %v120_v26, %v104_v23  ;;  %445 = vmatprep.mubr.msk.bf16.mxu1 %vm76_vm0, %v161_v25  ;;  %v99_v43 = vld [vmem:[#allocation3 + $0x30] sm:$0xff] }
  0x55   :  { %v113_v32 = vld [vmem:[#allocation6 + $0x20] sm:$0xff]  ;;  %v114_v33 = vld [vmem:[#allocation6 + $0x28] sm:$0xff]  ;;  %v100_v44 = vld [vmem:[#allocation3 + $0x38] sm:$0xff] }
  0x56   :  { %v105_v34 = vld [vmem:[#allocation3 + $0x60] sm:$0xff]  ;;  %v129_v35 = vadd.f32 %v113_v32, %v97_v28  ;;  %v130_v36 = vadd.f32 %v114_v33, %v98_v29  ;;  %v106_v37 = vld [vmem:[#allocation3 + $0x68] sm:$0xff]  ;;  %438 = vmatmul.mubr.msk.bf16.vlgmr.msra.gmra.mrb[0].mxu0 %vm76_vm0, %v158_v30  ;;  %v162_v40 = vpack.c.bf16 %v136_v31, %v135_v27  ;;  %v115_v45 = vld [vmem:[#allocation6 + $0x30] sm:$0xff] }
  0x57   :  { %v121_v38 = vld [vmem:[#allocation6 + $0x60] sm:$0xff]  ;;  %v122_v39 = vld [vmem:[#allocation6 + $0x68] sm:$0xff]  ;;  %v116_v47 = vld [vmem:[#allocation6 + $0x38] sm:$0xff]  ;;  %v131_v48 = vadd.f32 %v115_v45, %v99_v43 }
  0x58   :  { %v137_v41 = vadd.f32 %v121_v38, %v105_v34  ;;  %v138_v42 = vadd.f32 %v122_v39, %v106_v37  ;;  %v159_v46 = vpack.c.bf16 %v130_v36, %v129_v35  ;;  %v107_v49 = vld [vmem:[#allocation3 + $0x70] sm:$0xff]  ;;  %v108_v50 = vld [vmem:[#allocation3 + $0x78] sm:$0xff]  ;;  %446 = vmatmul.mubr.msk.bf16.vlgmr.msra.gmra.mrb[0].mxu1 %vm76_vm0, %v162_v40  ;;  %v132_v52 = vadd.f32 %v116_v47, %v100_v44  ;;  %v141_v60 = vld [vmem:[#allocation2] sm:$0xff] }
  0x59   :  { %v123_v53 = vld [vmem:[#allocation6 + $0x70] sm:$0xff]  ;;  %v124_v54 = vld [vmem:[#allocation6 + $0x78] sm:$0xff]  ;;  %v149_v2 = vld [vmem:[#allocation2 + $0x40] sm:$0xff] }
  0x5a   :  { %v163_v51 = vpack.c.bf16 %v138_v42, %v137_v41  ;;  %441 = vmatprep.mubr.msk.bf16.mxu0 %vm76_vm0, %v159_v46  ;;  %v139_v55 = vadd.f32 %v123_v53, %v107_v49  ;;  %v140_v56 = vadd.f32 %v124_v54, %v108_v50  ;;  %v160_v57 = vpack.c.bf16 %v132_v52, %v131_v48  ;;  %v143_v59 = vld [vmem:[#allocation2 + $0x10] sm:$0xff]  ;;  %v144_v63 = vld [vmem:[#allocation2 + $0x18] sm:$0xff]  ;;  %v142_v3 = vld [vmem:[#allocation2 + $0x8] sm:$0xff] }
  0x5b   :  { %v151_v62 = vld [vmem:[#allocation2 + $0x50] sm:$0xff]  ;;  %v152_v7 = vld [vmem:[#allocation2 + $0x58] sm:$0xff]  ;;  %v150_v12 = vld [vmem:[#allocation2 + $0x48] sm:$0xff] }
  0x5c   :  { %449 = vmatprep.mubr.msk.bf16.mxu1 %vm76_vm0, %v163_v51  ;;  %v164_v58 = vpack.c.bf16 %v140_v56, %v139_v55  ;;  %v147_v19 = vld [vmem:[#allocation2 + $0x30] sm:$0xff]  ;;  %v145_v20 = vld [vmem:[#allocation2 + $0x20] sm:$0xff]  ;;  %v148_v24 = vld [vmem:[#allocation2 + $0x38] sm:$0xff] }
  0x5d   :  { %v714_v21 = vld [vmem:[#allocation9] ss:$0 sm:$0xff]  ;;  %v153_v27 = vld [vmem:[#allocation2 + $0x60] sm:$0xff]  ;;  %v146_v28 = vld [vmem:[#allocation2 + $0x28] sm:$0xff] }
  0x5e   :  { %442 = vmatmul.mubr.msk.bf16.gmra.mrb[4].mxu0 %vm76_vm0, %v160_v57  ;;  %v155_v23 = vld [vmem:[#allocation2 + $0x70] sm:$0xff]  ;;  %v156_v33 = vld [vmem:[#allocation2 + $0x78] sm:$0xff]  ;;  %v154_v40 = vld [vmem:[#allocation2 + $0x68] sm:$0xff] }
  0x60   :  { %450 = vmatmul.mubr.msk.bf16.gmra.mrb[4].mxu1 %vm76_vm0, %v164_v58 }
 0x129   :  { %v439_v61 = vpop.f32.mrb[0].mxu0 }
 0x12a   :  { %v305_v0 = vadd.f32 %v439_v61, %v143_v59  ;;  %v240_v1 = vpop.f32.mrb[1].mxu0 }
 0x12b   :  { %v447_v4 = vpop.f32.mrb[0].mxu1  ;;  %v303_v5 = vadd.f32 %v240_v1, %v141_v60  ;;  %v440_v6 = vpop.f32.mrb[2].mxu0 }
 0x12c   :  { %321 = vst.msk [vmem:[#allocation2 + $0x10] sm:$0xff] %vm76_vm0, %v305_v0  ;;  %v313_v8 = vadd.f32 %v447_v4, %v151_v62  ;;  %v272_v9 = vpop.f32.mrb[1].mxu1  ;;  %v306_v10 = vadd.f32 %v440_v6, %v144_v63  ;;  %v243_v11 = vpop.f32.mrb[3].mxu0 }
 0x12d   :  { %319 = vst.msk [vmem:[#allocation2] sm:$0xff] %vm76_vm0, %v303_v5  ;;  %v311_v13 = vadd.f32 %v272_v9, %v149_v2  ;;  %v448_v14 = vpop.f32.mrb[2].mxu1  ;;  %v304_v15 = vadd.f32 %v243_v11, %v142_v3 }
 0x12e   :  { %329 = vst.msk [vmem:[#allocation2 + $0x50] sm:$0xff] %vm76_vm0, %v313_v8  ;;  %322 = vst.msk [vmem:[#allocation2 + $0x18] sm:$0xff] %vm76_vm0, %v306_v10  ;;  %v314_v16 = vadd.f32 %v448_v14, %v152_v7  ;;  %v275_v17 = vpop.f32.mrb[3].mxu1 }
 0x12f   :  { %327 = vst.msk [vmem:[#allocation2 + $0x40] sm:$0xff] %vm76_vm0, %v311_v13  ;;  %320 = vst.msk [vmem:[#allocation2 + $0x8] sm:$0xff] %vm76_vm0, %v304_v15  ;;  %v312_v18 = vadd.f32 %v275_v17, %v150_v12 }
 0x130   :  { %330 = vst.msk [vmem:[#allocation2 + $0x58] sm:$0xff] %vm76_vm0, %v314_v16 }
 0x131   :  { %328 = vst.msk [vmem:[#allocation2 + $0x48] sm:$0xff] %vm76_vm0, %v312_v18  ;;  %v443_v22 = vpop.f32.mrb[4].mxu0 }
 0x132   :  { %v309_v25 = vadd.f32 %v443_v22, %v147_v19  ;;  %v256_v26 = vpop.f32.mrb[5].mxu0 }
 0x133   :  { %v340_v29 = vld [vmem:[#allocation2 + $0x10] sm:$0xff]  ;;  %v451_v30 = vpop.f32.mrb[4].mxu1  ;;  %v307_v31 = vadd.f32 %v256_v26, %v145_v20  ;;  %v444_v32 = vpop.f32.mrb[6].mxu0 }
 0x134   :  { %v363_v34 = vadd.f32 %v714_v21, %v340_v29  ;;  %v338_v35 = vld [vmem:[#allocation2] sm:$0xff]  ;;  %325 = vst.msk [vmem:[#allocation2 + $0x30] sm:$0xff] %vm76_vm0, %v309_v25  ;;  %v317_v36 = vadd.f32 %v451_v30, %v155_v23  ;;  %v288_v37 = vpop.f32.mrb[5].mxu1  ;;  %v310_v38 = vadd.f32 %v444_v32, %v148_v24  ;;  %v259_v39 = vpop.f32.mrb[7].mxu0 }
 0x135   :  { %v348_v41 = vld [vmem:[#allocation2 + $0x50] sm:$0xff]  ;;  %v361_v42 = vadd.f32 %v714_v21, %v338_v35  ;;  %v341_v43 = vld [vmem:[#allocation2 + $0x18] sm:$0xff]  ;;  %323 = vst.msk [vmem:[#allocation2 + $0x20] sm:$0xff] %vm76_vm0, %v307_v31  ;;  %v315_v44 = vadd.f32 %v288_v37, %v153_v27  ;;  %v452_v45 = vpop.f32.mrb[6].mxu1  ;;  %v308_v46 = vadd.f32 %v259_v39, %v146_v28 }
 0x136   :  { %379 = vst.msk [vmem:[#allocation11 + $0x10] sm:$0xff] %vm76_vm0, %v363_v34  ;;  %v371_v47 = vadd.f32 %v714_v21, %v348_v41  ;;  %v346_v48 = vld [vmem:[#allocation2 + $0x40] sm:$0xff]  ;;  %v364_v49 = vadd.f32 %v714_v21, %v341_v43  ;;  %v339_v50 = vld [vmem:[#allocation2 + $0x8] sm:$0xff]  ;;  %333 = vst.msk [vmem:[#allocation2 + $0x70] sm:$0xff] %vm76_vm0, %v317_v36  ;;  %v318_v51 = vadd.f32 %v452_v45, %v156_v33  ;;  %v291_v52 = vpop.f32.mrb[7].mxu1 }
 0x137   :  { %326 = vst.msk [vmem:[#allocation2 + $0x38] sm:$0xff] %vm76_vm0, %v310_v38  ;;  %377 = vst.msk [vmem:[#allocation11] sm:$0xff] %vm76_vm0, %v361_v42  ;;  %v369_v53 = vadd.f32 %v714_v21, %v346_v48  ;;  %v349_v54 = vld [vmem:[#allocation2 + $0x58] sm:$0xff]  ;;  %v362_v55 = vadd.f32 %v714_v21, %v339_v50  ;;  %v316_v56 = vadd.f32 %v291_v52, %v154_v40 }
 0x138   :  { %331 = vst.msk [vmem:[#allocation2 + $0x60] sm:$0xff] %vm76_vm0, %v315_v44  ;;  %324 = vst.msk [vmem:[#allocation2 + $0x28] sm:$0xff] %vm76_vm0, %v308_v46  ;;  %v372_v57 = vadd.f32 %v714_v21, %v349_v54  ;;  %v347_v58 = vld [vmem:[#allocation2 + $0x48] sm:$0xff] }
 0x139   :  { %387 = vst.msk [vmem:[#allocation11 + $0x50] sm:$0xff] %vm76_vm0, %v371_v47  ;;  %380 = vst.msk [vmem:[#allocation11 + $0x18] sm:$0xff] %vm76_vm0, %v364_v49  ;;  %v370_v59 = vadd.f32 %v714_v21, %v347_v58 }
 0x13a   :  { %334 = vst.msk [vmem:[#allocation2 + $0x78] sm:$0xff] %vm76_vm0, %v318_v51  ;;  %385 = vst.msk [vmem:[#allocation11 + $0x40] sm:$0xff] %vm76_vm0, %v369_v53 }
 0x13b   :  { %378 = vst.msk [vmem:[#allocation11 + $0x8] sm:$0xff] %vm76_vm0, %v362_v55  ;;  %332 = vst.msk [vmem:[#allocation2 + $0x68] sm:$0xff] %vm76_vm0, %v316_v56  ;;  %v344_v60 = vld [vmem:[#allocation2 + $0x30] sm:$0xff] }
 0x13c   :  { %388 = vst.msk [vmem:[#allocation11 + $0x58] sm:$0xff] %vm76_vm0, %v372_v57  ;;  %386 = vst.msk [vmem:[#allocation11 + $0x48] sm:$0xff] %vm76_vm0, %v370_v59  ;;  %v367_v61 = vadd.f32 %v714_v21, %v344_v60  ;;  %v342_v62 = vld [vmem:[#allocation2 + $0x20] sm:$0xff] }
 0x13d   :  { %v352_v63 = vld [vmem:[#allocation2 + $0x70] sm:$0xff]  ;;  %v365_v0 = vadd.f32 %v714_v21, %v342_v62 }
 0x13e   :  { %v345_v1 = vld [vmem:[#allocation2 + $0x38] sm:$0xff]  ;;  %383 = vst.msk [vmem:[#allocation11 + $0x30] sm:$0xff] %vm76_vm0, %v367_v61  ;;  %v375_v2 = vadd.f32 %v714_v21, %v352_v63 }
 0x13f   :  { %v350_v3 = vld [vmem:[#allocation2 + $0x60] sm:$0xff]  ;;  %v368_v4 = vadd.f32 %v714_v21, %v345_v1  ;;  %v343_v5 = vld [vmem:[#allocation2 + $0x28] sm:$0xff]  ;;  %381 = vst.msk [vmem:[#allocation11 + $0x20] sm:$0xff] %vm76_vm0, %v365_v0 }
 0x140   :  { %v373_v6 = vadd.f32 %v714_v21, %v350_v3  ;;  %v366_v8 = vadd.f32 %v714_v21, %v343_v5  ;;  %391 = vst.msk [vmem:[#allocation11 + $0x70] sm:$0xff] %vm76_vm0, %v375_v2 }
 0x141   :  { %v353_v7 = vld [vmem:[#allocation2 + $0x78] sm:$0xff]  ;;  %384 = vst.msk [vmem:[#allocation11 + $0x38] sm:$0xff] %vm76_vm0, %v368_v4 }
 0x142   :  { %v376_v9 = vadd.f32 %v714_v21, %v353_v7  ;;  %v351_v10 = vld [vmem:[#allocation2 + $0x68] sm:$0xff]  ;;  %389 = vst.msk [vmem:[#allocation11 + $0x60] sm:$0xff] %vm76_vm0, %v373_v6  ;;  %382 = vst.msk [vmem:[#allocation11 + $0x28] sm:$0xff] %vm76_vm0, %v366_v8 }
 0x143   :  { %v374_v11 = vadd.f32 %v714_v21, %v351_v10 }
 0x144   :  { %392 = vst.msk [vmem:[#allocation11 + $0x78] sm:$0xff] %vm76_vm0, %v376_v9 }
 0x145   :  { %390 = vst.msk [vmem:[#allocation11 + $0x68] sm:$0xff] %vm76_vm0, %v374_v11 }
 0x146   :  { %568 = shalt.err (!%p565_p8)
}
 0x147   :  { %s569_s19 = scalar_lea.hbm %s776_s4, 2048 }
 0x148   :  { %p570_p9 = scmp.ne.s32.totalorder %s776_s4, %s569_s19  ;;  %p573_p10 = scmp.lt.u32.totalorder %s569_s19, %s776_s4 }
 0x14a   :  { %p575_p11 = pnand %p573_p10, %p570_p9 }
 0x14c   :  { %578 = shalt.err (!%p575_p11)
}
 0x14d   :  { %404 = dma.vmem_to_hbm [thread:$0]  %s399_s14, 2048, %s776_s4, [#allocation5], %s589_s27, %s589_s27, %s590_s28  }
 0x14e   :  { %585 = dma.done.wait [#allocation5], 2048  }
 0x14f   :  { %586 = vsyncadd [#allocation5], 4294965248 }
 0x150   :  { %408 = vsyncpa [#allocation4], 1 }
 0x151   :  { %409 = vsyncpa [#allocation7], 1 }
 0x152   :  { %410 = vsyncpa [#allocation10], 1 }
 0x153   :  { %411 = vsyncpa [#allocation5], 1 }

// kernel: msgaa_forward.7
= control target key start
LH: loop header
LB: loop body
LE: loop exit
PB: predicated region body
PF: predicated region fallthrough
CT: control target
= control target key end

     0   :  { %s11067_s0 = inlined_call_operand.hbm [shape: f32[2,64,32], index: 0, kind: input, shape index: {}]   ;;  %s11068_s1 = inlined_call_operand.hbm [shape: f32[2,64,32], index: 1, kind: input, shape index: {}]   ;;  %s11069_s2 = inlined_call_operand.hbm [shape: f32[2,64,32], index: 2, kind: input, shape index: {}]   ;;  %s11070_s3 = inlined_call_operand.hbm [shape: f32[2,16,32], index: 3, kind: input, shape index: {}]   ;;  %s11071_s4 = inlined_call_operand.hbm [shape: f32[4,16,64], index: 4, kind: input, shape index: {}]   ;;  %s11072_s5 = inlined_call_operand.hbm [shape: f32[4,64,16], index: 5, kind: input, shape index: {}]   ;;  %s11073_s6 = inlined_call_operand.hbm [shape: f32[2,64,32], index: 6, kind: output, shape index: {}]  }
   0x1   :  { %11102 = sst [smem:[#allocation27_spill]] %s11068_s1 }
   0x2   :  { %11103 = sst [smem:[#allocation28_spill]] %s11071_s4 }
   0x3   :  { %11104 = sst [smem:[#allocation29_spill]] %s11073_s6 }
   0x4   :  { %11 = vsyncpa [#allocation3], 0 }
   0x5   :  { %13 = vsyncpa [#allocation3 + $0x1], 0 }
   0x6   :  { %14 = vsyncpa [#allocation6], 0 }
   0x7   :  { %16 = vsyncpa [#allocation6 + $0x1], 0 }
   0x8   :  { %17 = vsyncpa [#allocation9], 0 }
   0x9   :  { %19 = vsyncpa [#allocation9 + $0x1], 0 }
   0xa   :  { %20 = vsyncpa [#allocation12], 0 }
   0xb   :  { %21 = vsyncpa [#allocation4], 0 }
   0xc   :  { %23 = vsyncpa [#allocation4 + $0x1], 0  ;;  %s8190_s21 = smov 0   ;;  %s8192_s22 = smov 0  }
   0xd   :  { %s8194_s23 = smov 0   ;;  %s8196_s24 = smov 0  }
   0xe LB: > { %11105 = sst [smem:[#allocation20_spill]] %s8121_s21  ;;  %s8211_s25 = sadd.s32 4294967295, %s8133_s24   ;;  %s8133_s24 = sphi %s8196_s24, %s11166_s24   ;;  %s8129_s23 = sphi %s8194_s23, %s11168_s23   ;;  %s8125_s22 = sphi %s8192_s22, %s11170_s22   ;;  %s8121_s21 = sphi %s8190_s21, %s11169_s21  }
   0xf   : > { %11106 = sst [smem:[#allocation21_spill]] %s8129_s23  ;;  %s7204_s26 = sadd.s32 4294967294, %s8133_s24  }
  0x10   : > { %s8215_s27 = sadd.s32 1, %s8133_s24   ;;  %s36_s28 = sadd.s32 1, %s8129_s23 }
  0x11   : > { %11107 = sst [smem:[#allocation22_spill]] %s8215_s27  ;;  %s33_s29 = ssub.s32 %s8133_s24, %s8215_s27 }
  0x12   : > { %p43_p0 = scmp.ne.s32.totalorder %s8129_s23, %s8125_s22  ;;  %p34_p1 = scmp.eq.s32.totalorder %s33_s29, 0 }
  0x13   : > { %p44_p2 = scmp.eq.s32.totalorder %s8133_s24, 0  ;;  %p49_p3 = scmp.ne.s32.totalorder %s8125_s22, %s8121_s21 }
  0x14   : > { %p11074_p4 = scmp.eq.s32.totalorder %s8211_s25, 0  ;;  %p193_p7 = scmp.eq.s32.totalorder %s8211_s25, 1 }
  0x15   : > { %s8227_s30 = scalar_select %p34_p1, %s8129_s23, %s36_s28  }
  0x16   : > { %p8229_p5 = por %p44_p2, %p43_p0  ;;  %p8235_p6 = por %p11074_p4, %p49_p3 }
  0x17   : > { %11108 = sst [smem:[#allocation23_spill]] %s8227_s30  ;;  %p199_p8 = scmp.eq.s32.totalorder %s7204_s26, 1 }
  0x18   : > { %s11109_s7 = scalar_select %p8229_p5, 1, 0 }
  0x19   : > { %s11110_s8 = scalar_select %p8235_p6, 1, 0 }
  0x1a   : > { %p7205_p9 = scmp.ge.s32.totalorder %s8133_s24, 1  ;;  %p206_p10 = scmp.lt.s32.totalorder %s8133_s24, 3 }
  0x1b   : > { %p8242_p11 = por %p193_p7, %p43_p0  ;;  %p8246_p12 = por %p199_p8, %p49_p3 }
  0x1c   : > { %p8250_p13 = pnand %p7205_p9, %p206_p10  ;;  %s8135_s12 = smov [#allocation10]  }
  0x1d   : > { %s11111_s9 = scalar_select %p8242_p11, 1, 0 }
  0x1e   : > { %s11112_s10 = scalar_select %p8246_p12, 1, 0 }
  0x1f   : > { %s11114_s11 = scalar_select %p8250_p13, 1, 0 }
  0x20   : > { %11113 = sst [smem:[#allocation24_spill]] %s11112_s10  ;;  %p7625_p1 = pneg %p8250_p13 }
  0x21   : > { %s218_s13 = sshll.u32 %s8135_s12, 4  ;;  %s8265_s15 = sand.u32 1, %s8129_s23   ;;  %s219_s13 = int_to_ptr.vmem [resolvable:$true] %s218_s13 }
  0x22   : > { %p8258_p2 = pnand %p7625_p1, %p11074_p4  ;;  %s8268_s16 = sshll.u32 %s8265_s15, 6 }
  0x23   : > { %s11116_s4 = sld [smem:[#allocation28_spill]] }
  0x24   : > { %s11115_s14 = scalar_select %p8258_p2, 1, 0 }
  0x25   : > { %p11084_p8 = pneg %p8258_p2 }
  0x29   : > { %s7875_s19 = scalar_lea.hbm %s11116_s4, 1024 }
  0x2a   : > { %p7876_p7 = scmp.ne.s32.totalorder %s11116_s4, %s7875_s19  ;;  %p7882_p1 = scmp.lt.u32.totalorder %s7875_s19, %s11116_s4 }
  0x2c   : > { %p7878_p9 = pnand %p11084_p8, %p7876_p7 }
  0x2e   : > { %p7879_p10 = pneg %p7878_p9 }
  0x30   : > { %p7884_p0 = pnand %p7882_p1, %p7879_p10 }
  0x32   : > { %7887 = shalt.err (!%p7884_p0)
}
  0x33   : > { %s7888_s12 = scalar_lea.vmem %s219_s13, 1024  ;;  %p7896_p11 = scmp.lt.s32.totalorder %s219_s13, %s219_s13 }
  0x34   : > { %p7889_p4 = scmp.ne.s32.totalorder %s219_s13, %s7888_s12  ;;  %p7897_p6 = scmp.lt.s32.totalorder %s7888_s12, %s7888_s12 }
  0x36   : > { %p7891_p3 = pnand %p7889_p4, %p11084_p8  ;;  %p7898_p13 = por %p7897_p6, %p7896_p11 }
  0x38   : > { %p7892_p12 = pneg %p7891_p3 }
  0x3a   : > { %p7899_p5 = pnand %p7898_p13, %p7892_p12 }
  0x3c   : > { %7902 = shalt.err (!%p7899_p5)
}
  0x3d   : > { %s11079_s17 = smov 128   ;;  %s11081_s18 = smov 8  }
  0x3e   : > { %7628 = dma.hbm_to_vmem [thread:$0]  (!%p8258_p2), %s11116_s4, 1024, %s219_s13, [#allocation9], %s11079_s17, %s11079_s17, %s11081_s18  }
  0x3f   : > { %s8296_s26 = sshll.u32 %s8133_s24, 10  ;;  %p11117_p4 = scmp.ne.s32.totalorder %s11109_s7, 0 }
  0x40   : > { %p11118_p5 = scmp.lt.s32.totalorder %s8133_s24, 2  ;;  %s11083_s29 = sand.u32 1, %s8133_s24  }
  0x41   : > { %s11120_s1 = sld [smem:[#allocation27_spill]]  ;;  %s270_s13 = scalar_lea.vmem [#allocation5], %s8268_s16 }
  0x42   : > { %p8302_p6 = pnand %p11118_p5, %p11117_p4  ;;  %s277_s19 = sshll.u32 %s270_s13, 4  ;;  %s8314_s19 = int_to_ptr.vmem [resolvable:$true] %s277_s19 }
  0x43   : > { %s8318_s7 = scalar_lea.sflag [#allocation6], %s11083_s29 }
  0x44   : > { %s11119_s28 = scalar_select %p8302_p6, 1, 0 }
  0x45   : > { %p8324_p12 = pneg %p8302_p6 }
  0x47   : > { %s8311_s23 = scalar_lea.hbm %s11120_s1, %s8296_s26  ;;  %s7908_s13 = scalar_lea.hbm %s11120_s1, 2048 }
  0x48   : > { %s7903_s20 = scalar_lea.hbm %s8311_s23, 1024  ;;  %p7909_p3 = scmp.lt.u32.totalorder %s8311_s23, %s11120_s1 }
  0x49   : > { %p7904_p11 = scmp.ne.s32.totalorder %s8311_s23, %s7903_s20  ;;  %p7910_p7 = scmp.lt.u32.totalorder %s7908_s13, %s7903_s20 }
  0x4a   : > { %s11121_s17 = scalar_select %p8324_p12, 1, 0 }
  0x4b   : > { %p7906_p13 = pnand %p8324_p12, %p7904_p11  ;;  %p7911_p9 = por %p7910_p7, %p7909_p3 }
  0x4c   : > { %p7912_p10 = scmp.lt.u32.totalorder %s7903_s20, %s8311_s23 }
  0x4d   : > { %p7907_p0 = pneg %p7906_p13 }
  0x4e   : > { %p7913_p1 = por %p7912_p10, %p7911_p9 }
  0x50   : > { %p7914_p4 = pnand %p7913_p1, %p7907_p0 }
  0x52   : > { %7917 = shalt.err (!%p7914_p4)
}
  0x53   : > { %s7918_s29 = scalar_lea.vmem %s8314_s19, 1024  ;;  %s8138_s30 = smov [#allocation5]  }
  0x54   : > { %p7919_p5 = scmp.ne.s32.totalorder %s8314_s19, %s7918_s29  ;;  %s7923_s12 = sshll.u32 %s8138_s30, 4  ;;  %s7924_s12 = int_to_ptr.vmem [resolvable:$false] %s7923_s12 }
  0x55   : > { %s7925_s4 = scalar_lea.vmem %s7924_s12, 2048  ;;  %p7926_p8 = scmp.lt.s32.totalorder %s8314_s19, %s7924_s12 }
  0x56   : > { %p7921_p11 = pnand %p7919_p5, %p8324_p12  ;;  %p7927_p2 = scmp.lt.s32.totalorder %s7925_s4, %s7918_s29 }
  0x58   : > { %p7922_p13 = pneg %p7921_p11  ;;  %p7928_p3 = por %p7927_p2, %p7926_p8 }
  0x5a   : > { %p7929_p7 = pnand %p7928_p3, %p7922_p13 }
  0x5c   : > { %7932 = shalt.err (!%p7929_p7)
}
  0x5d   : > { %s11122_s18 = smov 8   ;;  %s11123_s20 = smov 128  }
  0x5e   : > { %7638 = dma.hbm_to_vmem [thread:$0]  (!%p8302_p6), %s8311_s23, 1024, %s8314_s19, %s8318_s7, %s11123_s20, %s11123_s20, %s11122_s18  }
  0x5f   : > { %s8139_s13 = smov [#allocation11]   ;;  %s8355_s29 = scalar_lea.hbm %s11067_s0, %s8296_s26 }
  0x60   : > { %s231_s30 = sshll.u32 %s8139_s13, 4  ;;  %s7933_s10 = scalar_lea.hbm %s11072_s5, 4096  ;;  %s232_s30 = int_to_ptr.vmem [resolvable:$true] %s231_s30 }
  0x61   : > { %p7934_p2 = scmp.ne.s32.totalorder %s11072_s5, %s7933_s10  ;;  %p11124_p8 = scmp.ne.s32.totalorder %s11115_s14, 0 }
  0x62   : > { %p7940_p1 = scmp.lt.u32.totalorder %s7933_s10, %s11072_s5 }
  0x63   : > { %p11125_p0 = pneg %p11124_p8 }
  0x65   : > { %p7936_p9 = pnand %p7934_p2, %p11125_p0 }
  0x67   : > { %p7937_p10 = pneg %p7936_p9 }
  0x69   : > { %p7942_p4 = pnand %p7940_p1, %p7937_p10 }
  0x6b   : > { %7945 = shalt.err (!%p7942_p4)
}
  0x6c   : > { %s7946_s1 = scalar_lea.vmem %s232_s30, 4096  ;;  %p11126_p11 = pmov %p11125_p0 }
  0x6d   : > { %p7947_p5 = scmp.ne.s32.totalorder %s232_s30, %s7946_s1  ;;  %p7954_p7 = scmp.lt.s32.totalorder %s232_s30, %s232_s30 }
  0x6e   : > { %p7955_p6 = scmp.lt.s32.totalorder %s7946_s1, %s7946_s1 }
  0x6f   : > { %p7949_p13 = pnand %p7947_p5, %p11126_p11 }
  0x70   : > { %p7956_p12 = por %p7955_p6, %p7954_p7 }
  0x71   : > { %p7950_p3 = pneg %p7949_p13 }
  0x73   : > { %p7957_p0 = pnand %p7956_p12, %p7950_p3 }
  0x75   : > { %7960 = shalt.err (!%p7957_p0)
}
  0x76   : > { %7631 = dma.hbm_to_vmem [thread:$0]  (!%p11124_p8), %s11072_s5, 4096, %s232_s30, [#allocation12], %s11123_s20, %s11123_s20, %s11122_s18  }
  0x77   : > { %s249_s27 = scalar_lea.vmem [#allocation2], %s8268_s16  ;;  %s8387_s12 = scalar_lea.hbm %s11069_s2, %s8296_s26 }
  0x78   : > { %s256_s10 = sshll.u32 %s249_s27, 4  ;;  %s246_s4 = scalar_lea.sflag [#allocation3], %s8265_s15  ;;  %s8381_s10 = int_to_ptr.vmem [resolvable:$true] %s256_s10 }
  0x79   : > { %s7961_s23 = scalar_lea.hbm %s8355_s29, 1024  ;;  %p11127_p12 = scmp.ne.s32.totalorder %s11121_s17, 0 }
  0x7a   : > { %p7962_p6 = scmp.ne.s32.totalorder %s8355_s29, %s7961_s23  ;;  %s7966_s6 = scalar_lea.hbm %s11067_s0, 2048 }
  0x7b   : > { %p7967_p8 = scmp.lt.u32.totalorder %s8355_s29, %s11067_s0  ;;  %p7968_p10 = scmp.lt.u32.totalorder %s7966_s6, %s7961_s23 }
  0x7c   : > { %p7964_p2 = pnand %p7962_p6, %p11127_p12  ;;  %p7970_p4 = scmp.lt.u32.totalorder %s7961_s23, %s8355_s29 }
  0x7d   : > { %p7969_p1 = por %p7968_p10, %p7967_p8 }
  0x7e   : > { %p7965_p9 = pneg %p7964_p2 }
  0x7f   : > { %p7971_p5 = por %p7970_p4, %p7969_p1 }
  0x81   : > { %p7972_p11 = pnand %p7971_p5, %p7965_p9 }
  0x83   : > { %7975 = shalt.err (!%p7972_p11)
}
  0x84   : > { %s7976_s26 = scalar_lea.vmem %s8381_s10, 1024  ;;  %s8140_s27 = smov [#allocation2]  }
  0x85   : > { %p7977_p13 = scmp.ne.s32.totalorder %s8381_s10, %s7976_s26  ;;  %s7981_s14 = sshll.u32 %s8140_s27, 4  ;;  %s7982_s14 = int_to_ptr.vmem [resolvable:$false] %s7981_s14 }
  0x86   : > { %s7983_s13 = scalar_lea.vmem %s7982_s14, 2048  ;;  %p7984_p0 = scmp.lt.s32.totalorder %s8381_s10, %s7982_s14 }
  0x87   : > { %p7979_p3 = pnand %p7977_p13, %p11127_p12  ;;  %p7985_p6 = scmp.lt.s32.totalorder %s7983_s13, %s7976_s26 }
  0x89   : > { %p7980_p7 = pneg %p7979_p3  ;;  %p7986_p2 = por %p7985_p6, %p7984_p0 }
  0x8b   : > { %p7987_p8 = pnand %p7986_p2, %p7980_p7 }
  0x8d   : > { %7990 = shalt.err (!%p7987_p8)
}
  0x8e   : > { %p11128_p9 = scmp.ne.s32.totalorder %s11119_s28, 0  ;;  %s291_s23 = scalar_lea.vmem [#allocation7], %s8268_s16 }
  0x8f   : > { %s298_s19 = sshll.u32 %s291_s23, 4  ;;  %s7218_s1 = sshll.u32 %s8265_s15, 4  ;;  %s8418_s19 = int_to_ptr.vmem [resolvable:$true] %s298_s19 }
  0x90   : > { %7635 = dma.hbm_to_vmem [thread:$0]  (!%p11128_p9), %s8355_s29, 1024, %s8381_s10, %s246_s4, %s11123_s20, %s11123_s20, %s11122_s18  }
  0x91   : > { %s7991_s6 = scalar_lea.hbm %s8387_s12, 1024  ;;  %s7996_s26 = scalar_lea.hbm %s11069_s2, 2048 }
  0x92   : > { %p7992_p10 = scmp.ne.s32.totalorder %s8387_s12, %s7991_s6  ;;  %p7997_p5 = scmp.lt.u32.totalorder %s8387_s12, %s11069_s2 }
  0x93   : > { %p7998_p11 = scmp.lt.u32.totalorder %s7996_s26, %s7991_s6  ;;  %p8000_p3 = scmp.lt.u32.totalorder %s7991_s6, %s8387_s12 }
  0x94   : > { %p7994_p1 = pnand %p7992_p10, %p11127_p12 }
  0x95   : > { %p7999_p13 = por %p7998_p11, %p7997_p5 }
  0x96   : > { %p7995_p4 = pneg %p7994_p1 }
  0x97   : > { %p8001_p7 = por %p8000_p3, %p7999_p13 }
  0x99   : > { %p8002_p0 = pnand %p8001_p7, %p7995_p4 }
  0x9b   : > { %8005 = shalt.err (!%p8002_p0)
}
  0x9c   : > { %s8006_s16 = scalar_lea.vmem %s8418_s19, 1024  ;;  %s8141_s29 = smov [#allocation7]  }
  0x9d   : > { %p8007_p6 = scmp.ne.s32.totalorder %s8418_s19, %s8006_s16  ;;  %s8011_s10 = sshll.u32 %s8141_s29, 4  ;;  %s8012_s10 = int_to_ptr.vmem [resolvable:$false] %s8011_s10 }
  0x9e   : > { %s8013_s4 = scalar_lea.vmem %s8012_s10, 2048  ;;  %p8014_p10 = scmp.lt.s32.totalorder %s8418_s19, %s8012_s10 }
  0x9f   : > { %p8009_p2 = pnand %p8007_p6, %p11127_p12  ;;  %p8015_p1 = scmp.lt.s32.totalorder %s8013_s4, %s8006_s16 }
  0xa1   : > { %p8010_p8 = pneg %p8009_p2  ;;  %p8016_p5 = por %p8015_p1, %p8014_p10 }
  0xa3   : > { %p8017_p11 = pnand %p8016_p5, %p8010_p8 }
  0xa5   : > { %8020 = shalt.err (!%p8017_p11)
}
  0xa6   : > { %7641 = dma.hbm_to_vmem [thread:$0]  (!%p11128_p9), %s8387_s12, 1024, %s8418_s19, %s8318_s7, %s11123_s20, %s11123_s20, %s11122_s18  }
  0xa7   : > { %s7345_s13 = sshll.u32 %s8133_s24, 8  ;;  %s312_s23 = scalar_lea.vmem [#allocation8], %s7218_s1 }
  0xa8   : > { %s319_s6 = sshll.u32 %s312_s23, 4  ;;  %s8451_s26 = scalar_lea.hbm %s11070_s3, %s7345_s13  ;;  %s8453_s6 = int_to_ptr.vmem [resolvable:$true] %s319_s6 }
  0xa9   : > { %s11129_s27 = sand.u32 1, %s8133_s24   ;;  %s8021_s16 = scalar_lea.hbm %s8451_s26, 256 }
  0xaa   : > { %s8457_s14 = scalar_lea.sflag [#allocation9], %s11129_s27  ;;  %p8022_p4 = scmp.ne.s32.totalorder %s8451_s26, %s8021_s16 }
  0xab   : > { %s8026_s12 = scalar_lea.hbm %s11070_s3, 512  ;;  %p8027_p7 = scmp.lt.u32.totalorder %s8451_s26, %s11070_s3 }
  0xac   : > { %p8024_p13 = pnand %p8022_p4, %p11127_p12  ;;  %p8028_p0 = scmp.lt.u32.totalorder %s8026_s12, %s8021_s16 }
  0xad   : > { %p8030_p2 = scmp.lt.u32.totalorder %s8021_s16, %s8451_s26 }
  0xae   : > { %p8025_p3 = pneg %p8024_p13  ;;  %p8029_p6 = por %p8028_p0, %p8027_p7 }
  0xb0   : > { %p8031_p8 = por %p8030_p2, %p8029_p6 }
  0xb2   : > { %p8032_p10 = pnand %p8031_p8, %p8025_p3 }
  0xb4   : > { %8035 = shalt.err (!%p8032_p10)
}
  0xb5   : > { %s8036_s29 = scalar_lea.vmem %s8453_s6, 256  ;;  %s8142_s10 = smov [#allocation8]  }
  0xb6   : > { %p8037_p1 = scmp.ne.s32.totalorder %s8453_s6, %s8036_s29  ;;  %s8041_s4 = sshll.u32 %s8142_s10, 4  ;;  %s8042_s4 = int_to_ptr.vmem [resolvable:$false] %s8041_s4 }
  0xb7   : > { %s8043_s13 = scalar_lea.vmem %s8042_s4, 512  ;;  %p8044_p4 = scmp.lt.s32.totalorder %s8453_s6, %s8042_s4 }
  0xb8   : > { %p8039_p5 = pnand %p8037_p1, %p11127_p12  ;;  %p8045_p13 = scmp.lt.s32.totalorder %s8043_s13, %s8036_s29 }
  0xba   : > { %p8040_p11 = pneg %p8039_p5  ;;  %p8046_p7 = por %p8045_p13, %p8044_p4 }
  0xbc   : > { %p8047_p0 = pnand %p8046_p7, %p8040_p11 }
  0xbe   : > { %8050 = shalt.err (!%p8047_p0)
}
  0xbf   : > { %7644 = dma.hbm_to_vmem [thread:$0]  (!%p11128_p9), %s8451_s26, 256, %s8453_s6, %s8457_s14, %s11123_s20, %s11123_s20, %s11122_s18  }
  0xc0   : > { %p11130_p12 = scmp.ne.s32.totalorder %s11114_s11, 0 }
  0xc2   : > { %331 = sbr.rel (%p11130_p12) target bundleno = 2061 (0x80d), region = 44 }
  0xc9   : > { %s8487_s17 = sand.u32 1, %s8125_s22   ;;  %p11131_p3 = scmp.ne.s32.totalorder %s11110_s8, 0 }
  0xca   : > { %s8490_s23 = sshll.u32 %s8487_s17, 6  ;;  %s334_s28 = scalar_lea.sflag [#allocation3], %s8487_s17 }
  0xcb   : > { %s8494_s30 = scalar_lea.vmem [#allocation2], %s8490_s23 }
  0xcc   : > { %8096 = dma.done.wait (%p11131_p3), %s334_s28, 1024  }
  0xcd   : > { %8098 = vsyncadd (%p11131_p3), %s334_s28, 4294966272  ;;  %s342_s11 = sand.u32 1, %s8211_s25   ;;  %s8502_s20 = scalar_lea.vmem [#allocation5], %s8490_s23 }
  0xce   : > { %s343_s18 = scalar_lea.sflag [#allocation6], %s342_s11 }
  0xcf   : > { %8100 = dma.done.wait (%p11131_p3), %s343_s18, 2048  }
  0xd0   : > { %8102 = vsyncadd (%p11131_p3), %s343_s18, 4294965248  ;;  %s7225_s6 = sshll.u32 %s8487_s17, 4  ;;  %s8510_s21 = scalar_lea.vmem [#allocation7], %s8490_s23 }
  0xd1   : > { %s361_s26 = scalar_lea.sflag [#allocation9], %s342_s11  ;;  %s8512_s27 = scalar_lea.vmem [#allocation8], %s7225_s6 }
  0xd2   : > { %8104 = dma.done.wait (%p11131_p3), %s361_s26, 256  }
  0xd3   : > { %8106 = vsyncadd (%p11131_p3), %s361_s26, 4294967040  ;;  %p11132_p9 = scmp.eq.s32.totalorder %s8211_s25, 0 }
  0xd5   : > { %8108 = dma.done.wait (%p11132_p9), [#allocation9], 1024   ;;  %p11133_p6 = pmov %p11132_p9 }
  0xd7   : > { %8110 = vsyncadd (%p11133_p6), [#allocation9], 4294966272  ;;  %p11134_p2 = pmov %p11133_p6 }
  0xd9   : > { %8112 = dma.done.wait (%p11134_p2), [#allocation12], 4096   ;;  %p11135_p8 = pmov %p11134_p2 }
  0xda   : > { %v8527_v0 = vld [vmem:[%s8502_s20] sm:$0xff]  ;;  %s8143_s8 = smov 112   ;;  %s8144_s14 = smov 120   ;;  %v8534_v1 = vld [vmem:[%s8502_s20 + $0x8] sm:$0xff]  ;;  %v8545_v2 = vld [vmem:[%s8502_s20 + $0x18] sm:$0xff]  ;;  %v11096_v4 = vmov 0.0   ;;  %v510_v13 = vlaneseq }
  0xdb   : > { %8114 = vsyncadd (%p11135_p8), [#allocation12], 4294963200  ;;  %1649 = vrot.lane.b32.xlu1 %v8527_v0, %s8143_s8  ;;  %1625 = vrot.lane.b32.xlu0 %v8527_v0, %s8144_s14  ;;  %s8145_s16 = smov 104   ;;  %v8548_v3 = vld [vmem:[%s8502_s20 + $0x10] sm:$0xff]  ;;  %v8565_v5 = vld [vmem:[%s8502_s20 + $0x28] sm:$0xff]  ;;  %vm8147_vm0 = vmmov 0  }
  0xdc   : > { %7427 = vmatprep.subr.bf16.mxu0 %v11096_v4  ;;  %7439 = vmatprep.subr.bf16.mxu1 %v11096_v4  ;;  %v8568_v6 = vld [vmem:[%s8502_s20 + $0x20] sm:$0xff]  ;;  %v8583_v7 = vld [vmem:[%s8502_s20 + $0x38] sm:$0xff]  ;;  %v8586_v8 = vld [vmem:[%s8502_s20 + $0x30] sm:$0xff]  ;;  %v8148_v11 = vmov 1983009808   ;;  %v511_v19 = vshrl.u32 %v510_v13, 7 }
  0xdd   : > { %v8601_v9 = vld [vmem:[%s8512_s27 + $0x8] sm:$0xff]  ;;  %v8604_v10 = vld [vmem:[%s8512_s27] sm:$0xff]  ;;  %7435 = vmatprep.mubr.msk.bf16.mxu0 %vm8147_vm0, %v11096_v4  ;;  %7447 = vmatprep.mubr.msk.bf16.mxu1 %vm8147_vm0, %v11096_v4  ;;  %v508_v12 = vunpack.c.l.s4 %v8148_v11  ;;  %v8149_v16 = vmov 1934713408   ;;  %vm4299_vm1 = vcmask 64512   ;;  %vm4524_vm2 = vcmask 523264  }
  0xde   : > { %v540_v17 = vunpack.c.l.s4 %v8149_v16  ;;  %v2801_v22 = vld [vmem:[%s8510_s21] sm:$0xff]  ;;  %v2802_v23 = vld [vmem:[%s8510_s21 + $0x8] sm:$0xff]  ;;  %v2803_v43 = vld [vmem:[%s8510_s21 + $0x10] sm:$0xff]  ;;  %vm5133_vm3 = vcmask 130048   ;;  %s8150_s15 = smov 16   ;;  %s8151_s7 = smov 8  }
  0xdf   : > { %1651 = vrot.lane.b32.xlu1 %v8534_v1, %s8143_s8  ;;  %1627 = vrot.lane.b32.xlu0 %v8534_v1, %s8144_s14  ;;  %v509_v18 = vunpack.c.0.s8 %v508_v12  ;;  %s8152_s12 = smov 24   ;;  %vm7014_vm4 = vcmask 195584   ;;  %vm7023_vm5 = vcmask 261120   ;;  %s10967_s19 = scalar_lea.vmem [#allocation13], %s8490_s23 }
  0xe0   : > { %v541_v26 = vunpack.c.0.s8 %v540_v17  ;;  %v2804_v17 = vld [vmem:[%s8510_s21 + $0x18] sm:$0xff]  ;;  %s7046_s1 = sshll.u32 %s10967_s19, 4  ;;  %s7346_s29 = sshll.u32 %s8211_s25, 10  ;;  %s11009_s1 = int_to_ptr.vmem [resolvable:$true] %s7046_s1 }
  0xe1   : > { %v8628_v27 = vsub.s32 %v509_v18, %v511_v19  ;;  %s11160_s13 = sld [smem:[#allocation29_spill]]  ;;  %s7033_s25 = scalar_lea.sflag [#allocation4], %s8487_s17 }
  0xe2   : > { %v8635_v38 = vsub.s32 %v541_v26, %v511_v19  ;;  %s8051_s28 = scalar_lea.vmem %s11009_s1, 1024  ;;  %p11161_p1 = scmp.ne.s32.totalorder %s11111_s9, 0 }
  0xe3   : > { %1675 = vrot.lane.b32.xlu1 %v8534_v1, %s8145_s16  ;;  %1673 = vrot.lane.b32.xlu0 %v8527_v0, %s8145_s16  ;;  %p8052_p10 = scmp.ne.s32.totalorder %s11009_s1, %s8051_s28 }
  0xe5   : > { %p8053_p5 = pnand %p8052_p10, %p11161_p1 }
  0xe7   : > { %1631 = vrot.lane.b32.xlu1 %v8545_v2, %s8144_s14  ;;  %1629 = vrot.lane.b32.xlu0 %v8548_v3, %s8144_s14  ;;  %s11019_s23 = scalar_lea.hbm %s11160_s13, %s7346_s29  ;;  %p8054_p11 = pneg %p8053_p5 }
  0xeb   : > { %1655 = vrot.lane.b32.xlu1 %v8545_v2, %s8143_s8  ;;  %1653 = vrot.lane.b32.xlu0 %v8548_v3, %s8143_s8 }
  0xef   : > { %1679 = vrot.lane.b32.xlu1 %v8545_v2, %s8145_s16  ;;  %1677 = vrot.lane.b32.xlu0 %v8548_v3, %s8145_s16 }
  0xf3   : > { %1635 = vrot.lane.b32.xlu1 %v8565_v5, %s8144_s14  ;;  %1633 = vrot.lane.b32.xlu0 %v8568_v6, %s8144_s14 }
  0xf7   : > { %1659 = vrot.lane.b32.xlu1 %v8565_v5, %s8143_s8  ;;  %1657 = vrot.lane.b32.xlu0 %v8568_v6, %s8143_s8 }
  0xfb   : > { %1683 = vrot.lane.b32.xlu1 %v8565_v5, %s8145_s16  ;;  %1681 = vrot.lane.b32.xlu0 %v8568_v6, %s8145_s16 }
  0xff   : > { %1639 = vrot.lane.b32.xlu1 %v8583_v7, %s8144_s14  ;;  %1637 = vrot.lane.b32.xlu0 %v8586_v8, %s8144_s14 }
 0x103   : > { %1663 = vrot.lane.b32.xlu1 %v8583_v7, %s8143_s8  ;;  %1661 = vrot.lane.b32.xlu0 %v8586_v8, %s8143_s8 }
 0x107   : > { %1687 = vrot.lane.b32.xlu1 %v8583_v7, %s8145_s16  ;;  %1685 = vrot.lane.b32.xlu0 %v8586_v8, %s8145_s16 }
 0x10b   : > { %3999 = vrot.lane.b32.xlu1 %v8601_v9, %s8144_s14  ;;  %3997 = vrot.lane.b32.xlu0 %v8604_v10, %s8144_s14 }
 0x10f   : > { %4005 = vrot.lane.b32.xlu1 %v8601_v9, %s8143_s8  ;;  %4003 = vrot.lane.b32.xlu0 %v8604_v10, %s8143_s8 }
 0x113   : > { %4011 = vrot.lane.b32.xlu1 %v8601_v9, %s8145_s16  ;;  %4009 = vrot.lane.b32.xlu0 %v8604_v10, %s8145_s16 }
 0x117   : > { %2817 = vrot.lane.b32.xlu1 %v2801_v22, %s8144_s14  ;;  %2819 = vrot.lane.b32.xlu0 %v2802_v23, %s8144_s14 }
 0x11b   : > { %2841 = vrot.lane.b32.xlu1 %v2801_v22, %s8143_s8  ;;  %2865 = vrot.lane.b32.xlu0 %v2801_v22, %s8145_s16 }
 0x11f   : > { %2843 = vrot.lane.b32.xlu1 %v2802_v23, %s8143_s8  ;;  %2821 = vrot.lane.b32.xlu0 %v2803_v43, %s8144_s14 }
 0x123   : > { %2867 = vrot.lane.b32.xlu1 %v2802_v23, %s8145_s16  ;;  %2845 = vrot.lane.b32.xlu0 %v2803_v43, %s8143_s8 }
 0x127   : > { %2823 = vrot.lane.b32.xlu1 %v2804_v17, %s8144_s14  ;;  %2869 = vrot.lane.b32.xlu0 %v2803_v43, %s8145_s16 }
 0x12b   : > { %2847 = vrot.lane.b32.xlu1 %v2804_v17, %s8143_s8 }
 0x12f   : > { %2871 = vrot.lane.b32.xlu1 %v2804_v17, %s8145_s16 }
 0x14d   : > { %v1650_v14 = vpop.permute.xlu1 %1649  ;;  %v1626_v15 = vpop.permute.xlu0 %1625 }
 0x14e   : > { %v1697_v28 = vcombine.low %v8527_v0, %v1650_v14  ;;  %v1698_v29 = vcombine.high %v8527_v0, %v1650_v14 }
 0x150   : > { %v1705_v44 = vrot.slane %v1697_v28, %v8628_v27  ;;  %v1712_v45 = vrot.slane %v1698_v29, %v8628_v27 }
 0x151   : > { %v1652_v20 = vpop.permute.xlu1 %1651  ;;  %v1628_v21 = vpop.permute.xlu0 %1627 }
 0x152   : > { %v1765_v24 = vcombine.low %v8534_v1, %v1652_v20  ;;  %v1766_v25 = vcombine.high %v8534_v1, %v1652_v20 }
 0x154   : > { %v1773_v36 = vrot.slane %v1765_v24, %v8628_v27  ;;  %v1780_v37 = vrot.slane %v1766_v25, %v8628_v27 }
 0x155   : > { %v1676_v30 = vpop.permute.xlu1 %1675  ;;  %v1674_v31 = vpop.permute.xlu0 %1673 }
 0x156   : > { %v1781_v32 = vcombine.low %v1628_v21, %v1676_v30  ;;  %v1782_v33 = vcombine.high %v1628_v21, %v1676_v30  ;;  %v1713_v34 = vcombine.low %v1626_v15, %v1674_v31  ;;  %v1714_v35 = vcombine.high %v1626_v15, %v1674_v31 }
 0x158   : > { %v1789_v39 = vrot.slane %v1781_v32, %v8628_v27  ;;  %v1796_v40 = vrot.slane %v1782_v33, %v8628_v27  ;;  %v1721_v41 = vrot.slane %v1713_v34, %v8628_v27  ;;  %v1728_v42 = vrot.slane %v1714_v35, %v8628_v27 }
 0x159   : > { %v1632_v46 = vpop.permute.xlu1 %1631  ;;  %v1630_v47 = vpop.permute.xlu0 %1629 }
 0x15a   : > { %v1797_v48 = vcombine.low %v1773_v36, %v1789_v39  ;;  %v1798_v49 = vcombine.high %v1773_v36, %v1789_v39  ;;  %v1813_v50 = vcombine.low %v1780_v37, %v1796_v40  ;;  %v1814_v51 = vcombine.high %v1780_v37, %v1796_v40 }
 0x15b   : > { %v1729_v52 = vcombine.low %v1705_v44, %v1721_v41  ;;  %v1730_v53 = vcombine.high %v1705_v44, %v1721_v41  ;;  %v1745_v54 = vcombine.low %v1712_v45, %v1728_v42  ;;  %v1746_v55 = vcombine.high %v1712_v45, %v1728_v42 }
 0x15c   : > { %v1805_v56 = vrot.slane %v1797_v48, %v8635_v38  ;;  %v1812_v57 = vrot.slane %v1798_v49, %v8635_v38  ;;  %v1821_v0 = vrot.slane %v1813_v50, %v8635_v38  ;;  %v1828_v1 = vrot.slane %v1814_v51, %v8635_v38  ;;  %v8706_v50 = vld [vmem:[%s8510_s21 + $0x28] sm:$0xff] }
 0x15d   : > { %v1737_v58 = vrot.slane %v1729_v52, %v8635_v38  ;;  %v1744_v59 = vrot.slane %v1730_v53, %v8635_v38  ;;  %v1753_v60 = vrot.slane %v1745_v54, %v8635_v38  ;;  %v1760_v61 = vrot.slane %v1746_v55, %v8635_v38  ;;  %v1656_v62 = vpop.permute.xlu1 %1655  ;;  %v1654_v63 = vpop.permute.xlu0 %1653  ;;  %2827 = vrot.lane.b32.xlu0 %v8706_v50, %s8144_s14 }
 0x15e   : > { %v2309_v11 = vcombine.low %v1805_v56, %v1812_v57  ;;  %v7247_v12 = vcombine.high %v1805_v56, %v1812_v57  ;;  %v1901_v18 = vcombine.low %v8545_v2, %v1656_v62  ;;  %v1902_v19 = vcombine.high %v8545_v2, %v1656_v62 }
 0x15f   : > { %v2241_v13 = vcombine.low %v1737_v58, %v1744_v59  ;;  %v7245_v14 = vcombine.high %v1737_v58, %v1744_v59  ;;  %v2257_v15 = vcombine.low %v1753_v60, %v1760_v61  ;;  %v7246_v16 = vcombine.high %v1753_v60, %v1760_v61 }
 0x160   : > { %v1833_v20 = vcombine.low %v8548_v3, %v1654_v63  ;;  %v1834_v21 = vcombine.high %v8548_v3, %v1654_v63  ;;  %v2325_v29 = vcombine.low %v1821_v0, %v1828_v1  ;;  %v7248_v2 = vcombine.high %v1821_v0, %v1828_v1 }
 0x161   : > { %v1680_v22 = vpop.permute.xlu1 %1679  ;;  %v1678_v24 = vpop.permute.xlu0 %1677  ;;  %v8663_v25 = vrot.slane %v2241_v13, %v8628_v27  ;;  %v8666_v23 = vrot.slane %v7245_v14, %v8628_v27  ;;  %v8669_v26 = vrot.slane %v2257_v15, %v8628_v27  ;;  %v8672_v28 = vrot.slane %v7246_v16, %v8628_v27  ;;  %v8732_v14 = vld [vmem:[%s8510_s21 + $0x20] sm:$0xff] }
 0x162   : > { %v1909_v30 = vrot.slane %v1901_v18, %v8628_v27  ;;  %v1916_v3 = vrot.slane %v1902_v19, %v8628_v27  ;;  %v1917_v31 = vcombine.low %v1632_v46, %v1680_v22  ;;  %v1918_v32 = vcombine.high %v1632_v46, %v1680_v22  ;;  %2873 = vrot.lane.b32.xlu0 %v8732_v14, %s8145_s16 }
 0x163   : > { %v1849_v33 = vcombine.low %v1630_v47, %v1678_v24  ;;  %v1850_v34 = vcombine.high %v1630_v47, %v1678_v24  ;;  %v1841_v35 = vrot.slane %v1833_v20, %v8628_v27  ;;  %v1848_v36 = vrot.slane %v1834_v21, %v8628_v27  ;;  %v8747_v24 = vld [vmem:[%s8510_s21 + $0x30] sm:$0xff]  ;;  %2825 = vrot.lane.b32.xlu1 %v8732_v14, %s8144_s14 }
 0x164   : > { %v2273_v37 = vcombine.low %v8663_v25, %v8666_v23  ;;  %v2289_v39 = vcombine.low %v8669_v26, %v8672_v28  ;;  %v1925_v40 = vrot.slane %v1917_v31, %v8628_v27  ;;  %v1932_v41 = vrot.slane %v1918_v32, %v8628_v27 }
 0x165   : > { %v1857_v42 = vrot.slane %v1849_v33, %v8628_v27  ;;  %v1864_v44 = vrot.slane %v1850_v34, %v8628_v27  ;;  %v8688_v43 = vpop.permute.xlu1 %1635  ;;  %v8690_v45 = vpop.permute.xlu0 %1633  ;;  %v8693_v46 = vrot.slane %v2309_v11, %v8628_v27  ;;  %v8696_v47 = vrot.slane %v7247_v12, %v8628_v27 }
 0x166   : > { %v8699_v48 = vrot.slane %v2325_v29, %v8628_v27  ;;  %v8702_v49 = vrot.slane %v7248_v2, %v8628_v27  ;;  %v1933_v51 = vcombine.low %v1909_v30, %v1925_v40  ;;  %v1934_v52 = vcombine.high %v1909_v30, %v1925_v40  ;;  %2829 = vrot.lane.b32.xlu0 %v8747_v24, %s8144_s14 }
 0x167   : > { %v1949_v53 = vcombine.low %v1916_v3, %v1932_v41  ;;  %v1950_v54 = vcombine.high %v1916_v3, %v1932_v41  ;;  %v1865_v55 = vcombine.low %v1841_v35, %v1857_v42  ;;  %v1866_v56 = vcombine.high %v1841_v35, %v1857_v42  ;;  %2849 = vrot.lane.b32.xlu1 %v8732_v14, %s8143_s8 }
 0x168   : > { %v1881_v57 = vcombine.low %v1848_v36, %v1864_v44  ;;  %v1882_v58 = vcombine.high %v1848_v36, %v1864_v44  ;;  %v8711_v59 = vrot.slane %v1933_v51, %v8635_v38  ;;  %v8714_v60 = vrot.slane %v1934_v52, %v8635_v38 }
 0x169   : > { %v8717_v61 = vrot.slane %v1949_v53, %v8635_v38  ;;  %v8720_v62 = vrot.slane %v1950_v54, %v8635_v38  ;;  %v1660_v63 = vpop.permute.xlu1 %1659  ;;  %v1658_v0 = vpop.permute.xlu0 %1657  ;;  %v1873_v1 = vrot.slane %v1865_v55, %v8635_v38  ;;  %v1880_v11 = vrot.slane %v1866_v56, %v8635_v38 }
 0x16a   : > { %v8725_v12 = vrot.slane %v1881_v57, %v8635_v38  ;;  %v8728_v13 = vrot.slane %v1882_v58, %v8635_v38  ;;  %v2445_v15 = vcombine.low %v8711_v59, %v8714_v60  ;;  %v7251_v16 = vcombine.high %v8711_v59, %v8714_v60  ;;  %2853 = vrot.lane.b32.xlu0 %v8747_v24, %s8143_s8 }
 0x16b   : > { %v2281_v18 = vrot.slane %v2273_v37, %v8635_v38  ;;  %v2297_v19 = vrot.slane %v2289_v39, %v8635_v38  ;;  %v2461_v20 = vcombine.low %v8717_v61, %v8720_v62  ;;  %v7252_v17 = vcombine.high %v8717_v61, %v8720_v62  ;;  %2851 = vrot.lane.b32.xlu1 %v8706_v50, %s8143_s8 }
 0x16c   : > { %v2377_v21 = vcombine.low %v1873_v1, %v1880_v11  ;;  %v7249_v22 = vcombine.high %v1873_v1, %v1880_v11  ;;  %v2037_v29 = vcombine.low %v8565_v5, %v1660_v63  ;;  %v2038_v2 = vcombine.high %v8565_v5, %v1660_v63 }
 0x16d   : > { %v1969_v30 = vcombine.low %v8568_v6, %v1658_v0  ;;  %v1970_v3 = vcombine.high %v8568_v6, %v1658_v0  ;;  %v1684_v31 = vpop.permute.xlu1 %1683  ;;  %v1682_v32 = vpop.permute.xlu0 %1681  ;;  %v2393_v33 = vcombine.low %v8725_v12, %v8728_v13  ;;  %v7250_v34 = vcombine.high %v8725_v12, %v8728_v13 }
 0x16e   : > { %v2341_v35 = vcombine.low %v8693_v46, %v8696_v47  ;;  %v2357_v36 = vcombine.low %v8699_v48, %v8702_v49  ;;  %v2045_v5 = vrot.slane %v2037_v29, %v8628_v27  ;;  %v2052_v6 = vrot.slane %v2038_v2, %v8628_v27  ;;  %2877 = vrot.lane.b32.xlu0 %v8747_v24, %s8145_s16 }
 0x16f   : > { %v2305_v37 = vcombine.low %v2281_v18, %v2297_v19  ;;  %v2306_v39 = vcombine.high %v2281_v18, %v2297_v19  ;;  %v2053_v42 = vcombine.low %v8688_v43, %v1684_v31  ;;  %v2054_v44 = vcombine.high %v8688_v43, %v1684_v31  ;;  %2875 = vrot.lane.b32.xlu1 %v8706_v50, %s8145_s16 }
 0x170   : > { %v2349_v40 = vrot.slane %v2341_v35, %v8635_v38  ;;  %v2365_v41 = vrot.slane %v2357_v36, %v8635_v38  ;;  %v1977_v51 = vrot.slane %v1969_v30, %v8628_v27  ;;  %v1984_v52 = vrot.slane %v1970_v3, %v8628_v27 }
 0x171   : > { %v1985_v53 = vcombine.low %v8690_v45, %v1682_v32  ;;  %v1986_v54 = vcombine.high %v8690_v45, %v1682_v32  ;;  %v8775_v55 = vpop.permute.xlu1 %1639  ;;  %v8777_v56 = vpop.permute.xlu0 %1637  ;;  %v2061_v63 = vrot.slane %v2053_v42, %v8628_v27  ;;  %v2068_v0 = vrot.slane %v2054_v44, %v8628_v27 }
 0x172   : > { %v2373_v57 = vcombine.low %v2349_v40, %v2365_v41  ;;  %v2374_v58 = vcombine.high %v2349_v40, %v2365_v41  ;;  %v8786_v11 = vrot.slane %v2377_v21, %v8628_v27  ;;  %v8789_v45 = vrot.slane %v7249_v22, %v8628_v27 }
 0x173   : > { %v1993_v43 = vrot.slane %v1985_v53, %v8628_v27  ;;  %v2000_v1 = vrot.slane %v1986_v54, %v8628_v27  ;;  %v2069_v18 = vcombine.low %v2045_v5, %v2061_v63  ;;  %v2070_v19 = vcombine.high %v2045_v5, %v2061_v63 }
 0x174   : > { %v2785_v12 = vpack.c.bf16 %v2373_v57, %v2305_v37  ;;  %v2789_v13 = vpack.c.bf16 %v2374_v58, %v2306_v39  ;;  %v2085_v29 = vcombine.low %v2052_v6, %v2068_v0  ;;  %v2086_v2 = vcombine.high %v2052_v6, %v2068_v0 }
 0x175   : > { %v2001_v30 = vcombine.low %v1977_v51, %v1993_v43  ;;  %v2002_v3 = vcombine.high %v1977_v51, %v1993_v43  ;;  %v1664_v31 = vpop.permute.xlu1 %1663  ;;  %v1662_v32 = vpop.permute.xlu0 %1661  ;;  %v8796_v22 = vrot.slane %v2069_v18, %v8635_v38  ;;  %v8799_v36 = vrot.slane %v2070_v19, %v8635_v38 }
 0x176   : > { %v4304_v35 = vsel %vm4299_vm1, %v2785_v12, 0  ;;  %v4360_v21 = vsel %vm4299_vm1, %v2789_v13, 0  ;;  %v8804_v5 = vrot.slane %v2085_v29, %v8635_v38  ;;  %v8807_v6 = vrot.slane %v2086_v2, %v8635_v38  ;;  %v8847_v13 = vld [vmem:[%s8510_s21 + $0x38] sm:$0xff]  ;;  %v8863_v29 = vld [vmem:[%s8494_s30 + $0x8] sm:$0xff] }
 0x177   : > { %7428 = vmatpush3.bf16.xpose.msra.mxu0 %v4304_v35  ;;  %7440 = vmatpush3.bf16.xpose.msra.mxu1 %v4360_v21  ;;  %v8810_v37 = vrot.slane %v2001_v30, %v8635_v38  ;;  %v8813_v39 = vrot.slane %v2002_v3, %v8635_v38  ;;  %v2017_v40 = vcombine.low %v1984_v52, %v2000_v1 }
 0x178   : > { %7429 = vmatprep.subr.bf16.mxu0 %v11096_v4  ;;  %v8817_v41 = vrot.slane %v2393_v33, %v8628_v27  ;;  %v8820_v42 = vrot.slane %v7250_v34, %v8628_v27  ;;  %v2018_v53 = vcombine.high %v1984_v52, %v2000_v1  ;;  %v2173_v54 = vcombine.low %v8583_v7, %v1664_v31 }
 0x179   : > { %7441 = vmatprep.subr.bf16.mxu1 %v11096_v4  ;;  %v1688_v57 = vpop.permute.xlu1 %1687  ;;  %v8833_v58 = vrot.slane %v2017_v40, %v8635_v38  ;;  %v2174_v63 = vcombine.high %v8583_v7, %v1664_v31  ;;  %v1686_v0 = vpop.permute.xlu0 %1685  ;;  %v2513_v43 = vcombine.low %v8810_v37, %v8813_v39  ;;  %v7253_v1 = vcombine.high %v8810_v37, %v8813_v39 }
 0x17a   : > { %v8839_v52 = vrot.slane %v2018_v53, %v8635_v38  ;;  %v2105_v12 = vcombine.low %v8586_v8, %v1662_v32  ;;  %11136 = vst [vmem:[#allocation25_spill] sm:$0xff] %v8847_v13  ;;  %v2106_v7 = vcombine.high %v8586_v8, %v1662_v32  ;;  %v2409_v50 = vcombine.low %v8786_v11, %v8789_v45 }
 0x17b   : > { %v2425_v18 = vcombine.low %v8817_v41, %v8820_v42  ;;  %v8860_v19 = vrot.slane %v2445_v15, %v8628_v27  ;;  %v2181_v24 = vrot.slane %v2173_v54, %v8628_v27  ;;  %v2188_v30 = vrot.slane %v2174_v63, %v8628_v27  ;;  %2831 = vrot.lane.b32.xlu1 %v8847_v13, %s8144_s14 }
 0x17c   : > { %v2529_v2 = vcombine.low %v8833_v58, %v8839_v52  ;;  %v7254_v8 = vcombine.high %v8833_v58, %v8839_v52  ;;  %v2417_v3 = vrot.slane %v2409_v50, %v8635_v38  ;;  %v8877_v15 = vrot.slane %v7251_v16, %v8628_v27  ;;  %435 = vrot.lane.b32.xlu0 %v8863_v29, %s8144_s14 }
 0x17d   : > { %v2433_v31 = vrot.slane %v2425_v18, %v8635_v38  ;;  %v8883_v32 = vrot.slane %v2461_v20, %v8628_v27  ;;  %v8885_v35 = vpop.permute.xlu1 %3999  ;;  %v8893_v21 = vrot.slane %v7252_v17, %v8628_v27  ;;  %v2189_v59 = vcombine.low %v8775_v55, %v1688_v57  ;;  %v8905_v62 = vpop.permute.xlu0 %3997 }
 0x17e   : > { %v2190_v60 = vcombine.high %v8775_v55, %v1688_v57  ;;  %v2121_v16 = vcombine.low %v8777_v56, %v1686_v0  ;;  %v2113_v20 = vrot.slane %v2105_v12, %v8628_v27  ;;  %v2120_v40 = vrot.slane %v2106_v7, %v8628_v27 }
 0x17f   : > { %v2477_v53 = vcombine.low %v8860_v19, %v8877_v15  ;;  %v2122_v61 = vcombine.high %v8777_v56, %v1686_v0  ;;  %v2493_v17 = vcombine.low %v8883_v32, %v8893_v21  ;;  %v2197_v55 = vrot.slane %v2189_v59, %v8628_v27  ;;  %2855 = vrot.lane.b32.xlu1 %v8847_v13, %s8143_s8  ;;  %v8917_v56 = vld [vmem:[%s8494_s30] sm:$0xff] }
 0x180   : > { %v2204_v54 = vrot.slane %v2190_v60, %v8628_v27  ;;  %v2129_v57 = vrot.slane %v2121_v16, %v8628_v27  ;;  %v2441_v63 = vcombine.low %v2417_v3, %v2433_v31  ;;  %v2442_v7 = vcombine.high %v2417_v3, %v2433_v31  ;;  %481 = vrot.lane.b32.xlu0 %v8917_v56, %s8145_s16  ;;  %v8923_v31 = vld [vmem:[%s8494_s30 + $0x10] sm:$0xff] }
 0x181   : > { %v2485_v12 = vrot.slane %v2477_v53, %v8635_v38  ;;  %v2136_v50 = vrot.slane %v2122_v61, %v8628_v27  ;;  %v2501_v0 = vrot.slane %v2493_v17, %v8635_v38  ;;  %v2205_v18 = vcombine.low %v2181_v24, %v2197_v55  ;;  %v4006_v3 = vpop.permute.xlu1 %4005 }
 0x182   : > { %v2206_v59 = vcombine.high %v2181_v24, %v2197_v55  ;;  %v2221_v34 = vcombine.low %v2188_v30, %v2204_v54  ;;  %v2222_v60 = vcombine.high %v2188_v30, %v2204_v54  ;;  %v2137_v16 = vcombine.low %v2113_v20, %v2129_v57  ;;  %v4004_v54 = vpop.permute.xlu0 %4003 }
 0x183   : > { %v2138_v33 = vcombine.high %v2113_v20, %v2129_v57  ;;  %v2153_v53 = vcombine.low %v2120_v40, %v2136_v50  ;;  %v2509_v61 = vcombine.low %v2485_v12, %v2501_v0  ;;  %v2510_v51 = vcombine.high %v2485_v12, %v2501_v0  ;;  %2879 = vrot.lane.b32.xlu1 %v8847_v13, %s8145_s16 }
 0x184   : > { %v8926_v44 = vrot.slane %v2205_v18, %v8635_v38  ;;  %v8929_v17 = vrot.slane %v2206_v59, %v8635_v38  ;;  %v8932_v24 = vrot.slane %v2221_v34, %v8635_v38  ;;  %v8935_v55 = vrot.slane %v2222_v60, %v8635_v38  ;;  %437 = vrot.lane.b32.xlu0 %v8923_v31, %s8144_s14 }
 0x185   : > { %v8938_v30 = vrot.slane %v2137_v16, %v8635_v38  ;;  %v8941_v20 = vrot.slane %v2138_v33, %v8635_v38  ;;  %v2786_v57 = vpack.c.bf16 %v2509_v61, %v2441_v63  ;;  %v2790_v12 = vpack.c.bf16 %v2510_v51, %v2442_v7 }
 0x186   : > { %v4083_v0 = vcombine.low %v8601_v9, %v4006_v3  ;;  %v4084_v34 = vcombine.high %v8601_v9, %v4006_v3  ;;  %v2154_v60 = vcombine.high %v2120_v40, %v2136_v50  ;;  %v8960_v7 = vrot.slane %v2153_v53, %v8635_v38 }
 0x187   : > { %v4307_v63 = vsel %vm4299_vm1, %v2786_v57, 0  ;;  %v4363_v51 = vsel %vm4299_vm1, %v2790_v12, 0  ;;  %v2649_v3 = vcombine.low %v8938_v30, %v8941_v20  ;;  %v4015_v61 = vcombine.low %v8604_v10, %v4004_v54  ;;  %433 = vrot.lane.b32.xlu1 %v8917_v56, %s8144_s14 }
 0x188   : > { %7430 = vmatpush3.bf16.xpose.msra.mxu0 %v4307_v63  ;;  %7442 = vmatpush3.bf16.xpose.msra.mxu1 %v4363_v51  ;;  %v8963_v16 = vrot.slane %v2154_v60, %v8635_v38  ;;  %v4091_v50 = vrot.slane %v4083_v0, %v8628_v27  ;;  %v8977_v53 = vrot.slane %v2513_v43, %v8628_v27  ;;  %v4012_v63 = vpop.permute.xlu1 %4011  ;;  %v4010_v51 = vpop.permute.xlu0 %4009 }
 0x189   : > { %7431 = vmatprep.subr.bf16.mxu0 %v11096_v4  ;;  %7443 = vmatprep.subr.bf16.mxu1 %v11096_v4  ;;  %v4098_v57 = vrot.slane %v4084_v34, %v8628_v27  ;;  %v4016_v12 = vcombine.high %v8604_v10, %v4004_v54  ;;  %v8985_v0 = vrot.slane %v7253_v1, %v8628_v27 }
 0x18a   : > { %v8991_v60 = vrot.slane %v2529_v2, %v8628_v27  ;;  %v4023_v43 = vrot.slane %v4015_v61, %v8628_v27  ;;  %v9002_v37 = vrot.slane %v7254_v8, %v8628_v27  ;;  %v11137_v39 = vcombine.low %v8796_v22, %v8799_v36  ;;  %461 = vrot.lane.b32.xlu0 %v8923_v31, %s8143_s8 }
 0x18b   : > { %v2545_v2 = vcombine.low %v8977_v53, %v8985_v0  ;;  %v11138_v54 = vcombine.high %v8796_v22, %v8799_v36  ;;  %v11139_v58 = vcombine.low %v8804_v5, %v8807_v6  ;;  %v11140_v8 = vcombine.high %v8804_v5, %v8807_v6  ;;  %457 = vrot.lane.b32.xlu1 %v8917_v56, %s8143_s8  ;;  %v9056_v56 = vld [vmem:[%s8494_s30 + $0x20] sm:$0xff] }
 0x18c   : > { %v9008_v1 = vrot.slane %v11137_v39, %v8628_v27  ;;  %v2561_v39 = vcombine.low %v8991_v60, %v9002_v37  ;;  %v4099_v9 = vcombine.low %v8885_v35, %v4012_v63  ;;  %v4100_v22 = vcombine.high %v8885_v35, %v4012_v63 }
 0x18d   : > { %v9018_v34 = vrot.slane %v11138_v54, %v8628_v27  ;;  %v9024_v52 = vrot.slane %v11139_v58, %v8628_v27  ;;  %v9030_v61 = vrot.slane %v11140_v8, %v8628_v27  ;;  %v4031_v36 = vcombine.low %v8905_v62, %v4010_v51 }
 0x18e   : > { %v2553_v54 = vrot.slane %v2545_v2, %v8635_v38  ;;  %v4032_v6 = vcombine.high %v8905_v62, %v4010_v51  ;;  %v2569_v8 = vrot.slane %v2561_v39, %v8635_v38  ;;  %v4107_v35 = vrot.slane %v4099_v9, %v8628_v27  ;;  %485 = vrot.lane.b32.xlu0 %v8923_v31, %s8145_s16 }
 0x18f   : > { %v2613_v58 = vcombine.low %v9008_v1, %v9018_v34  ;;  %v2629_v5 = vcombine.low %v9024_v52, %v9030_v61  ;;  %v4114_v63 = vrot.slane %v4100_v22, %v8628_v27  ;;  %v4039_v59 = vrot.slane %v4031_v36, %v8628_v27  ;;  %459 = vrot.lane.b32.xlu1 %v8863_v29, %s8143_s8 }
 0x190   : > { %v4030_v2 = vrot.slane %v4016_v12, %v8628_v27  ;;  %v4046_v51 = vrot.slane %v4032_v6, %v8628_v27  ;;  %v2577_v39 = vcombine.low %v2553_v54, %v2569_v8  ;;  %v2578_v18 = vcombine.high %v2553_v54, %v2569_v8 }
 0x191   : > { %v2621_v33 = vrot.slane %v2613_v58, %v8635_v38  ;;  %v2637_v62 = vrot.slane %v2629_v5, %v8635_v38  ;;  %v4115_v9 = vcombine.low %v4091_v50, %v4107_v35  ;;  %v4116_v10 = vcombine.high %v4091_v50, %v4107_v35 }
 0x192   : > { %v4131_v36 = vcombine.low %v4098_v57, %v4114_v63  ;;  %v4132_v4 = vcombine.high %v4098_v57, %v4114_v63  ;;  %v4047_v58 = vcombine.low %v4023_v43, %v4039_v59  ;;  %v4048_v5 = vcombine.high %v4023_v43, %v4039_v59  ;;  %441 = vrot.lane.b32.xlu0 %v9056_v56, %s8144_s14 }
 0x193   : > { %v2645_v22 = vcombine.low %v2621_v33, %v2637_v62  ;;  %v2646_v40 = vcombine.high %v2621_v33, %v2637_v62  ;;  %v4123_v31 = vrot.slane %v4115_v9, %v8635_v38  ;;  %v4130_v12 = vrot.slane %v4116_v10, %v8635_v38  ;;  %483 = vrot.lane.b32.xlu1 %v8863_v29, %s8145_s16 }
 0x194   : > { %v4139_v50 = vrot.slane %v4131_v36, %v8635_v38  ;;  %v4146_v33 = vrot.slane %v4132_v4, %v8635_v38  ;;  %v4055_v35 = vrot.slane %v4047_v58, %v8635_v38  ;;  %v4062_v63 = vrot.slane %v4048_v5, %v8635_v38 }
 0x195   : > { %v2787_v6 = vpack.c.bf16 %v2645_v22, %v2577_v39  ;;  %v2791_v54 = vpack.c.bf16 %v2646_v40, %v2578_v18  ;;  %v4219_v57 = vcombine.low %v4123_v31, %v4130_v12  ;;  %v7279_v8 = vcombine.high %v4123_v31, %v4130_v12  ;;  %v420_v39 = vld [vmem:[%s8494_s30 + $0x18] sm:$0xff] }
 0x196   : > { %v4235_v43 = vcombine.low %v4139_v50, %v4146_v33  ;;  %v7280_v62 = vcombine.high %v4139_v50, %v4146_v33  ;;  %v7258_v18 = vcombine.high %v8960_v7, %v8963_v16  ;;  %v4063_v4 = vcombine.low %v4030_v2, %v4046_v51  ;;  %465 = vrot.lane.b32.xlu0 %v9056_v56, %s8143_s8 }
 0x197   : > { %v4310_v10 = vsel %vm4299_vm1, %v2787_v6, 0  ;;  %v4366_v59 = vsel %vm4299_vm1, %v2791_v54, 0  ;;  %v9078_v40 = vrot.slane %v2649_v3, %v8628_v27  ;;  %v9082_v9 = vrot.slane %v4219_v57, %v8628_v27  ;;  %439 = vrot.lane.b32.xlu1 %v420_v39, %s8144_s14 }
 0x198   : > { %7432 = vmatpush3.bf16.xpose.msra.mxu0 %v4310_v10  ;;  %7444 = vmatpush3.bf16.xpose.msra.mxu1 %v4366_v59  ;;  %v9085_v22 = vrot.slane %v7279_v8, %v8628_v27  ;;  %v4064_v29 = vcombine.high %v4030_v2, %v4046_v51  ;;  %v4151_v36 = vcombine.low %v4055_v35, %v4062_v63  ;;  %v11141_v31 = vmov 0.0  }
 0x199   : > { %7433 = vmatprep.subr.bf16.mxu0 %v11141_v31  ;;  %v9089_v12 = vrot.slane %v4235_v43, %v8628_v27  ;;  %v4071_v58 = vrot.slane %v4063_v4, %v8635_v38  ;;  %v7277_v5 = vcombine.high %v4055_v35, %v4062_v63  ;;  %7445 = vmatprep.subr.bf16.mxu1 %v11141_v31 }
 0x19a   : > { %v11142_v3 = vcombine.high %v8938_v30, %v8941_v20  ;;  %v9100_v54 = vrot.slane %v7280_v62, %v8628_v27  ;;  %v4078_v2 = vrot.slane %v4064_v29, %v8635_v38  ;;  %v9104_v51 = vrot.slane %v4151_v36, %v8628_v27  ;;  %489 = vrot.lane.b32.xlu0 %v9056_v56, %s8145_s16 }
 0x19b   : > { %v11143_v50 = vcombine.low %v8960_v7, %v8963_v16  ;;  %v9114_v30 = vrot.slane %v7277_v5, %v8628_v27  ;;  %v9117_v20 = vrot.slane %v7258_v18, %v8628_v27  ;;  %v11144_v8 = vcombine.low %v8926_v44, %v8929_v17  ;;  %463 = vrot.lane.b32.xlu1 %v420_v39, %s8143_s8 }
 0x19c   : > { %v9097_v6 = vrot.slane %v11142_v3, %v8628_v27  ;;  %v4167_v7 = vcombine.low %v4071_v58, %v4078_v2  ;;  %v7278_v16 = vcombine.high %v4071_v58, %v4078_v2  ;;  %v11145_v63 = vcombine.high %v8926_v44, %v8929_v17 }
 0x19d   : > { %v9110_v33 = vrot.slane %v11143_v50, %v8628_v27  ;;  %v9125_v35 = vrot.slane %v11144_v8, %v8628_v27  ;;  %v11146_v59 = vcombine.low %v8932_v24, %v8935_v55  ;;  %v11147_v4 = vcombine.high %v8932_v24, %v8935_v55 }
 0x19e   : > { %v2681_v57 = vcombine.low %v9078_v40, %v9097_v6  ;;  %v9133_v10 = vrot.slane %v11145_v63, %v8628_v27  ;;  %v9151_v44 = vrot.slane %v4167_v7, %v8628_v27  ;;  %v9154_v17 = vrot.slane %v7278_v16, %v8628_v27 }
 0x19f   : > { %v9139_v43 = vrot.slane %v11146_v59, %v8628_v27  ;;  %v2697_v18 = vcombine.low %v9110_v33, %v9117_v20  ;;  %v9148_v29 = vrot.slane %v11147_v4, %v8628_v27  ;;  %v4183_v58 = vcombine.low %v9104_v51, %v9114_v30  ;;  %487 = vrot.lane.b32.xlu1 %v420_v39, %s8145_s16 }
 0x1a0   : > { %v2689_v62 = vrot.slane %v2681_v57, %v8635_v38  ;;  %v2749_v36 = vcombine.low %v9125_v35, %v9133_v10  ;;  %v4251_v55 = vcombine.low %v9082_v9, %v9085_v22  ;;  %v4267_v3 = vcombine.low %v9089_v12, %v9100_v54 }
 0x1a1   : > { %v2705_v5 = vrot.slane %v2697_v18, %v8635_v38  ;;  %v2765_v24 = vcombine.low %v9139_v43, %v9148_v29  ;;  %v4191_v50 = vrot.slane %v4183_v58, %v8635_v38  ;;  %v4199_v57 = vcombine.low %v9151_v44, %v9154_v17 }
 0x1a2   : > { %v2757_v2 = vrot.slane %v2749_v36, %v8635_v38  ;;  %v4259_v63 = vrot.slane %v4251_v55, %v8635_v38  ;;  %v4275_v18 = vrot.slane %v4267_v3, %v8635_v38  ;;  %v2274_v56 = vcombine.high %v8663_v25, %v8666_v23 }
 0x1a3   : > { %v2713_v8 = vcombine.low %v2689_v62, %v2705_v5  ;;  %v2773_v7 = vrot.slane %v2765_v24, %v8635_v38  ;;  %v2714_v16 = vcombine.high %v2689_v62, %v2705_v5  ;;  %v4207_v59 = vrot.slane %v4199_v57, %v8635_v38  ;;  %v422_v5 = vld [vmem:[%s8494_s30 + $0x28] sm:$0xff] }
 0x1a4   : > { %v2290_v4 = vcombine.high %v8669_v26, %v8672_v28  ;;  %v2342_v24 = vcombine.high %v8693_v46, %v8696_v47  ;;  %v2358_v62 = vcombine.high %v8699_v48, %v8702_v49  ;;  %v4283_v57 = vcombine.low %v4259_v63, %v4275_v18  ;;  %443 = vrot.lane.b32.xlu1 %v422_v5, %s8144_s14 }
 0x1a5   : > { %v2781_v36 = vcombine.low %v2757_v2, %v2773_v7  ;;  %v2782_v58 = vcombine.high %v2757_v2, %v2773_v7  ;;  %v4215_v55 = vcombine.low %v4191_v50, %v4207_v59  ;;  %v2288_v25 = vrot.slane %v2274_v56, %v8635_v38 }
 0x1a6   : > { %v2304_v23 = vrot.slane %v2290_v4, %v8635_v38  ;;  %v4216_v26 = vcombine.high %v4191_v50, %v4207_v59  ;;  %v4284_v28 = vcombine.high %v4259_v63, %v4275_v18  ;;  %v2356_v39 = vrot.slane %v2342_v24, %v8635_v38 }
 0x1a7   : > { %v2788_v3 = vpack.c.bf16 %v2781_v36, %v2713_v8  ;;  %v2792_v13 = vpack.c.bf16 %v2782_v58, %v2714_v16  ;;  %v2372_v2 = vrot.slane %v2358_v62, %v8635_v38  ;;  %v2410_v50 = vcombine.high %v8786_v11, %v8789_v45 }
 0x1a8   : > { %v2307_v48 = vcombine.low %v2288_v25, %v2304_v23  ;;  %v2308_v49 = vcombine.high %v2288_v25, %v2304_v23  ;;  %v2426_v16 = vcombine.high %v8817_v41, %v8820_v42  ;;  %v2478_v63 = vcombine.high %v8860_v19, %v8877_v15  ;;  %467 = vrot.lane.b32.xlu1 %v422_v5, %s8143_s8 }
 0x1a9   : > { %v4313_v46 = vsel %vm4299_vm1, %v2788_v3, 0  ;;  %v4369_v47 = vsel %vm4299_vm1, %v2792_v13, 0  ;;  %v2375_v8 = vcombine.low %v2356_v39, %v2372_v2  ;;  %v2376_v7 = vcombine.high %v2356_v39, %v2372_v2 }
 0x1aa   : > { %7434 = vmatpush3.bf16.xpose.msra.mxu0 %v4313_v46  ;;  %7446 = vmatpush3.bf16.xpose.msra.mxu1 %v4369_v47  ;;  %v2494_v13 = vcombine.high %v8883_v32, %v8893_v21  ;;  %v9205_v59 = vpack.c.bf16 %v4283_v57, %v4215_v55  ;;  %v9207_v18 = vpack.c.bf16 %v4284_v28, %v4216_v26 }
 0x1ab   : > { %7451 = vmatprep.subr.bf16.mxu0 %v11141_v31  ;;  %7463 = vmatprep.subr.bf16.mxu1 %v11141_v31  ;;  %v2793_v56 = vpack.c.bf16 %v2375_v8, %v2307_v48  ;;  %v2424_v11 = vrot.slane %v2410_v50, %v8635_v38  ;;  %v2797_v45 = vpack.c.bf16 %v2376_v7, %v2308_v49 }
 0x1ac   : > { %v2440_v4 = vrot.slane %v2426_v16, %v8635_v38  ;;  %v2492_v41 = vrot.slane %v2478_v63, %v8635_v38  ;;  %v2508_v42 = vrot.slane %v2494_v13, %v8635_v38  ;;  %v2546_v19 = vcombine.high %v8977_v53, %v8985_v0  ;;  %491 = vrot.lane.b32.xlu1 %v422_v5, %s8145_s16 }
 0x1ad   : > { %v2562_v15 = vcombine.high %v8991_v60, %v9002_v37  ;;  %v4416_v24 = vsel %vm4299_vm1, %v2793_v56, 0  ;;  %v4472_v62 = vsel %vm4299_vm1, %v2797_v45, 0  ;;  %v2614_v53 = vcombine.high %v9008_v1, %v9018_v34 }
 0x1ae   : > { %v2443_v32 = vcombine.low %v2424_v11, %v2440_v4  ;;  %v2511_v21 = vcombine.low %v2492_v41, %v2508_v42  ;;  %v2444_v36 = vcombine.high %v2424_v11, %v2440_v4  ;;  %v2512_v58 = vcombine.high %v2492_v41, %v2508_v42  ;;  %v2818_v41 = vpop.permute.xlu1 %2817 }
 0x1af   : > { %v2630_v0 = vcombine.high %v9024_v52, %v9030_v61  ;;  %v2560_v5 = vrot.slane %v2546_v19, %v8635_v38  ;;  %v2576_v55 = vrot.slane %v2562_v15, %v8635_v38  ;;  %v2628_v1 = vrot.slane %v2614_v53, %v8635_v38  ;;  %v2820_v15 = vpop.permute.xlu0 %2819  ;;  %v7863_v53 = vld [vmem:[%s8510_s21] sm:$0xff] }
 0x1b0   : > { %v2794_v60 = vpack.c.bf16 %v2511_v21, %v2443_v32  ;;  %v2798_v37 = vpack.c.bf16 %v2512_v58, %v2444_v36  ;;  %v2682_v52 = vcombine.high %v9078_v40, %v9097_v6  ;;  %v2698_v61 = vcombine.high %v9110_v33, %v9117_v20  ;;  %v7862_v21 = vld [vmem:[%s8510_s21 + $0x8] sm:$0xff] }
 0x1b1   : > { %7436 = vmatmul.mubr.msk.bf16.vlgmr.msra.gmra.mrb[0].mxu0 %vm4299_vm1, %v9205_v59  ;;  %7448 = vmatmul.mubr.msk.bf16.vlgmr.msra.gmra.mrb[0].mxu1 %vm4299_vm1, %v9207_v18  ;;  %v2644_v34 = vrot.slane %v2630_v0, %v8635_v38  ;;  %v2579_v25 = vcombine.low %v2560_v5, %v2576_v55  ;;  %v2580_v23 = vcombine.high %v2560_v5, %v2576_v55 }
 0x1b2   : > { %7452 = vmatpush3.bf16.xpose.msra.mxu0 %v4416_v24  ;;  %7464 = vmatpush3.bf16.xpose.msra.mxu1 %v4472_v62  ;;  %v4419_v57 = vsel %vm4299_vm1, %v2794_v60, 0  ;;  %v4475_v3 = vsel %vm4299_vm1, %v2798_v37, 0  ;;  %v2750_v39 = vcombine.high %v9125_v35, %v9133_v10  ;;  %v2766_v2 = vcombine.high %v9139_v43, %v9148_v29  ;;  %v2842_v42 = vpop.permute.xlu1 %2841 }
 0x1b3   : > { %7453 = vmatprep.subr.bf16.mxu0 %v11141_v31  ;;  %7465 = vmatprep.subr.bf16.mxu1 %v11141_v31  ;;  %v2647_v26 = vcombine.low %v2628_v1, %v2644_v34  ;;  %v2648_v28 = vcombine.high %v2628_v1, %v2644_v34  ;;  %v2696_v40 = vrot.slane %v2682_v52, %v8635_v38  ;;  %v2866_v34 = vpop.permute.xlu0 %2865 }
 0x1b4   : > { %7459 = vmatprep.mubr.msk.bf16.mxu0 %vm8147_vm0, %v11141_v31  ;;  %7471 = vmatprep.mubr.msk.bf16.mxu1 %vm8147_vm0, %v11141_v31  ;;  %v2712_v6 = vrot.slane %v2698_v61, %v8635_v38  ;;  %v2764_v46 = vrot.slane %v2750_v39, %v8635_v38  ;;  %v2780_v47 = vrot.slane %v2766_v2, %v8635_v38 }
 0x1b5   : > { %v2795_v33 = vpack.c.bf16 %v2647_v26, %v2579_v25  ;;  %v2799_v20 = vpack.c.bf16 %v2648_v28, %v2580_v23  ;;  %v4184_v8 = vcombine.high %v9104_v51, %v9114_v30  ;;  %v4200_v7 = vcombine.high %v9151_v44, %v9154_v17 }
 0x1b6   : > { %v2715_v35 = vcombine.low %v2696_v40, %v2712_v6  ;;  %v2716_v10 = vcombine.high %v2696_v40, %v2712_v6  ;;  %v2783_v48 = vcombine.low %v2764_v46, %v2780_v47  ;;  %v2784_v49 = vcombine.high %v2764_v46, %v2780_v47  ;;  %v2844_v19 = vpop.permute.xlu1 %2843 }
 0x1b7   : > { %v4422_v43 = vsel %vm4299_vm1, %v2795_v33, 0  ;;  %v4478_v29 = vsel %vm4299_vm1, %v2799_v20, 0  ;;  %v4252_v50 = vcombine.high %v9082_v9, %v9085_v22  ;;  %v4268_v16 = vcombine.high %v9089_v12, %v9100_v54 }
 0x1b8   : > { %v2796_v63 = vpack.c.bf16 %v2783_v48, %v2715_v35  ;;  %v2800_v13 = vpack.c.bf16 %v2784_v49, %v2716_v10  ;;  %v4198_v56 = vrot.slane %v4184_v8, %v8635_v38  ;;  %v4214_v51 = vrot.slane %v4200_v7, %v8635_v38  ;;  %v2822_v35 = vpop.permute.xlu0 %2821 }
 0x1b9   : > { %v4266_v30 = vrot.slane %v4252_v50, %v8635_v38  ;;  %v4282_v44 = vrot.slane %v4268_v16, %v8635_v38  ;;  %v2957_v36 = vcombine.low %v7862_v21, %v2844_v19  ;;  %v2958_v58 = vcombine.high %v7862_v21, %v2844_v19 }
 0x1ba   : > { %7454 = vmatpush3.bf16.xpose.msra.mxu0 %v4419_v57  ;;  %7466 = vmatpush3.bf16.xpose.msra.mxu1 %v4475_v3  ;;  %v4425_v17 = vsel %vm4299_vm1, %v2796_v63, 0  ;;  %v4481_v9 = vsel %vm4299_vm1, %v2800_v13, 0  ;;  %v4217_v22 = vcombine.low %v4198_v56, %v4214_v51  ;;  %v4218_v54 = vcombine.high %v4198_v56, %v4214_v51  ;;  %v2868_v32 = vpop.permute.xlu1 %2867 }
 0x1bb   : > { %7455 = vmatprep.subr.bf16.mxu0 %v11141_v31  ;;  %7467 = vmatprep.subr.bf16.mxu1 %v11141_v31  ;;  %v4285_v12 = vcombine.low %v4266_v30, %v4282_v44  ;;  %v4286_v11 = vcombine.high %v4266_v30, %v4282_v44  ;;  %v2973_v24 = vcombine.low %v2820_v15, %v2868_v32  ;;  %v7864_v44 = vld [vmem:[%s8510_s21 + $0x18] sm:$0xff] }
 0x1bc   : > { %v2974_v62 = vcombine.high %v2820_v15, %v2868_v32  ;;  %v2889_v0 = vcombine.low %v7863_v53, %v2842_v42  ;;  %v2890_v60 = vcombine.high %v7863_v53, %v2842_v42  ;;  %v2965_v37 = vrot.slane %v2957_v36, %v8628_v27  ;;  %v2846_v30 = vpop.permute.xlu0 %2845  ;;  %v7865_v42 = vld [vmem:[%s8510_s21 + $0x10] sm:$0xff] }
 0x1bd   : > { %v9275_v45 = vpack.c.bf16 %v4285_v12, %v4217_v22  ;;  %v9277_v4 = vpack.c.bf16 %v4286_v11, %v4218_v54  ;;  %v2972_v5 = vrot.slane %v2958_v58, %v8628_v27  ;;  %v2981_v55 = vrot.slane %v2973_v24, %v8628_v27 }
 0x1be   : > { %v2988_v1 = vrot.slane %v2974_v62, %v8628_v27  ;;  %v2824_v52 = vpop.permute.xlu1 %2823  ;;  %v2897_v61 = vrot.slane %v2889_v0, %v8628_v27  ;;  %v2904_v57 = vrot.slane %v2890_v60, %v8628_v27  ;;  %v2905_v3 = vcombine.low %v2818_v41, %v2866_v34 }
 0x1bf   : > { %v2906_v25 = vcombine.high %v2818_v41, %v2866_v34  ;;  %v2989_v28 = vcombine.low %v2965_v37, %v2981_v55  ;;  %v2990_v39 = vcombine.high %v2965_v37, %v2981_v55  ;;  %v3025_v19 = vcombine.low %v7865_v42, %v2846_v30 }
 0x1c0   : > { %v2913_v23 = vrot.slane %v2905_v3, %v8628_v27  ;;  %v3005_v2 = vcombine.low %v2972_v5, %v2988_v1  ;;  %v3006_v40 = vcombine.high %v2972_v5, %v2988_v1  ;;  %v2870_v24 = vpop.permute.xlu0 %2869  ;;  %v3026_v5 = vcombine.high %v7865_v42, %v2846_v30 }
 0x1c1   : > { %v2920_v26 = vrot.slane %v2906_v25, %v8628_v27  ;;  %v2997_v49 = vrot.slane %v2989_v28, %v8635_v38  ;;  %v3004_v8 = vrot.slane %v2990_v39, %v8635_v38  ;;  %v3041_v55 = vcombine.low %v2822_v35, %v2870_v24 }
 0x1c2   : > { %7456 = vmatpush3.bf16.xpose.msra.mxu0 %v4422_v43  ;;  %7468 = vmatpush3.bf16.xpose.msra.mxu1 %v4478_v29  ;;  %v2848_v6 = vpop.permute.xlu1 %2847  ;;  %v2921_v33 = vcombine.low %v2897_v61, %v2913_v23  ;;  %v2922_v20 = vcombine.high %v2897_v61, %v2913_v23  ;;  %v3013_v7 = vrot.slane %v3005_v2, %v8635_v38 }
 0x1c3   : > { %7457 = vmatprep.subr.bf16.mxu0 %v11141_v31  ;;  %7469 = vmatprep.subr.bf16.mxu1 %v11141_v31  ;;  %v2937_v46 = vcombine.low %v2904_v57, %v2920_v26  ;;  %v2938_v47 = vcombine.high %v2904_v57, %v2920_v26  ;;  %v3020_v50 = vrot.slane %v3006_v40, %v8635_v38 }
 0x1c4   : > { %v2929_v10 = vrot.slane %v2921_v33, %v8635_v38  ;;  %v2936_v43 = vrot.slane %v2922_v20, %v8635_v38  ;;  %v3501_v54 = vcombine.low %v2997_v49, %v3004_v8  ;;  %v7263_v11 = vcombine.high %v2997_v49, %v3004_v8 }
 0x1c5   : > { %v2945_v29 = vrot.slane %v2937_v46, %v8635_v38  ;;  %v2952_v48 = vrot.slane %v2938_v47, %v8635_v38  ;;  %v3517_v41 = vcombine.low %v3013_v7, %v3020_v50  ;;  %v7264_v62 = vcombine.high %v3013_v7, %v3020_v50 }
 0x1c6   : > { %v2872_v16 = vpop.permute.xlu1 %2871  ;;  %v3433_v63 = vcombine.low %v2929_v10, %v2936_v43  ;;  %v7261_v13 = vcombine.high %v2929_v10, %v2936_v43  ;;  %v3042_v1 = vcombine.high %v2822_v35, %v2870_v24  ;;  %v9326_v34 = vrot.slane %v3501_v54, %v8628_v27 }
 0x1c7   : > { %v3449_v56 = vcombine.low %v2945_v29, %v2952_v48  ;;  %v7262_v51 = vcombine.high %v2945_v29, %v2952_v48  ;;  %v3109_v22 = vcombine.low %v2824_v52, %v2872_v16  ;;  %v3110_v12 = vcombine.high %v2824_v52, %v2872_v16 }
 0x1c8   : > { %v9310_v32 = vrot.slane %v3433_v63, %v8628_v27  ;;  %v9313_v21 = vrot.slane %v7261_v13, %v8628_v27  ;;  %v9329_v52 = vrot.slane %v7263_v11, %v8628_v27  ;;  %v3033_v57 = vrot.slane %v3025_v19, %v8628_v27 }
 0x1c9   : > { %v9316_v36 = vrot.slane %v3449_v56, %v8628_v27  ;;  %v9319_v58 = vrot.slane %v7262_v51, %v8628_v27  ;;  %v3117_v60 = vrot.slane %v3109_v22, %v8628_v27  ;;  %v3124_v37 = vrot.slane %v3110_v12, %v8628_v27  ;;  %v7866_v51 = vld [vmem:[%s8510_s21 + $0x28] sm:$0xff] }
 0x1ca   : > { %7458 = vmatpush3.bf16.xpose.msra.mxu0 %v4425_v17  ;;  %7470 = vmatpush3.bf16.xpose.msra.mxu1 %v4481_v9  ;;  %v3093_v17 = vcombine.low %v7864_v44, %v2848_v6  ;;  %v3094_v9 = vcombine.high %v7864_v44, %v2848_v6  ;;  %v3049_v3 = vrot.slane %v3041_v55, %v8628_v27 }
 0x1cb   : > { %7475 = vmatprep.subr.bf16.mxu0 %v11141_v31  ;;  %7487 = vmatprep.subr.bf16.mxu1 %v11141_v31  ;;  %v3465_v25 = vcombine.low %v9310_v32, %v9313_v21  ;;  %v3481_v23 = vcombine.low %v9316_v36, %v9319_v58  ;;  %v9340_v26 = vrot.slane %v3517_v41, %v8628_v27 }
 0x1cc   : > { %v3101_v53 = vrot.slane %v3093_v17, %v8628_v27  ;;  %v3108_v0 = vrot.slane %v3094_v9, %v8628_v27  ;;  %v9343_v28 = vrot.slane %v7264_v62, %v8628_v27  ;;  %v3040_v33 = vrot.slane %v3026_v5, %v8628_v27 }
 0x1cd   : > { %v3056_v20 = vrot.slane %v3042_v1, %v8628_v27  ;;  %v3533_v35 = vcombine.low %v9326_v34, %v9329_v52  ;;  %v3057_v10 = vcombine.low %v3033_v57, %v3049_v3  ;;  %v3058_v43 = vcombine.high %v3033_v57, %v3049_v3 }
 0x1ce   : > { %v3125_v39 = vcombine.low %v3101_v53, %v3117_v60  ;;  %v3126_v40 = vcombine.high %v3101_v53, %v3117_v60  ;;  %v3141_v6 = vcombine.low %v3108_v0, %v3124_v37  ;;  %v3142_v46 = vcombine.high %v3108_v0, %v3124_v37  ;;  %v7867_v53 = vld [vmem:[%s8510_s21 + $0x20] sm:$0xff] }
 0x1cf   : > { %v2828_v2 = vpop.permute.xlu0 %2827  ;;  %v3473_v29 = vrot.slane %v3465_v25, %v8635_v38  ;;  %v3489_v48 = vrot.slane %v3481_v23, %v8635_v38  ;;  %v3549_v8 = vcombine.low %v9340_v26, %v9343_v28  ;;  %v3073_v16 = vcombine.low %v3040_v33, %v3056_v20 }
 0x1d0   : > { %v9352_v49 = vrot.slane %v3125_v39, %v8635_v38  ;;  %v9357_v7 = vrot.slane %v3126_v40, %v8635_v38  ;;  %v9360_v50 = vrot.slane %v3141_v6, %v8635_v38  ;;  %v3074_v63 = vcombine.high %v3040_v33, %v3056_v20 }
 0x1d1   : > { %7460 = vmatmul.mubr.msk.bf16.vlgmr.msra.gmra.mrb[4].mxu0 %vm4299_vm1, %v9275_v45  ;;  %7472 = vmatmul.mubr.msk.bf16.vlgmr.msra.gmra.mrb[4].mxu1 %vm4299_vm1, %v9277_v4  ;;  %v9363_v13 = vrot.slane %v3142_v46, %v8635_v38  ;;  %v3541_v44 = vrot.slane %v3533_v35, %v8635_v38  ;;  %v3065_v9 = vrot.slane %v3057_v10, %v8635_v38 }
 0x1d2   : > { %7483 = vmatprep.mubr.msk.bf16.mxu0 %vm8147_vm0, %v11141_v31  ;;  %7495 = vmatprep.mubr.msk.bf16.mxu1 %vm8147_vm0, %v11141_v31  ;;  %v3072_v22 = vrot.slane %v3058_v43, %v8635_v38  ;;  %v3497_v54 = vcombine.low %v3473_v29, %v3489_v48  ;;  %v3557_v41 = vrot.slane %v3549_v8, %v8635_v38 }
 0x1d3   : > { %v3498_v42 = vcombine.high %v3473_v29, %v3489_v48  ;;  %v3088_v62 = vrot.slane %v3074_v63, %v8635_v38  ;;  %v3637_v57 = vcombine.low %v9352_v49, %v9357_v7  ;;  %v7268_v43 = vcombine.high %v9360_v50, %v9363_v13 }
 0x1d4   : > { %v2874_v17 = vpop.permute.xlu0 %2873  ;;  %v3565_v5 = vcombine.low %v3541_v44, %v3557_v41  ;;  %v3566_v55 = vcombine.high %v3541_v44, %v3557_v41  ;;  %v3569_v3 = vcombine.low %v3065_v9, %v3072_v22  ;;  %v7265_v25 = vcombine.high %v3065_v9, %v3072_v22 }
 0x1d5   : > { %v9307_v15 = vpop.permute.xlu1 %2825  ;;  %v9413_v44 = vrot.slane %v3637_v57, %v8628_v27  ;;  %v9424_v41 = vrot.slane %v7268_v43, %v8628_v27 }
 0x1d6   : > { %v3177_v60 = vcombine.low %v9307_v15, %v2874_v17  ;;  %v3178_v23 = vcombine.high %v9307_v15, %v2874_v17  ;;  %v3981_v40 = vpack.c.bf16 %v3566_v55, %v3498_v42  ;;  %v3653_v15 = vcombine.low %v9360_v50, %v9363_v13 }
 0x1d8   : > { %v3185_v46 = vrot.slane %v3177_v60, %v8628_v27  ;;  %7488 = vmatpush3.bf16.msra.mxu1 %v3981_v40  ;;  %v3192_v48 = vrot.slane %v3178_v23, %v8628_v27 }
 0x1d9   : > { %v9331_v61 = vpop.permute.xlu1 %2849  ;;  %7489 = vmatprep.subr.bf16.mxu1 %v11141_v31 }
 0x1da   : > { %v3161_v56 = vcombine.low %v8732_v14, %v9331_v61  ;;  %v3081_v14 = vrot.slane %v3073_v16, %v8635_v38  ;;  %v3162_v0 = vcombine.high %v7867_v53, %v9331_v61 }
 0x1dc   : > { %v3585_v6 = vcombine.low %v3081_v14, %v3088_v62  ;;  %v7266_v33 = vcombine.high %v3081_v14, %v3088_v62  ;;  %v3169_v20 = vrot.slane %v3161_v56, %v8628_v27  ;;  %v3176_v29 = vrot.slane %v3162_v0, %v8628_v27 }
 0x1dd   : > { %v2852_v47 = vpop.permute.xlu1 %2851 }
 0x1de   : > { %v3229_v30 = vcombine.low %v7866_v51, %v2852_v47  ;;  %v3230_v12 = vcombine.high %v7866_v51, %v2852_v47  ;;  %v7267_v47 = vcombine.high %v9352_v49, %v9357_v7  ;;  %v9398_v49 = vrot.slane %v3569_v3, %v8628_v27 }
 0x1df   : > { %v9401_v7 = vrot.slane %v7265_v25, %v8628_v27  ;;  %v9405_v50 = vrot.slane %v3585_v6, %v8628_v27  ;;  %v9408_v13 = vrot.slane %v7266_v33, %v8628_v27  ;;  %v3193_v56 = vcombine.low %v3169_v20, %v3185_v46 }
 0x1e0   : > { %v3237_v37 = vrot.slane %v3229_v30, %v8628_v27  ;;  %v3244_v39 = vrot.slane %v3230_v12, %v8628_v27  ;;  %v3194_v51 = vcombine.high %v3169_v20, %v3185_v46  ;;  %v9410_v30 = vpop.permute.xlu0 %2829  ;;  %v9416_v17 = vrot.slane %v7267_v47, %v8628_v27 }
 0x1e1   : > { %v2876_v11 = vpop.permute.xlu1 %2875  ;;  %v3209_v12 = vcombine.low %v3176_v29, %v3192_v48  ;;  %v3601_v53 = vcombine.low %v9398_v49, %v9401_v7  ;;  %v3617_v0 = vcombine.low %v9405_v50, %v9408_v13 }
 0x1e2   : > { %v3245_v19 = vcombine.low %v2828_v2, %v2876_v11  ;;  %v3246_v24 = vcombine.high %v2828_v2, %v2876_v11  ;;  %v3977_v2 = vpack.c.bf16 %v3565_v5, %v3497_v54  ;;  %v3210_v54 = vcombine.high %v3176_v29, %v3192_v48 }
 0x1e3   : > { %v9421_v11 = vrot.slane %v3653_v15, %v8628_v27  ;;  %v3208_v14 = vrot.slane %v3194_v51, %v8635_v38  ;;  %v3669_v5 = vcombine.low %v9413_v44, %v9416_v17  ;;  %v3217_v55 = vrot.slane %v3209_v12, %v8635_v38  ;;  %v11148_v15 = vld [vmem:[#allocation25_spill] sm:$0xff] }
 0x1e4   : > { %v3253_v1 = vrot.slane %v3245_v19, %v8628_v27  ;;  %v3260_v61 = vrot.slane %v3246_v24, %v8628_v27  ;;  %7476 = vmatpush3.bf16.msra.mxu0 %v3977_v2  ;;  %v3201_v24 = vrot.slane %v3193_v56, %v8635_v38  ;;  %v2854_v60 = vpop.permute.xlu0 %2853  ;;  %v3609_v57 = vrot.slane %v3601_v53, %v8635_v38 }
 0x1e5   : > { %7477 = vmatprep.subr.bf16.mxu0 %v11141_v31  ;;  %v3625_v3 = vrot.slane %v3617_v0, %v8635_v38  ;;  %v3677_v23 = vrot.slane %v3669_v5, %v8635_v38 }
 0x1e6   : > { %v3261_v35 = vcombine.low %v3237_v37, %v3253_v1  ;;  %v3262_v10 = vcombine.high %v3237_v37, %v3253_v1  ;;  %v3277_v16 = vcombine.low %v3244_v39, %v3260_v61  ;;  %v3278_v63 = vcombine.high %v3244_v39, %v3260_v61 }
 0x1e7   : > { %v3224_v1 = vrot.slane %v3210_v54, %v8635_v38  ;;  %v3685_v39 = vcombine.low %v9421_v11, %v9424_v41  ;;  %v3705_v61 = vcombine.low %v3201_v24, %v3208_v14  ;;  %v7269_v6 = vcombine.high %v3201_v24, %v3208_v14  ;;  %v7868_v54 = vld [vmem:[%s8510_s21 + $0x30] sm:$0xff] }
 0x1e8   : > { %v3269_v9 = vrot.slane %v3261_v35, %v8635_v38  ;;  %v3276_v22 = vrot.slane %v3262_v10, %v8635_v38  ;;  %v3285_v42 = vrot.slane %v3277_v16, %v8635_v38  ;;  %v3292_v19 = vrot.slane %v3278_v63, %v8635_v38  ;;  %v2878_v16 = vpop.permute.xlu0 %2877 }
 0x1e9   : > { %v3633_v20 = vcombine.low %v3609_v57, %v3625_v3  ;;  %v3693_v46 = vrot.slane %v3685_v39, %v8635_v38  ;;  %v3634_v47 = vcombine.high %v3609_v57, %v3625_v3  ;;  %v3721_v35 = vcombine.low %v3217_v55, %v3224_v1 }
 0x1ea   : > { %v3773_v37 = vcombine.low %v3269_v9, %v3276_v22  ;;  %v7271_v25 = vcombine.high %v3269_v9, %v3276_v22  ;;  %v3789_v2 = vcombine.low %v3285_v42, %v3292_v19  ;;  %v7272_v40 = vcombine.high %v3285_v42, %v3292_v19 }
 0x1eb   : > { %v7270_v10 = vcombine.high %v3217_v55, %v3224_v1  ;;  %v3701_v51 = vcombine.low %v3677_v23, %v3693_v46  ;;  %v3702_v9 = vcombine.high %v3677_v23, %v3693_v46  ;;  %v9452_v22 = vrot.slane %v3705_v61, %v8628_v27 }
 0x1ec   : > { %v9444_v33 = vrot.slane %v3773_v37, %v8628_v27  ;;  %v9455_v12 = vrot.slane %v7269_v6, %v8628_v27  ;;  %v3297_v42 = vcombine.low %v7868_v54, %v2854_v60  ;;  %v3298_v19 = vcombine.high %v7868_v54, %v2854_v60 }
 0x1ed   : > { %v9394_v8 = vpop.permute.xlu1 %2831  ;;  %v3978_v24 = vpack.c.bf16 %v3701_v51, %v3633_v20  ;;  %v3982_v14 = vpack.c.bf16 %v3702_v9, %v3634_v47  ;;  %v3314_v53 = vcombine.high %v9410_v30, %v2878_v16  ;;  %v9461_v0 = vrot.slane %v7271_v25, %v8628_v27 }
 0x1ee   : > { %v9467_v37 = vrot.slane %v7270_v10, %v8628_v27  ;;  %v9477_v57 = vrot.slane %v7272_v40, %v8628_v27  ;;  %v3737_v3 = vcombine.low %v9452_v22, %v9455_v12  ;;  %v3305_v25 = vrot.slane %v3297_v42, %v8628_v27 }
 0x1ef   : > { %7478 = vmatpush3.bf16.msra.mxu0 %v3978_v24  ;;  %7490 = vmatpush3.bf16.msra.mxu1 %v3982_v14  ;;  %v3312_v23 = vrot.slane %v3298_v19, %v8628_v27  ;;  %v3328_v61 = vrot.slane %v3314_v53, %v8628_v27  ;;  %v3805_v10 = vcombine.low %v9444_v33, %v9461_v0 }
 0x1f0   : > { %7479 = vmatprep.subr.bf16.mxu0 %v11141_v31  ;;  %7491 = vmatprep.subr.bf16.mxu1 %v11141_v31 }
 0x1f1   : > { %v2856_v62 = vpop.permute.xlu1 %2855 }
 0x1f2   : > { %v3365_v43 = vcombine.low %v11148_v15, %v2856_v62  ;;  %v3366_v29 = vcombine.high %v11148_v15, %v2856_v62  ;;  %v3313_v62 = vcombine.low %v9410_v30, %v2878_v16  ;;  %v9474_v30 = vrot.slane %v3789_v2, %v8628_v27 }
 0x1f3   : > { %v3745_v2 = vrot.slane %v3737_v3, %v8635_v38  ;;  %v3346_v16 = vcombine.high %v3312_v23, %v3328_v61 }
 0x1f4   : > { %v3373_v5 = vrot.slane %v3365_v43, %v8628_v27  ;;  %v3380_v55 = vrot.slane %v3366_v29, %v8628_v27  ;;  %v3321_v39 = vrot.slane %v3313_v62, %v8628_v27  ;;  %v3821_v15 = vcombine.low %v9474_v30, %v9477_v57 }
 0x1f5   : > { %v2880_v48 = vpop.permute.xlu1 %2879 }
 0x1f6   : > { %v3381_v63 = vcombine.low %v9394_v8, %v2880_v48  ;;  %v3382_v56 = vcombine.high %v9394_v8, %v2880_v48  ;;  %v9464_v8 = vrot.slane %v3721_v35, %v8628_v27  ;;  %v3329_v43 = vcombine.low %v3305_v25, %v3321_v39 }
 0x1f7   : > { %v3330_v29 = vcombine.high %v3305_v25, %v3321_v39  ;;  %v3345_v48 = vcombine.low %v3312_v23, %v3328_v61  ;;  %v3829_v51 = vrot.slane %v3821_v15, %v8635_v38 }
 0x1f8   : > { %v3389_v60 = vrot.slane %v3381_v63, %v8628_v27  ;;  %v3396_v1 = vrot.slane %v3382_v56, %v8628_v27  ;;  %v3753_v40 = vcombine.low %v9464_v8, %v9467_v37  ;;  %v3813_v56 = vrot.slane %v3805_v10, %v8635_v38 }
 0x1f9   : > { %v3337_v53 = vrot.slane %v3329_v43, %v8635_v38 }
 0x1fa   : > { %v3397_v6 = vcombine.low %v3373_v5, %v3389_v60  ;;  %v3398_v20 = vcombine.high %v3373_v5, %v3389_v60  ;;  %v3413_v46 = vcombine.low %v3380_v55, %v3396_v1  ;;  %v3414_v47 = vcombine.high %v3380_v55, %v3396_v1 }
 0x1fb   : > { %v3761_v35 = vrot.slane %v3753_v40, %v8635_v38  ;;  %v3837_v14 = vcombine.low %v3813_v56, %v3829_v51  ;;  %v3838_v62 = vcombine.high %v3813_v56, %v3829_v51  ;;  %v3344_v5 = vrot.slane %v3330_v29, %v8635_v38 }
 0x1fc   : > { %v3405_v54 = vrot.slane %v3397_v6, %v8635_v38  ;;  %v3412_v42 = vrot.slane %v3398_v20, %v8635_v38  ;;  %v3421_v19 = vrot.slane %v3413_v46, %v8635_v38  ;;  %v3428_v24 = vrot.slane %v3414_v47, %v8635_v38 }
 0x1fd   : > { %v3769_v63 = vcombine.low %v3745_v2, %v3761_v35  ;;  %v3770_v9 = vcombine.high %v3745_v2, %v3761_v35  ;;  %v3353_v55 = vrot.slane %v3345_v48, %v8635_v38  ;;  %v3360_v60 = vrot.slane %v3346_v16, %v8635_v38 }
 0x1fe   : > { %v3909_v25 = vcombine.low %v3405_v54, %v3412_v42  ;;  %v7275_v23 = vcombine.high %v3405_v54, %v3412_v42  ;;  %v3925_v39 = vcombine.low %v3421_v19, %v3428_v24  ;;  %v7276_v61 = vcombine.high %v3421_v19, %v3428_v24 }
 0x1ff   : > { %v3979_v1 = vpack.c.bf16 %v3837_v14, %v3769_v63  ;;  %v3983_v3 = vpack.c.bf16 %v3838_v62, %v3770_v9  ;;  %v3841_v2 = vcombine.low %v3337_v53, %v3344_v5  ;;  %v7273_v40 = vcombine.high %v3337_v53, %v3344_v5 }
 0x200   : > { %v3857_v6 = vcombine.low %v3353_v55, %v3360_v60  ;;  %v7274_v20 = vcombine.high %v3353_v55, %v3360_v60  ;;  %v3916_v46 = vrot.slane %v3909_v25, %v8628_v27  ;;  %v3924_v47 = vrot.slane %v7275_v23, %v8628_v27 }
 0x201   : > { %7480 = vmatpush3.bf16.msra.mxu0 %v3979_v1  ;;  %7492 = vmatpush3.bf16.msra.mxu1 %v3983_v3  ;;  %v3932_v35 = vrot.slane %v3925_v39, %v8628_v27  ;;  %v3940_v10 = vrot.slane %v7276_v61, %v8628_v27  ;;  %v3848_v15 = vrot.slane %v3841_v2, %v8628_v27 }
 0x202   : > { %7481 = vmatprep.subr.bf16.mxu0 %v11141_v31  ;;  %7493 = vmatprep.subr.bf16.mxu1 %v11141_v31  ;;  %v3856_v43 = vrot.slane %v7273_v40, %v8628_v27  ;;  %v3864_v29 = vrot.slane %v3857_v6, %v8628_v27  ;;  %v3872_v48 = vrot.slane %v7274_v20, %v8628_v27 }
 0x203   : > { %v3941_v56 = vcombine.low %v3916_v46, %v3924_v47  ;;  %v3957_v51 = vcombine.low %v3932_v35, %v3940_v10  ;;  %v3602_v60 = vcombine.high %v9398_v49, %v9401_v7  ;;  %v3618_v1 = vcombine.high %v9405_v50, %v9408_v13 }
 0x204   : > { %v3873_v16 = vcombine.low %v3848_v15, %v3856_v43  ;;  %v3889_v63 = vcombine.low %v3864_v29, %v3872_v48  ;;  %v3670_v3 = vcombine.high %v9413_v44, %v9416_v17  ;;  %v3686_v23 = vcombine.high %v9421_v11, %v9424_v41 }
 0x205   : > { %v3949_v42 = vrot.slane %v3941_v56, %v8635_v38  ;;  %v3965_v19 = vrot.slane %v3957_v51, %v8635_v38  ;;  %v3616_v25 = vrot.slane %v3602_v60, %v8635_v38  ;;  %v3632_v39 = vrot.slane %v3618_v1, %v8635_v38 }
 0x206   : > { %v3881_v9 = vrot.slane %v3873_v16, %v8635_v38  ;;  %v3897_v54 = vrot.slane %v3889_v63, %v8635_v38  ;;  %v3684_v61 = vrot.slane %v3670_v3, %v8635_v38  ;;  %v3738_v2 = vcombine.high %v9452_v22, %v9455_v12 }
 0x207   : > { %v3973_v14 = vcombine.low %v3949_v42, %v3965_v19  ;;  %v3974_v53 = vcombine.high %v3949_v42, %v3965_v19  ;;  %v3754_v49 = vcombine.high %v9464_v8, %v9467_v37  ;;  %v3700_v7 = vrot.slane %v3686_v23, %v8635_v38 }
 0x208   : > { %v3905_v24 = vcombine.low %v3881_v9, %v3897_v54  ;;  %v3906_v62 = vcombine.high %v3881_v9, %v3897_v54  ;;  %v3806_v50 = vcombine.high %v9444_v33, %v9461_v0  ;;  %v3635_v13 = vcombine.low %v3616_v25, %v3632_v39 }
 0x209   : > { %v3752_v44 = vrot.slane %v3738_v2, %v8635_v38  ;;  %v3768_v17 = vrot.slane %v3754_v49, %v8635_v38  ;;  %v3822_v11 = vcombine.high %v9474_v30, %v9477_v57  ;;  %v3703_v41 = vcombine.low %v3684_v61, %v3700_v7  ;;  %v4294_v49 = vld [vmem:[#allocation10 + $0x18] sm:$0xff] }
 0x20a   : > { %v3980_v5 = vpack.c.bf16 %v3973_v14, %v3905_v24  ;;  %v3984_v55 = vpack.c.bf16 %v3974_v53, %v3906_v62  ;;  %v3820_v40 = vrot.slane %v3806_v50, %v8635_v38  ;;  %v3636_v8 = vcombine.high %v3616_v25, %v3632_v39  ;;  %v4293_v14 = vld [vmem:[#allocation10 + $0x10] sm:$0xff]  ;;  %v4292_v53 = vld [vmem:[#allocation10 + $0x8] sm:$0xff] }
 0x20b   : > { %v3771_v22 = vcombine.low %v3752_v44, %v3768_v17  ;;  %v3836_v12 = vrot.slane %v3822_v11, %v8635_v38  ;;  %v3704_v37 = vcombine.high %v3684_v61, %v3700_v7  ;;  %v9545_v6 = vpack.c.bf16 %v3703_v41, %v3635_v13  ;;  %v4297_v41 = vld [vmem:[#allocation10 + $0x30] sm:$0xff] }
 0x20c   : > { %7482 = vmatpush3.bf16.msra.mxu0 %v3980_v5  ;;  %7494 = vmatpush3.bf16.msra.mxu1 %v3984_v55  ;;  %v3874_v20 = vcombine.high %v3848_v15, %v3856_v43  ;;  %v3890_v33 = vcombine.high %v3864_v29, %v3872_v48  ;;  %v3942_v0 = vcombine.high %v3916_v46, %v3924_v47 }
 0x20d   : > { %7499 = vmatprep.subr.bf16.mxu0 %v11141_v31  ;;  %7511 = vmatprep.subr.bf16.mxu1 %v11141_v31  ;;  %v3839_v16 = vcombine.low %v3820_v40, %v3836_v12  ;;  %v9547_v63 = vpack.c.bf16 %v3704_v37, %v3636_v8  ;;  %v3958_v56 = vcombine.high %v3932_v35, %v3940_v10  ;;  %v4291_v10 = vld [vmem:[#allocation10] sm:$0xff] }
 0x20e   : > { %v3772_v51 = vcombine.high %v3752_v44, %v3768_v17  ;;  %v3888_v30 = vrot.slane %v3874_v20, %v8635_v38  ;;  %v3904_v57 = vrot.slane %v3890_v33, %v8635_v38  ;;  %v3956_v9 = vrot.slane %v3942_v0, %v8635_v38  ;;  %v4295_v17 = vld [vmem:[#allocation10 + $0x20] sm:$0xff]  ;;  %v4298_v33 = vld [vmem:[#allocation10 + $0x38] sm:$0xff] }
 0x20f   : > { %v3840_v54 = vcombine.high %v3820_v40, %v3836_v12  ;;  %v9552_v42 = vpack.c.bf16 %v3839_v16, %v3771_v22  ;;  %v3972_v19 = vrot.slane %v3958_v56, %v8635_v38  ;;  %v4296_v22 = vld [vmem:[#allocation10 + $0x28] sm:$0xff] }
 0x210   : > { %v3907_v24 = vcombine.low %v3888_v30, %v3904_v57  ;;  %v3908_v46 = vcombine.high %v3888_v30, %v3904_v57 }
 0x211   : > { %v9555_v15 = vpack.c.bf16 %v3840_v54, %v3772_v51  ;;  %v3975_v47 = vcombine.low %v3956_v9, %v3972_v19  ;;  %v3976_v43 = vcombine.high %v3956_v9, %v3972_v19 }
 0x213   : > { %v9557_v29 = vpack.c.bf16 %v3975_v47, %v3907_v24  ;;  %v9559_v35 = vpack.c.bf16 %v3976_v43, %v3908_v46  ;;  %v9594_v46 = vld [vmem:[%s8494_s30 + $0x38] sm:$0xff]  ;;  %v9599_v47 = vld [vmem:[%s8494_s30 + $0x30] sm:$0xff]  ;;  %v9603_v43 = vpop.permute.xlu1 %433 }
 0x284   : > { %v4349_v48 = vpop.f32.mrb[0].mxu0  ;;  %v4405_v62 = vpop.f32.mrb[0].mxu1 }
 0x285   : > { %v9561_v5 = vadd.f32 %v4349_v48, %v4291_v10  ;;  %v7437_v55 = vpop.f32.mrb[1].mxu0  ;;  %v7449_v60 = vpop.f32.mrb[1].mxu1  ;;  %v9563_v25 = vadd.f32 %v4405_v62, %v4293_v14 }
 0x286   : > { %v4352_v1 = vpop.f32.mrb[2].mxu0  ;;  %v4408_v3 = vpop.f32.mrb[2].mxu1 }
 0x287   : > { %v9565_v23 = vadd.f32 %v4352_v1, %v4292_v53  ;;  %v7438_v39 = vpop.f32.mrb[3].mxu0  ;;  %v7450_v61 = vpop.f32.mrb[3].mxu1  ;;  %v4525_v2 = vsel %vm4524_vm2, %v9561_v5, -inf  ;;  %v9571_v50 = vadd.f32 %v4408_v3, %v4294_v49  ;;  %v4531_v13 = vsel %vm4524_vm2, %v9563_v25, -inf }
 0x288   : > { %4526 = vmax.xlane.f32.xlu0 %v4525_v2  ;;  %v9605_v10 = vpop.permute.xlu1 %457  ;;  %v9607_v48 = vpop.permute.xlu0 %435 }
 0x289   : > { %v4528_v7 = vsel %vm4524_vm2, %v9565_v23, -inf  ;;  %v4534_v44 = vsel %vm4524_vm2, %v9571_v50, -inf }
 0x28a   : > { %4529 = vmax.xlane.f32.xlu1 %v4528_v7 }
 0x28c   : > { %4532 = vmax.xlane.f32.xlu0 %v4531_v13  ;;  %v9609_v14 = vpop.permute.xlu1 %459  ;;  %v9611_v62 = vpop.permute.xlu0 %481 }
 0x290   : > { %4535 = vmax.xlane.f32.xlu0 %v4534_v44  ;;  %v9613_v53 = vpop.permute.xlu1 %483  ;;  %v9615_v55 = vpop.permute.xlu0 %437 }
 0x294   : > { %v9617_v60 = vpop.permute.xlu1 %439  ;;  %v9619_v1 = vpop.permute.xlu0 %461 }
 0x298   : > { %v9621_v3 = vpop.permute.xlu1 %463  ;;  %v9623_v39 = vpop.permute.xlu0 %485 }
 0x29c   : > { %v9625_v61 = vpop.permute.xlu1 %487  ;;  %v9627_v2 = vpop.permute.xlu0 %441 }
 0x2a0   : > { %v9629_v49 = vpop.permute.xlu1 %443  ;;  %v9631_v7 = vpop.permute.xlu0 %465 }
 0x2a4   : > { %v4461_v11 = vpop.f32.mrb[4].mxu0  ;;  %v4517_v40 = vpop.f32.mrb[4].mxu1 }
 0x2a5   : > { %v9577_v12 = vadd.f32 %v4461_v11, %v4295_v17  ;;  %v7461_v8 = vpop.f32.mrb[5].mxu0  ;;  %v7473_v37 = vpop.f32.mrb[5].mxu1  ;;  %v9579_v16 = vadd.f32 %v4517_v40, %v4297_v41 }
 0x2a6   : > { %v4464_v20 = vpop.f32.mrb[6].mxu0  ;;  %v4520_v0 = vpop.f32.mrb[6].mxu1 }
 0x2a7   : > { %v9581_v56 = vadd.f32 %v4464_v20, %v4296_v22  ;;  %v7462_v51 = vpop.f32.mrb[7].mxu0  ;;  %v7474_v30 = vpop.f32.mrb[7].mxu1  ;;  %v4537_v57 = vsel %vm4524_vm2, %v9577_v12, -inf  ;;  %v9585_v9 = vadd.f32 %v4520_v0, %v4298_v33  ;;  %v4543_v19 = vsel %vm4524_vm2, %v9579_v16, -inf }
 0x2a8   : > { %4538 = vmax.xlane.f32.xlu1 %v4537_v57  ;;  %v9633_v13 = vpop.permute.xlu1 %467  ;;  %v9635_v44 = vpop.permute.xlu0 %489 }
 0x2a9   : > { %v4540_v54 = vsel %vm4524_vm2, %v9581_v56, -inf  ;;  %v4546_v24 = vsel %vm4524_vm2, %v9585_v9, -inf }
 0x2aa   : > { %4541 = vmax.xlane.f32.xlu0 %v4540_v54 }
 0x2ac   : > { %4544 = vmax.xlane.f32.xlu1 %v4543_v19  ;;  %v9637_v17 = vpop.permute.xlu1 %491 }
 0x2ae   : > { %4547 = vmax.xlane.f32.xlu0 %v4546_v24 }
 0x2bd   : > { %447 = vrot.lane.b32.xlu1 %v9594_v46, %s8144_s14 }
 0x2c4   : > { %445 = vrot.lane.b32.xlu0 %v9599_v47, %s8144_s14 }
 0x315   : > { %v4527_v11 = vpop.xlane.xlu0 %4526 }
 0x316   : > { %v4549_v41 = vsub.f32 %v9561_v5, %v4527_v11 }
 0x317   : > { %v4530_v40 = vpop.xlane.xlu1 %4529 }
 0x318   : > { %v4557_v22 = vmul.f32 1.442695, %v4549_v41  ;;  %v4550_v8 = vsub.f32 %v9565_v23, %v4530_v40 }
 0x319   : > { %v4533_v37 = vpop.xlane.xlu0 %4532 }
 0x31a   : > { %7702 = vpow2.f32 %v4557_v22  ;;  %v4559_v20 = vmul.f32 1.442695, %v4550_v8  ;;  %v4551_v33 = vsub.f32 %v9563_v25, %v4533_v37 }
 0x31c   : > { %7704 = vpow2.f32 %v4559_v20  ;;  %v4561_v0 = vmul.f32 1.442695, %v4551_v33 }
 0x31d   : > { %v4536_v51 = vpop.xlane.xlu0 %4535 }
 0x31e   : > { %7706 = vpow2.f32 %v4561_v0  ;;  %v4552_v30 = vsub.f32 %v9571_v50, %v4536_v51 }
 0x320   : > { %v4563_v57 = vmul.f32 1.442695, %v4552_v30 }
 0x322   : > { %7708 = vpow2.f32 %v4563_v57 }
 0x324   : > { %v9643_v54 = vpop.eup %7702 }
 0x325   : > { %v4573_v5 = vsel %vm4524_vm2, %v9643_v54, 0.0 }
 0x326   : > { %v9647_v19 = vpop.eup %7704  ;;  %4574 = vadd.xlane.f32.xlu0 %v4573_v5 }
 0x327   : > { %v4576_v23 = vsel %vm4524_vm2, %v9647_v19, 0.0 }
 0x328   : > { %v9651_v25 = vpop.eup %7706  ;;  %4577 = vadd.xlane.f32.xlu1 %v4576_v23 }
 0x329   : > { %v4579_v24 = vsel %vm4524_vm2, %v9651_v25, 0.0 }
 0x32a   : > { %4580 = vadd.xlane.f32.xlu0 %v4579_v24 }
 0x32c   : > { %v9655_v50 = vpop.eup %7708 }
 0x32d   : > { %v4582_v11 = vsel %vm4524_vm2, %v9655_v50, 0.0 }
 0x32e   : > { %4583 = vadd.xlane.f32.xlu0 %v4582_v11 }
 0x335   : > { %v4539_v22 = vpop.xlane.xlu1 %4538 }
 0x336   : > { %v4553_v37 = vsub.f32 %v9577_v12, %v4539_v22 }
 0x337   : > { %v4542_v41 = vpop.xlane.xlu0 %4541 }
 0x338   : > { %v4554_v40 = vsub.f32 %v9581_v56, %v4542_v41  ;;  %v4565_v33 = vmul.f32 1.442695, %v4553_v37 }
 0x339   : > { %471 = vrot.lane.b32.xlu1 %v9594_v46, %s8143_s8  ;;  %v4545_v20 = vpop.xlane.xlu1 %4544 }
 0x33a   : > { %v4567_v8 = vmul.f32 1.442695, %v4554_v40  ;;  %v4555_v0 = vsub.f32 %v9579_v16, %v4545_v20 }
 0x33b   : > { %v4548_v51 = vpop.xlane.xlu0 %4547 }
 0x33c   : > { %7710 = vpow2.f32 %v4567_v8  ;;  %v4569_v30 = vmul.f32 1.442695, %v4555_v0  ;;  %v4556_v57 = vsub.f32 %v9585_v9, %v4548_v51  ;;  %v3482_v0 = vcombine.high %v9316_v36, %v9319_v58 }
 0x33d   : > { %7712 = vpow2.f32 %v4565_v33  ;;  %v9689_v22 = vpop.permute.xlu1 %447  ;;  %v3466_v33 = vcombine.high %v9310_v32, %v9313_v21  ;;  %v3534_v51 = vcombine.high %v9326_v34, %v9329_v52  ;;  %v7869_v34 = vld [vmem:[%s8494_s30] sm:$0xff] }
 0x33e   : > { %7714 = vpow2.f32 %v4569_v30  ;;  %v4571_v23 = vmul.f32 1.442695, %v4556_v57  ;;  %v3550_v30 = vcombine.high %v9340_v26, %v9343_v28  ;;  %v505_v52 = vcombine.low %v7869_v34, %v9605_v10 }
 0x33f   : > { %v9687_v40 = vpop.permute.xlu0 %445 }
 0x340   : > { %7716 = vpow2.f32 %v4571_v23  ;;  %v3480_v23 = vrot.slane %v3466_v33, %v8635_v38  ;;  %v3564_v32 = vrot.slane %v3550_v30, %v8635_v38 }
 0x344   : > { %469 = vrot.lane.b32.xlu0 %v9599_v47, %s8143_s8 }
 0x346   : > { %v9667_v5 = vpop.eup %7710 }
 0x347   : > { %v4588_v56 = vsel %vm4524_vm2, %v9667_v5, 0.0  ;;  %v9671_v12 = vpop.eup %7712 }
 0x348   : > { %v4585_v24 = vsel %vm4524_vm2, %v9671_v12, 0.0  ;;  %v9675_v16 = vpop.eup %7714 }
 0x349   : > { %v4591_v9 = vsel %vm4524_vm2, %v9675_v16, 0.0 }
 0x34a   : > { %v9679_v11 = vpop.eup %7716 }
 0x34b   : > { %v4594_v41 = vsel %vm4524_vm2, %v9679_v11, 0.0 }
 0x35d   : > { %4589 = vadd.xlane.f32.xlu1 %v4588_v56  ;;  %v3496_v56 = vrot.slane %v3482_v0, %v8635_v38  ;;  %v513_v0 = vrot.slane %v505_v52, %v8628_v27 }
 0x35f   : > { %v3499_v58 = vcombine.low %v3480_v23, %v3496_v56 }
 0x363   : > { %4586 = vadd.xlane.f32.xlu0 %v4585_v24  ;;  %v3548_v24 = vrot.slane %v3534_v51, %v8635_v38  ;;  %v7870_v51 = vld [vmem:[%s8494_s30 + $0x8] sm:$0xff] }
 0x364   : > { %v573_v30 = vcombine.low %v7870_v51, %v9609_v14 }
 0x366   : > { %v581_v52 = vrot.slane %v573_v30, %v8628_v27  ;;  %v657_v30 = vcombine.low %v9615_v55, %v9623_v39 }
 0x367   : > { %4592 = vadd.xlane.f32.xlu0 %v4591_v9  ;;  %v3567_v9 = vcombine.low %v3548_v24, %v3564_v32 }
 0x369   : > { %v3985_v33 = vpack.c.bf16 %v3567_v9, %v3499_v58 }
 0x36b   : > { %4595 = vadd.xlane.f32.xlu0 %v4594_v41  ;;  %v521_v41 = vcombine.low %v9603_v43, %v9611_v62 }
 0x36e   : > { %495 = vrot.lane.b32.xlu1 %v9594_v46, %s8145_s16 }
 0x381   : > { %493 = vrot.lane.b32.xlu0 %v9599_v47, %s8145_s16 }
 0x3b3   : > { %v4575_v8 = vpop.xlane.xlu0 %4574 }
 0x3b4   : > { %7718 = vrcp.f32 %v4575_v8 }
 0x3b5   : > { %v4578_v37 = vpop.xlane.xlu1 %4577 }
 0x3b6   : > { %7720 = vrcp.f32 %v4578_v37 }
 0x3b7   : > { %v4581_v20 = vpop.xlane.xlu0 %4580 }
 0x3b8   : > { %7722 = vrcp.f32 %v4581_v20  ;;  %v506_v20 = vcombine.high %v7869_v34, %v9605_v10  ;;  %v3568_v10 = vcombine.high %v3548_v24, %v3564_v32 }
 0x3ba   : > { %v520_v34 = vrot.slane %v506_v20, %v8628_v27 }
 0x3bb   : > { %v4584_v57 = vpop.xlane.xlu0 %4583 }
 0x3bc   : > { %7724 = vrcp.f32 %v4584_v57  ;;  %v522_v57 = vcombine.high %v9603_v43, %v9611_v62  ;;  %v574_v43 = vcombine.high %v7870_v51, %v9609_v14  ;;  %v590_v62 = vcombine.high %v9607_v48, %v9613_v53 }
 0x3be   : > { %v7719_v21 = vpop.eup %7718  ;;  %v604_v14 = vrot.slane %v590_v62, %v8628_v27 }
 0x3bf   : > { %v4605_v26 = vmul.f32 %v7719_v21, %v9643_v54  ;;  %v589_v54 = vcombine.low %v9607_v48, %v9613_v53  ;;  %v529_v21 = vrot.slane %v521_v41, %v8628_v27  ;;  %v588_v48 = vrot.slane %v574_v43, %v8628_v27 }
 0x3c0   : > { %v7721_v36 = vpop.eup %7720 }
 0x3c1   : > { %v4606_v28 = vmul.f32 %v7721_v36, %v9647_v19  ;;  %v3500_v36 = vcombine.high %v3480_v23, %v3496_v56  ;;  %v536_v23 = vrot.slane %v522_v57, %v8628_v27  ;;  %v537_v24 = vcombine.low %v513_v0, %v529_v21 }
 0x3c2   : > { %v7723_v37 = vpop.eup %7722  ;;  %v538_v32 = vcombine.high %v513_v0, %v529_v21  ;;  %v621_v20 = vcombine.low %v588_v48, %v604_v14  ;;  %v7871_v0 = vld [vmem:[%s8494_s30 + $0x10] sm:$0xff] }
 0x3c3   : > { %v4613_v8 = vpack.c.bf16 %v4606_v28, %v4605_v26  ;;  %v4607_v58 = vmul.f32 %v7723_v37, %v9651_v25  ;;  %v597_v25 = vrot.slane %v589_v54, %v8628_v27  ;;  %v553_v53 = vcombine.low %v520_v34, %v536_v23 }
 0x3c4   : > { %v554_v26 = vcombine.high %v520_v34, %v536_v23  ;;  %v552_v28 = vrot.slane %v538_v32, %v8635_v38  ;;  %v9745_v37 = vsel %vm4299_vm1, %v9205_v59, 0  ;;  %v641_v51 = vcombine.low %v7871_v0, %v9619_v1 }
 0x3c5   : > { %7484 = vmatmul.mubr.msk.bf16.vlgmr.msra.gmra.mrb[8].mxu0 %vm4524_vm2, %v4613_v8  ;;  %v605_v41 = vcombine.low %v581_v52, %v597_v25  ;;  %v606_v8 = vcombine.high %v581_v52, %v597_v25  ;;  %v561_v57 = vrot.slane %v553_v53, %v8635_v38  ;;  %v642_v54 = vcombine.high %v7871_v0, %v9619_v1 }
 0x3c6   : > { %v7725_v19 = vpop.eup %7724  ;;  %7500 = vmatpush3.bf16.msra.mxu0 %v3985_v33  ;;  %7507 = vmatprep.mubr.msk.bf16.mxu0 %vm8147_vm0, %v11141_v31  ;;  %v622_v33 = vcombine.high %v588_v48, %v604_v14  ;;  %v725_v1 = vcombine.low %v9617_v60, %v9625_v61  ;;  %v665_v34 = vrot.slane %v657_v30, %v8628_v27 }
 0x3c7   : > { %v4608_v9 = vmul.f32 %v7725_v19, %v9655_v50  ;;  %7501 = vmatprep.subr.bf16.mxu0 %v11141_v31  ;;  %v3989_v50 = vpack.c.bf16 %v3568_v10, %v3500_v36  ;;  %v658_v19 = vcombine.high %v9615_v55, %v9623_v39  ;;  %v613_v10 = vrot.slane %v605_v41, %v8635_v38 }
 0x3c8   : > { %v726_v55 = vcombine.high %v9617_v60, %v9625_v61  ;;  %v629_v39 = vrot.slane %v621_v20, %v8635_v38  ;;  %v636_v62 = vrot.slane %v622_v33, %v8635_v38  ;;  %v656_v23 = vrot.slane %v642_v54, %v8628_v27  ;;  %v7873_v33 = vld [vmem:[%s8494_s30 + $0x20] sm:$0xff] }
 0x3c9   : > { %v4614_v56 = vpack.c.bf16 %v4608_v9, %v4607_v58  ;;  %v620_v58 = vrot.slane %v606_v8, %v8635_v38  ;;  %v733_v25 = vrot.slane %v725_v1, %v8628_v27  ;;  %v793_v0 = vcombine.low %v9627_v2, %v9635_v44  ;;  %v7874_v1 = vld [vmem:[%s8494_s30 + $0x28] sm:$0xff] }
 0x3ca   : > { %7502 = vmatpush3.bf16.msra.mxu0 %v9545_v6  ;;  %v545_v6 = vrot.slane %v537_v24, %v8635_v38  ;;  %v1133_v48 = vcombine.low %v629_v39, %v636_v62  ;;  %v7232_v14 = vcombine.high %v629_v39, %v636_v62 }
 0x3cb   : > { %7496 = vmatmul.mubr.msk.bf16.vlgmr.msra.gmra.mrb[8].mxu1 %vm4524_vm2, %v4614_v56  ;;  %7503 = vmatprep.subr.bf16.mxu0 %v11141_v31  ;;  %v672_v56 = vrot.slane %v658_v19, %v8628_v27  ;;  %v1117_v61 = vcombine.low %v613_v10, %v620_v58  ;;  %v7231_v24 = vcombine.high %v613_v10, %v620_v58 }
 0x3cc   : > { %7512 = vmatpush3.bf16.msra.mxu1 %v3989_v50  ;;  %7519 = vmatprep.mubr.msk.bf16.mxu1 %vm8147_vm0, %v11141_v31  ;;  %v1049_v21 = vcombine.low %v545_v6, %v552_v28  ;;  %v7229_v36 = vcombine.high %v545_v6, %v552_v28  ;;  %v740_v50 = vrot.slane %v726_v55, %v8628_v27 }
 0x3cd   : > { %7513 = vmatprep.subr.bf16.mxu1 %v11141_v31  ;;  %v689_v28 = vcombine.low %v656_v23, %v672_v56  ;;  %v690_v41 = vcombine.high %v656_v23, %v672_v56  ;;  %v9798_v8 = vrot.slane %v1117_v61, %v8628_v27  ;;  %v9801_v20 = vrot.slane %v7231_v24, %v8628_v27 }
 0x3ce   : > { %7504 = vmatpush3.bf16.msra.mxu0 %v9552_v42  ;;  %v568_v42 = vrot.slane %v554_v26, %v8635_v38  ;;  %v9782_v60 = vrot.slane %v7229_v36, %v8628_v27  ;;  %v794_v36 = vcombine.high %v9627_v2, %v9635_v44  ;;  %v9813_v10 = vrot.slane %v1133_v48, %v8628_v27 }
 0x3cf   : > { %7505 = vmatprep.subr.bf16.mxu0 %v11141_v31  ;;  %v9816_v58 = vrot.slane %v7232_v14, %v8628_v27  ;;  %v845_v55 = vcombine.low %v7874_v1, %v9633_v13  ;;  %v861_v2 = vcombine.low %v9629_v49, %v9637_v17  ;;  %v846_v24 = vcombine.high %v7874_v1, %v9633_v13 }
 0x3d0   : > { %7514 = vmatpush3.bf16.msra.mxu1 %v9547_v63  ;;  %v7872_v63 = vld [vmem:[%s8494_s30 + $0x18] sm:$0xff]  ;;  %v7230_v52 = vcombine.high %v561_v57, %v568_v42  ;;  %v808_v23 = vrot.slane %v794_v36, %v8628_v27  ;;  %s8153_s30 = smov [#allocation13]  }
 0x3d1   : > { %7515 = vmatprep.subr.bf16.mxu1 %v11141_v31  ;;  %v709_v9 = vcombine.low %v7872_v63, %v9621_v3  ;;  %v710_v43 = vcombine.high %v7872_v63, %v9621_v3  ;;  %v1065_v3 = vcombine.low %v561_v57, %v568_v42  ;;  %v697_v63 = vrot.slane %v689_v28, %v8635_v38  ;;  %s8055_s11 = sshll.u32 %s8153_s30, 4  ;;  %s8056_s11 = int_to_ptr.vmem [resolvable:$false] %s8055_s11 }
 0x3d2   : > { %7506 = vmatpush3.bf16.msra.mxu0 %v9557_v29  ;;  %v649_v29 = vrot.slane %v641_v51, %v8628_v27  ;;  %v9793_v6 = vrot.slane %v7230_v52, %v8628_v27  ;;  %v869_v48 = vrot.slane %v861_v2, %v8628_v27  ;;  %s8057_s18 = scalar_lea.vmem %s8056_s11, 2048  ;;  %p8058_p4 = scmp.lt.s32.totalorder %s11009_s1, %s8056_s11 }
 0x3d3   : > { %7603 = vmatprep.subr.msk.bf16.mxu0 %vm4299_vm1, %v9205_v59  ;;  %v9779_v59 = vrot.slane %v1049_v21, %v8628_v27  ;;  %v717_v32 = vrot.slane %v709_v9, %v8628_v27  ;;  %v9790_v26 = vrot.slane %v1065_v3, %v8628_v27  ;;  %v778_v21 = vcombine.high %v7873_v33, %v9631_v7  ;;  %p8059_p13 = scmp.lt.s32.totalorder %s8057_s18, %s8051_s28 }
 0x3d4   : > { %7516 = vmatpush3.bf16.msra.mxu1 %v9555_v15  ;;  %v724_v15 = vrot.slane %v710_v43, %v8628_v27  ;;  %v674_v53 = vcombine.high %v649_v29, %v665_v34  ;;  %v704_v9 = vrot.slane %v690_v41, %v8635_v38 }
 0x3d5   : > { %7517 = vmatprep.subr.bf16.mxu1 %v11141_v31  ;;  %v673_v31 = vcombine.low %v649_v29, %v665_v34  ;;  %v741_v51 = vcombine.low %v717_v32, %v733_v25  ;;  %v742_v30 = vcombine.high %v717_v32, %v733_v25  ;;  %v792_v52 = vrot.slane %v778_v21, %v8628_v27  ;;  %p8060_p7 = por %p8059_p13, %p8058_p4 }
 0x3d6   : > { %v757_v57 = vcombine.low %v724_v15, %v740_v50  ;;  %v758_v42 = vcombine.high %v724_v15, %v740_v50  ;;  %v688_v19 = vrot.slane %v674_v53, %v8635_v38  ;;  %v1201_v56 = vcombine.low %v697_v63, %v704_v9 }
 0x3d7   : > { %v681_v54 = vrot.slane %v673_v31, %v8635_v38  ;;  %v749_v44 = vrot.slane %v741_v51, %v8635_v38  ;;  %v756_v39 = vrot.slane %v742_v30, %v8635_v38  ;;  %v7234_v61 = vcombine.high %v697_v63, %v704_v9  ;;  %p8061_p0 = pnand %p8060_p7, %p8054_p11 }
 0x3d8   : > { %7518 = vmatpush3.bf16.msra.mxu1 %v9559_v35  ;;  %v777_v35 = vcombine.low %v7873_v33, %v9631_v7  ;;  %v801_v7 = vrot.slane %v793_v0, %v8628_v27  ;;  %v765_v62 = vrot.slane %v757_v57, %v8635_v38  ;;  %v772_v29 = vrot.slane %v758_v42, %v8635_v38 }
 0x3d9   : > { %7604 = vmatprep.subr.msk.bf16.mxu1 %vm4299_vm1, %v9207_v18  ;;  %v1185_v34 = vcombine.low %v681_v54, %v688_v19  ;;  %v7233_v3 = vcombine.high %v681_v54, %v688_v19  ;;  %v862_v32 = vcombine.high %v9629_v49, %v9637_v17  ;;  %v853_v15 = vrot.slane %v845_v55, %v8628_v27  ;;  %v472_v19 = vpop.permute.xlu1 %471 }
 0x3da   : > { %v785_v43 = vrot.slane %v777_v35, %v8628_v27  ;;  %v1253_v14 = vcombine.low %v749_v44, %v756_v39  ;;  %v7235_v31 = vcombine.high %v749_v44, %v756_v39  ;;  %v1269_v53 = vcombine.low %v765_v62, %v772_v29 }
 0x3db   : > { %v7236_v28 = vcombine.high %v765_v62, %v772_v29  ;;  %v9838_v41 = vrot.slane %v1185_v34, %v8628_v27  ;;  %v9841_v33 = vrot.slane %v7233_v3, %v8628_v27  ;;  %v825_v13 = vcombine.low %v792_v52, %v808_v23 }
 0x3dc   : > { %v809_v25 = vcombine.low %v785_v43, %v801_v7  ;;  %v810_v50 = vcombine.high %v785_v43, %v801_v7  ;;  %v826_v35 = vcombine.high %v792_v52, %v808_v23  ;;  %v9844_v49 = vrot.slane %v1201_v56, %v8628_v27 }
 0x3dd   : > { %v9847_v17 = vrot.slane %v7234_v61, %v8628_v27  ;;  %v860_v0 = vrot.slane %v846_v24, %v8628_v27  ;;  %v876_v51 = vrot.slane %v862_v32, %v8628_v27  ;;  %v877_v42 = vcombine.low %v853_v15, %v869_v48 }
 0x3de   : > { %v817_v30 = vrot.slane %v809_v25, %v8635_v38  ;;  %v824_v57 = vrot.slane %v810_v50, %v8635_v38  ;;  %v878_v54 = vcombine.high %v853_v15, %v869_v48  ;;  %v9854_v21 = vrot.slane %v1253_v14, %v8628_v27  ;;  %v9885_v50 = vpop.permute.xlu0 %469 }
 0x3df   : > { %v9857_v36 = vrot.slane %v7235_v31, %v8628_v27  ;;  %v9860_v63 = vrot.slane %v1269_v53, %v8628_v27  ;;  %v9863_v9 = vrot.slane %v7236_v28, %v8628_v27  ;;  %v1217_v43 = vcombine.low %v9838_v41, %v9841_v33 }
 0x3e0   : > { %v833_v55 = vrot.slane %v825_v13, %v8635_v38  ;;  %v840_v7 = vrot.slane %v826_v35, %v8635_v38  ;;  %v1233_v2 = vcombine.low %v9844_v49, %v9847_v17  ;;  %v893_v39 = vcombine.low %v860_v0, %v876_v51 }
 0x3e1   : > { %11149 = vst [vmem:[#allocation25_spill] sm:$0xff] %v9860_v63  ;;  %11150 = vst [vmem:[#allocation26_spill] sm:$0xff] %v9863_v9  ;;  %v894_v62 = vcombine.high %v860_v0, %v876_v51  ;;  %v1321_v29 = vcombine.low %v817_v30, %v824_v57  ;;  %v7237_v34 = vcombine.high %v817_v30, %v824_v57 }
 0x3e2   : > { %v885_v3 = vrot.slane %v877_v42, %v8635_v38  ;;  %v892_v52 = vrot.slane %v878_v54, %v8635_v38  ;;  %v1285_v56 = vcombine.low %v9854_v21, %v9857_v36  ;;  %v1301_v24 = vcombine.low %v9860_v63, %v9863_v9 }
 0x3e3   : > { %v1337_v15 = vcombine.low %v833_v55, %v840_v7  ;;  %v7238_v25 = vcombine.high %v833_v55, %v840_v7  ;;  %v1081_v48 = vcombine.low %v9779_v59, %v9782_v60  ;;  %v1097_v14 = vcombine.low %v9790_v26, %v9793_v6 }
 0x3e4   : > { %v901_v31 = vrot.slane %v893_v39, %v8635_v38  ;;  %v908_v53 = vrot.slane %v894_v62, %v8635_v38  ;;  %v1149_v28 = vcombine.low %v9798_v8, %v9801_v20  ;;  %v1165_v13 = vcombine.low %v9813_v10, %v9816_v58 }
 0x3e5   : > { %v9898_v35 = vrot.slane %v1321_v29, %v8628_v27  ;;  %v9901_v0 = vrot.slane %v7237_v34, %v8628_v27  ;;  %v1389_v51 = vcombine.low %v885_v3, %v892_v52  ;;  %v981_v30 = vcombine.low %v9594_v46, %v472_v19 }
 0x3e6   : > { %v7239_v42 = vcombine.high %v885_v3, %v892_v52  ;;  %v9907_v7 = vrot.slane %v1337_v15, %v8628_v27  ;;  %v982_v39 = vcombine.high %v9594_v46, %v472_v19  ;;  %v9911_v29 = vrot.slane %v1081_v48, %v8635_v38 }
 0x3e7   : > { %v9914_v34 = vrot.slane %v1097_v14, %v8635_v38  ;;  %v9918_v3 = vrot.slane %v1149_v28, %v8635_v38  ;;  %v1405_v52 = vcombine.low %v901_v31, %v908_v53  ;;  %v989_v46 = vrot.slane %v981_v30, %v8628_v27 }
 0x3e8   : > { %v9926_v15 = vrot.slane %v7238_v25, %v8628_v27  ;;  %v9929_v48 = vrot.slane %v1389_v51, %v8628_v27  ;;  %v1082_v14 = vcombine.high %v9779_v59, %v9782_v60  ;;  %v1098_v28 = vcombine.high %v9790_v26, %v9793_v6 }
 0x3e9   : > { %v1113_v25 = vcombine.low %v9911_v29, %v9914_v34  ;;  %v9947_v59 = vrot.slane %v1233_v2, %v8635_v38  ;;  %v9950_v60 = vrot.slane %v1405_v52, %v8628_v27 }
 0x3ea   : > { %v4590_v23 = vpop.xlane.xlu1 %4589  ;;  %v1369_v61 = vcombine.low %v9907_v7, %v9926_v15 }
 0x3eb   : > { %7726 = vrcp.f32 %v4590_v23  ;;  %v7240_v23 = vcombine.high %v901_v31, %v908_v53  ;;  %v996_v31 = vrot.slane %v982_v39, %v8628_v27 }
 0x3ed   : > { %v9953_v26 = vrot.slane %v7240_v23, %v8628_v27 }
 0x3ee   : > { %v496_v57 = vpop.permute.xlu1 %495 }
 0x3ef   : > { %v997_v54 = vcombine.low %v9689_v22, %v496_v57  ;;  %v998_v55 = vcombine.high %v9689_v22, %v496_v57  ;;  %v9921_v22 = vrot.slane %v1165_v13, %v8635_v38  ;;  %v9936_v13 = vrot.slane %v7239_v42, %v8628_v27 }
 0x3f0   : > { %v4587_v62 = vpop.xlane.xlu0 %4586  ;;  %v1437_v1 = vcombine.low %v9950_v60, %v9953_v26 }
 0x3f1   : > { %v1005_v32 = vrot.slane %v997_v54, %v8628_v27  ;;  %7728 = vrcp.f32 %v4587_v62  ;;  %v1012_v19 = vrot.slane %v998_v55, %v8628_v27  ;;  %v1181_v51 = vcombine.low %v9918_v3, %v9921_v22 }
 0x3f2   : > { %v9944_v54 = vrot.slane %v1217_v43, %v8635_v38  ;;  %v9958_v55 = vrot.slane %v1082_v14, %v8635_v38  ;;  %v9961_v43 = vrot.slane %v1098_v28, %v8635_v38  ;;  %v9975_v28 = vrot.slane %v1285_v56, %v8635_v38 }
 0x3f3   : > { %v1013_v53 = vcombine.low %v989_v46, %v1005_v32  ;;  %v1014_v30 = vcombine.high %v989_v46, %v1005_v32  ;;  %v1029_v6 = vcombine.low %v996_v31, %v1012_v19  ;;  %v1030_v32 = vcombine.high %v996_v31, %v1012_v19 }
 0x3f4   : > { %v4593_v57 = vpop.xlane.xlu0 %4592  ;;  %v1593_v19 = vpack.c.bf16 %v1181_v51, %v1113_v25  ;;  %v1249_v14 = vcombine.low %v9944_v54, %v9947_v59  ;;  %v9981_v31 = vrot.slane %v1301_v24, %v8635_v38  ;;  %v913_v51 = vcombine.low %v9599_v47, %v9885_v50 }
 0x3f5   : > { %v1021_v39 = vrot.slane %v1013_v53, %v8635_v38  ;;  %v1028_v62 = vrot.slane %v1014_v30, %v8635_v38  ;;  %7730 = vrcp.f32 %v4593_v57  ;;  %v7727_v46 = vpop.eup %7726  ;;  %v1037_v53 = vrot.slane %v1029_v6, %v8635_v38 }
 0x3f6   : > { %v1044_v30 = vrot.slane %v1030_v32, %v8635_v38  ;;  %v1353_v57 = vcombine.low %v9898_v35, %v9901_v0  ;;  %v914_v56 = vcombine.high %v9599_v47, %v9885_v50  ;;  %v1421_v24 = vcombine.low %v9929_v48, %v9936_v13 }
 0x3f7   : > { %v4610_v6 = vmul.f32 %v7727_v46, %v9667_v5  ;;  %v1525_v32 = vcombine.low %v1021_v39, %v1028_v62  ;;  %v7243_v42 = vcombine.high %v1021_v39, %v1028_v62  ;;  %v1317_v50 = vcombine.low %v9975_v28, %v9981_v31 }
 0x3f8   : > { %v4596_v52 = vpop.xlane.xlu0 %4595  ;;  %v1541_v2 = vcombine.low %v1037_v53, %v1044_v30  ;;  %v7244_v9 = vcombine.high %v1037_v53, %v1044_v30  ;;  %v10004_v5 = vrot.slane %v1353_v57, %v8635_v38  ;;  %v928_v46 = vrot.slane %v914_v56, %v8628_v27 }
 0x3f9   : > { %7732 = vrcp.f32 %v4596_v52  ;;  %v10011_v62 = vrot.slane %v1525_v32, %v8628_v27  ;;  %v10021_v53 = vrot.slane %v1437_v1, %v8635_v38  ;;  %v10024_v30 = vrot.slane %v7243_v42, %v8628_v27 }
 0x3fa   : > { %v4413_v1 = vsel %vm4299_vm1, %v9275_v45, 0 }
 0x3fb   : > { %v7729_v25 = vpop.eup %7728 }
 0x3fc   : > { %v4609_v52 = vmul.f32 %v7729_v25, %v9671_v12  ;;  %v494_v44 = vpop.permute.xlu0 %493  ;;  %v921_v12 = vrot.slane %v913_v51, %v8628_v27 }
 0x3fd   : > { %v929_v23 = vcombine.low %v9687_v40, %v494_v44  ;;  %v930_v47 = vcombine.high %v9687_v40, %v494_v44  ;;  %v10015_v40 = vrot.slane %v1369_v61, %v8635_v38  ;;  %v10018_v44 = vrot.slane %v1421_v24, %v8635_v38 }
 0x3fe   : > { %v4615_v63 = vpack.c.bf16 %v4610_v6, %v4609_v52  ;;  %v10031_v61 = vrot.slane %v7244_v9, %v8628_v27  ;;  %v1594_v52 = vpack.c.bf16 %v1317_v50, %v1249_v14 }
 0x3ff   : > { %v937_v25 = vrot.slane %v929_v23, %v8628_v27  ;;  %v944_v39 = vrot.slane %v930_v47, %v8628_v27  ;;  %v7731_v56 = vpop.eup %7730  ;;  %v1453_v47 = vcombine.low %v10018_v44, %v10021_v53 }
 0x400   : > { %7508 = vmatmul.mubr.msk.bf16.vlgmr.msra.gmra.mrb[12].mxu0 %vm4524_vm2, %v4615_v63  ;;  %v10028_v63 = vrot.slane %v1541_v2, %v8628_v27  ;;  %v1182_v2 = vcombine.high %v9918_v3, %v9921_v22  ;;  %v1557_v3 = vcombine.low %v10011_v62, %v10024_v30 }
 0x401   : > { %v945_v23 = vcombine.low %v921_v12, %v937_v25  ;;  %v946_v57 = vcombine.high %v921_v12, %v937_v25  ;;  %v961_v51 = vcombine.low %v928_v46, %v944_v39  ;;  %7524 = vmatpush3.bf16.xpose.msra.mxu0 %v9745_v37  ;;  %v962_v24 = vcombine.high %v928_v46, %v944_v39 }
 0x402   : > { %7525 = vmatprep.mubr.msk.bf16.mxu0 %vm4299_vm1, %v1593_v19  ;;  %7605 = vmatprep.subr.msk.bf16.mxu0 %vm4299_vm1, %v9275_v45  ;;  %v1385_v19 = vcombine.low %v10004_v5, %v10015_v40  ;;  %v4611_v45 = vmul.f32 %v7731_v56, %v9675_v16  ;;  %v1573_v22 = vcombine.low %v10028_v63, %v10031_v61 }
 0x403   : > { %v953_v42 = vrot.slane %v945_v23, %v8635_v38  ;;  %v960_v37 = vrot.slane %v946_v57, %v8635_v38  ;;  %v969_v6 = vrot.slane %v961_v51, %v8635_v38  ;;  %v7733_v9 = vpop.eup %7732  ;;  %v976_v32 = vrot.slane %v962_v24, %v8635_v38 }
 0x404   : > { %v4612_v12 = vmul.f32 %v7733_v9, %v9679_v11  ;;  %v11151_v16 = vcombine.high %v9798_v8, %v9801_v20  ;;  %v1595_v24 = vpack.c.bf16 %v1453_v47, %v1385_v19  ;;  %v4357_v8 = vsel %vm4299_vm1, %v9207_v18, 0 }
 0x405   : > { %v1457_v46 = vcombine.low %v953_v42, %v960_v37  ;;  %v7241_v25 = vcombine.high %v953_v42, %v960_v37  ;;  %v1473_v39 = vcombine.low %v969_v6, %v976_v32  ;;  %v7242_v23 = vcombine.high %v969_v6, %v976_v32 }
 0x406   : > { %v4616_v57 = vpack.c.bf16 %v4612_v12, %v4611_v45  ;;  %v10064_v11 = vrot.slane %v11151_v16, %v8635_v38  ;;  %v11152_v42 = vcombine.high %v9813_v10, %v9816_v58  ;;  %v11153_v20 = vcombine.high %v9911_v29, %v9914_v34 }
 0x407   : > { %v10055_v14 = vrot.slane %v1457_v46, %v8628_v27  ;;  %v10058_v50 = vrot.slane %v7241_v25, %v8628_v27  ;;  %v10067_v51 = vrot.slane %v1473_v39, %v8628_v27  ;;  %v10070_v56 = vrot.slane %v7242_v23, %v8628_v27 }
 0x408   : > { %7526 = vmatmul.mubr.msk.bf16.vlgmr.msra.gmra.mrb[16].mxu0 %vm4299_vm1, %v1594_v52  ;;  %v1180_v37 = vrot.slane %v11152_v42, %v8635_v38  ;;  %7520 = vmatmul.mubr.msk.bf16.vlgmr.msra.gmra.mrb[12].mxu1 %vm4524_vm2, %v4616_v57  ;;  %v1597_v6 = vpack.c.bf16 %v1182_v2, %v11153_v20  ;;  %v1115_v32 = vcombine.low %v9958_v55, %v9961_v43 }
 0x409   : > { %7544 = vmatpush3.bf16.xpose.msra.mxu0 %v4413_v1  ;;  %v1489_v9 = vcombine.low %v10055_v14, %v10058_v50  ;;  %7534 = vmatpush3.bf16.xpose.msra.mxu1 %v4357_v8  ;;  %v1505_v10 = vcombine.low %v10067_v51, %v10070_v56  ;;  %v1565_v58 = vrot.slane %v1557_v3, %v8635_v38 }
 0x40a   : > { %7529 = vmatprep.mubr.msk.bf16.mxu0 %vm4299_vm1, %v1595_v24  ;;  %v1581_v18 = vrot.slane %v1573_v22, %v8635_v38  ;;  %7535 = vmatprep.mubr.msk.bf16.mxu1 %vm4299_vm1, %v1597_v6  ;;  %v1250_v29 = vcombine.high %v9944_v54, %v9947_v59  ;;  %v1318_v34 = vcombine.high %v9975_v28, %v9981_v31  ;;  %v4469_v31 = vsel %vm4299_vm1, %v9277_v4, 0 }
 0x40b   : > { %7606 = vmatprep.subr.msk.bf16.mxu1 %vm4299_vm1, %v9277_v4  ;;  %v1497_v1 = vrot.slane %v1489_v9, %v8635_v38  ;;  %v1513_v2 = vrot.slane %v1505_v10, %v8635_v38  ;;  %v1183_v52 = vcombine.low %v10064_v11, %v1180_v37  ;;  %v1354_v19 = vcombine.high %v9898_v35, %v9901_v0  ;;  %v11157_v4 = vld [vmem:[#allocation25_spill] sm:$0xff] }
 0x40c   : > { %v1370_v47 = vcombine.high %v9907_v7, %v9926_v15  ;;  %v1386_v45 = vcombine.high %v10004_v5, %v10015_v40  ;;  %v1454_v54 = vcombine.high %v10018_v44, %v10021_v53  ;;  %v1422_v59 = vcombine.high %v9929_v48, %v9936_v13 }
 0x40d   : > { %v1438_v28 = vcombine.high %v9950_v60, %v9953_v26  ;;  %v1521_v12 = vcombine.low %v1497_v1, %v1513_v2  ;;  %v1589_v35 = vcombine.low %v1565_v58, %v1581_v18  ;;  %v11154_v0 = vcombine.high %v9838_v41, %v9841_v33  ;;  %v11158_v26 = vld [vmem:[#allocation26_spill] sm:$0xff] }
 0x40e   : > { %v11155_v15 = vcombine.high %v9844_v49, %v9847_v17  ;;  %v11156_v48 = vcombine.high %v9854_v21, %v9857_v36  ;;  %v1598_v60 = vpack.c.bf16 %v1318_v34, %v1250_v29  ;;  %v11159_v40 = vcombine.high %v11157_v4, %v11158_v26 }
 0x40f   : > { %v1232_v7 = vrot.slane %v11154_v0, %v8635_v38  ;;  %v1596_v53 = vpack.c.bf16 %v1589_v35, %v1521_v12  ;;  %v1601_v46 = vpack.c.bf16 %v1183_v52, %v1115_v32  ;;  %v1368_v41 = vrot.slane %v1354_v19, %v8635_v38 }
 0x410   : > { %v1248_v5 = vrot.slane %v11155_v15, %v8635_v38  ;;  %v1300_v13 = vrot.slane %v11156_v48, %v8635_v38  ;;  %v1316_v44 = vrot.slane %v11159_v40, %v8635_v38  ;;  %7536 = vmatmul.mubr.msk.bf16.vlgmr.msra.gmra.mrb[16].mxu1 %vm4299_vm1, %v1598_v60  ;;  %v1599_v33 = vpack.c.bf16 %v1454_v54, %v1386_v45  ;;  %v4793_v48 = vld [vmem:[#allocation11] sm:$0xff] }
 0x411   : > { %v1384_v49 = vrot.slane %v1370_v47, %v8635_v38  ;;  %v1436_v17 = vrot.slane %v1422_v59, %v8635_v38  ;;  %v1452_v21 = vrot.slane %v1438_v28, %v8635_v38  ;;  %7554 = vmatpush3.bf16.xpose.msra.mxu1 %v4469_v31  ;;  %7530 = vmatmul.mubr.msk.bf16.gmra.mrb[20].mxu0 %vm4299_vm1, %v1596_v53 }
 0x412   : > { %7539 = vmatprep.mubr.msk.bf16.mxu1 %vm4299_vm1, %v1599_v33  ;;  %7545 = vmatprep.mubr.msk.bf16.mxu0 %vm4299_vm1, %v1601_v46  ;;  %v1522_v36 = vcombine.high %v1497_v1, %v1513_v2  ;;  %v1116_v25 = vcombine.high %v9958_v55, %v9961_v43  ;;  %v1184_v39 = vcombine.high %v10064_v11, %v1180_v37 }
 0x413   : > { %v1251_v23 = vcombine.low %v1232_v7, %v1248_v5  ;;  %v1319_v3 = vcombine.low %v1300_v13, %v1316_v44  ;;  %v1490_v22 = vcombine.high %v10055_v14, %v10058_v50  ;;  %v1506_v57 = vcombine.high %v10067_v51, %v10070_v56 }
 0x414   : > { %v1590_v16 = vcombine.high %v1565_v58, %v1581_v18  ;;  %v1387_v24 = vcombine.low %v1368_v41, %v1384_v49  ;;  %v1455_v42 = vcombine.low %v1436_v17, %v1452_v21  ;;  %v1558_v8 = vcombine.high %v10011_v62, %v10024_v30 }
 0x415   : > { %v1574_v20 = vcombine.high %v10028_v63, %v10031_v61  ;;  %v1602_v43 = vpack.c.bf16 %v1319_v3, %v1251_v23  ;;  %v1605_v11 = vpack.c.bf16 %v1184_v39, %v1116_v25  ;;  %v1504_v37 = vrot.slane %v1490_v22, %v8635_v38  ;;  %v4801_v25 = vld [vmem:[#allocation11 + $0x40] sm:$0xff]  ;;  %v4794_v39 = vld [vmem:[#allocation11 + $0x8] sm:$0xff]  ;;  %v4796_v3 = vld [vmem:[#allocation11 + $0x18] sm:$0xff] }
 0x416   : > { %v1600_v55 = vpack.c.bf16 %v1590_v16, %v1522_v36  ;;  %v1520_v6 = vrot.slane %v1506_v57, %v8635_v38  ;;  %v1603_v14 = vpack.c.bf16 %v1455_v42, %v1387_v24  ;;  %v1572_v50 = vrot.slane %v1558_v8, %v8635_v38  ;;  %v4803_v36 = vld [vmem:[#allocation11 + $0x50] sm:$0xff] }
 0x417   : > { %v1588_v62 = vrot.slane %v1574_v20, %v8635_v38  ;;  %v1252_v30 = vcombine.high %v1232_v7, %v1248_v5  ;;  %v1320_v63 = vcombine.high %v1300_v13, %v1316_v44  ;;  %v1388_v51 = vcombine.high %v1368_v41, %v1384_v49  ;;  %v4795_v5 = vld [vmem:[#allocation11 + $0x10] sm:$0xff] }
 0x418   : > { %7540 = vmatmul.mubr.msk.bf16.gmra.mrb[20].mxu1 %vm4299_vm1, %v1600_v55  ;;  %v1523_v61 = vcombine.low %v1504_v37, %v1520_v6  ;;  %v1456_v56 = vcombine.high %v1436_v17, %v1452_v21  ;;  %v1524_v18 = vcombine.high %v1504_v37, %v1520_v6  ;;  %v4799_v6 = vld [vmem:[#allocation11 + $0x30] sm:$0xff] }
 0x419   : > { %7546 = vmatmul.mubr.msk.bf16.vlgmr.msra.gmra.mrb[24].mxu0 %vm4299_vm1, %v1602_v43  ;;  %7555 = vmatprep.mubr.msk.bf16.mxu1 %vm4299_vm1, %v1605_v11  ;;  %v1591_v9 = vcombine.low %v1572_v50, %v1588_v62  ;;  %v1606_v32 = vpack.c.bf16 %v1320_v63, %v1252_v30  ;;  %v1592_v29 = vcombine.high %v1572_v50, %v1588_v62  ;;  %v4804_v62 = vld [vmem:[#allocation11 + $0x58] sm:$0xff] }
 0x41a   : > { %7549 = vmatprep.mubr.msk.bf16.mxu0 %vm4299_vm1, %v1603_v14  ;;  %v1607_v58 = vpack.c.bf16 %v1456_v56, %v1388_v51  ;;  %v4807_v51 = vld [vmem:[#allocation11 + $0x70] sm:$0xff] }
 0x41b   : > { %v1604_v10 = vpack.c.bf16 %v1591_v9, %v1523_v61  ;;  %v1608_v34 = vpack.c.bf16 %v1592_v29, %v1524_v18 }
 0x420   : > { %7556 = vmatmul.mubr.msk.bf16.vlgmr.msra.gmra.mrb[24].mxu1 %vm4299_vm1, %v1606_v32  ;;  %v4802_v32 = vld [vmem:[#allocation11 + $0x48] sm:$0xff] }
 0x421   : > { %7550 = vmatmul.mubr.msk.bf16.gmra.mrb[28].mxu0 %vm4299_vm1, %v1604_v10  ;;  %7559 = vmatprep.mubr.msk.bf16.mxu1 %vm4299_vm1, %v1607_v58 }
 0x428   : > { %7560 = vmatmul.mubr.msk.bf16.gmra.mrb[28].mxu1 %vm4299_vm1, %v1608_v34 }
 0x498   : > { %v4654_v1 = vpop.f32.mrb[8].mxu0 }
 0x499   : > { %v7485_v2 = vpop.f32.mrb[9].mxu0 }
 0x49a   : > { %v4657_v52 = vpop.f32.mrb[10].mxu0 }
 0x49b   : > { %v5502_v19 = vpack.c.bf16 %v4657_v52, %v4654_v1  ;;  %v7486_v47 = vpop.f32.mrb[11].mxu0 }
 0x49d   : > { %7563 = vmatprep.subr.bf16.mxu0 %v5502_v19 }
 0x49e   : > { %v4698_v45 = vpop.f32.mrb[8].mxu1  ;;  %7564 = vmatpush3.bf16.msra.mxu0 %v5502_v19  ;;  %v4797_v19 = vld [vmem:[#allocation11 + $0x20] sm:$0xff] }
 0x49f   : > { %v7497_v54 = vpop.f32.mrb[9].mxu1 }
 0x4a0   : > { %v4701_v59 = vpop.f32.mrb[10].mxu1 }
 0x4a1   : > { %v5503_v28 = vpack.c.bf16 %v4701_v59, %v4698_v45  ;;  %v7498_v31 = vpop.f32.mrb[11].mxu1  ;;  %v4800_v59 = vld [vmem:[#allocation11 + $0x38] sm:$0xff] }
 0x4a3   : > { %7573 = vmatprep.subr.bf16.mxu1 %v5503_v28 }
 0x4a4   : > { %7574 = vmatpush3.bf16.msra.mxu1 %v5503_v28 }
 0x4d3   : > { %v4742_v12 = vpop.f32.mrb[12].mxu0 }
 0x4d4   : > { %v7509_v35 = vpop.f32.mrb[13].mxu0 }
 0x4d5   : > { %v4745_v0 = vpop.f32.mrb[14].mxu0  ;;  %v4805_v35 = vld [vmem:[#allocation11 + $0x60] sm:$0xff] }
 0x4d6   : > { %v10163_v7 = vpack.c.bf16 %v4745_v0, %v4742_v12  ;;  %v7510_v15 = vpop.f32.mrb[15].mxu0 }
 0x4d8   : > { %7583 = vmatprep.subr.bf16.mxu0 %v10163_v7 }
 0x4db   : > { %v7527_v13 = vpop.f32.mrb[16].mxu0  ;;  %v4786_v60 = vpop.f32.mrb[12].mxu1 }
 0x4dc   : > { %v10166_v4 = vadd.f32 %v7527_v13, %v4795_v5  ;;  %v4871_v26 = vpop.f32.mrb[17].mxu0  ;;  %v7521_v40 = vpop.f32.mrb[13].mxu1  ;;  %v4808_v5 = vld [vmem:[#allocation11 + $0x78] sm:$0xff] }
 0x4dd   : > { %v10168_v44 = vadd.f32 %v4871_v26, %v4793_v48  ;;  %v7528_v53 = vpop.f32.mrb[18].mxu0  ;;  %v4789_v46 = vpop.f32.mrb[14].mxu1 }
 0x4de   : > { %v4874_v41 = vpop.f32.mrb[19].mxu0  ;;  %v5140_v33 = vsel %vm5133_vm3, %v10166_v4, -inf  ;;  %v10172_v49 = vpack.c.bf16 %v4789_v46, %v4786_v60  ;;  %v7522_v17 = vpop.f32.mrb[15].mxu1  ;;  %v10185_v37 = vadd.f32 %v7528_v53, %v4796_v3 }
 0x4df   : > { %5141 = vmax.xlane.f32.xlu1 %v5140_v33  ;;  %v5134_v21 = vsel %vm5133_vm3, %v10168_v44, -inf  ;;  %v10181_v20 = vadd.f32 %v4874_v41, %v4794_v39  ;;  %v4811_v33 = vld [vmem:[#allocation11 + $0x90] sm:$0xff] }
 0x4e0   : > { %5135 = vmax.xlane.f32.xlu0 %v5134_v21  ;;  %7593 = vmatprep.subr.bf16.mxu1 %v10172_v49  ;;  %v5143_v9 = vsel %vm5133_vm3, %v10185_v37, -inf }
 0x4e1   : > { %v5137_v63 = vsel %vm5133_vm3, %v10181_v20, -inf }
 0x4e3   : > { %v7537_v23 = vpop.f32.mrb[16].mxu1 }
 0x4e4   : > { %v10177_v22 = vadd.f32 %v7537_v23, %v4803_v36  ;;  %v7531_v57 = vpop.f32.mrb[20].mxu0  ;;  %v4948_v16 = vpop.f32.mrb[17].mxu1 }
 0x4e5   : > { %v10179_v24 = vadd.f32 %v4948_v16, %v4801_v25  ;;  %v4887_v42 = vpop.f32.mrb[21].mxu0  ;;  %v7538_v8 = vpop.f32.mrb[18].mxu1  ;;  %v10189_v30 = vadd.f32 %v7531_v57, %v4799_v6  ;;  %v4798_v25 = vld [vmem:[#allocation11 + $0x28] sm:$0xff]  ;;  %v4819_v57 = vld [vmem:[#allocation11 + $0xd0] sm:$0xff] }
 0x4e6   : > { %v7532_v55 = vpop.f32.mrb[22].mxu0  ;;  %v4951_v43 = vpop.f32.mrb[19].mxu1  ;;  %v5164_v11 = vsel %vm5133_vm3, %v10177_v22, -inf  ;;  %v10193_v61 = vadd.f32 %v7538_v8, %v4804_v62  ;;  %v10207_v28 = vadd.f32 %v4887_v42, %v4797_v19  ;;  %v4806_v8 = vld [vmem:[#allocation11 + $0x68] sm:$0xff]  ;;  %v4809_v62 = vld [vmem:[#allocation11 + $0x80] sm:$0xff]  ;;  %v4815_v19 = vld [vmem:[#allocation11 + $0xb0] sm:$0xff] }
 0x4e7   : > { %5165 = vmax.xlane.f32.xlu1 %v5164_v11  ;;  %v4890_v14 = vpop.f32.mrb[23].mxu0  ;;  %v5158_v50 = vsel %vm5133_vm3, %v10179_v24, -inf  ;;  %v5152_v52 = vsel %vm5133_vm3, %v10189_v30, -inf  ;;  %v10201_v47 = vadd.f32 %v4951_v43, %v4802_v32  ;;  %v10211_v12 = vadd.f32 %v7532_v55, %v4800_v59 }
 0x4e8   : > { %5159 = vmax.xlane.f32.xlu0 %v5158_v50  ;;  %v5167_v54 = vsel %vm5133_vm3, %v10193_v61, -inf  ;;  %v5146_v41 = vsel %vm5133_vm3, %v10207_v28, -inf  ;;  %v10231_v3 = vadd.f32 %v4890_v14, %v4798_v25 }
 0x4e9   : > { %v5161_v15 = vsel %vm5133_vm3, %v10201_v47, -inf  ;;  %v5155_v36 = vsel %vm5133_vm3, %v10211_v12, -inf }
 0x4eb   : > { %5138 = vmax.xlane.f32.xlu1 %v5137_v63  ;;  %v7541_v56 = vpop.f32.mrb[20].mxu1  ;;  %v5149_v63 = vsel %vm5133_vm3, %v10231_v3, -inf }
 0x4ec   : > { %5144 = vmax.xlane.f32.xlu0 %v5143_v9  ;;  %v4964_v10 = vpop.f32.mrb[21].mxu1  ;;  %v7547_v58 = vpop.f32.mrb[24].mxu0  ;;  %v10197_v34 = vadd.f32 %v7541_v56, %v4807_v51  ;;  %v4812_v51 = vld [vmem:[#allocation11 + $0x98] sm:$0xff] }
 0x4ed   : > { %v7542_v18 = vpop.f32.mrb[22].mxu1  ;;  %v5025_v29 = vpop.f32.mrb[25].mxu0  ;;  %v10215_v40 = vadd.f32 %v4964_v10, %v4805_v35  ;;  %v10227_v39 = vadd.f32 %v7547_v58, %v4811_v33  ;;  %v4817_v10 = vld [vmem:[#allocation11 + $0xc0] sm:$0xff]  ;;  %v4816_v33 = vld [vmem:[#allocation11 + $0xb8] sm:$0xff] }
 0x4ee   : > { %v4967_v1 = vpop.f32.mrb[23].mxu1  ;;  %v7548_v2 = vpop.f32.mrb[26].mxu0  ;;  %v5176_v31 = vsel %vm5133_vm3, %v10197_v34, -inf  ;;  %v10221_v17 = vadd.f32 %v7542_v18, %v4808_v5  ;;  %v10245_v56 = vadd.f32 %v5025_v29, %v4809_v62  ;;  %v4820_v18 = vld [vmem:[#allocation11 + $0xd8] sm:$0xff]  ;;  %v4818_v5 = vld [vmem:[#allocation11 + $0xc8] sm:$0xff] }
 0x4ef   : > { %5153 = vmax.xlane.f32.xlu1 %v5152_v52  ;;  %v10203_v45 = vpop.f32.mrb[27].mxu0  ;;  %v5170_v23 = vsel %vm5133_vm3, %v10215_v40, -inf  ;;  %v5188_v50 = vsel %vm5133_vm3, %v10227_v39, -inf  ;;  %v10241_v14 = vadd.f32 %v4967_v1, %v4806_v8  ;;  %v10249_v32 = vadd.f32 %v7548_v2, %v4812_v51  ;;  %v4824_v51 = vld [vmem:[#allocation11 + $0xf8] sm:$0xff] }
 0x4f0   : > { %5168 = vmax.xlane.f32.xlu0 %v5167_v54  ;;  %v5179_v42 = vsel %vm5133_vm3, %v10221_v17, -inf  ;;  %v5182_v52 = vsel %vm5133_vm3, %v10245_v56, -inf  ;;  %v4810_v54 = vld [vmem:[#allocation11 + $0x88] sm:$0xff] }
 0x4f1   : > { %v5173_v58 = vsel %vm5133_vm3, %v10241_v14, -inf  ;;  %v5191_v2 = vsel %vm5133_vm3, %v10249_v32, -inf  ;;  %v10266_v35 = vadd.f32 %v10203_v45, %v4810_v54 }
 0x4f3   : > { %v7557_v0 = vpop.f32.mrb[24].mxu1  ;;  %5177 = vmax.xlane.f32.xlu1 %v5176_v31  ;;  %v5185_v45 = vsel %vm5133_vm3, %v10266_v35, -inf }
 0x4f4   : > { %5162 = vmax.xlane.f32.xlu0 %v5161_v15  ;;  %v7551_v48 = vpop.f32.mrb[28].mxu0  ;;  %v5102_v13 = vpop.f32.mrb[25].mxu1  ;;  %v10237_v11 = vadd.f32 %v7557_v0, %v4819_v57  ;;  %v4813_v0 = vld [vmem:[#allocation11 + $0xa0] sm:$0xff]  ;;  %v4814_v57 = vld [vmem:[#allocation11 + $0xa8] sm:$0xff] }
 0x4f5   : > { %v5041_v60 = vpop.f32.mrb[29].mxu0  ;;  %v7558_v26 = vpop.f32.mrb[26].mxu1  ;;  %v10253_v1 = vadd.f32 %v5102_v13, %v4817_v10  ;;  %v10261_v59 = vadd.f32 %v7551_v48, %v4815_v19 }
 0x4f6   : > { %v10217_v53 = vpop.f32.mrb[30].mxu0  ;;  %v5105_v46 = vpop.f32.mrb[27].mxu1  ;;  %v5212_v9 = vsel %vm5133_vm3, %v10237_v11, -inf  ;;  %v10257_v29 = vadd.f32 %v7558_v26, %v4820_v18  ;;  %v10270_v13 = vadd.f32 %v5041_v60, %v4813_v0 }
 0x4f7   : > { %v10223_v21 = vpop.f32.mrb[31].mxu0  ;;  %5147 = vmax.xlane.f32.xlu1 %v5146_v41  ;;  %v5206_v31 = vsel %vm5133_vm3, %v10253_v1, -inf  ;;  %v5200_v26 = vsel %vm5133_vm3, %v10261_v59, -inf  ;;  %v10274_v48 = vadd.f32 %v5105_v46, %v4818_v5  ;;  %v4821_v41 = vld [vmem:[#allocation11 + $0xe0] sm:$0xff]  ;;  %v10283_v60 = vadd.f32 %v10217_v53, %v4816_v33 }
 0x4f8   : > { %5156 = vmax.xlane.f32.xlu0 %v5155_v36  ;;  %v5215_v15 = vsel %vm5133_vm3, %v10257_v29, -inf  ;;  %v5194_v25 = vsel %vm5133_vm3, %v10270_v13, -inf }
 0x4f9   : > { %v5209_v46 = vsel %vm5133_vm3, %v10274_v48, -inf  ;;  %v5203_v53 = vsel %vm5133_vm3, %v10283_v60, -inf }
 0x4fb   : > { %v7561_v16 = vpop.f32.mrb[28].mxu1  ;;  %5171 = vmax.xlane.f32.xlu1 %v5170_v23  ;;  %v4823_v23 = vld [vmem:[#allocation11 + $0xf0] sm:$0xff] }
 0x4fc   : > { %v5118_v55 = vpop.f32.mrb[29].mxu1  ;;  %5180 = vmax.xlane.f32.xlu0 %v5179_v42  ;;  %v10287_v42 = vadd.f32 %v7561_v16, %v4823_v23 }
 0x4fd   : > { %v10235_v43 = vpop.f32.mrb[30].mxu1  ;;  %v10278_v36 = vadd.f32 %v5118_v55, %v4821_v41  ;;  %v10292_v55 = vadd.f32 %v10223_v21, %v4814_v57 }
 0x4fe   : > { %v5121_v6 = vpop.f32.mrb[31].mxu1  ;;  %v5224_v62 = vsel %vm5133_vm3, %v10287_v42, -inf  ;;  %v10303_v21 = vadd.f32 %v10235_v43, %v4824_v51 }
 0x4ff   : > { %5189 = vmax.xlane.f32.xlu1 %v5188_v50  ;;  %v5218_v8 = vsel %vm5133_vm3, %v10278_v36, -inf  ;;  %v4822_v50 = vld [vmem:[#allocation11 + $0xe8] sm:$0xff]  ;;  %v5197_v16 = vsel %vm5133_vm3, %v10292_v55, -inf }
 0x500   : > { %5150 = vmax.xlane.f32.xlu0 %v5149_v63  ;;  %v10298_v63 = vadd.f32 %v5121_v6, %v4822_v50  ;;  %v5227_v10 = vsel %vm5133_vm3, %v10303_v21, -inf }
 0x503   : > { %5213 = vmax.xlane.f32.xlu1 %v5212_v9  ;;  %v5221_v9 = vsel %vm5133_vm3, %v10298_v63, -inf }
 0x504   : > { %5174 = vmax.xlane.f32.xlu0 %v5173_v58 }
 0x507   : > { %5183 = vmax.xlane.f32.xlu1 %v5182_v52 }
 0x508   : > { %5192 = vmax.xlane.f32.xlu0 %v5191_v2 }
 0x50b   : > { %5207 = vmax.xlane.f32.xlu1 %v5206_v31 }
 0x50c   : > { %5216 = vmax.xlane.f32.xlu0 %v5215_v15 }
 0x50f   : > { %5201 = vmax.xlane.f32.xlu1 %v5200_v26 }
 0x510   : > { %5186 = vmax.xlane.f32.xlu0 %v5185_v45 }
 0x513   : > { %5195 = vmax.xlane.f32.xlu1 %v5194_v25 }
 0x514   : > { %5210 = vmax.xlane.f32.xlu0 %v5209_v46 }
 0x517   : > { %5219 = vmax.xlane.f32.xlu1 %v5218_v8 }
 0x518   : > { %5204 = vmax.xlane.f32.xlu0 %v5203_v53 }
 0x51b   : > { %5225 = vmax.xlane.f32.xlu1 %v5224_v62 }
 0x51c   : > { %5198 = vmax.xlane.f32.xlu0 %v5197_v16 }
 0x520   : > { %5222 = vmax.xlane.f32.xlu0 %v5221_v9 }
 0x524   : > { %5228 = vmax.xlane.f32.xlu0 %v5227_v10 }
 0x56c   : > { %v5142_v58 = vpop.xlane.xlu1 %5141 }
 0x56d   : > { %v5232_v6 = vsub.f32 %v10166_v4, %v5142_v58  ;;  %v5136_v52 = vpop.xlane.xlu0 %5135 }
 0x56e   : > { %v5230_v19 = vsub.f32 %v10168_v44, %v5136_v52 }
 0x56f   : > { %v5266_v18 = vmul.f32 1.442695, %v5232_v6 }
 0x570   : > { %v5262_v31 = vmul.f32 1.442695, %v5230_v19 }
 0x571   : > { %7734 = vpow2.f32 %v5266_v18 }
 0x574   : > { %v5166_v2 = vpop.xlane.xlu1 %5165 }
 0x575   : > { %v5240_v43 = vsub.f32 %v10177_v22, %v5166_v2  ;;  %v5160_v54 = vpop.xlane.xlu0 %5159 }
 0x576   : > { %v5238_v15 = vsub.f32 %v10179_v24, %v5160_v54 }
 0x577   : > { %v5282_v0 = vmul.f32 1.442695, %v5240_v43 }
 0x578   : > { %v5139_v5 = vpop.xlane.xlu1 %5138  ;;  %v5278_v45 = vmul.f32 1.442695, %v5238_v15 }
 0x579   : > { %7736 = vpow2.f32 %v5282_v0  ;;  %v5145_v26 = vpop.xlane.xlu0 %5144  ;;  %v5231_v33 = vsub.f32 %v10181_v20, %v5139_v5 }
 0x57a   : > { %v5233_v4 = vsub.f32 %v10185_v37, %v5145_v26  ;;  %7738 = vpow2.f32 %v5262_v31 }
 0x57b   : > { %v10313_v41 = vpop.eup %7734  ;;  %v5264_v8 = vmul.f32 1.442695, %v5231_v33 }
 0x57c   : > { %v5332_v44 = vsel %vm5133_vm3, %v10313_v41, 0.0  ;;  %v5268_v22 = vmul.f32 1.442695, %v5233_v4  ;;  %v5154_v25 = vpop.xlane.xlu1 %5153 }
 0x57d   : > { %5333 = vadd.xlane.f32.xlu1 %v5332_v44  ;;  %v5236_v23 = vsub.f32 %v10189_v30, %v5154_v25  ;;  %v5169_v24 = vpop.xlane.xlu0 %5168 }
 0x57e   : > { %7740 = vpow2.f32 %v5268_v22  ;;  %v5241_v46 = vsub.f32 %v10193_v61, %v5169_v24 }
 0x57f   : > { %7742 = vpow2.f32 %v5278_v45  ;;  %v5274_v57 = vmul.f32 1.442695, %v5236_v23 }
 0x580   : > { %v5284_v37 = vmul.f32 1.442695, %v5241_v46  ;;  %v5178_v53 = vpop.xlane.xlu1 %5177 }
 0x581   : > { %v5244_v50 = vsub.f32 %v10197_v34, %v5178_v53  ;;  %v5163_v62 = vpop.xlane.xlu0 %5162 }
 0x582   : > { %7744 = vpow2.f32 %v5284_v37  ;;  %v5239_v20 = vsub.f32 %v10201_v47, %v5163_v62 }
 0x583   : > { %v10323_v16 = vpop.eup %7736  ;;  %7746 = vpow2.f32 %v5274_v57  ;;  %v5290_v51 = vmul.f32 1.442695, %v5244_v50 }
 0x584   : > { %7748 = vpow2.f32 %v5264_v8  ;;  %v5280_v30 = vmul.f32 1.442695, %v5239_v20  ;;  %v5148_v9 = vpop.xlane.xlu1 %5147  ;;  %v5356_v61 = vsel %vm5133_vm3, %v10323_v16, 0.0  ;;  %v10327_v10 = vpop.eup %7738 }
 0x585   : > { %v5234_v58 = vsub.f32 %v10207_v28, %v5148_v9  ;;  %v5157_v6 = vpop.xlane.xlu0 %5156  ;;  %5357 = vadd.xlane.f32.xlu1 %v5356_v61  ;;  %7750 = vpow2.f32 %v5290_v51  ;;  %v5326_v2 = vsel %vm5133_vm3, %v10327_v10, 0.0 }
 0x586   : > { %v5237_v34 = vsub.f32 %v10211_v12, %v5157_v6  ;;  %7752 = vpow2.f32 %v5280_v30 }
 0x587   : > { %v5270_v47 = vmul.f32 1.442695, %v5234_v58 }
 0x588   : > { %v10331_v18 = vpop.eup %7740  ;;  %v5276_v52 = vmul.f32 1.442695, %v5237_v34  ;;  %v5172_v19 = vpop.xlane.xlu1 %5171 }
 0x589   : > { %v10335_v43 = vpop.eup %7742  ;;  %v5242_v54 = vsub.f32 %v10215_v40, %v5172_v19  ;;  %v5181_v31 = vpop.xlane.xlu0 %5180  ;;  %5327 = vadd.xlane.f32.xlu1 %v5326_v2  ;;  %v5335_v28 = vsel %vm5133_vm3, %v10331_v18, 0.0  ;;  %7754 = vpow2.f32 %v5270_v47 }
 0x58a   : > { %v5245_v12 = vsub.f32 %v10221_v17, %v5181_v31  ;;  %5336 = vadd.xlane.f32.xlu0 %v5335_v28  ;;  %7756 = vpow2.f32 %v5276_v52  ;;  %v5350_v4 = vsel %vm5133_vm3, %v10335_v43, 0.0 }
 0x58b   : > { %v5286_v0 = vmul.f32 1.442695, %v5242_v54 }
 0x58c   : > { %v10341_v15 = vpop.eup %7744  ;;  %v5292_v5 = vmul.f32 1.442695, %v5245_v12  ;;  %v5190_v26 = vpop.xlane.xlu1 %5189 }
 0x58d   : > { %v10345_v45 = vpop.eup %7746  ;;  %v5248_v40 = vsub.f32 %v10227_v39, %v5190_v26  ;;  %v5151_v44 = vpop.xlane.xlu0 %5150  ;;  %5351 = vadd.xlane.f32.xlu1 %v5350_v4  ;;  %v5359_v17 = vsel %vm5133_vm3, %v10341_v15, 0.0  ;;  %7758 = vpow2.f32 %v5286_v0 }
 0x58e   : > { %v10350_v33 = vpop.eup %7748  ;;  %v5235_v22 = vsub.f32 %v10231_v3, %v5151_v44  ;;  %5360 = vadd.xlane.f32.xlu0 %v5359_v17  ;;  %7760 = vpow2.f32 %v5292_v5  ;;  %v5344_v46 = vsel %vm5133_vm3, %v10345_v45, 0.0 }
 0x58f   : > { %v5298_v25 = vmul.f32 1.442695, %v5248_v40  ;;  %v10355_v57 = vpop.eup %7750  ;;  %v5329_v37 = vsel %vm5133_vm3, %v10350_v33, 0.0 }
 0x590   : > { %v5272_v23 = vmul.f32 1.442695, %v5235_v22  ;;  %v5214_v24 = vpop.xlane.xlu1 %5213  ;;  %v10360_v53 = vpop.eup %7752  ;;  %v5368_v51 = vsel %vm5133_vm3, %v10355_v57, 0.0 }
 0x591   : > { %v5256_v39 = vsub.f32 %v10237_v11, %v5214_v24  ;;  %v5175_v8 = vpop.xlane.xlu0 %5174  ;;  %5345 = vadd.xlane.f32.xlu1 %v5344_v46  ;;  %7762 = vpow2.f32 %v5298_v25  ;;  %v5353_v61 = vsel %vm5133_vm3, %v10360_v53, 0.0 }
 0x592   : > { %v5243_v3 = vsub.f32 %v10241_v14, %v5175_v8  ;;  %5330 = vadd.xlane.f32.xlu0 %v5329_v37  ;;  %7764 = vpow2.f32 %v5272_v23 }
 0x593   : > { %v5314_v50 = vmul.f32 1.442695, %v5256_v39  ;;  %v10365_v30 = vpop.eup %7754 }
 0x594   : > { %v5288_v62 = vmul.f32 1.442695, %v5243_v3  ;;  %v5184_v20 = vpop.xlane.xlu1 %5183  ;;  %v10370_v58 = vpop.eup %7756  ;;  %v5338_v52 = vsel %vm5133_vm3, %v10365_v30, 0.0 }
 0x595   : > { %v5246_v11 = vsub.f32 %v10245_v56, %v5184_v20  ;;  %v5193_v9 = vpop.xlane.xlu0 %5192  ;;  %5369 = vadd.xlane.f32.xlu1 %v5368_v51  ;;  %7766 = vpow2.f32 %v5314_v50  ;;  %v5347_v54 = vsel %vm5133_vm3, %v10370_v58, 0.0 }
 0x596   : > { %v5249_v14 = vsub.f32 %v10249_v32, %v5193_v9  ;;  %5354 = vadd.xlane.f32.xlu0 %v5353_v61  ;;  %7768 = vpow2.f32 %v5288_v62 }
 0x597   : > { %v5294_v6 = vmul.f32 1.442695, %v5246_v11  ;;  %v10375_v19 = vpop.eup %7758 }
 0x598   : > { %v5300_v34 = vmul.f32 1.442695, %v5249_v14  ;;  %v5208_v47 = vpop.xlane.xlu1 %5207  ;;  %v10380_v31 = vpop.eup %7760  ;;  %v5362_v5 = vsel %vm5133_vm3, %v10375_v19, 0.0 }
 0x599   : > { %v5254_v56 = vsub.f32 %v10253_v1, %v5208_v47  ;;  %v5217_v2 = vpop.xlane.xlu0 %5216  ;;  %5339 = vadd.xlane.f32.xlu1 %v5338_v52  ;;  %7770 = vpow2.f32 %v5294_v6  ;;  %v5371_v40 = vsel %vm5133_vm3, %v10380_v31, 0.0 }
 0x59a   : > { %v5257_v32 = vsub.f32 %v10257_v29, %v5217_v2  ;;  %5348 = vadd.xlane.f32.xlu0 %v5347_v54  ;;  %7772 = vpow2.f32 %v5300_v34 }
 0x59b   : > { %v5310_v28 = vmul.f32 1.442695, %v5254_v56  ;;  %v10385_v26 = vpop.eup %7762 }
 0x59c   : > { %v5316_v12 = vmul.f32 1.442695, %v5257_v32  ;;  %v5202_v0 = vpop.xlane.xlu1 %5201  ;;  %v10390_v44 = vpop.eup %7764  ;;  %v5380_v23 = vsel %vm5133_vm3, %v10385_v26, 0.0 }
 0x59d   : > { %v5252_v1 = vsub.f32 %v10261_v59, %v5202_v0  ;;  %v5187_v4 = vpop.xlane.xlu0 %5186  ;;  %5363 = vadd.xlane.f32.xlu1 %v5362_v5  ;;  %7774 = vpow2.f32 %v5310_v28  ;;  %v5341_v39 = vsel %vm5133_vm3, %v10390_v44, 0.0 }
 0x59e   : > { %v5247_v29 = vsub.f32 %v10266_v35, %v5187_v4  ;;  %5372 = vadd.xlane.f32.xlu0 %v5371_v40  ;;  %7776 = vpow2.f32 %v5316_v12 }
 0x59f   : > { %v5306_v17 = vmul.f32 1.442695, %v5252_v1  ;;  %v10395_v24 = vpop.eup %7766 }
 0x5a0   : > { %v5296_v22 = vmul.f32 1.442695, %v5247_v29  ;;  %v5196_v25 = vpop.xlane.xlu1 %5195  ;;  %v10400_v8 = vpop.eup %7768  ;;  %v5404_v62 = vsel %vm5133_vm3, %v10395_v24, 0.0 }
 0x5a1   : > { %v5250_v59 = vsub.f32 %v10270_v13, %v5196_v25  ;;  %v5211_v46 = vpop.xlane.xlu0 %5210  ;;  %5381 = vadd.xlane.f32.xlu1 %v5380_v23  ;;  %7778 = vpow2.f32 %v5306_v17  ;;  %v5365_v11 = vsel %vm5133_vm3, %v10400_v8, 0.0 }
 0x5a2   : > { %v5255_v35 = vsub.f32 %v10274_v48, %v5211_v46  ;;  %5342 = vadd.xlane.f32.xlu0 %v5341_v39  ;;  %7780 = vpow2.f32 %v5296_v22 }
 0x5a3   : > { %v5302_v37 = vmul.f32 1.442695, %v5250_v59  ;;  %v10405_v20 = vpop.eup %7770 }
 0x5a4   : > { %v5312_v3 = vmul.f32 1.442695, %v5255_v35  ;;  %v5220_v50 = vpop.xlane.xlu1 %5219  ;;  %v10410_v9 = vpop.eup %7772  ;;  %v5374_v34 = vsel %vm5133_vm3, %v10405_v20, 0.0 }
 0x5a5   : > { %v5258_v13 = vsub.f32 %v10278_v36, %v5220_v50  ;;  %v5205_v51 = vpop.xlane.xlu0 %5204  ;;  %5405 = vadd.xlane.f32.xlu1 %v5404_v62  ;;  %7782 = vpow2.f32 %v5302_v37  ;;  %v5383_v56 = vsel %vm5133_vm3, %v10410_v9, 0.0 }
 0x5a6   : > { %v5253_v48 = vsub.f32 %v10283_v60, %v5205_v51  ;;  %5366 = vadd.xlane.f32.xlu0 %v5365_v11  ;;  %7784 = vpow2.f32 %v5312_v3 }
 0x5a7   : > { %v5318_v61 = vmul.f32 1.442695, %v5258_v13  ;;  %v10415_v47 = vpop.eup %7774 }
 0x5a8   : > { %v5308_v14 = vmul.f32 1.442695, %v5253_v48  ;;  %v5226_v6 = vpop.xlane.xlu1 %5225  ;;  %v10420_v2 = vpop.eup %7776  ;;  %v5398_v28 = vsel %vm5133_vm3, %v10415_v47, 0.0 }
 0x5a9   : > { %v5260_v36 = vsub.f32 %v10287_v42, %v5226_v6  ;;  %v5199_v52 = vpop.xlane.xlu0 %5198  ;;  %5375 = vadd.xlane.f32.xlu1 %v5374_v34  ;;  %7786 = vpow2.f32 %v5318_v61  ;;  %v5407_v0 = vsel %vm5133_vm3, %v10420_v2, 0.0 }
 0x5aa   : > { %v5251_v60 = vsub.f32 %v10292_v55, %v5199_v52  ;;  %5384 = vadd.xlane.f32.xlu0 %v5383_v56  ;;  %7788 = vpow2.f32 %v5308_v14 }
 0x5ab   : > { %v5322_v54 = vmul.f32 1.442695, %v5260_v36  ;;  %v10425_v12 = vpop.eup %7778 }
 0x5ac   : > { %v5304_v32 = vmul.f32 1.442695, %v5251_v60  ;;  %v10429_v5 = vpop.eup %7780  ;;  %v5392_v4 = vsel %vm5133_vm3, %v10425_v12, 0.0 }
 0x5ad   : > { %v5223_v42 = vpop.xlane.xlu0 %5222  ;;  %5399 = vadd.xlane.f32.xlu1 %v5398_v28  ;;  %7790 = vpow2.f32 %v5322_v54  ;;  %v5377_v17 = vsel %vm5133_vm3, %v10429_v5, 0.0 }
 0x5ae   : > { %v5259_v1 = vsub.f32 %v10298_v63, %v5223_v42  ;;  %5408 = vadd.xlane.f32.xlu0 %v5407_v0  ;;  %7792 = vpow2.f32 %v5304_v32 }
 0x5af   : > { %v10434_v40 = vpop.eup %7782 }
 0x5b0   : > { %v5320_v55 = vmul.f32 1.442695, %v5259_v1  ;;  %v10438_v22 = vpop.eup %7784  ;;  %v5386_v23 = vsel %vm5133_vm3, %v10434_v40, 0.0 }
 0x5b1   : > { %v5229_v29 = vpop.xlane.xlu0 %5228  ;;  %5393 = vadd.xlane.f32.xlu1 %v5392_v4  ;;  %v5401_v46 = vsel %vm5133_vm3, %v10438_v22, 0.0 }
 0x5b2   : > { %v5261_v25 = vsub.f32 %v10303_v21, %v5229_v29  ;;  %5378 = vadd.xlane.f32.xlu0 %v5377_v17  ;;  %7794 = vpow2.f32 %v5320_v55 }
 0x5b3   : > { %v10443_v59 = vpop.eup %7786 }
 0x5b4   : > { %v5324_v63 = vmul.f32 1.442695, %v5261_v25  ;;  %v10447_v39 = vpop.eup %7788  ;;  %v5410_v35 = vsel %vm5133_vm3, %v10443_v59, 0.0 }
 0x5b5   : > { %5387 = vadd.xlane.f32.xlu1 %v5386_v23  ;;  %v5395_v37 = vsel %vm5133_vm3, %v10447_v39, 0.0 }
 0x5b6   : > { %5402 = vadd.xlane.f32.xlu0 %v5401_v46  ;;  %7796 = vpow2.f32 %v5324_v63 }
 0x5b7   : > { %v10451_v21 = vpop.eup %7790 }
 0x5b8   : > { %v10455_v3 = vpop.eup %7792  ;;  %v5416_v50 = vsel %vm5133_vm3, %v10451_v21, 0.0 }
 0x5b9   : > { %5411 = vadd.xlane.f32.xlu1 %v5410_v35  ;;  %v5389_v62 = vsel %vm5133_vm3, %v10455_v3, 0.0 }
 0x5ba   : > { %5396 = vadd.xlane.f32.xlu0 %v5395_v37 }
 0x5bc   : > { %v10461_v13 = vpop.eup %7794 }
 0x5bd   : > { %5417 = vadd.xlane.f32.xlu1 %v5416_v50  ;;  %v5413_v51 = vsel %vm5133_vm3, %v10461_v13, 0.0 }
 0x5be   : > { %5390 = vadd.xlane.f32.xlu0 %v5389_v62 }
 0x5c0   : > { %v10465_v11 = vpop.eup %7796 }
 0x5c1   : > { %v5419_v48 = vsel %vm5133_vm3, %v10465_v11, 0.0 }
 0x5c2   : > { %5414 = vadd.xlane.f32.xlu0 %v5413_v51 }
 0x5c6   : > { %5420 = vadd.xlane.f32.xlu0 %v5419_v48 }
 0x60a   : > { %v5334_v61 = vpop.xlane.xlu1 %5333 }
 0x612   : > { %v5358_v14 = vpop.xlane.xlu1 %5357 }
 0x616   : > { %v5328_v6 = vpop.xlane.xlu1 %5327 }
 0x617   : > { %v5337_v34 = vpop.xlane.xlu0 %5336 }
 0x618   : > { %7798 = vrcp.f32 %v5337_v34 }
 0x619   : > { %7800 = vrcp.f32 %v5328_v6 }
 0x61a   : > { %v5352_v36 = vpop.xlane.xlu1 %5351  ;;  %7802 = vrcp.f32 %v5334_v61 }
 0x61b   : > { %v5361_v52 = vpop.xlane.xlu0 %5360 }
 0x61e   : > { %v5346_v56 = vpop.xlane.xlu1 %5345 }
 0x61f   : > { %v5331_v60 = vpop.xlane.xlu0 %5330 }
 0x620   : > { %7804 = vrcp.f32 %v5331_v60 }
 0x621   : > { %7806 = vrcp.f32 %v5361_v52 }
 0x622   : > { %7808 = vrcp.f32 %v5352_v36  ;;  %v5370_v54 = vpop.xlane.xlu1 %5369  ;;  %v7799_v42 = vpop.eup %7798 }
 0x623   : > { %7810 = vrcp.f32 %v5358_v14  ;;  %v5355_v32 = vpop.xlane.xlu0 %5354  ;;  %v7801_v1 = vpop.eup %7800  ;;  %v5457_v29 = vmul.f32 %v7799_v42, %v10331_v18 }
 0x624   : > { %7812 = vrcp.f32 %v5355_v32  ;;  %v7803_v55 = vpop.eup %7802  ;;  %v5454_v23 = vmul.f32 %v7801_v1, %v10327_v10 }
 0x625   : > { %v5456_v37 = vmul.f32 %v7803_v55, %v10313_v41 }
 0x626   : > { %v5340_v28 = vpop.xlane.xlu1 %5339 }
 0x627   : > { %v5349_v0 = vpop.xlane.xlu0 %5348  ;;  %v5487_v48 = vpack.c.bf16 %v5457_v29, %v5456_v37 }
 0x628   : > { %7814 = vrcp.f32 %v5349_v0 }
 0x629   : > { %7816 = vrcp.f32 %v5340_v28 }
 0x62a   : > { %v7805_v4 = vpop.eup %7804  ;;  %v5364_v17 = vpop.xlane.xlu1 %5363  ;;  %7818 = vrcp.f32 %v5346_v56 }
 0x62b   : > { %v7807_v25 = vpop.eup %7806  ;;  %v5373_v63 = vpop.xlane.xlu0 %5372  ;;  %v5455_v46 = vmul.f32 %v7805_v4, %v10350_v33 }
 0x62c   : > { %v7809_v35 = vpop.eup %7808  ;;  %v5465_v61 = vmul.f32 %v7807_v25, %v10341_v15 }
 0x62d   : > { %v7811_v50 = vpop.eup %7810  ;;  %v5486_v62 = vpack.c.bf16 %v5455_v46, %v5454_v23  ;;  %v5462_v10 = vmul.f32 %v7809_v35, %v10335_v43 }
 0x62e   : > { %v7813_v51 = vpop.eup %7812  ;;  %v5382_v14 = vpop.xlane.xlu1 %5381  ;;  %v5464_v6 = vmul.f32 %v7811_v50, %v10323_v16 }
 0x62f   : > { %v5343_v18 = vpop.xlane.xlu0 %5342  ;;  %7565 = vmatprep.mubr.msk.bf16.mxu0 %vm5133_vm3, %v5486_v62  ;;  %v5463_v33 = vmul.f32 %v7813_v51, %v10360_v53 }
 0x630   : > { %7820 = vrcp.f32 %v5343_v18  ;;  %7566 = vmatmul.mubr.msk.bf16.vlgmr.msra.gmra.mrb[32].mxu0 %vm5133_vm3, %v5487_v48  ;;  %v5491_v15 = vpack.c.bf16 %v5465_v61, %v5464_v6 }
 0x631   : > { %7822 = vrcp.f32 %v5373_v63  ;;  %7584 = vmatpush3.bf16.msra.mxu0 %v10163_v7  ;;  %v5490_v41 = vpack.c.bf16 %v5463_v33, %v5462_v10 }
 0x632   : > { %7824 = vrcp.f32 %v5364_v17  ;;  %v5406_v34 = vpop.xlane.xlu1 %5405  ;;  %v7815_v43 = vpop.eup %7814 }
 0x633   : > { %7826 = vrcp.f32 %v5370_v54  ;;  %v5367_v36 = vpop.xlane.xlu0 %5366  ;;  %7575 = vmatprep.mubr.msk.bf16.mxu1 %vm5133_vm3, %v5490_v41  ;;  %v7817_v52 = vpop.eup %7816  ;;  %v5461_v32 = vmul.f32 %v7815_v43, %v10370_v58 }
 0x634   : > { %7828 = vrcp.f32 %v5367_v36  ;;  %7576 = vmatmul.mubr.msk.bf16.vlgmr.msra.gmra.mrb[32].mxu1 %vm5133_vm3, %v5491_v15  ;;  %v7819_v56 = vpop.eup %7818  ;;  %v5458_v54 = vmul.f32 %v7817_v52, %v10365_v30 }
 0x635   : > { %7594 = vmatpush3.bf16.msra.mxu1 %v10172_v49  ;;  %v5460_v55 = vmul.f32 %v7819_v56, %v10345_v45 }
 0x636   : > { %v5376_v16 = vpop.xlane.xlu1 %5375 }
 0x637   : > { %v5385_v53 = vpop.xlane.xlu0 %5384  ;;  %v5489_v25 = vpack.c.bf16 %v5461_v32, %v5460_v55 }
 0x638   : > { %7830 = vrcp.f32 %v5385_v53 }
 0x639   : > { %7832 = vrcp.f32 %v5376_v16 }
 0x63a   : > { %v7821_v60 = vpop.eup %7820  ;;  %v5400_v7 = vpop.xlane.xlu1 %5399  ;;  %7834 = vrcp.f32 %v5382_v14 }
 0x63b   : > { %v7823_v28 = vpop.eup %7822  ;;  %v5409_v42 = vpop.xlane.xlu0 %5408  ;;  %v5459_v0 = vmul.f32 %v7821_v60, %v10390_v44 }
 0x63c   : > { %v7825_v1 = vpop.eup %7824  ;;  %v5469_v63 = vmul.f32 %v7823_v28, %v10380_v31 }
 0x63d   : > { %v7827_v4 = vpop.eup %7826  ;;  %v5488_v49 = vpack.c.bf16 %v5459_v0, %v5458_v54  ;;  %v5466_v30 = vmul.f32 %v7825_v1, %v10375_v19 }
 0x63e   : > { %v7829_v29 = vpop.eup %7828  ;;  %v5394_v17 = vpop.xlane.xlu1 %5393  ;;  %v5468_v45 = vmul.f32 %v7827_v4, %v10355_v57 }
 0x63f   : > { %v5379_v58 = vpop.xlane.xlu0 %5378  ;;  %7569 = vmatprep.mubr.msk.bf16.mxu0 %vm5133_vm3, %v5488_v49  ;;  %v5467_v44 = vmul.f32 %v7829_v29, %v10400_v8 }
 0x640   : > { %7836 = vrcp.f32 %v5379_v58  ;;  %7570 = vmatmul.mubr.msk.bf16.gmra.mrb[36].mxu0 %vm5133_vm3, %v5489_v25  ;;  %v5493_v46 = vpack.c.bf16 %v5469_v63, %v5468_v45 }
 0x641   : > { %7838 = vrcp.f32 %v5409_v42  ;;  %v5492_v23 = vpack.c.bf16 %v5467_v44, %v5466_v30 }
 0x642   : > { %7840 = vrcp.f32 %v5400_v7  ;;  %v5388_v35 = vpop.xlane.xlu1 %5387  ;;  %v7831_v19 = vpop.eup %7830 }
 0x643   : > { %7842 = vrcp.f32 %v5406_v34  ;;  %v5403_v31 = vpop.xlane.xlu0 %5402  ;;  %7579 = vmatprep.mubr.msk.bf16.mxu1 %vm5133_vm3, %v5492_v23  ;;  %v7833_v8 = vpop.eup %7832  ;;  %v5473_v57 = vmul.f32 %v7831_v19, %v10410_v9 }
 0x644   : > { %7844 = vrcp.f32 %v5403_v31  ;;  %7580 = vmatmul.mubr.msk.bf16.gmra.mrb[36].mxu1 %vm5133_vm3, %v5493_v46  ;;  %v7835_v50 = vpop.eup %7834  ;;  %v5470_v14 = vmul.f32 %v7833_v8, %v10405_v20 }
 0x645   : > { %v5472_v33 = vmul.f32 %v7835_v50, %v10385_v26 }
 0x646   : > { %v5412_v62 = vpop.xlane.xlu1 %5411 }
 0x647   : > { %v5397_v37 = vpop.xlane.xlu0 %5396  ;;  %v5495_v34 = vpack.c.bf16 %v5473_v57, %v5472_v33 }
 0x648   : > { %7846 = vrcp.f32 %v5397_v37 }
 0x649   : > { %7848 = vrcp.f32 %v5388_v35 }
 0x64a   : > { %v7837_v51 = vpop.eup %7836  ;;  %7850 = vrcp.f32 %v5394_v17  ;;  %v5418_v9 = vpop.xlane.xlu1 %5417 }
 0x64b   : > { %v7839_v48 = vpop.eup %7838  ;;  %v5391_v61 = vpop.xlane.xlu0 %5390  ;;  %v5471_v18 = vmul.f32 %v7837_v51, %v10429_v5 }
 0x64c   : > { %v7841_v10 = vpop.eup %7840  ;;  %7852 = vrcp.f32 %v5391_v61  ;;  %v5481_v36 = vmul.f32 %v7839_v48, %v10420_v2 }
 0x64d   : > { %v7843_v6 = vpop.eup %7842  ;;  %v5494_v41 = vpack.c.bf16 %v5471_v18, %v5470_v14  ;;  %7854 = vrcp.f32 %v5412_v62  ;;  %v5478_v43 = vmul.f32 %v7841_v10, %v10415_v47 }
 0x64e   : > { %v7845_v15 = vpop.eup %7844  ;;  %v5480_v5 = vmul.f32 %v7843_v6, %v10395_v24 }
 0x64f   : > { %v5415_v16 = vpop.xlane.xlu0 %5414  ;;  %7585 = vmatprep.mubr.msk.bf16.mxu0 %vm5133_vm3, %v5494_v41  ;;  %v5479_v20 = vmul.f32 %v7845_v15, %v10438_v22 }
 0x650   : > { %7856 = vrcp.f32 %v5415_v16  ;;  %7586 = vmatmul.mubr.msk.bf16.vlgmr.msra.gmra.mrb[40].mxu0 %vm5133_vm3, %v5495_v34  ;;  %v5499_v53 = vpack.c.bf16 %v5481_v36, %v5480_v5 }
 0x651   : > { %v5498_v26 = vpack.c.bf16 %v5479_v20, %v5478_v43  ;;  %7858 = vrcp.f32 %v5418_v9 }
 0x652   : > { %v7847_v52 = vpop.eup %7846 }
 0x653   : > { %v5421_v56 = vpop.xlane.xlu0 %5420  ;;  %7595 = vmatprep.mubr.msk.bf16.mxu1 %vm5133_vm3, %v5498_v26  ;;  %v7849_v2 = vpop.eup %7848  ;;  %v5477_v22 = vmul.f32 %v7847_v52, %v10447_v39 }
 0x654   : > { %7860 = vrcp.f32 %v5421_v56  ;;  %7596 = vmatmul.mubr.msk.bf16.vlgmr.msra.gmra.mrb[40].mxu1 %vm5133_vm3, %v5499_v53  ;;  %v7851_v60 = vpop.eup %7850  ;;  %v5474_v24 = vmul.f32 %v7849_v2, %v10434_v40 }
 0x655   : > { %v5476_v28 = vmul.f32 %v7851_v60, %v10425_v12 }
 0x656   : > { %v7853_v47 = vpop.eup %7852 }
 0x657   : > { %v5475_v7 = vmul.f32 %v7853_v47, %v10455_v3  ;;  %v7855_v32 = vpop.eup %7854  ;;  %v5497_v0 = vpack.c.bf16 %v5477_v22, %v5476_v28 }
 0x658   : > { %v5482_v1 = vmul.f32 %v7855_v32, %v10443_v59 }
 0x659   : > { %v5496_v42 = vpack.c.bf16 %v5475_v7, %v5474_v24 }
 0x65a   : > { %v7857_v54 = vpop.eup %7856 }
 0x65b   : > { %7589 = vmatprep.mubr.msk.bf16.mxu0 %vm5133_vm3, %v5496_v42  ;;  %v5483_v55 = vmul.f32 %v7857_v54, %v10461_v13  ;;  %v7859_v4 = vpop.eup %7858 }
 0x65c   : > { %7590 = vmatmul.mubr.msk.bf16.gmra.mrb[44].mxu0 %vm5133_vm3, %v5497_v0  ;;  %v5484_v40 = vmul.f32 %v7859_v4, %v10451_v21 }
 0x65d   : > { %v5500_v39 = vpack.c.bf16 %v5483_v55, %v5482_v1 }
 0x65e   : > { %v7861_v49 = vpop.eup %7860 }
 0x65f   : > { %7599 = vmatprep.mubr.msk.bf16.mxu1 %vm5133_vm3, %v5500_v39  ;;  %v5485_v12 = vmul.f32 %v7861_v49, %v10465_v11 }
 0x661   : > { %v5501_v3 = vpack.c.bf16 %v5485_v12, %v5484_v40 }
 0x663   : > { %7600 = vmatmul.mubr.msk.bf16.gmra.mrb[44].mxu1 %vm5133_vm3, %v5501_v3 }
 0x703   : > { %v7567_v29 = vpop.f32.mrb[32].mxu0 }
 0x704   : > { %v5552_v17 = vpop.f32.mrb[33].mxu0 }
 0x705   : > { %v7568_v25 = vpop.f32.mrb[34].mxu0 }
 0x706   : > { %v5555_v59 = vpop.f32.mrb[35].mxu0 }
 0x707   : > { %v7577_v63 = vpop.f32.mrb[32].mxu1 }
 0x708   : > { %v5629_v13 = vpop.f32.mrb[33].mxu1 }
 0x709   : > { %v10519_v58 = vpop.f32.mrb[34].mxu1 }
 0x70a   : > { %v10521_v30 = vpop.f32.mrb[35].mxu1 }
 0x713   : > { %v10523_v44 = vpop.f32.mrb[36].mxu0 }
 0x714   : > { %v10525_v45 = vpop.f32.mrb[37].mxu0 }
 0x715   : > { %v10527_v21 = vpop.f32.mrb[38].mxu0 }
 0x716   : > { %v10529_v11 = vpop.f32.mrb[39].mxu0 }
 0x717   : > { %v10531_v23 = vpop.f32.mrb[36].mxu1 }
 0x718   : > { %v10533_v46 = vpop.f32.mrb[37].mxu1 }
 0x719   : > { %v10535_v35 = vpop.f32.mrb[38].mxu1 }
 0x71a   : > { %v10537_v31 = vpop.f32.mrb[39].mxu1 }
 0x723   : > { %v7587_v19 = vpop.f32.mrb[40].mxu0 }
 0x724   : > { %v5950_v37 = vcombine.low %v7567_v29, %v7587_v19  ;;  %v5951_v8 = vcombine.high %v7567_v29, %v7587_v19  ;;  %v5706_v50 = vpop.f32.mrb[41].mxu0 }
 0x725   : > { %v5814_v62 = vcombine.low %v5552_v17, %v5706_v50  ;;  %v5815_v51 = vcombine.high %v5552_v17, %v5706_v50  ;;  %v7588_v57 = vpop.f32.mrb[42].mxu0 }
 0x726   : > { %v5958_v48 = vrot.slane %v5950_v37, %v8628_v27  ;;  %v5965_v61 = vrot.slane %v5951_v8, %v8628_v27  ;;  %v6018_v14 = vcombine.low %v7568_v25, %v7588_v57  ;;  %v6019_v18 = vcombine.high %v7568_v25, %v7588_v57  ;;  %v5709_v10 = vpop.f32.mrb[43].mxu0 }
 0x727   : > { %v5822_v33 = vrot.slane %v5814_v62, %v8628_v27  ;;  %v5829_v6 = vrot.slane %v5815_v51, %v8628_v27  ;;  %v5882_v41 = vcombine.low %v5555_v59, %v5709_v10  ;;  %v5883_v15 = vcombine.high %v5555_v59, %v5709_v10  ;;  %v7597_v34 = vpop.f32.mrb[40].mxu1 }
 0x728   : > { %v10544_v36 = vrot.slane %v6018_v14, %v8628_v27  ;;  %v10547_v9 = vrot.slane %v6019_v18, %v8628_v27  ;;  %v5966_v16 = vcombine.low %v7577_v63, %v7597_v34  ;;  %v5967_v43 = vcombine.high %v7577_v63, %v7597_v34  ;;  %v5783_v20 = vpop.f32.mrb[41].mxu1 }
 0x729   : > { %v10550_v5 = vrot.slane %v5882_v41, %v8628_v27  ;;  %v10553_v26 = vrot.slane %v5883_v15, %v8628_v27  ;;  %v5830_v53 = vcombine.low %v5629_v13, %v5783_v20  ;;  %v5831_v52 = vcombine.high %v5629_v13, %v5783_v20  ;;  %v7598_v56 = vpop.f32.mrb[42].mxu1 }
 0x72a   : > { %v5974_v2 = vrot.slane %v5966_v16, %v8628_v27  ;;  %v5981_v60 = vrot.slane %v5967_v43, %v8628_v27  ;;  %v6034_v47 = vcombine.low %v10519_v58, %v7598_v56  ;;  %v6035_v22 = vcombine.high %v10519_v58, %v7598_v56  ;;  %v5786_v24 = vpop.f32.mrb[43].mxu1 }
 0x72b   : > { %v5838_v7 = vrot.slane %v5830_v53, %v8628_v27  ;;  %v5845_v32 = vrot.slane %v5831_v52, %v8628_v27  ;;  %v5898_v28 = vcombine.low %v10521_v30, %v5786_v24  ;;  %v5899_v42 = vcombine.high %v10521_v30, %v5786_v24 }
 0x72c   : > { %v5982_v54 = vcombine.low %v5958_v48, %v5974_v2  ;;  %v5983_v0 = vcombine.high %v5958_v48, %v5974_v2  ;;  %v5998_v1 = vcombine.low %v5965_v61, %v5981_v60  ;;  %v5999_v55 = vcombine.high %v5965_v61, %v5981_v60 }
 0x72d   : > { %v5846_v4 = vcombine.low %v5822_v33, %v5838_v7  ;;  %v5847_v39 = vcombine.high %v5822_v33, %v5838_v7  ;;  %v5862_v49 = vcombine.low %v5829_v6, %v5845_v32  ;;  %v5863_v40 = vcombine.high %v5829_v6, %v5845_v32 }
 0x72e   : > { %v5990_v12 = vrot.slane %v5982_v54, %v8635_v38  ;;  %v5997_v3 = vrot.slane %v5983_v0, %v8635_v38  ;;  %v6006_v29 = vrot.slane %v5998_v1, %v8635_v38  ;;  %v6013_v17 = vrot.slane %v5999_v55, %v8635_v38 }
 0x72f   : > { %v5854_v25 = vrot.slane %v5846_v4, %v8635_v38  ;;  %v5861_v59 = vrot.slane %v5847_v39, %v8635_v38  ;;  %v5870_v63 = vrot.slane %v5862_v49, %v8635_v38  ;;  %v5877_v13 = vrot.slane %v5863_v40, %v8635_v38  ;;  %v10571_v58 = vpop.f32.mrb[44].mxu0 }
 0x730   : > { %v6494_v30 = vcombine.low %v5990_v12, %v5997_v3  ;;  %v7325_v19 = vcombine.high %v5990_v12, %v5997_v3  ;;  %v6510_v37 = vcombine.low %v6006_v29, %v6013_v17  ;;  %v7326_v8 = vcombine.high %v6006_v29, %v6013_v17  ;;  %v10573_v50 = vpop.f32.mrb[45].mxu0 }
 0x731   : > { %v6358_v62 = vcombine.low %v5854_v25, %v5861_v59  ;;  %v7321_v51 = vcombine.high %v5854_v25, %v5861_v59  ;;  %v6374_v57 = vcombine.low %v5870_v63, %v5877_v13  ;;  %v7322_v48 = vcombine.high %v5870_v63, %v5877_v13  ;;  %v10575_v61 = vpop.f32.mrb[46].mxu0 }
 0x732   : > { %v10578_v14 = vrot.slane %v6494_v30, %v8628_v27  ;;  %v10581_v18 = vrot.slane %v7325_v19, %v8628_v27  ;;  %v10584_v10 = vrot.slane %v6510_v37, %v8628_v27  ;;  %v10587_v33 = vrot.slane %v7326_v8, %v8628_v27  ;;  %v10589_v6 = vpop.f32.mrb[47].mxu0 }
 0x733   : > { %v10592_v41 = vrot.slane %v6358_v62, %v8628_v27  ;;  %v10595_v15 = vrot.slane %v7321_v51, %v8628_v27  ;;  %v10598_v34 = vrot.slane %v6374_v57, %v8628_v27  ;;  %v10601_v16 = vrot.slane %v7322_v48, %v8628_v27 }
 0x734   : > { %v6042_v43 = vrot.slane %v6034_v47, %v8628_v27  ;;  %v6049_v20 = vrot.slane %v6035_v22, %v8628_v27  ;;  %v5906_v53 = vrot.slane %v5898_v28, %v8628_v27  ;;  %v5913_v52 = vrot.slane %v5899_v42, %v8628_v27 }
 0x735   : > { %v6222_v56 = vcombine.low %v10523_v44, %v10571_v58  ;;  %v6223_v2 = vcombine.high %v10523_v44, %v10571_v58  ;;  %v6086_v60 = vcombine.low %v10525_v45, %v10573_v50  ;;  %v6087_v24 = vcombine.high %v10525_v45, %v10573_v50 }
 0x736   : > { %v6050_v47 = vcombine.low %v10544_v36, %v6042_v43  ;;  %v6051_v22 = vcombine.high %v10544_v36, %v6042_v43  ;;  %v6066_v7 = vcombine.low %v10547_v9, %v6049_v20  ;;  %v6067_v32 = vcombine.high %v10547_v9, %v6049_v20  ;;  %v7601_v28 = vpop.f32.mrb[44].mxu1 }
 0x737   : > { %v5914_v42 = vcombine.low %v10550_v5, %v5906_v53  ;;  %v5915_v54 = vcombine.high %v10550_v5, %v5906_v53  ;;  %v5930_v44 = vcombine.low %v10553_v26, %v5913_v52  ;;  %v5931_v0 = vcombine.high %v10553_v26, %v5913_v52  ;;  %v5799_v1 = vpop.f32.mrb[45].mxu1 }
 0x738   : > { %v6058_v45 = vrot.slane %v6050_v47, %v8635_v38  ;;  %v6065_v55 = vrot.slane %v6051_v22, %v8635_v38  ;;  %v6074_v36 = vrot.slane %v6066_v7, %v8635_v38  ;;  %v6081_v4 = vrot.slane %v6067_v32, %v8635_v38  ;;  %v10627_v39 = vpop.f32.mrb[46].mxu1 }
 0x739   : > { %v5922_v9 = vrot.slane %v5914_v42, %v8635_v38  ;;  %v5929_v49 = vrot.slane %v5915_v54, %v8635_v38  ;;  %v5938_v5 = vrot.slane %v5930_v44, %v8635_v38  ;;  %v5945_v40 = vrot.slane %v5931_v0, %v8635_v38  ;;  %v10633_v26 = vpop.f32.mrb[47].mxu1 }
 0x73a   : > { %v6562_v12 = vcombine.low %v6058_v45, %v6065_v55  ;;  %v7327_v3 = vcombine.high %v6058_v45, %v6065_v55  ;;  %v6578_v29 = vcombine.low %v6074_v36, %v6081_v4  ;;  %v7328_v17 = vcombine.high %v6074_v36, %v6081_v4 }
 0x73b   : > { %v6426_v25 = vcombine.low %v5922_v9, %v5929_v49  ;;  %v7323_v59 = vcombine.high %v5922_v9, %v5929_v49  ;;  %v6442_v63 = vcombine.low %v5938_v5, %v5945_v40  ;;  %v7324_v13 = vcombine.high %v5938_v5, %v5945_v40 }
 0x73c   : > { %v10636_v58 = vrot.slane %v6562_v12, %v8628_v27  ;;  %v10639_v30 = vrot.slane %v7327_v3, %v8628_v27  ;;  %v10642_v19 = vrot.slane %v6578_v29, %v8628_v27  ;;  %v10645_v37 = vrot.slane %v7328_v17, %v8628_v27 }
 0x73d   : > { %v10648_v8 = vrot.slane %v6426_v25, %v8628_v27  ;;  %v10651_v50 = vrot.slane %v7323_v59, %v8628_v27  ;;  %v10654_v62 = vrot.slane %v6442_v63, %v8628_v27  ;;  %v10657_v51 = vrot.slane %v7324_v13, %v8628_v27 }
 0x73e   : > { %v6230_v57 = vrot.slane %v6222_v56, %v8628_v27  ;;  %v6237_v48 = vrot.slane %v6223_v2, %v8628_v27  ;;  %v6094_v43 = vrot.slane %v6086_v60, %v8628_v27  ;;  %v6101_v20 = vrot.slane %v6087_v24, %v8628_v27 }
 0x73f   : > { %v6290_v53 = vcombine.low %v10527_v21, %v10575_v61  ;;  %v6291_v52 = vcombine.high %v10527_v21, %v10575_v61  ;;  %v6154_v47 = vcombine.low %v10529_v11, %v10589_v6  ;;  %v6155_v22 = vcombine.high %v10529_v11, %v10589_v6 }
 0x740   : > { %v6238_v56 = vcombine.low %v10531_v23, %v7601_v28  ;;  %v6239_v2 = vcombine.high %v10531_v23, %v7601_v28  ;;  %v6102_v60 = vcombine.low %v10533_v46, %v5799_v1  ;;  %v6103_v24 = vcombine.high %v10533_v46, %v5799_v1 }
 0x741   : > { %v6298_v7 = vrot.slane %v6290_v53, %v8628_v27  ;;  %v10677_v32 = vrot.slane %v6291_v52, %v8628_v27  ;;  %v10680_v21 = vrot.slane %v6154_v47, %v8628_v27  ;;  %v10683_v61 = vrot.slane %v6155_v22, %v8628_v27 }
 0x742   : > { %v6246_v11 = vrot.slane %v6238_v56, %v8628_v27  ;;  %v6253_v6 = vrot.slane %v6239_v2, %v8628_v27  ;;  %v6110_v23 = vrot.slane %v6102_v60, %v8628_v27  ;;  %v6117_v28 = vrot.slane %v6103_v24, %v8628_v27 }
 0x743   : > { %v6306_v46 = vcombine.low %v10535_v35, %v10627_v39  ;;  %v6307_v42 = vcombine.high %v10535_v35, %v10627_v39  ;;  %v6170_v54 = vcombine.low %v10537_v31, %v10633_v26  ;;  %v6171_v44 = vcombine.high %v10537_v31, %v10633_v26 }
 0x744   : > { %v6254_v0 = vcombine.low %v6230_v57, %v6246_v11  ;;  %v6255_v1 = vcombine.high %v6230_v57, %v6246_v11  ;;  %v6270_v45 = vcombine.low %v6237_v48, %v6253_v6  ;;  %v6271_v55 = vcombine.high %v6237_v48, %v6253_v6 }
 0x745   : > { %v6118_v36 = vcombine.low %v6094_v43, %v6110_v23  ;;  %v6119_v4 = vcombine.high %v6094_v43, %v6110_v23  ;;  %v6134_v9 = vcombine.low %v6101_v20, %v6117_v28  ;;  %v6135_v49 = vcombine.high %v6101_v20, %v6117_v28 }
 0x746   : > { %v6262_v5 = vrot.slane %v6254_v0, %v8635_v38  ;;  %v6269_v40 = vrot.slane %v6255_v1, %v8635_v38  ;;  %v6278_v35 = vrot.slane %v6270_v45, %v8635_v38  ;;  %v6285_v39 = vrot.slane %v6271_v55, %v8635_v38 }
 0x747   : > { %v6126_v12 = vrot.slane %v6118_v36, %v8635_v38  ;;  %v6133_v31 = vrot.slane %v6119_v4, %v8635_v38  ;;  %v6142_v26 = vrot.slane %v6134_v9, %v8635_v38  ;;  %v6149_v3 = vrot.slane %v6135_v49, %v8635_v38 }
 0x748   : > { %v6766_v29 = vcombine.low %v6262_v5, %v6269_v40  ;;  %v7333_v17 = vcombine.high %v6262_v5, %v6269_v40  ;;  %v6782_v25 = vcombine.low %v6278_v35, %v6285_v39  ;;  %v7334_v59 = vcombine.high %v6278_v35, %v6285_v39 }
 0x749   : > { %v6630_v63 = vcombine.low %v6126_v12, %v6133_v31  ;;  %v7329_v13 = vcombine.high %v6126_v12, %v6133_v31  ;;  %v6646_v57 = vcombine.low %v6142_v26, %v6149_v3  ;;  %v7330_v48 = vcombine.high %v6142_v26, %v6149_v3 }
 0x74a   : > { %v10706_v43 = vrot.slane %v6766_v29, %v8628_v27  ;;  %v10709_v20 = vrot.slane %v7333_v17, %v8628_v27  ;;  %v10712_v53 = vrot.slane %v6782_v25, %v8628_v27  ;;  %v10715_v52 = vrot.slane %v7334_v59, %v8628_v27 }
 0x74b   : > { %v10718_v47 = vrot.slane %v6630_v63, %v8628_v27  ;;  %v10721_v22 = vrot.slane %v7329_v13, %v8628_v27  ;;  %v10724_v56 = vrot.slane %v6646_v57, %v8628_v27  ;;  %v10727_v2 = vrot.slane %v7330_v48, %v8628_v27 }
 0x74c   : > { %v6314_v60 = vrot.slane %v6306_v46, %v8628_v27  ;;  %v6321_v24 = vrot.slane %v6307_v42, %v8628_v27  ;;  %v6178_v11 = vrot.slane %v6170_v54, %v8628_v27  ;;  %v6185_v6 = vrot.slane %v6171_v44, %v8628_v27 }
 0x74d   : > { %v6527_v23 = vcombine.high %v10578_v14, %v10581_v18  ;;  %v6543_v28 = vcombine.high %v10584_v10, %v10587_v33  ;;  %v6526_v0 = vcombine.low %v10578_v14, %v10581_v18  ;;  %v6542_v1 = vcombine.low %v10584_v10, %v10587_v33 }
 0x74e   : > { %v6322_v45 = vcombine.low %v6298_v7, %v6314_v60  ;;  %v6323_v46 = vcombine.high %v6298_v7, %v6314_v60  ;;  %v6338_v42 = vcombine.low %v10677_v32, %v6321_v24  ;;  %v6339_v54 = vcombine.high %v10677_v32, %v6321_v24 }
 0x74f   : > { %v6186_v44 = vcombine.low %v10680_v21, %v6178_v11  ;;  %v6187_v55 = vcombine.high %v10680_v21, %v6178_v11  ;;  %v6202_v36 = vcombine.low %v10683_v61, %v6185_v6  ;;  %v6203_v4 = vcombine.high %v10683_v61, %v6185_v6 }
 0x750   : > { %v6330_v9 = vrot.slane %v6322_v45, %v8635_v38  ;;  %v6337_v14 = vrot.slane %v6323_v46, %v8635_v38  ;;  %v6346_v18 = vrot.slane %v6338_v42, %v8635_v38  ;;  %v6353_v10 = vrot.slane %v6339_v54, %v8635_v38 }
 0x751   : > { %v6194_v33 = vrot.slane %v6186_v44, %v8635_v38  ;;  %v6201_v7 = vrot.slane %v6187_v55, %v8635_v38  ;;  %v6210_v32 = vrot.slane %v6202_v36, %v8635_v38  ;;  %v6217_v21 = vrot.slane %v6203_v4, %v8635_v38 }
 0x752   : > { %v6834_v49 = vcombine.low %v6330_v9, %v6337_v14  ;;  %v7335_v5 = vcombine.high %v6330_v9, %v6337_v14  ;;  %v6850_v40 = vcombine.low %v6346_v18, %v6353_v10  ;;  %v7336_v61 = vcombine.high %v6346_v18, %v6353_v10 }
 0x753   : > { %v6698_v35 = vcombine.low %v6194_v33, %v6201_v7  ;;  %v7331_v39 = vcombine.high %v6194_v33, %v6201_v7  ;;  %v6714_v12 = vcombine.low %v6210_v32, %v6217_v21  ;;  %v7332_v31 = vcombine.high %v6210_v32, %v6217_v21 }
 0x754   : > { %v10756_v26 = vrot.slane %v6834_v49, %v8628_v27  ;;  %v10759_v3 = vrot.slane %v7335_v5, %v8628_v27  ;;  %v10762_v29 = vrot.slane %v6850_v40, %v8628_v27  ;;  %v10765_v17 = vrot.slane %v7336_v61, %v8628_v27 }
 0x755   : > { %v10768_v25 = vrot.slane %v6698_v35, %v8628_v27  ;;  %v10771_v59 = vrot.slane %v7331_v39, %v8628_v27  ;;  %v10774_v63 = vrot.slane %v6714_v12, %v8628_v27  ;;  %v10777_v13 = vrot.slane %v7332_v31, %v8628_v27 }
 0x756   : > { %v6541_v57 = vrot.slane %v6527_v23, %v8635_v38  ;;  %v6557_v48 = vrot.slane %v6543_v28, %v8635_v38  ;;  %v10782_v60 = vrot.slane %v6526_v0, %v8635_v38  ;;  %v10785_v24 = vrot.slane %v6542_v1, %v8635_v38 }
 0x757   : > { %v6390_v11 = vcombine.low %v10592_v41, %v10595_v15  ;;  %v6406_v6 = vcombine.low %v10598_v34, %v10601_v16  ;;  %v6391_v27 = vcombine.high %v10592_v41, %v10595_v15  ;;  %v6407_v23 = vcombine.high %v10598_v34, %v10601_v16 }
 0x758   : > { %v6560_v45 = vcombine.low %v6541_v57, %v6557_v48  ;;  %v6559_v28 = vcombine.high %v10782_v60, %v10785_v24  ;;  %v6561_v0 = vcombine.high %v6541_v57, %v6557_v48  ;;  %v6594_v1 = vcombine.low %v10636_v58, %v10639_v30 }
 0x759   : > { %v10800_v46 = vrot.slane %v6390_v11, %v8635_v38  ;;  %v10803_v42 = vrot.slane %v6406_v6, %v8635_v38  ;;  %v6405_v54 = vrot.slane %v6391_v27, %v8635_v38  ;;  %v6421_v41 = vrot.slane %v6407_v23, %v8635_v38 }
 0x75a   : > { %6946 = vrot.lane.b32.xlu0 %v6560_v45, %s8150_s15  ;;  %6914 = vrot.lane.b32.xlu1 %v6559_v28, %s8151_s7  ;;  %v10810_v15 = vrot.slane %v6594_v1, %v8635_v38  ;;  %v6610_v34 = vcombine.low %v10642_v19, %v10645_v37  ;;  %v6595_v16 = vcombine.high %v10636_v58, %v10639_v30 }
 0x75b   : > { %v6423_v44 = vcombine.high %v10800_v46, %v10803_v42  ;;  %v6424_v55 = vcombine.low %v6405_v54, %v6421_v41  ;;  %v6425_v36 = vcombine.high %v6405_v54, %v6421_v41  ;;  %v6611_v4 = vcombine.high %v10642_v19, %v10645_v37 }
 0x75c   : > { %v10821_v9 = vrot.slane %v6610_v34, %v8635_v38  ;;  %v6609_v14 = vrot.slane %v6595_v16, %v8635_v38  ;;  %v6458_v18 = vcombine.low %v10648_v8, %v10651_v50  ;;  %v6474_v10 = vcombine.low %v10654_v62, %v10657_v51 }
 0x75d   : > { %v6625_v58 = vrot.slane %v6611_v4, %v8635_v38  ;;  %v6459_v30 = vcombine.high %v10648_v8, %v10651_v50  ;;  %v6475_v33 = vcombine.high %v10654_v62, %v10657_v51  ;;  %v6798_v19 = vcombine.low %v10706_v43, %v10709_v20 }
 0x75e   : > { %6978 = vrot.lane.b32.xlu0 %v6561_v0, %s8152_s12  ;;  %6910 = vrot.lane.b32.xlu1 %v6423_v44, %s8151_s7  ;;  %v6627_v37 = vcombine.high %v10810_v15, %v10821_v9  ;;  %v10840_v7 = vrot.slane %v6458_v18, %v8635_v38  ;;  %v10843_v32 = vrot.slane %v6474_v10, %v8635_v38 }
 0x75f   : > { %v6628_v8 = vcombine.low %v6609_v14, %v6625_v58  ;;  %v6629_v50 = vcombine.high %v6609_v14, %v6625_v58  ;;  %v10846_v62 = vrot.slane %v6459_v30, %v8635_v38  ;;  %v10849_v51 = vrot.slane %v6475_v33, %v8635_v38 }
 0x760   : > { %v6491_v21 = vcombine.high %v10840_v7, %v10843_v32  ;;  %v10854_v49 = vrot.slane %v6798_v19, %v8635_v38  ;;  %v6814_v5 = vcombine.low %v10712_v53, %v10715_v52  ;;  %v6799_v40 = vcombine.high %v10706_v43, %v10709_v20 }
 0x761   : > { %v6492_v61 = vcombine.low %v10846_v62, %v10849_v51  ;;  %v6493_v35 = vcombine.high %v10846_v62, %v10849_v51  ;;  %v6815_v39 = vcombine.high %v10712_v53, %v10715_v52  ;;  %v6662_v12 = vcombine.low %v10718_v47, %v10721_v22 }
 0x762   : > { %6942 = vrot.lane.b32.xlu0 %v6424_v55, %s8150_s15  ;;  %6916 = vrot.lane.b32.xlu1 %v6627_v37, %s8151_s7  ;;  %v10871_v31 = vrot.slane %v6814_v5, %v8635_v38  ;;  %v6813_v43 = vrot.slane %v6799_v40, %v8635_v38  ;;  %v6678_v20 = vcombine.low %v10724_v56, %v10727_v2 }
 0x763   : > { %v6829_v57 = vrot.slane %v6815_v39, %v8635_v38  ;;  %v10878_v48 = vrot.slane %v6662_v12, %v8635_v38  ;;  %v6866_v53 = vcombine.low %v10756_v26, %v10759_v3  ;;  %v6882_v52 = vcombine.low %v10762_v29, %v10765_v17 }
 0x764   : > { %v6831_v11 = vcombine.high %v10854_v49, %v10871_v31  ;;  %v10887_v6 = vrot.slane %v6678_v20, %v8635_v38  ;;  %v6663_v27 = vcombine.high %v10718_v47, %v10721_v22  ;;  %v6679_v23 = vcombine.high %v10724_v56, %v10727_v2 }
 0x765   : > { %v6832_v45 = vcombine.low %v6813_v43, %v6829_v57  ;;  %v10894_v28 = vrot.slane %v6866_v53, %v8635_v38  ;;  %v10897_v0 = vrot.slane %v6882_v52, %v8635_v38  ;;  %v6867_v1 = vcombine.high %v10756_v26, %v10759_v3 }
 0x766   : > { %6974 = vrot.lane.b32.xlu0 %v6425_v36, %s8152_s12  ;;  %6948 = vrot.lane.b32.xlu1 %v6628_v8, %s8150_s15  ;;  %v6695_v47 = vcombine.high %v10878_v48, %v10887_v6  ;;  %v6677_v22 = vrot.slane %v6663_v27, %v8635_v38  ;;  %v6693_v56 = vrot.slane %v6679_v23, %v8635_v38 }
 0x767   : > { %v6899_v2 = vcombine.high %v10894_v28, %v10897_v0  ;;  %v6881_v54 = vrot.slane %v6867_v1, %v8635_v38  ;;  %v6883_v41 = vcombine.high %v10762_v29, %v10765_v17  ;;  %v6730_v26 = vcombine.low %v10768_v25, %v10771_v59 }
 0x768   : > { %v6696_v3 = vcombine.low %v6677_v22, %v6693_v56  ;;  %v6697_v34 = vcombine.high %v6677_v22, %v6693_v56  ;;  %v6746_v16 = vcombine.low %v10774_v63, %v10777_v13  ;;  %v6833_v44 = vcombine.high %v6813_v43, %v6829_v57 }
 0x769   : > { %v6897_v55 = vrot.slane %v6883_v41, %v8635_v38  ;;  %v10918_v36 = vrot.slane %v6730_v26, %v8635_v38  ;;  %v6731_v4 = vcombine.high %v10768_v25, %v10771_v59  ;;  %v6747_v29 = vcombine.high %v10774_v63, %v10777_v13 }
 0x76a   : > { %6980 = vrot.lane.b32.xlu1 %v6629_v50, %s8152_s12  ;;  %6912 = vrot.lane.b32.xlu0 %v6491_v21, %s8151_s7  ;;  %v10927_v17 = vrot.slane %v6746_v16, %v8635_v38  ;;  %v6558_v14 = vcombine.low %v10782_v60, %v10785_v24  ;;  %v6422_v18 = vcombine.low %v10800_v46, %v10803_v42 }
 0x76b   : > { %v6900_v10 = vcombine.low %v6881_v54, %v6897_v55  ;;  %v6745_v58 = vrot.slane %v6731_v4, %v8635_v38  ;;  %v6761_v25 = vrot.slane %v6747_v29, %v8635_v38  ;;  %v6901_v59 = vcombine.high %v6881_v54, %v6897_v55 }
 0x76c   : > { %v6763_v63 = vcombine.high %v10918_v36, %v10927_v17  ;;  %v6626_v13 = vcombine.low %v10810_v15, %v10821_v9  ;;  %v6490_v30 = vcombine.low %v10840_v7, %v10843_v32  ;;  %v6830_v60 = vcombine.low %v10854_v49, %v10871_v31 }
 0x76d   : > { %v6764_v24 = vcombine.low %v6745_v58, %v6761_v25  ;;  %v6765_v46 = vcombine.high %v6745_v58, %v6761_v25  ;;  %v6694_v42 = vcombine.low %v10878_v48, %v10887_v6  ;;  %v6898_v38 = vcombine.low %v10894_v28, %v10897_v0 }
 0x76e   : > { %6944 = vrot.lane.b32.xlu1 %v6492_v61, %s8150_s15  ;;  %6922 = vrot.lane.b32.xlu0 %v6831_v11, %s8151_s7  ;;  %v6762_v15 = vcombine.low %v10918_v36, %v10927_v17 }
 0x772   : > { %6976 = vrot.lane.b32.xlu1 %v6493_v35, %s8152_s12  ;;  %6954 = vrot.lane.b32.xlu0 %v6832_v45, %s8150_s15 }
 0x776   : > { %6918 = vrot.lane.b32.xlu0 %v6695_v47, %s8151_s7  ;;  %6924 = vrot.lane.b32.xlu1 %v6899_v2, %s8151_s7 }
 0x77a   : > { %6950 = vrot.lane.b32.xlu0 %v6696_v3, %s8150_s15  ;;  %6956 = vrot.lane.b32.xlu1 %v6900_v10, %s8150_s15 }
 0x77e   : > { %6982 = vrot.lane.b32.xlu0 %v6697_v34, %s8152_s12  ;;  %6920 = vrot.lane.b32.xlu1 %v6763_v63, %s8151_s7 }
 0x782   : > { %6986 = vrot.lane.b32.xlu0 %v6833_v44, %s8152_s12  ;;  %6952 = vrot.lane.b32.xlu1 %v6764_v24, %s8150_s15 }
 0x786   : > { %6984 = vrot.lane.b32.xlu1 %v6765_v46, %s8152_s12 }
 0x78a   : > { %6988 = vrot.lane.b32.xlu1 %v6901_v59, %s8152_s12 }
 0x7cc   : > { %v6947_v9 = vpop.permute.xlu0 %6946  ;;  %v6915_v33 = vpop.permute.xlu1 %6914 }
 0x7cd   : > { %v7000_v19 = vsel %vm4299_vm1, %v6558_v14, %v6915_v33 }
 0x7ce   : > { %v7008_v7 = vsel %vm5133_vm3, %v7000_v19, %v6947_v9 }
 0x7d0   : > { %v6979_v37 = vpop.permute.xlu0 %6978  ;;  %v6911_v32 = vpop.permute.xlu1 %6910 }
 0x7d1   : > { %v7017_v8 = vsel %vm7014_vm4, %v7008_v7, %v6979_v37  ;;  %v6998_v51 = vsel %vm4299_vm1, %v6422_v18, %v6911_v32 }
 0x7d2   : > { %7026 = vst.msk [vmem:[%s10967_s19 + $0x10] sm:$0xff] %vm7023_vm5, %v7017_v8 }
 0x7d4   : > { %v6943_v50 = vpop.permute.xlu0 %6942  ;;  %v6917_v62 = vpop.permute.xlu1 %6916 }
 0x7d5   : > { %v7006_v21 = vsel %vm5133_vm3, %v6998_v51, %v6943_v50  ;;  %v7001_v35 = vsel %vm4299_vm1, %v6626_v13, %v6917_v62 }
 0x7d8   : > { %v6975_v5 = vpop.permute.xlu0 %6974  ;;  %v6949_v40 = vpop.permute.xlu1 %6948 }
 0x7d9   : > { %v7015_v61 = vsel %vm7014_vm4, %v7006_v21, %v6975_v5  ;;  %v7009_v39 = vsel %vm5133_vm3, %v7001_v35, %v6949_v40 }
 0x7da   : > { %7024 = vst.msk [vmem:[%s10967_s19] sm:$0xff] %vm7023_vm5, %v7015_v61 }
 0x7dc   : > { %v6913_v12 = vpop.permute.xlu0 %6912  ;;  %v6981_v43 = vpop.permute.xlu1 %6980 }
 0x7dd   : > { %v7018_v20 = vsel %vm7014_vm4, %v7009_v39, %v6981_v43  ;;  %v6999_v53 = vsel %vm4299_vm1, %v6490_v30, %v6913_v12 }
 0x7de   : > { %7027 = vst.msk [vmem:[%s10967_s19 + $0x18] sm:$0xff] %vm7023_vm5, %v7018_v20 }
 0x7e0   : > { %v6923_v57 = vpop.permute.xlu0 %6922  ;;  %v6945_v48 = vpop.permute.xlu1 %6944 }
 0x7e1   : > { %v7007_v52 = vsel %vm5133_vm3, %v6999_v53, %v6945_v48  ;;  %v7004_v26 = vsel %vm4299_vm1, %v6830_v60, %v6923_v57 }
 0x7e4   : > { %v6955_v11 = vpop.permute.xlu0 %6954  ;;  %v6977_v6 = vpop.permute.xlu1 %6976 }
 0x7e5   : > { %v7016_v27 = vsel %vm7014_vm4, %v7007_v52, %v6977_v6  ;;  %v7012_v3 = vsel %vm5133_vm3, %v7004_v26, %v6955_v11 }
 0x7e6   : > { %7025 = vst.msk [vmem:[%s10967_s19 + $0x8] sm:$0xff] %vm7023_vm5, %v7016_v27 }
 0x7e8   : > { %v6919_v23 = vpop.permute.xlu0 %6918  ;;  %v6925_v45 = vpop.permute.xlu1 %6924 }
 0x7e9   : > { %v7002_v22 = vsel %vm4299_vm1, %v6694_v42, %v6919_v23  ;;  %v7005_v36 = vsel %vm4299_vm1, %v6898_v38, %v6925_v45 }
 0x7ec   : > { %v6951_v1 = vpop.permute.xlu0 %6950  ;;  %v6957_v47 = vpop.permute.xlu1 %6956 }
 0x7ed   : > { %v7010_v56 = vsel %vm5133_vm3, %v7002_v22, %v6951_v1  ;;  %v7013_v29 = vsel %vm5133_vm3, %v7005_v36, %v6957_v47 }
 0x7f0   : > { %v6983_v2 = vpop.permute.xlu0 %6982  ;;  %v6921_v54 = vpop.permute.xlu1 %6920 }
 0x7f1   : > { %v7019_v41 = vsel %vm7014_vm4, %v7010_v56, %v6983_v2  ;;  %v7003_v55 = vsel %vm4299_vm1, %v6762_v15, %v6921_v54 }
 0x7f2   : > { %7028 = vst.msk [vmem:[%s10967_s19 + $0x20] sm:$0xff] %vm7023_vm5, %v7019_v41 }
 0x7f4   : > { %v6987_v34 = vpop.permute.xlu0 %6986  ;;  %v6953_v16 = vpop.permute.xlu1 %6952 }
 0x7f5   : > { %v7021_v44 = vsel %vm7014_vm4, %v7012_v3, %v6987_v34  ;;  %v7011_v49 = vsel %vm5133_vm3, %v7003_v55, %v6953_v16 }
 0x7f6   : > { %7030 = vst.msk [vmem:[%s10967_s19 + $0x30] sm:$0xff] %vm7023_vm5, %v7021_v44 }
 0x7f8   : > { %v6985_v31 = vpop.permute.xlu1 %6984 }
 0x7f9   : > { %v7020_v4 = vsel %vm7014_vm4, %v7011_v49, %v6985_v31 }
 0x7fa   : > { %7029 = vst.msk [vmem:[%s10967_s19 + $0x28] sm:$0xff] %vm7023_vm5, %v7020_v4 }
 0x7fc   : > { %v6989_v17 = vpop.permute.xlu1 %6988 }
 0x7fd   : > { %v7022_v14 = vsel %vm7014_vm4, %v7013_v29, %v6989_v17 }
 0x7fe   : > { %7031 = vst.msk [vmem:[%s10967_s19 + $0x38] sm:$0xff] %vm7023_vm5, %v7022_v14 }
 0x7ff   : > { %8064 = shalt.err (!%p8061_p0)
}
 0x800   : > { %s8065_s20 = scalar_lea.hbm %s11019_s23, 1024  ;;  %s8069_s26 = scalar_lea.hbm %s11160_s13, 2048 }
 0x801   : > { %p8066_p12 = scmp.ne.s32.totalorder %s11019_s23, %s8065_s20  ;;  %p8070_p6 = scmp.lt.u32.totalorder %s11019_s23, %s11160_s13 }
 0x802   : > { %p8071_p2 = scmp.lt.u32.totalorder %s8069_s26, %s8065_s20  ;;  %p8073_p10 = scmp.lt.u32.totalorder %s8065_s20, %s11019_s23 }
 0x803   : > { %p8067_p3 = pnand %p8066_p12, %p11161_p1 }
 0x804   : > { %p8072_p8 = por %p8071_p2, %p8070_p6 }
 0x805   : > { %p8068_p9 = pneg %p8067_p3 }
 0x806   : > { %p8074_p5 = por %p8073_p10, %p8072_p8 }
 0x808   : > { %p8075_p11 = pnand %p8074_p5, %p8068_p9 }
 0x80a   : > { %8078 = shalt.err (!%p8075_p11)
}
 0x80b   : > { %s8154_s14 = smov 128  }
 0x80c   : > { %7623 = dma.vmem_to_hbm [thread:$0]  (%p11161_p1), %s11009_s1, 1024, %s11019_s23, %s7033_s25, %s8154_s14, %s8154_s14, %s8151_s7  }
 0x80d PF: > { %s11162_s16 = sld [smem:[#allocation20_spill]]  ;;  %s11163_s15 = sld [smem:[#allocation24_spill]] }
 0x80e   : > { %p11165_p13 = scmp.ge.s32.totalorder %s8133_s24, 2 }
 0x813   : > { %s7061_s12 = sand.u32 1, %s11162_s16   ;;  %p11164_p4 = scmp.ne.s32.totalorder %s11163_s15, 0 }
 0x814   : > { %s7062_s19 = scalar_lea.sflag [#allocation4], %s7061_s12 }
 0x815   : > { %p7646_p7 = pnand %p11165_p13, %p11164_p4 }
 0x817   : > { %8116 = dma.done.wait (!%p7646_p7), %s7062_s19, 1024  }
 0x818   : > { %8118 = vsyncadd (!%p7646_p7), %s7062_s19, 4294966272  ;;  %s11166_s24 = sld [smem:[#allocation22_spill]]  ;;  %s11167_s9 = sld [smem:[#allocation21_spill]] }
 0x819   : > { %s11168_s23 = sld [smem:[#allocation23_spill]]  ;;  %s11169_s21 = smov %s8125_s22 }
 0x81e   : > { %p26_p0 = scmp.ge.s32.totalorder %s11166_s24, 4   ;;  %s11170_s22 = smov %s11167_s9 }
 0x820   :  { %28 = sbr.rel (!%p26_p0) target bundleno = 14 (0xe), region = 134 }
 0x827   :  { %7067 = vsyncpa [#allocation3], 1 }
 0x828   :  { %7069 = vsyncpa [#allocation3 + $0x1], 1 }
 0x829   :  { %7070 = vsyncpa [#allocation6], 1 }
 0x82a   :  { %7072 = vsyncpa [#allocation6 + $0x1], 1 }
 0x82b   :  { %7073 = vsyncpa [#allocation9], 1 }
 0x82c   :  { %7075 = vsyncpa [#allocation9 + $0x1], 1 }
 0x82d   :  { %7076 = vsyncpa [#allocation12], 1 }
 0x82e   :  { %7077 = vsyncpa [#allocation4], 1 }
 0x82f   :  { %7079 = vsyncpa [#allocation4 + $0x1], 1 }

</bundles_post_ra>
